<compile_context>
chip_gen: v7x
topology: tpu7x:2x2x1
jax: 0.10.0
libtpu: 0.0.40
codegen_flags: <defaults>
</compile_context>

<pallas_src>
import functools

import jax
import jax.numpy as jnp
from jax import lax
from jax.experimental import pallas as pl
from jax.experimental.pallas import tpu as pltpu

F32 = jnp.float32
BF16 = jnp.bfloat16


# ----------------------------------------------------------------------------
# small helpers
# ----------------------------------------------------------------------------
def _round_up(x, m):
    return (x + m - 1) // m * m


def _row(v):
    return v.reshape(1, -1).astype(F32)


def _cparams(n_parallel_axes):
    cp_cls = getattr(pltpu, "CompilerParams", None)
    if cp_cls is None:                       # fallback for older JAX releases
        cp_cls = getattr(pltpu, "TPUCompilerParams")
    # TODO(synk): production -- also set vmem_limit_bytes (<=48 MiB on v7x,
    # 64-96 MiB on v6e) once tiles are re-sized for long sequences.
    return cp_cls(dimension_semantics=("parallel",) * n_parallel_axes)


def _pick_row_tiling(M, row_tile):
    Mp = _round_up(max(M, 8), 8)
    tm = min(Mp, row_tile)
    Mp = _round_up(Mp, tm)
    return Mp, tm


def _pad_rows(x2d, Mp):
    M = x2d.shape[0]
    if Mp == M:
        return x2d
    return jnp.pad(x2d, ((0, Mp - M), (0, 0)))


# ----------------------------------------------------------------------------
# Pallas kernels
# ----------------------------------------------------------------------------
def _linear_kernel(x_ref, w_ref, b_ref, o_ref, *, activation):
    """Y = act(X @ W + b); bf16 operands, f32 accumulation."""
    acc = jnp.dot(x_ref[...].astype(BF16), w_ref[...],
                  preferred_element_type=F32) + b_ref[...]
    if activation == "tanh":
        acc = jnp.tanh(acc)
    o_ref[...] = acc.astype(o_ref.dtype)


def _linear_mask_kernel(x_ref, w_ref, b_ref, m_ref, o_ref, *, activation):
    """Y = act(X @ W + b) * row_mask (output-masking fused into the epilogue)."""
    acc = jnp.dot(x_ref[...].astype(BF16), w_ref[...],
                  preferred_element_type=F32) + b_ref[...]
    if activation == "tanh":
        acc = jnp.tanh(acc)
    o_ref[...] = (acc * m_ref[...]).astype(o_ref.dtype)


def _ffn_kernel(x_ref, g1_ref, b1_ref, w1_ref, bb1_ref, w2_ref, bb2_ref,
                g2_ref, b2_ref, o_ref, *, final_ln):
    """out = [LN2]( x + 0.5 * (SiLU(LN1(x) @ W1 + b1) @ W2 + b2) )."""
    x = x_ref[...].astype(F32)                         # residual & LN input
    mu = jnp.mean(x, axis=-1, keepdims=True)
    xc = x - mu
    var = jnp.mean(xc * xc, axis=-1, keepdims=True)
    y = xc * lax.rsqrt(var + 1e-5) * g1_ref[...] + b1_ref[...]
    h = jnp.dot(y.astype(BF16), w1_ref[...], preferred_element_type=F32)
    h = h + bb1_ref[...]
    h = h * jax.nn.sigmoid(h)                          # SiLU (f32, VPU/EUP)
    z = jnp.dot(h.astype(BF16), w2_ref[...], preferred_element_type=F32)
    z = z + bb2_ref[...]
    out = x + 0.5 * z
    if final_ln:                                       # fused final LayerNorm
        mu2 = jnp.mean(out, axis=-1, keepdims=True)
        oc = out - mu2
        var2 = jnp.mean(oc * oc, axis=-1, keepdims=True)
        out = oc * lax.rsqrt(var2 + 1e-5) * g2_ref[...] + b2_ref[...]
    o_ref[...] = out.astype(o_ref.dtype)


def _mhsa_kernel(x_ref, m_ref, g_ref, b_ref, wqkv_ref, bqkv_ref, wo_ref, bo_ref,
                 o_ref, *, num_heads, dh, scale):
    """Fused LN + QKV + masked multi-head attention + out-proj + residual."""
    x = x_ref[0].astype(F32)                           # (T, D)
    mask = m_ref[0]                                    # (1, T) key validity
    mu = jnp.mean(x, axis=-1, keepdims=True)
    xc = x - mu
    var = jnp.mean(xc * xc, axis=-1, keepdims=True)
    y = xc * lax.rsqrt(var + 1e-5) * g_ref[...] + b_ref[...]
    qkv = jnp.dot(y.astype(BF16), wqkv_ref[...],
                  preferred_element_type=F32) + bqkv_ref[...]     # (T, 3D)
    D = num_heads * dh
    acc = jnp.zeros_like(x)                            # (T, D) f32 out-proj acc
    for hd in range(num_heads):                        # static head loop
        q = qkv[:, hd * dh:(hd + 1) * dh] * scale
        k = qkv[:, D + hd * dh:D + (hd + 1) * dh]
        v = qkv[:, 2 * D + hd * dh:2 * D + (hd + 1) * dh]
        s = lax.dot_general(q.astype(BF16), k.astype(BF16),
                            (((1,), (1,)), ((), ())),
                            preferred_element_type=F32)           # (T, T)
        s = jnp.where(mask > 0, s, -1e30)              # key_padding_mask
        s = s - jnp.max(s, axis=-1, keepdims=True)
        p = jnp.exp(s)
        p = p * pl.reciprocal(jnp.sum(p, axis=-1, keepdims=True), approx=True)
        oh = jnp.dot(p.astype(BF16), v.astype(BF16),
                     preferred_element_type=F32)                  # (T, dh)
        # out-proj accumulated per head: concat(heads) @ Wout == sum_h oh @ Wout[h]
        acc = acc + jnp.dot(oh.astype(BF16), wo_ref[hd * dh:(hd + 1) * dh, :],
                            preferred_element_type=F32)
    # TODO(synk): for long sequences switch to a flash-style tiled kernel
    # (grid over q/k tiles, online-softmax scratch) to bound VMEM.
    o_ref[0] = (acc + bo_ref[...] + x).astype(o_ref.dtype)


def _convmod_kernel(x_ref, g_ref, b_ref, wa_ref, ba_ref, wb_ref, bb_ref,
                    dw_ref, sh_ref, w2_ref, b2_ref, o_ref, *, T, K):
    """Fused LN + pointwise GLU + depthwise conv (BN folded) + SiLU + pointwise
    + residual, for one batch element."""
    x = x_ref[0].astype(F32)                           # (T, D)
    mu = jnp.mean(x, axis=-1, keepdims=True)
    xc = x - mu
    var = jnp.mean(xc * xc, axis=-1, keepdims=True)
    y = xc * lax.rsqrt(var + 1e-5) * g_ref[...] + b_ref[...]
    yb = y.astype(BF16)
    val = jnp.dot(yb, wa_ref[...], preferred_element_type=F32) + ba_ref[...]
    gate = jnp.dot(yb, wb_ref[...], preferred_element_type=F32) + bb_ref[...]
    u = val * jax.nn.sigmoid(gate)                     # GLU, (T, D)
    # depthwise conv, 'same' zero padding; BN scale pre-folded into dw taps.
    D = u.shape[-1]
    pad_l = (K - 1) // 2
    pad_r = K - 1 - pad_l
    up = jnp.concatenate([jnp.zeros((pad_l, D), F32), u,
                          jnp.zeros((pad_r, D), F32)], axis=0)
    w = dw_ref[...]                                    # (K, D), BN-scaled, f32
    acc = jnp.zeros((T, D), F32)
    for k in range(K):                                 # static tap loop (VPU)
        acc = acc + up[k:k + T, :] * w[k:k + 1, :]
    acc = acc + sh_ref[...]                            # folded conv-bias + BN shift
    acc = acc * jax.nn.sigmoid(acc)                    # SiLU
    z = jnp.dot(acc.astype(BF16), w2_ref[...],
                preferred_element_type=F32) + b2_ref[...]
    o_ref[0] = (x + z).astype(o_ref.dtype)


def _bilstm_kernel(gx_ref, whf_ref, whb_ref, of_ref, ob_ref,
                   hf, cf, hb, cb, *, T, H):
    """Fused forward+backward LSTM recurrence.
    gx: (T, B, 8H) precomputed input gates; [:, :, :4H] fwd, [:, :, 4H:] bwd."""
    hf[...] = jnp.zeros_like(hf)
    cf[...] = jnp.zeros_like(cf)
    hb[...] = jnp.zeros_like(hb)
    cb[...] = jnp.zeros_like(cb)

    def cell(g, c):
        i = jax.nn.sigmoid(g[:, 0:H])
        f = jax.nn.sigmoid(g[:, H:2 * H])
        gg = jnp.tanh(g[:, 2 * H:3 * H])
        o = jax.nn.sigmoid(g[:, 3 * H:4 * H])
        c_new = f * c + i * gg
        h_new = o * jnp.tanh(c_new)
        return h_new, c_new

    @pl.loop(0, T)
    def _(t):
        tb = T - 1 - t
        g_f_row = gx_ref[t].astype(F32)                # (B, 8H)
        g_b_row = gx_ref[tb].astype(F32)               # (B, 8H)
        gf = g_f_row[:, 0:4 * H] + jnp.dot(hf[...], whf_ref[...],
                                           preferred_element_type=F32)
        gb = g_b_row[:, 4 * H:8 * H] + jnp.dot(hb[...], whb_ref[...],
                                               preferred_element_type=F32)
        h_new, c_new = cell(gf, cf[...])
        hf[...] = h_new
        cf[...] = c_new
        of_ref[t] = h_new.astype(of_ref.dtype)
        h_new, c_new = cell(gb, cb[...])
        hb[...] = h_new
        cb[...] = c_new
        ob_ref[tb] = h_new.astype(ob_ref.dtype)
    # TODO(synk): for long T, stream gx in chunks (manual double-buffer) and
    # slab-buffer output timesteps in VMEM before storing.


# ----------------------------------------------------------------------------
# pallas_call wrappers
# ----------------------------------------------------------------------------
def linear_rows(x, w, b, *, activation="none", mask=None, row_tile=256):
    """Row-tiled linear: x (..., K) -> (..., N). Weights resident per tile."""
    *lead, K = x.shape
    N = w.shape[1]
    M = 1
    for d in lead:
        M *= d
    x2 = x.reshape(M, K)
    Mp, tm = _pick_row_tiling(M, row_tile)
    x2 = _pad_rows(x2, Mp)
    wb = w.astype(BF16)
    b2 = _row(b)
    grid = (Mp // tm,)
    if mask is None:
        y = pl.pallas_call(
            functools.partial(_linear_kernel, activation=activation),
            out_shape=jax.ShapeDtypeStruct((Mp, N), F32),
            grid=grid,
            in_specs=[pl.BlockSpec((tm, K), lambda i: (i, 0)),
                      pl.BlockSpec((K, N), lambda i: (0, 0)),
                      pl.BlockSpec((1, N), lambda i: (0, 0))],
            out_specs=pl.BlockSpec((tm, N), lambda i: (i, 0)),
            compiler_params=_cparams(1),
        )(x2, wb, b2)
    else:
        m2 = _pad_rows(mask.reshape(M, 1).astype(F32), Mp)
        y = pl.pallas_call(
            functools.partial(_linear_mask_kernel, activation=activation),
            out_shape=jax.ShapeDtypeStruct((Mp, N), F32),
            grid=grid,
            in_specs=[pl.BlockSpec((tm, K), lambda i: (i, 0)),
                      pl.BlockSpec((K, N), lambda i: (0, 0)),
                      pl.BlockSpec((1, N), lambda i: (0, 0)),
                      pl.BlockSpec((tm, 1), lambda i: (i, 0))],
            out_specs=pl.BlockSpec((tm, N), lambda i: (i, 0)),
            compiler_params=_cparams(1),
        )(x2, wb, b2, m2)
    return y[:M].reshape(*lead, N)


def ffn_half(h, p, *, final_ln=False, final_g=None, final_b=None, row_tile=256):
    B, T, D = h.shape
    Fdim = p["w1"].shape[1]
    M = B * T
    Mp, tm = _pick_row_tiling(M, row_tile)
    x2 = _pad_rows(h.reshape(M, D), Mp)
    if final_g is None:
        final_g = jnp.ones((D,), F32)
        final_b = jnp.zeros((D,), F32)
    y = pl.pallas_call(
        functools.partial(_ffn_kernel, final_ln=final_ln),
        out_shape=jax.ShapeDtypeStruct((Mp, D), F32),
        grid=(Mp // tm,),
        in_specs=[pl.BlockSpec((tm, D), lambda i: (i, 0)),
                  pl.BlockSpec((1, D), lambda i: (0, 0)),
                  pl.BlockSpec((1, D), lambda i: (0, 0)),
                  pl.BlockSpec((D, Fdim), lambda i: (0, 0)),
                  pl.BlockSpec((1, Fdim), lambda i: (0, 0)),
                  pl.BlockSpec((Fdim, D), lambda i: (0, 0)),
                  pl.BlockSpec((1, D), lambda i: (0, 0)),
                  pl.BlockSpec((1, D), lambda i: (0, 0)),
                  pl.BlockSpec((1, D), lambda i: (0, 0))],
        out_specs=pl.BlockSpec((tm, D), lambda i: (i, 0)),
        compiler_params=_cparams(1),
    )(x2, _row(p["ln_g"]), _row(p["ln_b"]),
      p["w1"].astype(BF16), _row(p["b1"]),
      p["w2"].astype(BF16), _row(p["b2"]),
      _row(final_g), _row(final_b))
    return y[:M].reshape(B, T, D)


def mhsa_block(h, p, mask3, num_heads):
    B, T, D = h.shape
    dh = D // num_heads
    scale = 1.0 / float(dh) ** 0.5
    return pl.pallas_call(
        functools.partial(_mhsa_kernel, num_heads=num_heads, dh=dh, scale=scale),
        out_shape=jax.ShapeDtypeStruct((B, T, D), F32),
        grid=(B,),
        in_specs=[pl.BlockSpec((1, T, D), lambda b: (b, 0, 0)),
                  pl.BlockSpec((1, 1, T), lambda b: (b, 0, 0)),
                  pl.BlockSpec((1, D), lambda b: (0, 0)),
                  pl.BlockSpec((1, D), lambda b: (0, 0)),
                  pl.BlockSpec((D, 3 * D), lambda b: (0, 0)),
                  pl.BlockSpec((1, 3 * D), lambda b: (0, 0)),
                  pl.BlockSpec((D, D), lambda b: (0, 0)),
                  pl.BlockSpec((1, D), lambda b: (0, 0))],
        out_specs=pl.BlockSpec((1, T, D), lambda b: (b, 0, 0)),
        compiler_params=_cparams(1),
    )(h, mask3, _row(p["ln_g"]), _row(p["ln_b"]),
      p["w_qkv"].astype(BF16), _row(p["b_qkv"]),
      p["w_out"].astype(BF16), _row(p["b_out"]))


def conv_block(h, p):
    B, T, D = h.shape
    K = p["dw_w"].shape[0]
    # Fold eval-mode BatchNorm and depthwise-conv bias host-side.
    scale = p["bn_g"] * lax.rsqrt(p["bn_rv"] + 1e-5)
    dw_scaled = (p["dw_w"] * scale[None, :]).astype(F32)
    shift = (p["dw_b"] - p["bn_rm"]) * scale + p["bn_b"]
    # Lane-aligned GLU: split pointwise-1 weights into value / gate halves.
    wa, wb = p["pw1_w"][:, :D], p["pw1_w"][:, D:]
    ba, bb = p["pw1_b"][:D], p["pw1_b"][D:]
    return pl.pallas_call(
        functools.partial(_convmod_kernel, T=T, K=K),
        out_shape=jax.ShapeDtypeStruct((B, T, D), F32),
        grid=(B,),
        in_specs=[pl.BlockSpec((1, T, D), lambda b: (b, 0, 0)),
                  pl.BlockSpec((1, D), lambda b: (0, 0)),
                  pl.BlockSpec((1, D), lambda b: (0, 0)),
                  pl.BlockSpec((D, D), lambda b: (0, 0)),
                  pl.BlockSpec((1, D), lambda b: (0, 0)),
                  pl.BlockSpec((D, D), lambda b: (0, 0)),
                  pl.BlockSpec((1, D), lambda b: (0, 0)),
                  pl.BlockSpec((K, D), lambda b: (0, 0)),
                  pl.BlockSpec((1, D), lambda b: (0, 0)),
                  pl.BlockSpec((D, D), lambda b: (0, 0)),
                  pl.BlockSpec((1, D), lambda b: (0, 0))],
        out_specs=pl.BlockSpec((1, T, D), lambda b: (b, 0, 0)),
        compiler_params=_cparams(1),
    )(h, _row(p["ln_g"]), _row(p["ln_b"]),
      wa.astype(BF16), _row(ba), wb.astype(BF16), _row(bb),
      dw_scaled, _row(shift), p["pw2_w"].astype(BF16), _row(p["pw2_b"]))


def bilstm(h, p):
    """Bidirectional LSTM. Matches torch.nn.LSTM on the (unpacked) padded batch."""
    B, T, D = h.shape
    H = D
    # One bf16 matmul produces input gates of BOTH directions.
    w_ih_cat = jnp.concatenate([p["fwd"]["w_ih"], p["bwd"]["w_ih"]], axis=1)
    b_cat = jnp.concatenate([p["fwd"]["b"], p["bwd"]["b"]], axis=0)
    gx = linear_rows(h, w_ih_cat, b_cat)               # (B, T, 8H)
    gx = gx.transpose(1, 0, 2)                         # (T, B, 8H) time-major
    out_f, out_b = pl.pallas_call(
        functools.partial(_bilstm_kernel, T=T, H=H),
        out_shape=(jax.ShapeDtypeStruct((T, B, H), F32),
                   jax.ShapeDtypeStruct((T, B, H), F32)),
        scratch_shapes=[pltpu.VMEM((B, H), F32),
                        pltpu.VMEM((B, H), F32),
                        pltpu.VMEM((B, H), F32),
                        pltpu.VMEM((B, H), F32)],
    )(gx, p["fwd"]["w_hh"].astype(F32), p["bwd"]["w_hh"].astype(F32))
    return jnp.concatenate([out_f.transpose(1, 0, 2),
                            out_b.transpose(1, 0, 2)], axis=-1)


# ----------------------------------------------------------------------------
# Conformer encoder forward
# ----------------------------------------------------------------------------
def conformer_layer(h, p, mask3, num_heads):
    h = ffn_half(h, p["ffn1"])                                     # FFN * 0.5 + res
    h = mhsa_block(h, p["attn"], mask3, num_heads)                 # MHSA + res
    h = conv_block(h, p["conv"])                                   # ConvModule + res
    h = ffn_half(h, p["ffn2"], final_ln=True,                      # FFN * 0.5 + res + LN
                 final_g=p["final_ln_g"], final_b=p["final_ln_b"])
    return h


@functools.partial(jax.jit, static_argnames=("num_heads", "use_rnn", "use_tanh"))
def _forward_impl(params, x, x_len, *, num_heads, use_rnn, use_tanh):
    """x: (B, C_in, T) already truncated to T = max(x_len); T is static here."""
    B, _, T = x.shape
    mask = (jnp.arange(T)[None, :] < x_len[:, None]).astype(F32)   # (B, T)
    mask3 = mask.reshape(B, 1, T)

    # input projection (Conv1d k=1) -> (B, T, D)
    h = linear_rows(x.transpose(0, 2, 1),
                    params["in_proj"]["w"], params["in_proj"]["b"])

    # conformer block  # TODO(synk): lax.scan over stacked layer params for deep encoders
    for lp in params["layers"]:
        h = conformer_layer(h, lp, mask3, num_heads)

    # bidirectional LSTM
    if use_rnn:
        h = bilstm(h, params["lstm"])                              # (B, T, 2D)

    # output Conv1d(k=1) + tanh + length mask (all fused in the linear epilogue)
    out = linear_rows(h, params["out_proj"]["w"], params["out_proj"]["b"],
                      activation="tanh" if use_tanh else "none",
                      mask=mask[:, :, None])
    return out.transpose(0, 2, 1), x_len                           # (B, C_out, T)


def conformer_encoder_forward(params, x, x_len, *, num_heads,
                              use_rnn=True, use_tanh=True):
    # Host-side truncation (PyTorch: x = x[..., :x_len.max()]).
    # TODO(synk): production -- bucket/pad T to avoid recompiles per max length.
    T = int(x_len.max())
    return _forward_impl(params, x[:, :, :T], x_len, num_heads=num_heads,
                         use_rnn=use_rnn, use_tanh=use_tanh)


# ----------------------------------------------------------------------------
# Deterministic parameter initialization (mirrors the module's shapes)
# ----------------------------------------------------------------------------
class _KeyGen:
    def __init__(self, key):
        self.key = key

    def __call__(self):
        self.key, sub = jax.random.split(self.key)
        return sub


def init_params(key, in_channels, hidden, out_channels, num_layers, num_heads,
                dconv_k):
    D, Fdim = hidden, 4 * hidden
    kg = _KeyGen(key)
    w = lambda shape: 0.01 * jax.random.normal(kg(), shape, F32)
    zeros = lambda shape: jnp.zeros(shape, F32)
    ones = lambda shape: jnp.ones(shape, F32)

    def ffn_p():
        return {"ln_g": ones((D,)), "ln_b": zeros((D,)),
                "w1": w((D, Fdim)), "b1": zeros((Fdim,)),
                "w2": w((Fdim, D)), "b2": zeros((D,))}

    params = {
        "in_proj": {"w": w((in_channels, D)), "b": zeros((D,))},
        "layers": [],
        "lstm": {
            "fwd": {"w_ih": w((D, 4 * D)), "w_hh": w((D, 4 * D)), "b": zeros((4 * D,))},
            "bwd": {"w_ih": w((D, 4 * D)), "w_hh": w((D, 4 * D)), "b": zeros((4 * D,))},
        },
        "out_proj": {"w": w((2 * D, out_channels)), "b": zeros((out_channels,))},
    }
    for _ in range(num_layers):
        params["layers"].append({
            "ffn1": ffn_p(),
            "attn": {"ln_g": ones((D,)), "ln_b": zeros((D,)),
                     "w_qkv": w((D, 3 * D)), "b_qkv": zeros((3 * D,)),
                     "w_out": w((D, D)), "b_out": zeros((D,))},
            "conv": {"ln_g": ones((D,)), "ln_b": zeros((D,)),
                     "pw1_w": w((D, 2 * D)), "pw1_b": zeros((2 * D,)),
                     "dw_w": w((dconv_k, D)), "dw_b": zeros((D,)),
                     "bn_g": ones((D,)), "bn_b": zeros((D,)),
                     "bn_rm": zeros((D,)), "bn_rv": ones((D,)),
                     "pw2_w": w((D, D)), "pw2_b": zeros((D,))},
            "ffn2": ffn_p(),
            "final_ln_g": ones((D,)), "final_ln_b": zeros((D,)),
        })
    return params


# ----------------------------------------------------------------------------
if __name__ == "__main__":
    # Small, lane-friendly shapes consistent with the module:
    # in_channels=64, hidden=128 (so dh=32, all activation last-dims lane
    # aligned), out_channels=8, num_layers=2, num_heads=4, depthwise K=31.
    B, C_in, T_full = 2, 64, 24
    hidden, out_ch, num_layers, num_heads, dconv_k = 128, 8, 2, 4, 31

    key = jax.random.PRNGKey(0)
    kx, kp = jax.random.split(key)
    x = jax.random.normal(kx, (B, C_in, T_full), F32)
    x_len = jnp.array([24, 17], jnp.int32)

    params = init_params(kp, C_in, hidden, out_ch, num_layers, num_heads, dconv_k)

    y, y_len = conformer_encoder_forward(params, x, x_len, num_heads=num_heads,
                                         use_rnn=True, use_tanh=True)
    y = jax.block_until_ready(y)

    assert y.shape == (B, out_ch, int(x_len.max()))
    assert bool(jnp.isfinite(y).all())
    assert bool((y[1, :, int(x_len[1]):] == 0).all())   # padded frames masked
    print("KERNEL_OK")
</pallas_src>

<mosaic_0001>
module attributes {stable_mosaic.version = 11 : i64} {
  func.func @_linear_kernel(%arg0: i32, %arg1: memref<48x64xf32, #tpu.memory_space<vmem>>, %arg2: memref<64x128xbf16, #tpu.memory_space<vmem>>, %arg3: memref<1x128xf32, #tpu.memory_space<vmem>>, %arg4: memref<48x128xf32, #tpu.memory_space<vmem>>) attributes {dimension_semantics = [#tpu.dimension_semantics<parallel>], iteration_bounds = array<i64: 1>, scalar_prefetch = 0 : i64, scratch_operands = 0 : i64, tpu.core_type = #tpu.core_type<tc>, window_params = [{transform_indices = @transform_0, window_bounds = array<i64: 48, 64>}, {pipeline_mode = #tpu.pipeline_mode<synchronous>, transform_indices = @transform_1, window_bounds = array<i64: 64, 128>}, {pipeline_mode = #tpu.pipeline_mode<synchronous>, transform_indices = @transform_2, window_bounds = array<i64: 1, 128>}, {transform_indices = @transform_3, window_bounds = array<i64: 48, 128>}]} {
    %c0 = arith.constant 0 : index
    %c0_0 = arith.constant 0 : index
    %0 = vector.load %arg1[%c0, %c0_0] : memref<48x64xf32, #tpu.memory_space<vmem>>, vector<48x64xf32>
    %1 = arith.truncf %0 : vector<48x64xf32> to vector<48x64xbf16>
    %c0_1 = arith.constant 0 : index
    %c0_2 = arith.constant 0 : index
    %2 = vector.load %arg2[%c0_1, %c0_2] : memref<64x128xbf16, #tpu.memory_space<vmem>>, vector<64x128xbf16>
    %cst = arith.constant dense<0.000000e+00> : vector<48x128xf32>
    %3 = tpu.matmul %1, %2, %cst {dimension_numbers = #tpu.dot_dimension_numbers<[1], [0], [0], [1], [0, 0, 1, 1], [], []>} : vector<48x64xbf16>, vector<64x128xbf16>, vector<48x128xf32> -> vector<48x128xf32>
    %c0_3 = arith.constant 0 : index
    %c0_4 = arith.constant 0 : index
    %4 = vector.load %arg3[%c0_3, %c0_4] : memref<1x128xf32, #tpu.memory_space<vmem>>, vector<1x128xf32>
    %5 = vector.broadcast %4 : vector<1x128xf32> to vector<48x128xf32>
    %6 = arith.addf %3, %5 : vector<48x128xf32>
    %c0_5 = arith.constant 0 : index
    %c0_6 = arith.constant 0 : index
    %7 = vector.load %arg4[%c0_5, %c0_6] : memref<48x128xf32, #tpu.memory_space<vmem>>, vector<48x128xf32>
    tpu.vector_store %arg4[%c0_5, %c0_6], %6 {strides = array<i32>} : memref<48x128xf32, #tpu.memory_space<vmem>>, vector<48x128xf32>,
    return
  }
  func.func @transform_0(%arg0: i32) -> (i32, i32) {
    %c0_i32 = arith.constant 0 : i32
    %c0_i32_0 = arith.constant 0 : i32
    return %arg0, %c0_i32 : i32, i32
  }
  func.func @transform_1(%arg0: i32) -> (i32, i32) {
    %c0_i32 = arith.constant 0 : i32
    %c0_i32_0 = arith.constant 0 : i32
    %c0_i32_1 = arith.constant 0 : i32
    return %c0_i32, %c0_i32_0 : i32, i32
  }
  func.func @transform_2(%arg0: i32) -> (i32, i32) {
    %c0_i32 = arith.constant 0 : i32
    %c0_i32_0 = arith.constant 0 : i32
    %c0_i32_1 = arith.constant 0 : i32
    return %c0_i32, %c0_i32_0 : i32, i32
  }
  func.func @transform_3(%arg0: i32) -> (i32, i32) {
    %c0_i32 = arith.constant 0 : i32
    %c0_i32_0 = arith.constant 0 : i32
    return %arg0, %c0_i32 : i32, i32
  }
}

module attributes {stable_mosaic.version = 11 : i64} {
  func.func @_ffn_kernel(%arg0: i32, %arg1: memref<48x128xf32, #tpu.memory_space<vmem>>, %arg2: memref<1x128xf32, #tpu.memory_space<vmem>>, %arg3: memref<1x128xf32, #tpu.memory_space<vmem>>, %arg4: memref<128x512xbf16, #tpu.memory_space<vmem>>, %arg5: memref<1x512xf32, #tpu.memory_space<vmem>>, %arg6: memref<512x128xbf16, #tpu.memory_space<vmem>>, %arg7: memref<1x128xf32, #tpu.memory_space<vmem>>, %arg8: memref<1x128xf32, #tpu.memory_space<vmem>>, %arg9: memref<1x128xf32, #tpu.memory_space<vmem>>, %arg10: memref<48x128xf32, #tpu.memory_space<vmem>>) attributes {dimension_semantics = [#tpu.dimension_semantics<parallel>], iteration_bounds = array<i64: 1>, scalar_prefetch = 0 : i64, scratch_operands = 0 : i64, tpu.core_type = #tpu.core_type<tc>, window_params = [{transform_indices = @transform_0, window_bounds = array<i64: 48, 128>}, {pipeline_mode = #tpu.pipeline_mode<synchronous>, transform_indices = @transform_1, window_bounds = array<i64: 1, 128>}, {pipeline_mode = #tpu.pipeline_mode<synchronous>, transform_indices = @transform_2, window_bounds = array<i64: 1, 128>}, {pipeline_mode = #tpu.pipeline_mode<synchronous>, transform_indices = @transform_3, window_bounds = array<i64: 128, 512>}, {pipeline_mode = #tpu.pipeline_mode<synchronous>, transform_indices = @transform_4, window_bounds = array<i64: 1, 512>}, {pipeline_mode = #tpu.pipeline_mode<synchronous>, transform_indices = @transform_5, window_bounds = array<i64: 512, 128>}, {pipeline_mode = #tpu.pipeline_mode<synchronous>, transform_indices = @transform_6, window_bounds = array<i64: 1, 128>}, {pipeline_mode = #tpu.pipeline_mode<synchronous>, transform_indices = @transform_7, window_bounds = array<i64: 1, 128>}, {pipeline_mode = #tpu.pipeline_mode<synchronous>, transform_indices = @transform_8, window_bounds = array<i64: 1, 128>}, {transform_indices = @transform_9, window_bounds = array<i64: 48, 128>}]} {
    %c0 = arith.constant 0 : index
    %c0_0 = arith.constant 0 : index
    %0 = vector.load %arg1[%c0, %c0_0] : memref<48x128xf32, #tpu.memory_space<vmem>>, vector<48x128xf32>
    %cst = arith.constant dense<0.000000e+00> : vector<48xf32>
    %1 = vector.multi_reduction <add>, %0, %cst [1] : vector<48x128xf32> to vector<48xf32>
    %2 = vector.shape_cast %1 : vector<48xf32> to vector<48x1xf32>
    %cst_1 = arith.constant 1.280000e+02 : f32
    %3 = vector.broadcast %cst_1 : f32 to vector<48x1xf32>
    %4 = arith.divf %2, %3 : vector<48x1xf32>
    %5 = vector.broadcast %4 : vector<48x1xf32> to vector<48x128xf32>
    %6 = arith.subf %0, %5 : vector<48x128xf32>
    %7 = arith.mulf %6, %6 : vector<48x128xf32>
    %cst_2 = arith.constant dense<0.000000e+00> : vector<48xf32>
    %8 = vector.multi_reduction <add>, %7, %cst_2 [1] : vector<48x128xf32> to vector<48xf32>
    %9 = vector.shape_cast %8 : vector<48xf32> to vector<48x1xf32>
    %cst_3 = arith.constant 1.280000e+02 : f32
    %10 = vector.broadcast %cst_3 : f32 to vector<48x1xf32>
    %11 = arith.divf %9, %10 : vector<48x1xf32>
    %cst_4 = arith.constant 9.99999974E-6 : f32
    %12 = vector.broadcast %cst_4 : f32 to vector<48x1xf32>
    %13 = arith.addf %11, %12 : vector<48x1xf32>
    %14 = math.rsqrt %13 : vector<48x1xf32>
    %15 = vector.broadcast %14 : vector<48x1xf32> to vector<48x128xf32>
    %16 = arith.mulf %6, %15 : vector<48x128xf32>
    %c0_5 = arith.constant 0 : index
    %c0_6 = arith.constant 0 : index
    %17 = vector.load %arg2[%c0_5, %c0_6] : memref<1x128xf32, #tpu.memory_space<vmem>>, vector<1x128xf32>
    %18 = vector.broadcast %17 : vector<1x128xf32> to vector<48x128xf32>
    %19 = arith.mulf %16, %18 : vector<48x128xf32>
    %c0_7 = arith.constant 0 : index
    %c0_8 = arith.constant 0 : index
    %20 = vector.load %arg3[%c0_7, %c0_8] : memref<1x128xf32, #tpu.memory_space<vmem>>, vector<1x128xf32>
    %21 = vector.broadcast %20 : vector<1x128xf32> to vector<48x128xf32>
    %22 = arith.addf %19, %21 : vector<48x128xf32>
    %23 = arith.truncf %22 : vector<48x128xf32> to vector<48x128xbf16>
    %c0_9 = arith.constant 0 : index
    %c0_10 = arith.constant 0 : index
    %24 = vector.load %arg4[%c0_9, %c0_10] : memref<128x512xbf16, #tpu.memory_space<vmem>>, vector<128x512xbf16>
    %cst_11 = arith.constant dense<0.000000e+00> : vector<48x512xf32>
    %25 = tpu.matmul %23, %24, %cst_11 {dimension_numbers = #tpu.dot_dimension_numbers<[1], [0], [0], [1], [0, 0, 1, 1], [], []>} : vector<48x128xbf16>, vector<128x512xbf16>, vector<48x512xf32> -> vector<48x512xf32>
    %c0_12 = arith.constant 0 : index
    %c0_13 = arith.constant 0 : index
    %26 = vector.load %arg5[%c0_12, %c0_13] : memref<1x512xf32, #tpu.memory_space<vmem>>, vector<1x512xf32>
    %27 = vector.broadcast %26 : vector<1x512xf32> to vector<48x512xf32>
    %28 = arith.addf %25, %27 : vector<48x512xf32>
    %29 = arith.negf %28 : vector<48x512xf32>
    %30 = math.exp %29 : vector<48x512xf32>
    %cst_14 = arith.constant 1.000000e+00 : f32
    %31 = vector.broadcast %cst_14 : f32 to vector<48x512xf32>
    %32 = arith.addf %31, %30 : vector<48x512xf32>
    %33 = arith.divf %31, %32 : vector<48x512xf32>
    %34 = arith.mulf %28, %33 : vector<48x512xf32>
    %35 = arith.truncf %34 : vector<48x512xf32> to vector<48x512xbf16>
    %c0_15 = arith.constant 0 : index
    %c0_16 = arith.constant 0 : index
    %36 = vector.load %arg6[%c0_15, %c0_16] : memref<512x128xbf16, #tpu.memory_space<vmem>>, vector<512x128xbf16>
    %cst_17 = arith.constant dense<0.000000e+00> : vector<48x128xf32>
    %37 = tpu.matmul %35, %36, %cst_17 {dimension_numbers = #tpu.dot_dimension_numbers<[1], [0], [0], [1], [0, 0, 1, 1], [], []>} : vector<48x512xbf16>, vector<512x128xbf16>, vector<48x128xf32> -> vector<48x128xf32>
    %c0_18 = arith.constant 0 : index
    %c0_19 = arith.constant 0 : index
    %38 = vector.load %arg7[%c0_18, %c0_19] : memref<1x128xf32, #tpu.memory_space<vmem>>, vector<1x128xf32>
    %39 = vector.broadcast %38 : vector<1x128xf32> to vector<48x128xf32>
    %40 = arith.addf %37, %39 : vector<48x128xf32>
    %cst_20 = arith.constant 5.000000e-01 : f32
    %41 = vector.broadcast %cst_20 : f32 to vector<48x128xf32>
    %42 = arith.mulf %41, %40 : vector<48x128xf32>
    %43 = arith.addf %0, %42 : vector<48x128xf32>
    %c0_21 = arith.constant 0 : index
    %c0_22 = arith.constant 0 : index
    %44 = vector.load %arg10[%c0_21, %c0_22] : memref<48x128xf32, #tpu.memory_space<vmem>>, vector<48x128xf32>
    tpu.vector_store %arg10[%c0_21, %c0_22], %43 {strides = array<i32>} : memref<48x128xf32, #tpu.memory_space<vmem>>, vector<48x128xf32>,
    return
  }
  func.func @transform_0(%arg0: i32) -> (i32, i32) {
    %c0_i32 = arith.constant 0 : i32
    %c0_i32_0 = arith.constant 0 : i32
    return %arg0, %c0_i32 : i32, i32
  }
  func.func @transform_1(%arg0: i32) -> (i32, i32) {
    %c0_i32 = arith.constant 0 : i32
    %c0_i32_0 = arith.constant 0 : i32
    %c0_i32_1 = arith.constant 0 : i32
    return %c0_i32, %c0_i32_0 : i32, i32
  }
  func.func @transform_2(%arg0: i32) -> (i32, i32) {
    %c0_i32 = arith.constant 0 : i32
    %c0_i32_0 = arith.constant 0 : i32
    %c0_i32_1 = arith.constant 0 : i32
    return %c0_i32, %c0_i32_0 : i32, i32
  }
  func.func @transform_3(%arg0: i32) -> (i32, i32) {
    %c0_i32 = arith.constant 0 : i32
    %c0_i32_0 = arith.constant 0 : i32
    %c0_i32_1 = arith.constant 0 : i32
    return %c0_i32, %c0_i32_0 : i32, i32
  }
  func.func @transform_4(%arg0: i32) -> (i32, i32) {
    %c0_i32 = arith.constant 0 : i32
    %c0_i32_0 = arith.constant 0 : i32
    %c0_i32_1 = arith.constant 0 : i32
    return %c0_i32, %c0_i32_0 : i32, i32
  }
  func.func @transform_5(%arg0: i32) -> (i32, i32) {
    %c0_i32 = arith.constant 0 : i32
    %c0_i32_0 = arith.constant 0 : i32
    %c0_i32_1 = arith.constant 0 : i32
    return %c0_i32, %c0_i32_0 : i32, i32
  }
  func.func @transform_6(%arg0: i32) -> (i32, i32) {
    %c0_i32 = arith.constant 0 : i32
    %c0_i32_0 = arith.constant 0 : i32
    %c0_i32_1 = arith.constant 0 : i32
    return %c0_i32, %c0_i32_0 : i32, i32
  }
  func.func @transform_7(%arg0: i32) -> (i32, i32) {
    %c0_i32 = arith.constant 0 : i32
    %c0_i32_0 = arith.constant 0 : i32
    %c0_i32_1 = arith.constant 0 : i32
    return %c0_i32, %c0_i32_0 : i32, i32
  }
  func.func @transform_8(%arg0: i32) -> (i32, i32) {
    %c0_i32 = arith.constant 0 : i32
    %c0_i32_0 = arith.constant 0 : i32
    %c0_i32_1 = arith.constant 0 : i32
    return %c0_i32, %c0_i32_0 : i32, i32
  }
  func.func @transform_9(%arg0: i32) -> (i32, i32) {
    %c0_i32 = arith.constant 0 : i32
    %c0_i32_0 = arith.constant 0 : i32
    return %arg0, %c0_i32 : i32, i32
  }
}

module attributes {stable_mosaic.version = 11 : i64} {
  func.func @_mhsa_kernel(%arg0: i32, %arg1: memref<1x24x128xf32, #tpu.memory_space<vmem>>, %arg2: memref<1x1x24xf32, #tpu.memory_space<vmem>>, %arg3: memref<1x128xf32, #tpu.memory_space<vmem>>, %arg4: memref<1x128xf32, #tpu.memory_space<vmem>>, %arg5: memref<128x384xbf16, #tpu.memory_space<vmem>>, %arg6: memref<1x384xf32, #tpu.memory_space<vmem>>, %arg7: memref<128x128xbf16, #tpu.memory_space<vmem>>, %arg8: memref<1x128xf32, #tpu.memory_space<vmem>>, %arg9: memref<1x24x128xf32, #tpu.memory_space<vmem>>) attributes {dimension_semantics = [#tpu.dimension_semantics<parallel>], iteration_bounds = array<i64: 2>, scalar_prefetch = 0 : i64, scratch_operands = 0 : i64, tpu.core_type = #tpu.core_type<tc>, window_params = [{transform_indices = @transform_0, window_bounds = array<i64: 1, 24, 128>}, {transform_indices = @transform_1, window_bounds = array<i64: 1, 1, 24>}, {pipeline_mode = #tpu.pipeline_mode<synchronous>, transform_indices = @transform_2, window_bounds = array<i64: 1, 128>}, {pipeline_mode = #tpu.pipeline_mode<synchronous>, transform_indices = @transform_3, window_bounds = array<i64: 1, 128>}, {pipeline_mode = #tpu.pipeline_mode<synchronous>, transform_indices = @transform_4, window_bounds = array<i64: 128, 384>}, {pipeline_mode = #tpu.pipeline_mode<synchronous>, transform_indices = @transform_5, window_bounds = array<i64: 1, 384>}, {pipeline_mode = #tpu.pipeline_mode<synchronous>, transform_indices = @transform_6, window_bounds = array<i64: 128, 128>}, {pipeline_mode = #tpu.pipeline_mode<synchronous>, transform_indices = @transform_7, window_bounds = array<i64: 1, 128>}, {transform_indices = @transform_8, window_bounds = array<i64: 1, 24, 128>}]} {
    %c0 = arith.constant 0 : index
    %c0_0 = arith.constant 0 : index
    %c0_1 = arith.constant 0 : index
    %0 = vector.load %arg1[%c0, %c0_0, %c0_1] : memref<1x24x128xf32, #tpu.memory_space<vmem>>, vector<1x24x128xf32>
    %1 = vector.shape_cast %0 : vector<1x24x128xf32> to vector<24x128xf32>
    %c0_2 = arith.constant 0 : index
    %c0_3 = arith.constant 0 : index
    %c0_4 = arith.constant 0 : index
    %2 = vector.load %arg2[%c0_2, %c0_3, %c0_4] : memref<1x1x24xf32, #tpu.memory_space<vmem>>, vector<1x1x24xf32>
    %3 = vector.shape_cast %2 : vector<1x1x24xf32> to vector<1x24xf32>
    %cst = arith.constant dense<0.000000e+00> : vector<24xf32>
    %4 = vector.multi_reduction <add>, %1, %cst [1] : vector<24x128xf32> to vector<24xf32>
    %5 = vector.shape_cast %4 : vector<24xf32> to vector<24x1xf32>
    %cst_5 = arith.constant 1.280000e+02 : f32
    %6 = vector.broadcast %cst_5 : f32 to vector<24x1xf32>
    %7 = arith.divf %5, %6 : vector<24x1xf32>
    %8 = vector.broadcast %7 : vector<24x1xf32> to vector<24x128xf32>
    %9 = arith.subf %1, %8 : vector<24x128xf32>
    %10 = arith.mulf %9, %9 : vector<24x128xf32>
    %cst_6 = arith.constant dense<0.000000e+00> : vector<24xf32>
    %11 = vector.multi_reduction <add>, %10, %cst_6 [1] : vector<24x128xf32> to vector<24xf32>
    %12 = vector.shape_cast %11 : vector<24xf32> to vector<24x1xf32>
    %cst_7 = arith.constant 1.280000e+02 : f32
    %13 = vector.broadcast %cst_7 : f32 to vector<24x1xf32>
    %14 = arith.divf %12, %13 : vector<24x1xf32>
    %cst_8 = arith.constant 9.99999974E-6 : f32
    %15 = vector.broadcast %cst_8 : f32 to vector<24x1xf32>
    %16 = arith.addf %14, %15 : vector<24x1xf32>
    %17 = math.rsqrt %16 : vector<24x1xf32>
    %18 = vector.broadcast %17 : vector<24x1xf32> to vector<24x128xf32>
    %19 = arith.mulf %9, %18 : vector<24x128xf32>
    %c0_9 = arith.constant 0 : index
    %c0_10 = arith.constant 0 : index
    %20 = vector.load %arg3[%c0_9, %c0_10] : memref<1x128xf32, #tpu.memory_space<vmem>>, vector<1x128xf32>
    %21 = vector.broadcast %20 : vector<1x128xf32> to vector<24x128xf32>
    %22 = arith.mulf %19, %21 : vector<24x128xf32>
    %c0_11 = arith.constant 0 : index
    %c0_12 = arith.constant 0 : index
    %23 = vector.load %arg4[%c0_11, %c0_12] : memref<1x128xf32, #tpu.memory_space<vmem>>, vector<1x128xf32>
    %24 = vector.broadcast %23 : vector<1x128xf32> to vector<24x128xf32>
    %25 = arith.addf %22, %24 : vector<24x128xf32>
    %26 = arith.truncf %25 : vector<24x128xf32> to vector<24x128xbf16>
    %c0_13 = arith.constant 0 : index
    %c0_14 = arith.constant 0 : index
    %27 = vector.load %arg5[%c0_13, %c0_14] : memref<128x384xbf16, #tpu.memory_space<vmem>>, vector<128x384xbf16>
    %cst_15 = arith.constant dense<0.000000e+00> : vector<24x384xf32>
    %28 = tpu.matmul %26, %27, %cst_15 {dimension_numbers = #tpu.dot_dimension_numbers<[1], [0], [0], [1], [0, 0, 1, 1], [], []>} : vector<24x128xbf16>, vector<128x384xbf16>, vector<24x384xf32> -> vector<24x384xf32>
    %c0_16 = arith.constant 0 : index
    %c0_17 = arith.constant 0 : index
    %29 = vector.load %arg6[%c0_16, %c0_17] : memref<1x384xf32, #tpu.memory_space<vmem>>, vector<1x384xf32>
    %30 = vector.broadcast %29 : vector<1x384xf32> to vector<24x384xf32>
    %31 = arith.addf %28, %30 : vector<24x384xf32>
    %cst_18 = arith.constant 0.000000e+00 : f32
    %32 = vector.broadcast %cst_18 : f32 to vector<24x128xf32>
    %33 = vector.extract_strided_slice %31 {offsets = [0, 0], sizes = [24, 32], strides = [1, 1]} : vector<24x384xf32> to vector<24x32xf32>
    %cst_19 = arith.constant 0.176776692 : f32
    %34 = vector.broadcast %cst_19 : f32 to vector<24x32xf32>
    %35 = arith.mulf %33, %34 : vector<24x32xf32>
    %36 = vector.extract_strided_slice %31 {offsets = [0, 128], sizes = [24, 32], strides = [1, 1]} : vector<24x384xf32> to vector<24x32xf32>
    %37 = vector.extract_strided_slice %31 {offsets = [0, 256], sizes = [24, 32], strides = [1, 1]} : vector<24x384xf32> to vector<24x32xf32>
    %38 = arith.truncf %35 : vector<24x32xf32> to vector<24x32xbf16>
    %39 = arith.truncf %36 : vector<24x32xf32> to vector<24x32xbf16>
    %cst_20 = arith.constant dense<0.000000e+00> : vector<24x24xf32>
    %40 = tpu.matmul %38, %39, %cst_20 {dimension_numbers = #tpu.dot_dimension_numbers<[1], [1], [0], [0], [0, 0, 1, 0], [], []>} : vector<24x32xbf16>, vector<24x32xbf16>, vector<24x24xf32> -> vector<24x24xf32>
    %cst_21 = arith.constant 0.000000e+00 : f32
    %41 = vector.broadcast %cst_21 : f32 to vector<1x24xf32>
    %42 = arith.cmpf ogt, %3, %41 : vector<1x24xf32>
    %cst_22 = arith.constant -1.000000e+30 : f32
    %43 = vector.shape_cast %42 : vector<1x24xi1> to vector<1x24xi1>
    %44 = vector.broadcast %43 : vector<1x24xi1> to vector<24x24xi1>
    %45 = vector.broadcast %cst_22 : f32 to vector<24x24xf32>
    %46 = arith.select %44, %40, %45 : vector<24x24xi1>, vector<24x24xf32>
    %cst_23 = arith.constant dense<0xFF800000> : vector<24xf32>
    %47 = vector.multi_reduction <maximumf>, %46, %cst_23 [1] : vector<24x24xf32> to vector<24xf32>
    %48 = vector.shape_cast %47 : vector<24xf32> to vector<24x1xf32>
    %49 = vector.broadcast %48 : vector<24x1xf32> to vector<24x24xf32>
    %50 = arith.subf %46, %49 : vector<24x24xf32>
    %51 = math.exp %50 : vector<24x24xf32>
    %cst_24 = arith.constant dense<0.000000e+00> : vector<24xf32>
    %52 = vector.multi_reduction <add>, %51, %cst_24 [1] : vector<24x24xf32> to vector<24xf32>
    %53 = vector.shape_cast %52 : vector<24xf32> to vector<24x1xf32>
    %54 = tpu.reciprocal %53 {approx = true} : vector<24x1xf32> -> vector<24x1xf32>
    %55 = vector.broadcast %54 : vector<24x1xf32> to vector<24x24xf32>
    %56 = arith.mulf %51, %55 : vector<24x24xf32>
    %57 = arith.truncf %56 : vector<24x24xf32> to vector<24x24xbf16>
    %58 = arith.truncf %37 : vector<24x32xf32> to vector<24x32xbf16>
    %cst_25 = arith.constant dense<0.000000e+00> : vector<24x32xf32>
    %59 = tpu.matmul %57, %58, %cst_25 {dimension_numbers = #tpu.dot_dimension_numbers<[1], [0], [0], [1], [0, 0, 1, 1], [], []>} : vector<24x24xbf16>, vector<24x32xbf16>, vector<24x32xf32> -> vector<24x32xf32>
    %60 = arith.truncf %59 : vector<24x32xf32> to vector<24x32xbf16>
    %c0_26 = arith.constant 0 : index
    %c0_27 = arith.constant 0 : index
    %61 = vector.load %arg7[%c0_26, %c0_27] : memref<128x128xbf16, #tpu.memory_space<vmem>>, vector<32x128xbf16>
    %cst_28 = arith.constant dense<0.000000e+00> : vector<24x128xf32>
    %62 = tpu.matmul %60, %61, %cst_28 {dimension_numbers = #tpu.dot_dimension_numbers<[1], [0], [0], [1], [0, 0, 1, 1], [], []>} : vector<24x32xbf16>, vector<32x128xbf16>, vector<24x128xf32> -> vector<24x128xf32>
    %63 = arith.addf %32, %62 : vector<24x128xf32>
    %64 = vector.extract_strided_slice %31 {offsets = [0, 32], sizes = [24, 32], strides = [1, 1]} : vector<24x384xf32> to vector<24x32xf32>
    %cst_29 = arith.constant 0.176776692 : f32
    %65 = vector.broadcast %cst_29 : f32 to vector<24x32xf32>
    %66 = arith.mulf %64, %65 : vector<24x32xf32>
    %67 = vector.extract_strided_slice %31 {offsets = [0, 160], sizes = [24, 32], strides = [1, 1]} : vector<24x384xf32> to vector<24x32xf32>
    %68 = vector.extract_strided_slice %31 {offsets = [0, 288], sizes = [24, 32], strides = [1, 1]} : vector<24x384xf32> to vector<24x32xf32>
    %69 = arith.truncf %66 : vector<24x32xf32> to vector<24x32xbf16>
    %70 = arith.truncf %67 : vector<24x32xf32> to vector<24x32xbf16>
    %cst_30 = arith.constant dense<0.000000e+00> : vector<24x24xf32>
    %71 = tpu.matmul %69, %70, %cst_30 {dimension_numbers = #tpu.dot_dimension_numbers<[1], [1], [0], [0], [0, 0, 1, 0], [], []>} : vector<24x32xbf16>, vector<24x32xbf16>, vector<24x24xf32> -> vector<24x24xf32>
    %cst_31 = arith.constant 0.000000e+00 : f32
    %72 = vector.broadcast %cst_31 : f32 to vector<1x24xf32>
    %73 = arith.cmpf ogt, %3, %72 : vector<1x24xf32>
    %cst_32 = arith.constant -1.000000e+30 : f32
    %74 = vector.shape_cast %73 : vector<1x24xi1> to vector<1x24xi1>
    %75 = vector.broadcast %74 : vector<1x24xi1> to vector<24x24xi1>
    %76 = vector.broadcast %cst_32 : f32 to vector<24x24xf32>
    %77 = arith.select %75, %71, %76 : vector<24x24xi1>, vector<24x24xf32>
    %cst_33 = arith.constant dense<0xFF800000> : vector<24xf32>
    %78 = vector.multi_reduction <maximumf>, %77, %cst_33 [1] : vector<24x24xf32> to vector<24xf32>
    %79 = vector.shape_cast %78 : vector<24xf32> to vector<24x1xf32>
    %80 = vector.broadcast %79 : vector<24x1xf32> to vector<24x24xf32>
    %81 = arith.subf %77, %80 : vector<24x24xf32>
    %82 = math.exp %81 : vector<24x24xf32>
    %cst_34 = arith.constant dense<0.000000e+00> : vector<24xf32>
    %83 = vector.multi_reduction <add>, %82, %cst_34 [1] : vector<24x24xf32> to vector<24xf32>
    %84 = vector.shape_cast %83 : vector<24xf32> to vector<24x1xf32>
    %85 = tpu.reciprocal %84 {approx = true} : vector<24x1xf32> -> vector<24x1xf32>
    %86 = vector.broadcast %85 : vector<24x1xf32> to vector<24x24xf32>
    %87 = arith.mulf %82, %86 : vector<24x24xf32>
    %88 = arith.truncf %87 : vector<24x24xf32> to vector<24x24xbf16>
    %89 = arith.truncf %68 : vector<24x32xf32> to vector<24x32xbf16>
    %cst_35 = arith.constant dense<0.000000e+00> : vector<24x32xf32>
    %90 = tpu.matmul %88, %89, %cst_35 {dimension_numbers = #tpu.dot_dimension_numbers<[1], [0], [0], [1], [0, 0, 1, 1], [], []>} : vector<24x24xbf16>, vector<24x32xbf16>, vector<24x32xf32> -> vector<24x32xf32>
    %91 = arith.truncf %90 : vector<24x32xf32> to vector<24x32xbf16>
    %c32 = arith.constant 32 : index
    %c0_36 = arith.constant 0 : index
    %92 = vector.load %arg7[%c32, %c0_36] : memref<128x128xbf16, #tpu.memory_space<vmem>>, vector<32x128xbf16>
    %cst_37 = arith.constant dense<0.000000e+00> : vector<24x128xf32>
    %93 = tpu.matmul %91, %92, %cst_37 {dimension_numbers = #tpu.dot_dimension_numbers<[1], [0], [0], [1], [0, 0, 1, 1], [], []>} : vector<24x32xbf16>, vector<32x128xbf16>, vector<24x128xf32> -> vector<24x128xf32>
    %94 = arith.addf %63, %93 : vector<24x128xf32>
    %95 = vector.extract_strided_slice %31 {offsets = [0, 64], sizes = [24, 32], strides = [1, 1]} : vector<24x384xf32> to vector<24x32xf32>
    %cst_38 = arith.constant 0.176776692 : f32
    %96 = vector.broadcast %cst_38 : f32 to vector<24x32xf32>
    %97 = arith.mulf %95, %96 : vector<24x32xf32>
    %98 = vector.extract_strided_slice %31 {offsets = [0, 192], sizes = [24, 32], strides = [1, 1]} : vector<24x384xf32> to vector<24x32xf32>
    %99 = vector.extract_strided_slice %31 {offsets = [0, 320], sizes = [24, 32], strides = [1, 1]} : vector<24x384xf32> to vector<24x32xf32>
    %100 = arith.truncf %97 : vector<24x32xf32> to vector<24x32xbf16>
    %101 = arith.truncf %98 : vector<24x32xf32> to vector<24x32xbf16>
    %cst_39 = arith.constant dense<0.000000e+00> : vector<24x24xf32>
    %102 = tpu.matmul %100, %101, %cst_39 {dimension_numbers = #tpu.dot_dimension_numbers<[1], [1], [0], [0], [0, 0, 1, 0], [], []>} : vector<24x32xbf16>, vector<24x32xbf16>, vector<24x24xf32> -> vector<24x24xf32>
    %cst_40 = arith.constant 0.000000e+00 : f32
    %103 = vector.broadcast %cst_40 : f32 to vector<1x24xf32>
    %104 = arith.cmpf ogt, %3, %103 : vector<1x24xf32>
    %cst_41 = arith.constant -1.000000e+30 : f32
    %105 = vector.shape_cast %104 : vector<1x24xi1> to vector<1x24xi1>
    %106 = vector.broadcast %105 : vector<1x24xi1> to vector<24x24xi1>
    %107 = vector.broadcast %cst_41 : f32 to vector<24x24xf32>
    %108 = arith.select %106, %102, %107 : vector<24x24xi1>, vector<24x24xf32>
    %cst_42 = arith.constant dense<0xFF800000> : vector<24xf32>
    %109 = vector.multi_reduction <maximumf>, %108, %cst_42 [1] : vector<24x24xf32> to vector<24xf32>
    %110 = vector.shape_cast %109 : vector<24xf32> to vector<24x1xf32>
    %111 = vector.broadcast %110 : vector<24x1xf32> to vector<24x24xf32>
    %112 = arith.subf %108, %111 : vector<24x24xf32>
    %113 = math.exp %112 : vector<24x24xf32>
    %cst_43 = arith.constant dense<0.000000e+00> : vector<24xf32>
    %114 = vector.multi_reduction <add>, %113, %cst_43 [1] : vector<24x24xf32> to vector<24xf32>
    %115 = vector.shape_cast %114 : vector<24xf32> to vector<24x1xf32>
    %116 = tpu.reciprocal %115 {approx = true} : vector<24x1xf32> -> vector<24x1xf32>
    %117 = vector.broadcast %116 : vector<24x1xf32> to vector<24x24xf32>
    %118 = arith.mulf %113, %117 : vector<24x24xf32>
    %119 = arith.truncf %118 : vector<24x24xf32> to vector<24x24xbf16>
    %120 = arith.truncf %99 : vector<24x32xf32> to vector<24x32xbf16>
    %cst_44 = arith.constant dense<0.000000e+00> : vector<24x32xf32>
    %121 = tpu.matmul %119, %120, %cst_44 {dimension_numbers = #tpu.dot_dimension_numbers<[1], [0], [0], [1], [0, 0, 1, 1], [], []>} : vector<24x24xbf16>, vector<24x32xbf16>, vector<24x32xf32> -> vector<24x32xf32>
    %122 = arith.truncf %121 : vector<24x32xf32> to vector<24x32xbf16>
    %c64 = arith.constant 64 : index
    %c0_45 = arith.constant 0 : index
    %123 = vector.load %arg7[%c64, %c0_45] : memref<128x128xbf16, #tpu.memory_space<vmem>>, vector<32x128xbf16>
    %cst_46 = arith.constant dense<0.000000e+00> : vector<24x128xf32>
    %124 = tpu.matmul %122, %123, %cst_46 {dimension_numbers = #tpu.dot_dimension_numbers<[1], [0], [0], [1], [0, 0, 1, 1], [], []>} : vector<24x32xbf16>, vector<32x128xbf16>, vector<24x128xf32> -> vector<24x128xf32>
    %125 = arith.addf %94, %124 : vector<24x128xf32>
    %126 = vector.extract_strided_slice %31 {offsets = [0, 96], sizes = [24, 32], strides = [1, 1]} : vector<24x384xf32> to vector<24x32xf32>
    %cst_47 = arith.constant 0.176776692 : f32
    %127 = vector.broadcast %cst_47 : f32 to vector<24x32xf32>
    %128 = arith.mulf %126, %127 : vector<24x32xf32>
    %129 = vector.extract_strided_slice %31 {offsets = [0, 224], sizes = [24, 32], strides = [1, 1]} : vector<24x384xf32> to vector<24x32xf32>
    %130 = vector.extract_strided_slice %31 {offsets = [0, 352], sizes = [24, 32], strides = [1, 1]} : vector<24x384xf32> to vector<24x32xf32>
    %131 = arith.truncf %128 : vector<24x32xf32> to vector<24x32xbf16>
    %132 = arith.truncf %129 : vector<24x32xf32> to vector<24x32xbf16>
    %cst_48 = arith.constant dense<0.000000e+00> : vector<24x24xf32>
    %133 = tpu.matmul %131, %132, %cst_48 {dimension_numbers = #tpu.dot_dimension_numbers<[1], [1], [0], [0], [0, 0, 1, 0], [], []>} : vector<24x32xbf16>, vector<24x32xbf16>, vector<24x24xf32> -> vector<24x24xf32>
    %cst_49 = arith.constant 0.000000e+00 : f32
    %134 = vector.broadcast %cst_49 : f32 to vector<1x24xf32>
    %135 = arith.cmpf ogt, %3, %134 : vector<1x24xf32>
    %cst_50 = arith.constant -1.000000e+30 : f32
    %136 = vector.shape_cast %135 : vector<1x24xi1> to vector<1x24xi1>
    %137 = vector.broadcast %136 : vector<1x24xi1> to vector<24x24xi1>
    %138 = vector.broadcast %cst_50 : f32 to vector<24x24xf32>
    %139 = arith.select %137, %133, %138 : vector<24x24xi1>, vector<24x24xf32>
    %cst_51 = arith.constant dense<0xFF800000> : vector<24xf32>
    %140 = vector.multi_reduction <maximumf>, %139, %cst_51 [1] : vector<24x24xf32> to vector<24xf32>
    %141 = vector.shape_cast %140 : vector<24xf32> to vector<24x1xf32>
    %142 = vector.broadcast %141 : vector<24x1xf32> to vector<24x24xf32>
    %143 = arith.subf %139, %142 : vector<24x24xf32>
    %144 = math.exp %143 : vector<24x24xf32>
    %cst_52 = arith.constant dense<0.000000e+00> : vector<24xf32>
    %145 = vector.multi_reduction <add>, %144, %cst_52 [1] : vector<24x24xf32> to vector<24xf32>
    %146 = vector.shape_cast %145 : vector<24xf32> to vector<24x1xf32>
    %147 = tpu.reciprocal %146 {approx = true} : vector<24x1xf32> -> vector<24x1xf32>
    %148 = vector.broadcast %147 : vector<24x1xf32> to vector<24x24xf32>
    %149 = arith.mulf %144, %148 : vector<24x24xf32>
    %150 = arith.truncf %149 : vector<24x24xf32> to vector<24x24xbf16>
    %151 = arith.truncf %130 : vector<24x32xf32> to vector<24x32xbf16>
    %cst_53 = arith.constant dense<0.000000e+00> : vector<24x32xf32>
    %152 = tpu.matmul %150, %151, %cst_53 {dimension_numbers = #tpu.dot_dimension_numbers<[1], [0], [0], [1], [0, 0, 1, 1], [], []>} : vector<24x24xbf16>, vector<24x32xbf16>, vector<24x32xf32> -> vector<24x32xf32>
    %153 = arith.truncf %152 : vector<24x32xf32> to vector<24x32xbf16>
    %c96 = arith.constant 96 : index
    %c0_54 = arith.constant 0 : index
    %154 = vector.load %arg7[%c96, %c0_54] : memref<128x128xbf16, #tpu.memory_space<vmem>>, vector<32x128xbf16>
    %cst_55 = arith.constant dense<0.000000e+00> : vector<24x128xf32>
    %155 = tpu.matmul %153, %154, %cst_55 {dimension_numbers = #tpu.dot_dimension_numbers<[1], [0], [0], [1], [0, 0, 1, 1], [], []>} : vector<24x32xbf16>, vector<32x128xbf16>, vector<24x128xf32> -> vector<24x128xf32>
    %156 = arith.addf %125, %155 : vector<24x128xf32>
    %c0_56 = arith.constant 0 : index
    %c0_57 = arith.constant 0 : index
    %157 = vector.load %arg8[%c0_56, %c0_57] : memref<1x128xf32, #tpu.memory_space<vmem>>, vector<1x128xf32>
    %158 = vector.broadcast %157 : vector<1x128xf32> to vector<24x128xf32>
    %159 = arith.addf %156, %158 : vector<24x128xf32>
    %160 = arith.addf %159, %1 : vector<24x128xf32>
    %c0_58 = arith.constant 0 : index
    %c0_59 = arith.constant 0 : index
    %c0_60 = arith.constant 0 : index
    %161 = vector.load %arg9[%c0_58, %c0_59, %c0_60] : memref<1x24x128xf32, #tpu.memory_space<vmem>>, vector<1x24x128xf32>
    %162 = vector.shape_cast %161 : vector<1x24x128xf32> to vector<24x128xf32>
    %163 = vector.shape_cast %160 : vector<24x128xf32> to vector<1x24x128xf32>
    tpu.vector_store %arg9[%c0_58, %c0_59, %c0_60], %163 {strides = array<i32>} : memref<1x24x128xf32, #tpu.memory_space<vmem>>, vector<1x24x128xf32>,
    return
  }
  func.func @transform_0(%arg0: i32) -> (i32, i32, i32) {
    %c0_i32 = arith.constant 0 : i32
    %c0_i32_0 = arith.constant 0 : i32
    %c0_i32_1 = arith.constant 0 : i32
    return %arg0, %c0_i32, %c0_i32_0 : i32, i32, i32
  }
  func.func @transform_1(%arg0: i32) -> (i32, i32, i32) {
    %c0_i32 = arith.constant 0 : i32
    %c0_i32_0 = arith.constant 0 : i32
    %c0_i32_1 = arith.constant 0 : i32
    return %arg0, %c0_i32, %c0_i32_0 : i32, i32, i32
  }
  func.func @transform_2(%arg0: i32) -> (i32, i32) {
    %c0_i32 = arith.constant 0 : i32
    %c0_i32_0 = arith.constant 0 : i32
    %c0_i32_1 = arith.constant 0 : i32
    return %c0_i32, %c0_i32_0 : i32, i32
  }
  func.func @transform_3(%arg0: i32) -> (i32, i32) {
    %c0_i32 = arith.constant 0 : i32
    %c0_i32_0 = arith.constant 0 : i32
    %c0_i32_1 = arith.constant 0 : i32
    return %c0_i32, %c0_i32_0 : i32, i32
  }
  func.func @transform_4(%arg0: i32) -> (i32, i32) {
    %c0_i32 = arith.constant 0 : i32
    %c0_i32_0 = arith.constant 0 : i32
    %c0_i32_1 = arith.constant 0 : i32
    return %c0_i32, %c0_i32_0 : i32, i32
  }
  func.func @transform_5(%arg0: i32) -> (i32, i32) {
    %c0_i32 = arith.constant 0 : i32
    %c0_i32_0 = arith.constant 0 : i32
    %c0_i32_1 = arith.constant 0 : i32
    return %c0_i32, %c0_i32_0 : i32, i32
  }
  func.func @transform_6(%arg0: i32) -> (i32, i32) {
    %c0_i32 = arith.constant 0 : i32
    %c0_i32_0 = arith.constant 0 : i32
    %c0_i32_1 = arith.constant 0 : i32
    return %c0_i32, %c0_i32_0 : i32, i32
  }
  func.func @transform_7(%arg0: i32) -> (i32, i32) {
    %c0_i32 = arith.constant 0 : i32
    %c0_i32_0 = arith.constant 0 : i32
    %c0_i32_1 = arith.constant 0 : i32
    return %c0_i32, %c0_i32_0 : i32, i32
  }
  func.func @transform_8(%arg0: i32) -> (i32, i32, i32) {
    %c0_i32 = arith.constant 0 : i32
    %c0_i32_0 = arith.constant 0 : i32
    %c0_i32_1 = arith.constant 0 : i32
    return %arg0, %c0_i32, %c0_i32_0 : i32, i32, i32
  }
}

module attributes {stable_mosaic.version = 11 : i64} {
  func.func @_convmod_kernel(%arg0: i32, %arg1: memref<1x24x128xf32, #tpu.memory_space<vmem>>, %arg2: memref<1x128xf32, #tpu.memory_space<vmem>>, %arg3: memref<1x128xf32, #tpu.memory_space<vmem>>, %arg4: memref<128x128xbf16, #tpu.memory_space<vmem>>, %arg5: memref<1x128xf32, #tpu.memory_space<vmem>>, %arg6: memref<128x128xbf16, #tpu.memory_space<vmem>>, %arg7: memref<1x128xf32, #tpu.memory_space<vmem>>, %arg8: memref<31x128xf32, #tpu.memory_space<vmem>>, %arg9: memref<1x128xf32, #tpu.memory_space<vmem>>, %arg10: memref<128x128xbf16, #tpu.memory_space<vmem>>, %arg11: memref<1x128xf32, #tpu.memory_space<vmem>>, %arg12: memref<1x24x128xf32, #tpu.memory_space<vmem>>) attributes {dimension_semantics = [#tpu.dimension_semantics<parallel>], iteration_bounds = array<i64: 2>, scalar_prefetch = 0 : i64, scratch_operands = 0 : i64, tpu.core_type = #tpu.core_type<tc>, window_params = [{transform_indices = @transform_0, window_bounds = array<i64: 1, 24, 128>}, {pipeline_mode = #tpu.pipeline_mode<synchronous>, transform_indices = @transform_1, window_bounds = array<i64: 1, 128>}, {pipeline_mode = #tpu.pipeline_mode<synchronous>, transform_indices = @transform_2, window_bounds = array<i64: 1, 128>}, {pipeline_mode = #tpu.pipeline_mode<synchronous>, transform_indices = @transform_3, window_bounds = array<i64: 128, 128>}, {pipeline_mode = #tpu.pipeline_mode<synchronous>, transform_indices = @transform_4, window_bounds = array<i64: 1, 128>}, {pipeline_mode = #tpu.pipeline_mode<synchronous>, transform_indices = @transform_5, window_bounds = array<i64: 128, 128>}, {pipeline_mode = #tpu.pipeline_mode<synchronous>, transform_indices = @transform_6, window_bounds = array<i64: 1, 128>}, {pipeline_mode = #tpu.pipeline_mode<synchronous>, transform_indices = @transform_7, window_bounds = array<i64: 31, 128>}, {pipeline_mode = #tpu.pipeline_mode<synchronous>, transform_indices = @transform_8, window_bounds = array<i64: 1, 128>}, {pipeline_mode = #tpu.pipeline_mode<synchronous>, transform_indices = @transform_9, window_bounds = array<i64: 128, 128>}, {pipeline_mode = #tpu.pipeline_mode<synchronous>, transform_indices = @transform_10, window_bounds = array<i64: 1, 128>}, {transform_indices = @transform_11, window_bounds = array<i64: 1, 24, 128>}]} {
    %c0 = arith.constant 0 : index
    %c0_0 = arith.constant 0 : index
    %c0_1 = arith.constant 0 : index
    %0 = vector.load %arg1[%c0, %c0_0, %c0_1] : memref<1x24x128xf32, #tpu.memory_space<vmem>>, vector<1x24x128xf32>
    %1 = vector.shape_cast %0 : vector<1x24x128xf32> to vector<24x128xf32>
    %cst = arith.constant dense<0.000000e+00> : vector<24xf32>
    %2 = vector.multi_reduction <add>, %1, %cst [1] : vector<24x128xf32> to vector<24xf32>
    %3 = vector.shape_cast %2 : vector<24xf32> to vector<24x1xf32>
    %cst_2 = arith.constant 1.280000e+02 : f32
    %4 = vector.broadcast %cst_2 : f32 to vector<24x1xf32>
    %5 = arith.divf %3, %4 : vector<24x1xf32>
    %6 = vector.broadcast %5 : vector<24x1xf32> to vector<24x128xf32>
    %7 = arith.subf %1, %6 : vector<24x128xf32>
    %8 = arith.mulf %7, %7 : vector<24x128xf32>
    %cst_3 = arith.constant dense<0.000000e+00> : vector<24xf32>
    %9 = vector.multi_reduction <add>, %8, %cst_3 [1] : vector<24x128xf32> to vector<24xf32>
    %10 = vector.shape_cast %9 : vector<24xf32> to vector<24x1xf32>
    %cst_4 = arith.constant 1.280000e+02 : f32
    %11 = vector.broadcast %cst_4 : f32 to vector<24x1xf32>
    %12 = arith.divf %10, %11 : vector<24x1xf32>
    %cst_5 = arith.constant 9.99999974E-6 : f32
    %13 = vector.broadcast %cst_5 : f32 to vector<24x1xf32>
    %14 = arith.addf %12, %13 : vector<24x1xf32>
    %15 = math.rsqrt %14 : vector<24x1xf32>
    %16 = vector.broadcast %15 : vector<24x1xf32> to vector<24x128xf32>
    %17 = arith.mulf %7, %16 : vector<24x128xf32>
    %c0_6 = arith.constant 0 : index
    %c0_7 = arith.constant 0 : index
    %18 = vector.load %arg2[%c0_6, %c0_7] : memref<1x128xf32, #tpu.memory_space<vmem>>, vector<1x128xf32>
    %19 = vector.broadcast %18 : vector<1x128xf32> to vector<24x128xf32>
    %20 = arith.mulf %17, %19 : vector<24x128xf32>
    %c0_8 = arith.constant 0 : index
    %c0_9 = arith.constant 0 : index
    %21 = vector.load %arg3[%c0_8, %c0_9] : memref<1x128xf32, #tpu.memory_space<vmem>>, vector<1x128xf32>
    %22 = vector.broadcast %21 : vector<1x128xf32> to vector<24x128xf32>
    %23 = arith.addf %20, %22 : vector<24x128xf32>
    %24 = arith.truncf %23 : vector<24x128xf32> to vector<24x128xbf16>
    %c0_10 = arith.constant 0 : index
    %c0_11 = arith.constant 0 : index
    %25 = vector.load %arg4[%c0_10, %c0_11] : memref<128x128xbf16, #tpu.memory_space<vmem>>, vector<128x128xbf16>
    %cst_12 = arith.constant dense<0.000000e+00> : vector<24x128xf32>
    %26 = tpu.matmul %24, %25, %cst_12 {dimension_numbers = #tpu.dot_dimension_numbers<[1], [0], [0], [1], [0, 0, 1, 1], [], []>} : vector<24x128xbf16>, vector<128x128xbf16>, vector<24x128xf32> -> vector<24x128xf32>
    %c0_13 = arith.constant 0 : index
    %c0_14 = arith.constant 0 : index
    %27 = vector.load %arg5[%c0_13, %c0_14] : memref<1x128xf32, #tpu.memory_space<vmem>>, vector<1x128xf32>
    %28 = vector.broadcast %27 : vector<1x128xf32> to vector<24x128xf32>
    %29 = arith.addf %26, %28 : vector<24x128xf32>
    %c0_15 = arith.constant 0 : index
    %c0_16 = arith.constant 0 : index
    %30 = vector.load %arg6[%c0_15, %c0_16] : memref<128x128xbf16, #tpu.memory_space<vmem>>, vector<128x128xbf16>
    %cst_17 = arith.constant dense<0.000000e+00> : vector<24x128xf32>
    %31 = tpu.matmul %24, %30, %cst_17 {dimension_numbers = #tpu.dot_dimension_numbers<[1], [0], [0], [1], [0, 0, 1, 1], [], []>} : vector<24x128xbf16>, vector<128x128xbf16>, vector<24x128xf32> -> vector<24x128xf32>
    %c0_18 = arith.constant 0 : index
    %c0_19 = arith.constant 0 : index
    %32 = vector.load %arg7[%c0_18, %c0_19] : memref<1x128xf32, #tpu.memory_space<vmem>>, vector<1x128xf32>
    %33 = vector.broadcast %32 : vector<1x128xf32> to vector<24x128xf32>
    %34 = arith.addf %31, %33 : vector<24x128xf32>
    %35 = arith.negf %34 : vector<24x128xf32>
    %36 = math.exp %35 : vector<24x128xf32>
    %cst_20 = arith.constant 1.000000e+00 : f32
    %37 = vector.broadcast %cst_20 : f32 to vector<24x128xf32>
    %38 = arith.addf %37, %36 : vector<24x128xf32>
    %39 = arith.divf %37, %38 : vector<24x128xf32>
    %40 = arith.mulf %29, %39 : vector<24x128xf32>
    %cst_21 = arith.constant 0.000000e+00 : f32
    %41 = vector.broadcast %cst_21 : f32 to vector<15x128xf32>
    %cst_22 = arith.constant 0.000000e+00 : f32
    %42 = vector.broadcast %cst_22 : f32 to vector<15x128xf32>
    %43 = tpu.concatenate %41, %40, %42 in 0 : vector<15x128xf32>, vector<24x128xf32>, vector<15x128xf32> -> vector<54x128xf32>
    %c0_23 = arith.constant 0 : index
    %c0_24 = arith.constant 0 : index
    %44 = vector.load %arg8[%c0_23, %c0_24] : memref<31x128xf32, #tpu.memory_space<vmem>>, vector<31x128xf32>
    %cst_25 = arith.constant 0.000000e+00 : f32
    %45 = vector.broadcast %cst_25 : f32 to vector<24x128xf32>
    %46 = vector.extract_strided_slice %43 {offsets = [0, 0], sizes = [24, 128], strides = [1, 1]} : vector<54x128xf32> to vector<24x128xf32>
    %47 = vector.extract_strided_slice %44 {offsets = [0, 0], sizes = [1, 128], strides = [1, 1]} : vector<31x128xf32> to vector<1x128xf32>
    %48 = vector.broadcast %47 : vector<1x128xf32> to vector<24x128xf32>
    %49 = arith.mulf %46, %48 : vector<24x128xf32>
    %50 = arith.addf %45, %49 : vector<24x128xf32>
    %51 = vector.extract_strided_slice %43 {offsets = [1, 0], sizes = [24, 128], strides = [1, 1]} : vector<54x128xf32> to vector<24x128xf32>
    %52 = vector.extract_strided_slice %44 {offsets = [1, 0], sizes = [1, 128], strides = [1, 1]} : vector<31x128xf32> to vector<1x128xf32>
    %53 = vector.broadcast %52 : vector<1x128xf32> to vector<24x128xf32>
    %54 = arith.mulf %51, %53 : vector<24x128xf32>
    %55 = arith.addf %50, %54 : vector<24x128xf32>
    %56 = vector.extract_strided_slice %43 {offsets = [2, 0], sizes = [24, 128], strides = [1, 1]} : vector<54x128xf32> to vector<24x128xf32>
    %57 = vector.extract_strided_slice %44 {offsets = [2, 0], sizes = [1, 128], strides = [1, 1]} : vector<31x128xf32> to vector<1x128xf32>
    %58 = vector.broadcast %57 : vector<1x128xf32> to vector<24x128xf32>
    %59 = arith.mulf %56, %58 : vector<24x128xf32>
    %60 = arith.addf %55, %59 : vector<24x128xf32>
    %61 = vector.extract_strided_slice %43 {offsets = [3, 0], sizes = [24, 128], strides = [1, 1]} : vector<54x128xf32> to vector<24x128xf32>
    %62 = vector.extract_strided_slice %44 {offsets = [3, 0], sizes = [1, 128], strides = [1, 1]} : vector<31x128xf32> to vector<1x128xf32>
    %63 = vector.broadcast %62 : vector<1x128xf32> to vector<24x128xf32>
    %64 = arith.mulf %61, %63 : vector<24x128xf32>
    %65 = arith.addf %60, %64 : vector<24x128xf32>
    %66 = vector.extract_strided_slice %43 {offsets = [4, 0], sizes = [24, 128], strides = [1, 1]} : vector<54x128xf32> to vector<24x128xf32>
    %67 = vector.extract_strided_slice %44 {offsets = [4, 0], sizes = [1, 128], strides = [1, 1]} : vector<31x128xf32> to vector<1x128xf32>
    %68 = vector.broadcast %67 : vector<1x128xf32> to vector<24x128xf32>
    %69 = arith.mulf %66, %68 : vector<24x128xf32>
    %70 = arith.addf %65, %69 : vector<24x128xf32>
    %71 = vector.extract_strided_slice %43 {offsets = [5, 0], sizes = [24, 128], strides = [1, 1]} : vector<54x128xf32> to vector<24x128xf32>
    %72 = vector.extract_strided_slice %44 {offsets = [5, 0], sizes = [1, 128], strides = [1, 1]} : vector<31x128xf32> to vector<1x128xf32>
    %73 = vector.broadcast %72 : vector<1x128xf32> to vector<24x128xf32>
    %74 = arith.mulf %71, %73 : vector<24x128xf32>
    %75 = arith.addf %70, %74 : vector<24x128xf32>
    %76 = vector.extract_strided_slice %43 {offsets = [6, 0], sizes = [24, 128], strides = [1, 1]} : vector<54x128xf32> to vector<24x128xf32>
    %77 = vector.extract_strided_slice %44 {offsets = [6, 0], sizes = [1, 128], strides = [1, 1]} : vector<31x128xf32> to vector<1x128xf32>
    %78 = vector.broadcast %77 : vector<1x128xf32> to vector<24x128xf32>
    %79 = arith.mulf %76, %78 : vector<24x128xf32>
    %80 = arith.addf %75, %79 : vector<24x128xf32>
    %81 = vector.extract_strided_slice %43 {offsets = [7, 0], sizes = [24, 128], strides = [1, 1]} : vector<54x128xf32> to vector<24x128xf32>
    %82 = vector.extract_strided_slice %44 {offsets = [7, 0], sizes = [1, 128], strides = [1, 1]} : vector<31x128xf32> to vector<1x128xf32>
    %83 = vector.broadcast %82 : vector<1x128xf32> to vector<24x128xf32>
    %84 = arith.mulf %81, %83 : vector<24x128xf32>
    %85 = arith.addf %80, %84 : vector<24x128xf32>
    %86 = vector.extract_strided_slice %43 {offsets = [8, 0], sizes = [24, 128], strides = [1, 1]} : vector<54x128xf32> to vector<24x128xf32>
    %87 = vector.extract_strided_slice %44 {offsets = [8, 0], sizes = [1, 128], strides = [1, 1]} : vector<31x128xf32> to vector<1x128xf32>
    %88 = vector.broadcast %87 : vector<1x128xf32> to vector<24x128xf32>
    %89 = arith.mulf %86, %88 : vector<24x128xf32>
    %90 = arith.addf %85, %89 : vector<24x128xf32>
    %91 = vector.extract_strided_slice %43 {offsets = [9, 0], sizes = [24, 128], strides = [1, 1]} : vector<54x128xf32> to vector<24x128xf32>
    %92 = vector.extract_strided_slice %44 {offsets = [9, 0], sizes = [1, 128], strides = [1, 1]} : vector<31x128xf32> to vector<1x128xf32>
    %93 = vector.broadcast %92 : vector<1x128xf32> to vector<24x128xf32>
    %94 = arith.mulf %91, %93 : vector<24x128xf32>
    %95 = arith.addf %90, %94 : vector<24x128xf32>
    %96 = vector.extract_strided_slice %43 {offsets = [10, 0], sizes = [24, 128], strides = [1, 1]} : vector<54x128xf32> to vector<24x128xf32>
    %97 = vector.extract_strided_slice %44 {offsets = [10, 0], sizes = [1, 128], strides = [1, 1]} : vector<31x128xf32> to vector<1x128xf32>
    %98 = vector.broadcast %97 : vector<1x128xf32> to vector<24x128xf32>
    %99 = arith.mulf %96, %98 : vector<24x128xf32>
    %100 = arith.addf %95, %99 : vector<24x128xf32>
    %101 = vector.extract_strided_slice %43 {offsets = [11, 0], sizes = [24, 128], strides = [1, 1]} : vector<54x128xf32> to vector<24x128xf32>
    %102 = vector.extract_strided_slice %44 {offsets = [11, 0], sizes = [1, 128], strides = [1, 1]} : vector<31x128xf32> to vector<1x128xf32>
    %103 = vector.broadcast %102 : vector<1x128xf32> to vector<24x128xf32>
    %104 = arith.mulf %101, %103 : vector<24x128xf32>
    %105 = arith.addf %100, %104 : vector<24x128xf32>
    %106 = vector.extract_strided_slice %43 {offsets = [12, 0], sizes = [24, 128], strides = [1, 1]} : vector<54x128xf32> to vector<24x128xf32>
    %107 = vector.extract_strided_slice %44 {offsets = [12, 0], sizes = [1, 128], strides = [1, 1]} : vector<31x128xf32> to vector<1x128xf32>
    %108 = vector.broadcast %107 : vector<1x128xf32> to vector<24x128xf32>
    %109 = arith.mulf %106, %108 : vector<24x128xf32>
    %110 = arith.addf %105, %109 : vector<24x128xf32>
    %111 = vector.extract_strided_slice %43 {offsets = [13, 0], sizes = [24, 128], strides = [1, 1]} : vector<54x128xf32> to vector<24x128xf32>
    %112 = vector.extract_strided_slice %44 {offsets = [13, 0], sizes = [1, 128], strides = [1, 1]} : vector<31x128xf32> to vector<1x128xf32>
    %113 = vector.broadcast %112 : vector<1x128xf32> to vector<24x128xf32>
    %114 = arith.mulf %111, %113 : vector<24x128xf32>
    %115 = arith.addf %110, %114 : vector<24x128xf32>
    %116 = vector.extract_strided_slice %43 {offsets = [14, 0], sizes = [24, 128], strides = [1, 1]} : vector<54x128xf32> to vector<24x128xf32>
    %117 = vector.extract_strided_slice %44 {offsets = [14, 0], sizes = [1, 128], strides = [1, 1]} : vector<31x128xf32> to vector<1x128xf32>
    %118 = vector.broadcast %117 : vector<1x128xf32> to vector<24x128xf32>
    %119 = arith.mulf %116, %118 : vector<24x128xf32>
    %120 = arith.addf %115, %119 : vector<24x128xf32>
    %121 = vector.extract_strided_slice %43 {offsets = [15, 0], sizes = [24, 128], strides = [1, 1]} : vector<54x128xf32> to vector<24x128xf32>
    %122 = vector.extract_strided_slice %44 {offsets = [15, 0], sizes = [1, 128], strides = [1, 1]} : vector<31x128xf32> to vector<1x128xf32>
    %123 = vector.broadcast %122 : vector<1x128xf32> to vector<24x128xf32>
    %124 = arith.mulf %121, %123 : vector<24x128xf32>
    %125 = arith.addf %120, %124 : vector<24x128xf32>
    %126 = vector.extract_strided_slice %43 {offsets = [16, 0], sizes = [24, 128], strides = [1, 1]} : vector<54x128xf32> to vector<24x128xf32>
    %127 = vector.extract_strided_slice %44 {offsets = [16, 0], sizes = [1, 128], strides = [1, 1]} : vector<31x128xf32> to vector<1x128xf32>
    %128 = vector.broadcast %127 : vector<1x128xf32> to vector<24x128xf32>
    %129 = arith.mulf %126, %128 : vector<24x128xf32>
    %130 = arith.addf %125, %129 : vector<24x128xf32>
    %131 = vector.extract_strided_slice %43 {offsets = [17, 0], sizes = [24, 128], strides = [1, 1]} : vector<54x128xf32> to vector<24x128xf32>
    %132 = vector.extract_strided_slice %44 {offsets = [17, 0], sizes = [1, 128], strides = [1, 1]} : vector<31x128xf32> to vector<1x128xf32>
    %133 = vector.broadcast %132 : vector<1x128xf32> to vector<24x128xf32>
    %134 = arith.mulf %131, %133 : vector<24x128xf32>
    %135 = arith.addf %130, %134 : vector<24x128xf32>
    %136 = vector.extract_strided_slice %43 {offsets = [18, 0], sizes = [24, 128], strides = [1, 1]} : vector<54x128xf32> to vector<24x128xf32>
    %137 = vector.extract_strided_slice %44 {offsets = [18, 0], sizes = [1, 128], strides = [1, 1]} : vector<31x128xf32> to vector<1x128xf32>
    %138 = vector.broadcast %137 : vector<1x128xf32> to vector<24x128xf32>
    %139 = arith.mulf %136, %138 : vector<24x128xf32>
    %140 = arith.addf %135, %139 : vector<24x128xf32>
    %141 = vector.extract_strided_slice %43 {offsets = [19, 0], sizes = [24, 128], strides = [1, 1]} : vector<54x128xf32> to vector<24x128xf32>
    %142 = vector.extract_strided_slice %44 {offsets = [19, 0], sizes = [1, 128], strides = [1, 1]} : vector<31x128xf32> to vector<1x128xf32>
    %143 = vector.broadcast %142 : vector<1x128xf32> to vector<24x128xf32>
    %144 = arith.mulf %141, %143 : vector<24x128xf32>
    %145 = arith.addf %140, %144 : vector<24x128xf32>
    %146 = vector.extract_strided_slice %43 {offsets = [20, 0], sizes = [24, 128], strides = [1, 1]} : vector<54x128xf32> to vector<24x128xf32>
    %147 = vector.extract_strided_slice %44 {offsets = [20, 0], sizes = [1, 128], strides = [1, 1]} : vector<31x128xf32> to vector<1x128xf32>
    %148 = vector.broadcast %147 : vector<1x128xf32> to vector<24x128xf32>
    %149 = arith.mulf %146, %148 : vector<24x128xf32>
    %150 = arith.addf %145, %149 : vector<24x128xf32>
    %151 = vector.extract_strided_slice %43 {offsets = [21, 0], sizes = [24, 128], strides = [1, 1]} : vector<54x128xf32> to vector<24x128xf32>
    %152 = vector.extract_strided_slice %44 {offsets = [21, 0], sizes = [1, 128], strides = [1, 1]} : vector<31x128xf32> to vector<1x128xf32>
    %153 = vector.broadcast %152 : vector<1x128xf32> to vector<24x128xf32>
    %154 = arith.mulf %151, %153 : vector<24x128xf32>
    %155 = arith.addf %150, %154 : vector<24x128xf32>
    %156 = vector.extract_strided_slice %43 {offsets = [22, 0], sizes = [24, 128], strides = [1, 1]} : vector<54x128xf32> to vector<24x128xf32>
    %157 = vector.extract_strided_slice %44 {offsets = [22, 0], sizes = [1, 128], strides = [1, 1]} : vector<31x128xf32> to vector<1x128xf32>
    %158 = vector.broadcast %157 : vector<1x128xf32> to vector<24x128xf32>
    %159 = arith.mulf %156, %158 : vector<24x128xf32>
    %160 = arith.addf %155, %159 : vector<24x128xf32>
    %161 = vector.extract_strided_slice %43 {offsets = [23, 0], sizes = [24, 128], strides = [1, 1]} : vector<54x128xf32> to vector<24x128xf32>
    %162 = vector.extract_strided_slice %44 {offsets = [23, 0], sizes = [1, 128], strides = [1, 1]} : vector<31x128xf32> to vector<1x128xf32>
    %163 = vector.broadcast %162 : vector<1x128xf32> to vector<24x128xf32>
    %164 = arith.mulf %161, %163 : vector<24x128xf32>
    %165 = arith.addf %160, %164 : vector<24x128xf32>
    %166 = vector.extract_strided_slice %43 {offsets = [24, 0], sizes = [24, 128], strides = [1, 1]} : vector<54x128xf32> to vector<24x128xf32>
    %167 = vector.extract_strided_slice %44 {offsets = [24, 0], sizes = [1, 128], strides = [1, 1]} : vector<31x128xf32> to vector<1x128xf32>
    %168 = vector.broadcast %167 : vector<1x128xf32> to vector<24x128xf32>
    %169 = arith.mulf %166, %168 : vector<24x128xf32>
    %170 = arith.addf %165, %169 : vector<24x128xf32>
    %171 = vector.extract_strided_slice %43 {offsets = [25, 0], sizes = [24, 128], strides = [1, 1]} : vector<54x128xf32> to vector<24x128xf32>
    %172 = vector.extract_strided_slice %44 {offsets = [25, 0], sizes = [1, 128], strides = [1, 1]} : vector<31x128xf32> to vector<1x128xf32>
    %173 = vector.broadcast %172 : vector<1x128xf32> to vector<24x128xf32>
    %174 = arith.mulf %171, %173 : vector<24x128xf32>
    %175 = arith.addf %170, %174 : vector<24x128xf32>
    %176 = vector.extract_strided_slice %43 {offsets = [26, 0], sizes = [24, 128], strides = [1, 1]} : vector<54x128xf32> to vector<24x128xf32>
    %177 = vector.extract_strided_slice %44 {offsets = [26, 0], sizes = [1, 128], strides = [1, 1]} : vector<31x128xf32> to vector<1x128xf32>
    %178 = vector.broadcast %177 : vector<1x128xf32> to vector<24x128xf32>
    %179 = arith.mulf %176, %178 : vector<24x128xf32>
    %180 = arith.addf %175, %179 : vector<24x128xf32>
    %181 = vector.extract_strided_slice %43 {offsets = [27, 0], sizes = [24, 128], strides = [1, 1]} : vector<54x128xf32> to vector<24x128xf32>
    %182 = vector.extract_strided_slice %44 {offsets = [27, 0], sizes = [1, 128], strides = [1, 1]} : vector<31x128xf32> to vector<1x128xf32>
    %183 = vector.broadcast %182 : vector<1x128xf32> to vector<24x128xf32>
    %184 = arith.mulf %181, %183 : vector<24x128xf32>
    %185 = arith.addf %180, %184 : vector<24x128xf32>
    %186 = vector.extract_strided_slice %43 {offsets = [28, 0], sizes = [24, 128], strides = [1, 1]} : vector<54x128xf32> to vector<24x128xf32>
    %187 = vector.extract_strided_slice %44 {offsets = [28, 0], sizes = [1, 128], strides = [1, 1]} : vector<31x128xf32> to vector<1x128xf32>
    %188 = vector.broadcast %187 : vector<1x128xf32> to vector<24x128xf32>
    %189 = arith.mulf %186, %188 : vector<24x128xf32>
    %190 = arith.addf %185, %189 : vector<24x128xf32>
    %191 = vector.extract_strided_slice %43 {offsets = [29, 0], sizes = [24, 128], strides = [1, 1]} : vector<54x128xf32> to vector<24x128xf32>
    %192 = vector.extract_strided_slice %44 {offsets = [29, 0], sizes = [1, 128], strides = [1, 1]} : vector<31x128xf32> to vector<1x128xf32>
    %193 = vector.broadcast %192 : vector<1x128xf32> to vector<24x128xf32>
    %194 = arith.mulf %191, %193 : vector<24x128xf32>
    %195 = arith.addf %190, %194 : vector<24x128xf32>
    %196 = vector.extract_strided_slice %43 {offsets = [30, 0], sizes = [24, 128], strides = [1, 1]} : vector<54x128xf32> to vector<24x128xf32>
    %197 = vector.extract_strided_slice %44 {offsets = [30, 0], sizes = [1, 128], strides = [1, 1]} : vector<31x128xf32> to vector<1x128xf32>
    %198 = vector.broadcast %197 : vector<1x128xf32> to vector<24x128xf32>
    %199 = arith.mulf %196, %198 : vector<24x128xf32>
    %200 = arith.addf %195, %199 : vector<24x128xf32>
    %c0_26 = arith.constant 0 : index
    %c0_27 = arith.constant 0 : index
    %201 = vector.load %arg9[%c0_26, %c0_27] : memref<1x128xf32, #tpu.memory_space<vmem>>, vector<1x128xf32>
    %202 = vector.broadcast %201 : vector<1x128xf32> to vector<24x128xf32>
    %203 = arith.addf %200, %202 : vector<24x128xf32>
    %204 = arith.negf %203 : vector<24x128xf32>
    %205 = math.exp %204 : vector<24x128xf32>
    %cst_28 = arith.constant 1.000000e+00 : f32
    %206 = vector.broadcast %cst_28 : f32 to vector<24x128xf32>
    %207 = arith.addf %206, %205 : vector<24x128xf32>
    %208 = arith.divf %206, %207 : vector<24x128xf32>
    %209 = arith.mulf %203, %208 : vector<24x128xf32>
    %210 = arith.truncf %209 : vector<24x128xf32> to vector<24x128xbf16>
    %c0_29 = arith.constant 0 : index
    %c0_30 = arith.constant 0 : index
    %211 = vector.load %arg10[%c0_29, %c0_30] : memref<128x128xbf16, #tpu.memory_space<vmem>>, vector<128x128xbf16>
    %cst_31 = arith.constant dense<0.000000e+00> : vector<24x128xf32>
    %212 = tpu.matmul %210, %211, %cst_31 {dimension_numbers = #tpu.dot_dimension_numbers<[1], [0], [0], [1], [0, 0, 1, 1], [], []>} : vector<24x128xbf16>, vector<128x128xbf16>, vector<24x128xf32> -> vector<24x128xf32>
    %c0_32 = arith.constant 0 : index
    %c0_33 = arith.constant 0 : index
    %213 = vector.load %arg11[%c0_32, %c0_33] : memref<1x128xf32, #tpu.memory_space<vmem>>, vector<1x128xf32>
    %214 = vector.broadcast %213 : vector<1x128xf32> to vector<24x128xf32>
    %215 = arith.addf %212, %214 : vector<24x128xf32>
    %216 = arith.addf %1, %215 : vector<24x128xf32>
    %c0_34 = arith.constant 0 : index
    %c0_35 = arith.constant 0 : index
    %c0_36 = arith.constant 0 : index
    %217 = vector.load %arg12[%c0_34, %c0_35, %c0_36] : memref<1x24x128xf32, #tpu.memory_space<vmem>>, vector<1x24x128xf32>
    %218 = vector.shape_cast %217 : vector<1x24x128xf32> to vector<24x128xf32>
    %219 = vector.shape_cast %216 : vector<24x128xf32> to vector<1x24x128xf32>
    tpu.vector_store %arg12[%c0_34, %c0_35, %c0_36], %219 {strides = array<i32>} : memref<1x24x128xf32, #tpu.memory_space<vmem>>, vector<1x24x128xf32>,
    return
  }
  func.func @transform_0(%arg0: i32) -> (i32, i32, i32) {
    %c0_i32 = arith.constant 0 : i32
    %c0_i32_0 = arith.constant 0 : i32
    %c0_i32_1 = arith.constant 0 : i32
    return %arg0, %c0_i32, %c0_i32_0 : i32, i32, i32
  }
  func.func @transform_1(%arg0: i32) -> (i32, i32) {
    %c0_i32 = arith.constant 0 : i32
    %c0_i32_0 = arith.constant 0 : i32
    %c0_i32_1 = arith.constant 0 : i32
    return %c0_i32, %c0_i32_0 : i32, i32
  }
  func.func @transform_2(%arg0: i32) -> (i32, i32) {
    %c0_i32 = arith.constant 0 : i32
    %c0_i32_0 = arith.constant 0 : i32
    %c0_i32_1 = arith.constant 0 : i32
    return %c0_i32, %c0_i32_0 : i32, i32
  }
  func.func @transform_3(%arg0: i32) -> (i32, i32) {
    %c0_i32 = arith.constant 0 : i32
    %c0_i32_0 = arith.constant 0 : i32
    %c0_i32_1 = arith.constant 0 : i32
    return %c0_i32, %c0_i32_0 : i32, i32
  }
  func.func @transform_4(%arg0: i32) -> (i32, i32) {
    %c0_i32 = arith.constant 0 : i32
    %c0_i32_0 = arith.constant 0 : i32
    %c0_i32_1 = arith.constant 0 : i32
    return %c0_i32, %c0_i32_0 : i32, i32
  }
  func.func @transform_5(%arg0: i32) -> (i32, i32) {
    %c0_i32 = arith.constant 0 : i32
    %c0_i32_0 = arith.constant 0 : i32
    %c0_i32_1 = arith.constant 0 : i32
    return %c0_i32, %c0_i32_0 : i32, i32
  }
  func.func @transform_6(%arg0: i32) -> (i32, i32) {
    %c0_i32 = arith.constant 0 : i32
    %c0_i32_0 = arith.constant 0 : i32
    %c0_i32_1 = arith.constant 0 : i32
    return %c0_i32, %c0_i32_0 : i32, i32
  }
  func.func @transform_7(%arg0: i32) -> (i32, i32) {
    %c0_i32 = arith.constant 0 : i32
    %c0_i32_0 = arith.constant 0 : i32
    %c0_i32_1 = arith.constant 0 : i32
    return %c0_i32, %c0_i32_0 : i32, i32
  }
  func.func @transform_8(%arg0: i32) -> (i32, i32) {
    %c0_i32 = arith.constant 0 : i32
    %c0_i32_0 = arith.constant 0 : i32
    %c0_i32_1 = arith.constant 0 : i32
    return %c0_i32, %c0_i32_0 : i32, i32
  }
  func.func @transform_9(%arg0: i32) -> (i32, i32) {
    %c0_i32 = arith.constant 0 : i32
    %c0_i32_0 = arith.constant 0 : i32
    %c0_i32_1 = arith.constant 0 : i32
    return %c0_i32, %c0_i32_0 : i32, i32
  }
  func.func @transform_10(%arg0: i32) -> (i32, i32) {
    %c0_i32 = arith.constant 0 : i32
    %c0_i32_0 = arith.constant 0 : i32
    %c0_i32_1 = arith.constant 0 : i32
    return %c0_i32, %c0_i32_0 : i32, i32
  }
  func.func @transform_11(%arg0: i32) -> (i32, i32, i32) {
    %c0_i32 = arith.constant 0 : i32
    %c0_i32_0 = arith.constant 0 : i32
    %c0_i32_1 = arith.constant 0 : i32
    return %arg0, %c0_i32, %c0_i32_0 : i32, i32, i32
  }
}

module attributes {stable_mosaic.version = 11 : i64} {
  func.func @_ffn_kernel(%arg0: i32, %arg1: memref<48x128xf32, #tpu.memory_space<vmem>>, %arg2: memref<1x128xf32, #tpu.memory_space<vmem>>, %arg3: memref<1x128xf32, #tpu.memory_space<vmem>>, %arg4: memref<128x512xbf16, #tpu.memory_space<vmem>>, %arg5: memref<1x512xf32, #tpu.memory_space<vmem>>, %arg6: memref<512x128xbf16, #tpu.memory_space<vmem>>, %arg7: memref<1x128xf32, #tpu.memory_space<vmem>>, %arg8: memref<1x128xf32, #tpu.memory_space<vmem>>, %arg9: memref<1x128xf32, #tpu.memory_space<vmem>>, %arg10: memref<48x128xf32, #tpu.memory_space<vmem>>) attributes {dimension_semantics = [#tpu.dimension_semantics<parallel>], iteration_bounds = array<i64: 1>, scalar_prefetch = 0 : i64, scratch_operands = 0 : i64, tpu.core_type = #tpu.core_type<tc>, window_params = [{transform_indices = @transform_0, window_bounds = array<i64: 48, 128>}, {pipeline_mode = #tpu.pipeline_mode<synchronous>, transform_indices = @transform_1, window_bounds = array<i64: 1, 128>}, {pipeline_mode = #tpu.pipeline_mode<synchronous>, transform_indices = @transform_2, window_bounds = array<i64: 1, 128>}, {pipeline_mode = #tpu.pipeline_mode<synchronous>, transform_indices = @transform_3, window_bounds = array<i64: 128, 512>}, {pipeline_mode = #tpu.pipeline_mode<synchronous>, transform_indices = @transform_4, window_bounds = array<i64: 1, 512>}, {pipeline_mode = #tpu.pipeline_mode<synchronous>, transform_indices = @transform_5, window_bounds = array<i64: 512, 128>}, {pipeline_mode = #tpu.pipeline_mode<synchronous>, transform_indices = @transform_6, window_bounds = array<i64: 1, 128>}, {pipeline_mode = #tpu.pipeline_mode<synchronous>, transform_indices = @transform_7, window_bounds = array<i64: 1, 128>}, {pipeline_mode = #tpu.pipeline_mode<synchronous>, transform_indices = @transform_8, window_bounds = array<i64: 1, 128>}, {transform_indices = @transform_9, window_bounds = array<i64: 48, 128>}]} {
    %c0 = arith.constant 0 : index
    %c0_0 = arith.constant 0 : index
    %0 = vector.load %arg1[%c0, %c0_0] : memref<48x128xf32, #tpu.memory_space<vmem>>, vector<48x128xf32>
    %cst = arith.constant dense<0.000000e+00> : vector<48xf32>
    %1 = vector.multi_reduction <add>, %0, %cst [1] : vector<48x128xf32> to vector<48xf32>
    %2 = vector.shape_cast %1 : vector<48xf32> to vector<48x1xf32>
    %cst_1 = arith.constant 1.280000e+02 : f32
    %3 = vector.broadcast %cst_1 : f32 to vector<48x1xf32>
    %4 = arith.divf %2, %3 : vector<48x1xf32>
    %5 = vector.broadcast %4 : vector<48x1xf32> to vector<48x128xf32>
    %6 = arith.subf %0, %5 : vector<48x128xf32>
    %7 = arith.mulf %6, %6 : vector<48x128xf32>
    %cst_2 = arith.constant dense<0.000000e+00> : vector<48xf32>
    %8 = vector.multi_reduction <add>, %7, %cst_2 [1] : vector<48x128xf32> to vector<48xf32>
    %9 = vector.shape_cast %8 : vector<48xf32> to vector<48x1xf32>
    %cst_3 = arith.constant 1.280000e+02 : f32
    %10 = vector.broadcast %cst_3 : f32 to vector<48x1xf32>
    %11 = arith.divf %9, %10 : vector<48x1xf32>
    %cst_4 = arith.constant 9.99999974E-6 : f32
    %12 = vector.broadcast %cst_4 : f32 to vector<48x1xf32>
    %13 = arith.addf %11, %12 : vector<48x1xf32>
    %14 = math.rsqrt %13 : vector<48x1xf32>
    %15 = vector.broadcast %14 : vector<48x1xf32> to vector<48x128xf32>
    %16 = arith.mulf %6, %15 : vector<48x128xf32>
    %c0_5 = arith.constant 0 : index
    %c0_6 = arith.constant 0 : index
    %17 = vector.load %arg2[%c0_5, %c0_6] : memref<1x128xf32, #tpu.memory_space<vmem>>, vector<1x128xf32>
    %18 = vector.broadcast %17 : vector<1x128xf32> to vector<48x128xf32>
    %19 = arith.mulf %16, %18 : vector<48x128xf32>
    %c0_7 = arith.constant 0 : index
    %c0_8 = arith.constant 0 : index
    %20 = vector.load %arg3[%c0_7, %c0_8] : memref<1x128xf32, #tpu.memory_space<vmem>>, vector<1x128xf32>
    %21 = vector.broadcast %20 : vector<1x128xf32> to vector<48x128xf32>
    %22 = arith.addf %19, %21 : vector<48x128xf32>
    %23 = arith.truncf %22 : vector<48x128xf32> to vector<48x128xbf16>
    %c0_9 = arith.constant 0 : index
    %c0_10 = arith.constant 0 : index
    %24 = vector.load %arg4[%c0_9, %c0_10] : memref<128x512xbf16, #tpu.memory_space<vmem>>, vector<128x512xbf16>
    %cst_11 = arith.constant dense<0.000000e+00> : vector<48x512xf32>
    %25 = tpu.matmul %23, %24, %cst_11 {dimension_numbers = #tpu.dot_dimension_numbers<[1], [0], [0], [1], [0, 0, 1, 1], [], []>} : vector<48x128xbf16>, vector<128x512xbf16>, vector<48x512xf32> -> vector<48x512xf32>
    %c0_12 = arith.constant 0 : index
    %c0_13 = arith.constant 0 : index
    %26 = vector.load %arg5[%c0_12, %c0_13] : memref<1x512xf32, #tpu.memory_space<vmem>>, vector<1x512xf32>
    %27 = vector.broadcast %26 : vector<1x512xf32> to vector<48x512xf32>
    %28 = arith.addf %25, %27 : vector<48x512xf32>
    %29 = arith.negf %28 : vector<48x512xf32>
    %30 = math.exp %29 : vector<48x512xf32>
    %cst_14 = arith.constant 1.000000e+00 : f32
    %31 = vector.broadcast %cst_14 : f32 to vector<48x512xf32>
    %32 = arith.addf %31, %30 : vector<48x512xf32>
    %33 = arith.divf %31, %32 : vector<48x512xf32>
    %34 = arith.mulf %28, %33 : vector<48x512xf32>
    %35 = arith.truncf %34 : vector<48x512xf32> to vector<48x512xbf16>
    %c0_15 = arith.constant 0 : index
    %c0_16 = arith.constant 0 : index
    %36 = vector.load %arg6[%c0_15, %c0_16] : memref<512x128xbf16, #tpu.memory_space<vmem>>, vector<512x128xbf16>
    %cst_17 = arith.constant dense<0.000000e+00> : vector<48x128xf32>
    %37 = tpu.matmul %35, %36, %cst_17 {dimension_numbers = #tpu.dot_dimension_numbers<[1], [0], [0], [1], [0, 0, 1, 1], [], []>} : vector<48x512xbf16>, vector<512x128xbf16>, vector<48x128xf32> -> vector<48x128xf32>
    %c0_18 = arith.constant 0 : index
    %c0_19 = arith.constant 0 : index
    %38 = vector.load %arg7[%c0_18, %c0_19] : memref<1x128xf32, #tpu.memory_space<vmem>>, vector<1x128xf32>
    %39 = vector.broadcast %38 : vector<1x128xf32> to vector<48x128xf32>
    %40 = arith.addf %37, %39 : vector<48x128xf32>
    %cst_20 = arith.constant 5.000000e-01 : f32
    %41 = vector.broadcast %cst_20 : f32 to vector<48x128xf32>
    %42 = arith.mulf %41, %40 : vector<48x128xf32>
    %43 = arith.addf %0, %42 : vector<48x128xf32>
    %cst_21 = arith.constant dense<0.000000e+00> : vector<48xf32>
    %44 = vector.multi_reduction <add>, %43, %cst_21 [1] : vector<48x128xf32> to vector<48xf32>
    %45 = vector.shape_cast %44 : vector<48xf32> to vector<48x1xf32>
    %cst_22 = arith.constant 1.280000e+02 : f32
    %46 = vector.broadcast %cst_22 : f32 to vector<48x1xf32>
    %47 = arith.divf %45, %46 : vector<48x1xf32>
    %48 = vector.broadcast %47 : vector<48x1xf32> to vector<48x128xf32>
    %49 = arith.subf %43, %48 : vector<48x128xf32>
    %50 = arith.mulf %49, %49 : vector<48x128xf32>
    %cst_23 = arith.constant dense<0.000000e+00> : vector<48xf32>
    %51 = vector.multi_reduction <add>, %50, %cst_23 [1] : vector<48x128xf32> to vector<48xf32>
    %52 = vector.shape_cast %51 : vector<48xf32> to vector<48x1xf32>
    %cst_24 = arith.constant 1.280000e+02 : f32
    %53 = vector.broadcast %cst_24 : f32 to vector<48x1xf32>
    %54 = arith.divf %52, %53 : vector<48x1xf32>
    %cst_25 = arith.constant 9.99999974E-6 : f32
    %55 = vector.broadcast %cst_25 : f32 to vector<48x1xf32>
    %56 = arith.addf %54, %55 : vector<48x1xf32>
    %57 = math.rsqrt %56 : vector<48x1xf32>
    %58 = vector.broadcast %57 : vector<48x1xf32> to vector<48x128xf32>
    %59 = arith.mulf %49, %58 : vector<48x128xf32>
    %c0_26 = arith.constant 0 : index
    %c0_27 = arith.constant 0 : index
    %60 = vector.load %arg8[%c0_26, %c0_27] : memref<1x128xf32, #tpu.memory_space<vmem>>, vector<1x128xf32>
    %61 = vector.broadcast %60 : vector<1x128xf32> to vector<48x128xf32>
    %62 = arith.mulf %59, %61 : vector<48x128xf32>
    %c0_28 = arith.constant 0 : index
    %c0_29 = arith.constant 0 : index
    %63 = vector.load %arg9[%c0_28, %c0_29] : memref<1x128xf32, #tpu.memory_space<vmem>>, vector<1x128xf32>
    %64 = vector.broadcast %63 : vector<1x128xf32> to vector<48x128xf32>
    %65 = arith.addf %62, %64 : vector<48x128xf32>
    %c0_30 = arith.constant 0 : index
    %c0_31 = arith.constant 0 : index
    %66 = vector.load %arg10[%c0_30, %c0_31] : memref<48x128xf32, #tpu.memory_space<vmem>>, vector<48x128xf32>
    tpu.vector_store %arg10[%c0_30, %c0_31], %65 {strides = array<i32>} : memref<48x128xf32, #tpu.memory_space<vmem>>, vector<48x128xf32>,
    return
  }
  func.func @transform_0(%arg0: i32) -> (i32, i32) {
    %c0_i32 = arith.constant 0 : i32
    %c0_i32_0 = arith.constant 0 : i32
    return %arg0, %c0_i32 : i32, i32
  }
  func.func @transform_1(%arg0: i32) -> (i32, i32) {
    %c0_i32 = arith.constant 0 : i32
    %c0_i32_0 = arith.constant 0 : i32
    %c0_i32_1 = arith.constant 0 : i32
    return %c0_i32, %c0_i32_0 : i32, i32
  }
  func.func @transform_2(%arg0: i32) -> (i32, i32) {
    %c0_i32 = arith.constant 0 : i32
    %c0_i32_0 = arith.constant 0 : i32
    %c0_i32_1 = arith.constant 0 : i32
    return %c0_i32, %c0_i32_0 : i32, i32
  }
  func.func @transform_3(%arg0: i32) -> (i32, i32) {
    %c0_i32 = arith.constant 0 : i32
    %c0_i32_0 = arith.constant 0 : i32
    %c0_i32_1 = arith.constant 0 : i32
    return %c0_i32, %c0_i32_0 : i32, i32
  }
  func.func @transform_4(%arg0: i32) -> (i32, i32) {
    %c0_i32 = arith.constant 0 : i32
    %c0_i32_0 = arith.constant 0 : i32
    %c0_i32_1 = arith.constant 0 : i32
    return %c0_i32, %c0_i32_0 : i32, i32
  }
  func.func @transform_5(%arg0: i32) -> (i32, i32) {
    %c0_i32 = arith.constant 0 : i32
    %c0_i32_0 = arith.constant 0 : i32
    %c0_i32_1 = arith.constant 0 : i32
    return %c0_i32, %c0_i32_0 : i32, i32
  }
  func.func @transform_6(%arg0: i32) -> (i32, i32) {
    %c0_i32 = arith.constant 0 : i32
    %c0_i32_0 = arith.constant 0 : i32
    %c0_i32_1 = arith.constant 0 : i32
    return %c0_i32, %c0_i32_0 : i32, i32
  }
  func.func @transform_7(%arg0: i32) -> (i32, i32) {
    %c0_i32 = arith.constant 0 : i32
    %c0_i32_0 = arith.constant 0 : i32
    %c0_i32_1 = arith.constant 0 : i32
    return %c0_i32, %c0_i32_0 : i32, i32
  }
  func.func @transform_8(%arg0: i32) -> (i32, i32) {
    %c0_i32 = arith.constant 0 : i32
    %c0_i32_0 = arith.constant 0 : i32
    %c0_i32_1 = arith.constant 0 : i32
    return %c0_i32, %c0_i32_0 : i32, i32
  }
  func.func @transform_9(%arg0: i32) -> (i32, i32) {
    %c0_i32 = arith.constant 0 : i32
    %c0_i32_0 = arith.constant 0 : i32
    return %arg0, %c0_i32 : i32, i32
  }
}

module attributes {stable_mosaic.version = 11 : i64} {
  func.func @_linear_kernel(%arg0: i32, %arg1: memref<48x128xf32, #tpu.memory_space<vmem>>, %arg2: memref<128x1024xbf16, #tpu.memory_space<vmem>>, %arg3: memref<1x1024xf32, #tpu.memory_space<vmem>>, %arg4: memref<48x1024xf32, #tpu.memory_space<vmem>>) attributes {dimension_semantics = [#tpu.dimension_semantics<parallel>], iteration_bounds = array<i64: 1>, scalar_prefetch = 0 : i64, scratch_operands = 0 : i64, tpu.core_type = #tpu.core_type<tc>, window_params = [{transform_indices = @transform_0, window_bounds = array<i64: 48, 128>}, {pipeline_mode = #tpu.pipeline_mode<synchronous>, transform_indices = @transform_1, window_bounds = array<i64: 128, 1024>}, {pipeline_mode = #tpu.pipeline_mode<synchronous>, transform_indices = @transform_2, window_bounds = array<i64: 1, 1024>}, {transform_indices = @transform_3, window_bounds = array<i64: 48, 1024>}]} {
    %c0 = arith.constant 0 : index
    %c0_0 = arith.constant 0 : index
    %0 = vector.load %arg1[%c0, %c0_0] : memref<48x128xf32, #tpu.memory_space<vmem>>, vector<48x128xf32>
    %1 = arith.truncf %0 : vector<48x128xf32> to vector<48x128xbf16>
    %c0_1 = arith.constant 0 : index
    %c0_2 = arith.constant 0 : index
    %2 = vector.load %arg2[%c0_1, %c0_2] : memref<128x1024xbf16, #tpu.memory_space<vmem>>, vector<128x1024xbf16>
    %cst = arith.constant dense<0.000000e+00> : vector<48x1024xf32>
    %3 = tpu.matmul %1, %2, %cst {dimension_numbers = #tpu.dot_dimension_numbers<[1], [0], [0], [1], [0, 0, 1, 1], [], []>} : vector<48x128xbf16>, vector<128x1024xbf16>, vector<48x1024xf32> -> vector<48x1024xf32>
    %c0_3 = arith.constant 0 : index
    %c0_4 = arith.constant 0 : index
    %4 = vector.load %arg3[%c0_3, %c0_4] : memref<1x1024xf32, #tpu.memory_space<vmem>>, vector<1x1024xf32>
    %5 = vector.broadcast %4 : vector<1x1024xf32> to vector<48x1024xf32>
    %6 = arith.addf %3, %5 : vector<48x1024xf32>
    %c0_5 = arith.constant 0 : index
    %c0_6 = arith.constant 0 : index
    %7 = vector.load %arg4[%c0_5, %c0_6] : memref<48x1024xf32, #tpu.memory_space<vmem>>, vector<48x1024xf32>
    tpu.vector_store %arg4[%c0_5, %c0_6], %6 {strides = array<i32>} : memref<48x1024xf32, #tpu.memory_space<vmem>>, vector<48x1024xf32>,
    return
  }
  func.func @transform_0(%arg0: i32) -> (i32, i32) {
    %c0_i32 = arith.constant 0 : i32
    %c0_i32_0 = arith.constant 0 : i32
    return %arg0, %c0_i32 : i32, i32
  }
  func.func @transform_1(%arg0: i32) -> (i32, i32) {
    %c0_i32 = arith.constant 0 : i32
    %c0_i32_0 = arith.constant 0 : i32
    %c0_i32_1 = arith.constant 0 : i32
    return %c0_i32, %c0_i32_0 : i32, i32
  }
  func.func @transform_2(%arg0: i32) -> (i32, i32) {
    %c0_i32 = arith.constant 0 : i32
    %c0_i32_0 = arith.constant 0 : i32
    %c0_i32_1 = arith.constant 0 : i32
    return %c0_i32, %c0_i32_0 : i32, i32
  }
  func.func @transform_3(%arg0: i32) -> (i32, i32) {
    %c0_i32 = arith.constant 0 : i32
    %c0_i32_0 = arith.constant 0 : i32
    return %arg0, %c0_i32 : i32, i32
  }
}

module attributes {stable_mosaic.version = 11 : i64} {
  func.func @_bilstm_kernel(%arg0: memref<24x2x1024xf32, #tpu.memory_space<vmem>>, %arg1: memref<128x512xf32, #tpu.memory_space<vmem>>, %arg2: memref<128x512xf32, #tpu.memory_space<vmem>>, %arg3: memref<24x2x128xf32, #tpu.memory_space<vmem>>, %arg4: memref<24x2x128xf32, #tpu.memory_space<vmem>>, %arg5: memref<2x128xf32, #tpu.memory_space<vmem>>, %arg6: memref<2x128xf32, #tpu.memory_space<vmem>>, %arg7: memref<2x128xf32, #tpu.memory_space<vmem>>, %arg8: memref<2x128xf32, #tpu.memory_space<vmem>>) attributes {dimension_semantics = [], scalar_prefetch = 0 : i64, scratch_operands = 4 : i64, tpu.core_type = #tpu.core_type<tc>} {
    %cst = arith.constant 0.000000e+00 : f32
    %0 = vector.broadcast %cst : f32 to vector<2x128xf32>
    %c0 = arith.constant 0 : index
    %c0_0 = arith.constant 0 : index
    %1 = vector.load %arg5[%c0, %c0_0] : memref<2x128xf32, #tpu.memory_space<vmem>>, vector<2x128xf32>
    tpu.vector_store %arg5[%c0, %c0_0], %0 {strides = array<i32>} : memref<2x128xf32, #tpu.memory_space<vmem>>, vector<2x128xf32>,
    %cst_1 = arith.constant 0.000000e+00 : f32
    %2 = vector.broadcast %cst_1 : f32 to vector<2x128xf32>
    %c0_2 = arith.constant 0 : index
    %c0_3 = arith.constant 0 : index
    %3 = vector.load %arg6[%c0_2, %c0_3] : memref<2x128xf32, #tpu.memory_space<vmem>>, vector<2x128xf32>
    tpu.vector_store %arg6[%c0_2, %c0_3], %2 {strides = array<i32>} : memref<2x128xf32, #tpu.memory_space<vmem>>, vector<2x128xf32>,
    %cst_4 = arith.constant 0.000000e+00 : f32
    %4 = vector.broadcast %cst_4 : f32 to vector<2x128xf32>
    %c0_5 = arith.constant 0 : index
    %c0_6 = arith.constant 0 : index
    %5 = vector.load %arg7[%c0_5, %c0_6] : memref<2x128xf32, #tpu.memory_space<vmem>>, vector<2x128xf32>
    tpu.vector_store %arg7[%c0_5, %c0_6], %4 {strides = array<i32>} : memref<2x128xf32, #tpu.memory_space<vmem>>, vector<2x128xf32>,
    %cst_7 = arith.constant 0.000000e+00 : f32
    %6 = vector.broadcast %cst_7 : f32 to vector<2x128xf32>
    %c0_8 = arith.constant 0 : index
    %c0_9 = arith.constant 0 : index
    %7 = vector.load %arg8[%c0_8, %c0_9] : memref<2x128xf32, #tpu.memory_space<vmem>>, vector<2x128xf32>
    tpu.vector_store %arg8[%c0_8, %c0_9], %6 {strides = array<i32>} : memref<2x128xf32, #tpu.memory_space<vmem>>, vector<2x128xf32>,
    %c0_i32 = arith.constant 0 : i32
    %c24_i32 = arith.constant 24 : i32
    %8 = arith.addi %c0_i32, %c24_i32 : i32
    %c1_i32 = arith.constant 1 : i32
    scf.for %arg9 = %c0_i32 to %8 step %c1_i32  : i32 {
      %c1_i32_11 = arith.constant 1 : i32
      %9 = arith.muli %arg9, %c1_i32_11 : i32
      %c0_i32_12 = arith.constant 0 : i32
      %10 = arith.addi %c0_i32_12, %9 : i32
      %c23_i32 = arith.constant 23 : i32
      %11 = arith.subi %c23_i32, %10 : i32
      %12 = arith.index_cast %10 : i32 to index
      %c0_13 = arith.constant 0 : index
      %c0_14 = arith.constant 0 : index
      %13 = vector.load %arg0[%12, %c0_13, %c0_14] : memref<24x2x1024xf32, #tpu.memory_space<vmem>>, vector<1x2x1024xf32>
      %14 = vector.shape_cast %13 : vector<1x2x1024xf32> to vector<2x1024xf32>
      %15 = arith.index_cast %11 : i32 to index
      %c0_15 = arith.constant 0 : index
      %c0_16 = arith.constant 0 : index
      %16 = vector.load %arg0[%15, %c0_15, %c0_16] : memref<24x2x1024xf32, #tpu.memory_space<vmem>>, vector<1x2x1024xf32>
      %17 = vector.shape_cast %16 : vector<1x2x1024xf32> to vector<2x1024xf32>
      %18 = vector.extract_strided_slice %14 {offsets = [0, 0], sizes = [2, 512], strides = [1, 1]} : vector<2x1024xf32> to vector<2x512xf32>
      %c0_17 = arith.constant 0 : index
      %c0_18 = arith.constant 0 : index
      %19 = vector.load %arg5[%c0_17, %c0_18] : memref<2x128xf32, #tpu.memory_space<vmem>>, vector<2x128xf32>
      %c0_19 = arith.constant 0 : index
      %c0_20 = arith.constant 0 : index
      %20 = vector.load %arg1[%c0_19, %c0_20] : memref<128x512xf32, #tpu.memory_space<vmem>>, vector<128x512xf32>
      %cst_21 = arith.constant dense<0.000000e+00> : vector<2x512xf32>
      %21 = tpu.matmul %19, %20, %cst_21 {dimension_numbers = #tpu.dot_dimension_numbers<[1], [0], [0], [1], [0, 0, 1, 1], [], []>} : vector<2x128xf32>, vector<128x512xf32>, vector<2x512xf32> -> vector<2x512xf32>
      %22 = arith.addf %18, %21 : vector<2x512xf32>
      %23 = vector.extract_strided_slice %17 {offsets = [0, 512], sizes = [2, 512], strides = [1, 1]} : vector<2x1024xf32> to vector<2x512xf32>
      %c0_22 = arith.constant 0 : index
      %c0_23 = arith.constant 0 : index
      %24 = vector.load %arg7[%c0_22, %c0_23] : memref<2x128xf32, #tpu.memory_space<vmem>>, vector<2x128xf32>
      %c0_24 = arith.constant 0 : index
      %c0_25 = arith.constant 0 : index
      %25 = vector.load %arg2[%c0_24, %c0_25] : memref<128x512xf32, #tpu.memory_space<vmem>>, vector<128x512xf32>
      %cst_26 = arith.constant dense<0.000000e+00> : vector<2x512xf32>
      %26 = tpu.matmul %24, %25, %cst_26 {dimension_numbers = #tpu.dot_dimension_numbers<[1], [0], [0], [1], [0, 0, 1, 1], [], []>} : vector<2x128xf32>, vector<128x512xf32>, vector<2x512xf32> -> vector<2x512xf32>
      %27 = arith.addf %23, %26 : vector<2x512xf32>
      %c0_27 = arith.constant 0 : index
      %c0_28 = arith.constant 0 : index
      %28 = vector.load %arg6[%c0_27, %c0_28] : memref<2x128xf32, #tpu.memory_space<vmem>>, vector<2x128xf32>
      %29 = vector.extract_strided_slice %22 {offsets = [0, 0], sizes = [2, 128], strides = [1, 1]} : vector<2x512xf32> to vector<2x128xf32>
      %30 = arith.negf %29 : vector<2x128xf32>
      %31 = math.exp %30 : vector<2x128xf32>
      %cst_29 = arith.constant 1.000000e+00 : f32
      %32 = vector.broadcast %cst_29 : f32 to vector<2x128xf32>
      %33 = arith.addf %32, %31 : vector<2x128xf32>
      %34 = arith.divf %32, %33 : vector<2x128xf32>
      %35 = vector.extract_strided_slice %22 {offsets = [0, 128], sizes = [2, 128], strides = [1, 1]} : vector<2x512xf32> to vector<2x128xf32>
      %36 = arith.negf %35 : vector<2x128xf32>
      %37 = math.exp %36 : vector<2x128xf32>
      %cst_30 = arith.constant 1.000000e+00 : f32
      %38 = vector.broadcast %cst_30 : f32 to vector<2x128xf32>
      %39 = arith.addf %38, %37 : vector<2x128xf32>
      %40 = arith.divf %38, %39 : vector<2x128xf32>
      %41 = vector.extract_strided_slice %22 {offsets = [0, 256], sizes = [2, 128], strides = [1, 1]} : vector<2x512xf32> to vector<2x128xf32>
      %42 = math.tanh %41 : vector<2x128xf32>
      %43 = vector.extract_strided_slice %22 {offsets = [0, 384], sizes = [2, 128], strides = [1, 1]} : vector<2x512xf32> to vector<2x128xf32>
      %44 = arith.negf %43 : vector<2x128xf32>
      %45 = math.exp %44 : vector<2x128xf32>
      %cst_31 = arith.constant 1.000000e+00 : f32
      %46 = vector.broadcast %cst_31 : f32 to vector<2x128xf32>
      %47 = arith.addf %46, %45 : vector<2x128xf32>
      %48 = arith.divf %46, %47 : vector<2x128xf32>
      %49 = arith.mulf %40, %28 : vector<2x128xf32>
      %50 = arith.mulf %34, %42 : vector<2x128xf32>
      %51 = arith.addf %49, %50 : vector<2x128xf32>
      %52 = math.tanh %51 : vector<2x128xf32>
      %53 = arith.mulf %48, %52 : vector<2x128xf32>
      %c0_32 = arith.constant 0 : index
      %c0_33 = arith.constant 0 : index
      %54 = vector.load %arg5[%c0_32, %c0_33] : memref<2x128xf32, #tpu.memory_space<vmem>>, vector<2x128xf32>
      tpu.vector_store %arg5[%c0_32, %c0_33], %53 {strides = array<i32>} : memref<2x128xf32, #tpu.memory_space<vmem>>, vector<2x128xf32>,
      %c0_34 = arith.constant 0 : index
      %c0_35 = arith.constant 0 : index
      %55 = vector.load %arg6[%c0_34, %c0_35] : memref<2x128xf32, #tpu.memory_space<vmem>>, vector<2x128xf32>
      tpu.vector_store %arg6[%c0_34, %c0_35], %51 {strides = array<i32>} : memref<2x128xf32, #tpu.memory_space<vmem>>, vector<2x128xf32>,
      %56 = arith.index_cast %10 : i32 to index
      %c0_36 = arith.constant 0 : index
      %c0_37 = arith.constant 0 : index
      %57 = vector.load %arg3[%56, %c0_36, %c0_37] : memref<24x2x128xf32, #tpu.memory_space<vmem>>, vector<1x2x128xf32>
      %58 = vector.shape_cast %57 : vector<1x2x128xf32> to vector<2x128xf32>
      %59 = vector.shape_cast %53 : vector<2x128xf32> to vector<1x2x128xf32>
      tpu.vector_store %arg3[%56, %c0_36, %c0_37], %59 {strides = array<i32>} : memref<24x2x128xf32, #tpu.memory_space<vmem>>, vector<1x2x128xf32>,
      %c0_38 = arith.constant 0 : index
      %c0_39 = arith.constant 0 : index
      %60 = vector.load %arg8[%c0_38, %c0_39] : memref<2x128xf32, #tpu.memory_space<vmem>>, vector<2x128xf32>
      %61 = vector.extract_strided_slice %27 {offsets = [0, 0], sizes = [2, 128], strides = [1, 1]} : vector<2x512xf32> to vector<2x128xf32>
      %62 = arith.negf %61 : vector<2x128xf32>
      %63 = math.exp %62 : vector<2x128xf32>
      %cst_40 = arith.constant 1.000000e+00 : f32
      %64 = vector.broadcast %cst_40 : f32 to vector<2x128xf32>
      %65 = arith.addf %64, %63 : vector<2x128xf32>
      %66 = arith.divf %64, %65 : vector<2x128xf32>
      %67 = vector.extract_strided_slice %27 {offsets = [0, 128], sizes = [2, 128], strides = [1, 1]} : vector<2x512xf32> to vector<2x128xf32>
      %68 = arith.negf %67 : vector<2x128xf32>
      %69 = math.exp %68 : vector<2x128xf32>
      %cst_41 = arith.constant 1.000000e+00 : f32
      %70 = vector.broadcast %cst_41 : f32 to vector<2x128xf32>
      %71 = arith.addf %70, %69 : vector<2x128xf32>
      %72 = arith.divf %70, %71 : vector<2x128xf32>
      %73 = vector.extract_strided_slice %27 {offsets = [0, 256], sizes = [2, 128], strides = [1, 1]} : vector<2x512xf32> to vector<2x128xf32>
      %74 = math.tanh %73 : vector<2x128xf32>
      %75 = vector.extract_strided_slice %27 {offsets = [0, 384], sizes = [2, 128], strides = [1, 1]} : vector<2x512xf32> to vector<2x128xf32>
      %76 = arith.negf %75 : vector<2x128xf32>
      %77 = math.exp %76 : vector<2x128xf32>
      %cst_42 = arith.constant 1.000000e+00 : f32
      %78 = vector.broadcast %cst_42 : f32 to vector<2x128xf32>
      %79 = arith.addf %78, %77 : vector<2x128xf32>
      %80 = arith.divf %78, %79 : vector<2x128xf32>
      %81 = arith.mulf %72, %60 : vector<2x128xf32>
      %82 = arith.mulf %66, %74 : vector<2x128xf32>
      %83 = arith.addf %81, %82 : vector<2x128xf32>
      %84 = math.tanh %83 : vector<2x128xf32>
      %85 = arith.mulf %80, %84 : vector<2x128xf32>
      %c0_43 = arith.constant 0 : index
      %c0_44 = arith.constant 0 : index
      %86 = vector.load %arg7[%c0_43, %c0_44] : memref<2x128xf32, #tpu.memory_space<vmem>>, vector<2x128xf32>
      tpu.vector_store %arg7[%c0_43, %c0_44], %85 {strides = array<i32>} : memref<2x128xf32, #tpu.memory_space<vmem>>, vector<2x128xf32>,
      %c0_45 = arith.constant 0 : index
      %c0_46 = arith.constant 0 : index
      %87 = vector.load %arg8[%c0_45, %c0_46] : memref<2x128xf32, #tpu.memory_space<vmem>>, vector<2x128xf32>
      tpu.vector_store %arg8[%c0_45, %c0_46], %83 {strides = array<i32>} : memref<2x128xf32, #tpu.memory_space<vmem>>, vector<2x128xf32>,
      %88 = arith.index_cast %11 : i32 to index
      %c0_47 = arith.constant 0 : index
      %c0_48 = arith.constant 0 : index
      %89 = vector.load %arg4[%88, %c0_47, %c0_48] : memref<24x2x128xf32, #tpu.memory_space<vmem>>, vector<1x2x128xf32>
      %90 = vector.shape_cast %89 : vector<1x2x128xf32> to vector<2x128xf32>
      %91 = vector.shape_cast %85 : vector<2x128xf32> to vector<1x2x128xf32>
      tpu.vector_store %arg4[%88, %c0_47, %c0_48], %91 {strides = array<i32>} : memref<24x2x128xf32, #tpu.memory_space<vmem>>, vector<1x2x128xf32>,
    }
    %c24_i32_10 = arith.constant 24 : i32
    return
  }
}

module attributes {stable_mosaic.version = 11 : i64} {
  func.func @_linear_mask_kernel(%arg0: i32, %arg1: memref<48x256xf32, #tpu.memory_space<vmem>>, %arg2: memref<256x8xbf16, #tpu.memory_space<vmem>>, %arg3: memref<1x8xf32, #tpu.memory_space<vmem>>, %arg4: memref<48x1xf32, #tpu.memory_space<vmem>>, %arg5: memref<48x8xf32, #tpu.memory_space<vmem>>) attributes {dimension_semantics = [#tpu.dimension_semantics<parallel>], iteration_bounds = array<i64: 1>, scalar_prefetch = 0 : i64, scratch_operands = 0 : i64, tpu.core_type = #tpu.core_type<tc>, window_params = [{transform_indices = @transform_0, window_bounds = array<i64: 48, 256>}, {pipeline_mode = #tpu.pipeline_mode<synchronous>, transform_indices = @transform_1, window_bounds = array<i64: 256, 8>}, {pipeline_mode = #tpu.pipeline_mode<synchronous>, transform_indices = @transform_2, window_bounds = array<i64: 1, 8>}, {transform_indices = @transform_3, window_bounds = array<i64: 48, 1>}, {transform_indices = @transform_4, window_bounds = array<i64: 48, 8>}]} {
    %c0 = arith.constant 0 : index
    %c0_0 = arith.constant 0 : index
    %0 = vector.load %arg1[%c0, %c0_0] : memref<48x256xf32, #tpu.memory_space<vmem>>, vector<48x256xf32>
    %1 = arith.truncf %0 : vector<48x256xf32> to vector<48x256xbf16>
    %c0_1 = arith.constant 0 : index
    %c0_2 = arith.constant 0 : index
    %2 = vector.load %arg2[%c0_1, %c0_2] : memref<256x8xbf16, #tpu.memory_space<vmem>>, vector<256x8xbf16>
    %cst = arith.constant dense<0.000000e+00> : vector<48x8xf32>
    %3 = tpu.matmul %1, %2, %cst {dimension_numbers = #tpu.dot_dimension_numbers<[1], [0], [0], [1], [0, 0, 1, 1], [], []>} : vector<48x256xbf16>, vector<256x8xbf16>, vector<48x8xf32> -> vector<48x8xf32>
    %c0_3 = arith.constant 0 : index
    %c0_4 = arith.constant 0 : index
    %4 = vector.load %arg3[%c0_3, %c0_4] : memref<1x8xf32, #tpu.memory_space<vmem>>, vector<1x8xf32>
    %5 = vector.broadcast %4 : vector<1x8xf32> to vector<48x8xf32>
    %6 = arith.addf %3, %5 : vector<48x8xf32>
    %7 = math.tanh %6 : vector<48x8xf32>
    %c0_5 = arith.constant 0 : index
    %c0_6 = arith.constant 0 : index
    %8 = vector.load %arg4[%c0_5, %c0_6] : memref<48x1xf32, #tpu.memory_space<vmem>>, vector<48x1xf32>
    %9 = vector.broadcast %8 : vector<48x1xf32> to vector<48x8xf32>
    %10 = arith.mulf %7, %9 : vector<48x8xf32>
    %c0_7 = arith.constant 0 : index
    %c0_8 = arith.constant 0 : index
    %11 = vector.load %arg5[%c0_7, %c0_8] : memref<48x8xf32, #tpu.memory_space<vmem>>, vector<48x8xf32>
    tpu.vector_store %arg5[%c0_7, %c0_8], %10 {strides = array<i32>} : memref<48x8xf32, #tpu.memory_space<vmem>>, vector<48x8xf32>,
    return
  }
  func.func @transform_0(%arg0: i32) -> (i32, i32) {
    %c0_i32 = arith.constant 0 : i32
    %c0_i32_0 = arith.constant 0 : i32
    return %arg0, %c0_i32 : i32, i32
  }
  func.func @transform_1(%arg0: i32) -> (i32, i32) {
    %c0_i32 = arith.constant 0 : i32
    %c0_i32_0 = arith.constant 0 : i32
    %c0_i32_1 = arith.constant 0 : i32
    return %c0_i32, %c0_i32_0 : i32, i32
  }
  func.func @transform_2(%arg0: i32) -> (i32, i32) {
    %c0_i32 = arith.constant 0 : i32
    %c0_i32_0 = arith.constant 0 : i32
    %c0_i32_1 = arith.constant 0 : i32
    return %c0_i32, %c0_i32_0 : i32, i32
  }
  func.func @transform_3(%arg0: i32) -> (i32, i32) {
    %c0_i32 = arith.constant 0 : i32
    %c0_i32_0 = arith.constant 0 : i32
    return %arg0, %c0_i32 : i32, i32
  }
  func.func @transform_4(%arg0: i32) -> (i32, i32) {
    %c0_i32 = arith.constant 0 : i32
    %c0_i32_0 = arith.constant 0 : i32
    return %arg0, %c0_i32 : i32, i32
  }
}

</mosaic_0001>

<bundles_post_ra>
// kernel: _forward_impl.12
= control target key start
LH: loop header
LB: loop body
LE: loop exit
PB: predicated region body
PF: predicated region fallthrough
CT: control target
= control target key end

     0   :  { %v189_v0 = vmov 0.0   ;;  %vm190_vm0 = vmmov 0   ;;  %vm63_vm1 = vcmask 523264   ;;  %s265_s1 = inlined_call_operand.vmem [shape: bf16[64,128], index: 1, kind: input, shape index: {}]   ;;  %s266_s0 = inlined_call_operand.vmem [shape: f32[48,64], index: 0, kind: input, shape index: {}]   ;;  %s267_s2 = inlined_call_operand.vmem [shape: f32[1,128], index: 2, kind: input, shape index: {}]   ;;  %s268_s3 = inlined_call_operand.vmem [shape: f32[48,128], index: 3, kind: output, shape index: {}]  }
   0x1   :  { %175 = vmatprep.subr.bf16.mxu1 %v189_v0  ;;  %v185_v1 = vld [vmem:[%s265_s1] sm:$0xff]   ;;  %155 = vmatprep.subr.bf16.mxu0 %v189_v0  ;;  %v186_v2 = vld [vmem:[%s265_s1 + $0x8] sm:$0xff]   ;;  %v187_v3 = vld [vmem:[%s265_s1 + $0x10] sm:$0xff]  }
   0x2   :  { %167 = vmatprep.mubr.msk.bf16.mxu1 %vm190_vm0, %v189_v0  ;;  %163 = vmatprep.mubr.msk.bf16.mxu0 %vm190_vm0, %v189_v0  ;;  %v188_v4 = vld [vmem:[%s265_s1 + $0x18] sm:$0xff]   ;;  %v17_v5 = vld [vmem:[%s266_s0 + $0x10] sm:$0xff]  ;;  %v15_v7 = vld [vmem:[%s266_s0] sm:$0xff] }
   0x3   :  { %179 = vmatpush3.bf16.msra.mxu1 %v185_v1  ;;  %156 = vmatpush3.bf16.msra.mxu0 %v185_v1  ;;  %v18_v6 = vld [vmem:[%s266_s0 + $0x18] sm:$0xff]  ;;  %v16_v8 = vld [vmem:[%s266_s0 + $0x8] sm:$0xff]  ;;  %v19_v11 = vld [vmem:[%s266_s0 + $0x20] sm:$0xff] }
   0x4   :  { %176 = vmatprep.subr.bf16.mxu1 %v189_v0  ;;  %157 = vmatprep.subr.bf16.mxu0 %v189_v0  ;;  %v22_v9 = vpack.c.bf16 %v18_v6, %v17_v5  ;;  %v21_v10 = vpack.c.bf16 %v16_v8, %v15_v7  ;;  %v20_v12 = vld [vmem:[%s266_s0 + $0x28] sm:$0xff]  ;;  %v140_v14 = vld [vmem:[%s267_s2] ss:$0 sm:$0xff] }
   0x5   :  { %v23_v13 = vpack.c.bf16 %v20_v12, %v19_v11 }
   0x7   :  { %180 = vmatpush3.bf16.msra.mxu1 %v186_v2  ;;  %158 = vmatpush3.bf16.msra.mxu0 %v186_v2 }
   0x8   :  { %177 = vmatprep.subr.bf16.mxu1 %v189_v0  ;;  %159 = vmatprep.subr.bf16.mxu0 %v189_v0 }
   0xb   :  { %181 = vmatpush3.bf16.msra.mxu1 %v187_v3  ;;  %160 = vmatpush3.bf16.msra.mxu0 %v187_v3 }
   0xc   :  { %178 = vmatprep.subr.bf16.mxu1 %v189_v0  ;;  %161 = vmatprep.subr.bf16.mxu0 %v189_v0 }
   0xf   :  { %182 = vmatpush3.bf16.msra.mxu1 %v188_v4  ;;  %162 = vmatpush3.bf16.msra.mxu0 %v188_v4 }
  0x12   :  { %168 = vmatmul.mubr.msk.bf16.vlgmr.msra.gmra.mrb[0].mxu1 %vm63_vm1, %v22_v9  ;;  %164 = vmatmul.mubr.msk.bf16.vlgmr.msra.gmra.mrb[0].mxu0 %vm63_vm1, %v21_v10 }
  0x13   :  { %171 = vmatprep.mubr.msk.bf16.mxu1 %vm190_vm0, %v189_v0 }
  0x1a   :  { %172 = vmatmul.mubr.msk.bf16.gmra.mrb[4].mxu1 %vm63_vm1, %v23_v13 }
  0xe5   :  { %v115_v15 = vpop.f32.mrb[0].mxu1  ;;  %v107_v16 = vpop.f32.mrb[0].mxu0 }
  0xe6   :  { %v116_v17 = vadd.f32 %v140_v14, %v115_v15  ;;  %v169_v18 = vpop.f32.mrb[1].mxu1  ;;  %v108_v19 = vadd.f32 %v140_v14, %v107_v16  ;;  %v165_v20 = vpop.f32.mrb[1].mxu0 }
  0xe7   :  { %v118_v21 = vpop.f32.mrb[2].mxu1  ;;  %v110_v22 = vpop.f32.mrb[2].mxu0 }
  0xe8   :  { %132 = vst [vmem:[%s268_s3 + $0x10] sm:$0xff] %v116_v17  ;;  %v119_v23 = vadd.f32 %v140_v14, %v118_v21  ;;  %v170_v24 = vpop.f32.mrb[3].mxu1  ;;  %130 = vst [vmem:[%s268_s3] sm:$0xff] %v108_v19  ;;  %v111_v25 = vadd.f32 %v140_v14, %v110_v22  ;;  %v166_v26 = vpop.f32.mrb[3].mxu0 }
  0xea   :  { %133 = vst [vmem:[%s268_s3 + $0x18] sm:$0xff] %v119_v23  ;;  %131 = vst [vmem:[%s268_s3 + $0x8] sm:$0xff] %v111_v25 }
  0xed   :  { %v123_v27 = vpop.f32.mrb[4].mxu1 }
  0xee   :  { %v124_v28 = vadd.f32 %v140_v14, %v123_v27  ;;  %v173_v29 = vpop.f32.mrb[5].mxu1 }
  0xef   :  { %v126_v30 = vpop.f32.mrb[6].mxu1 }
  0xf0   :  { %134 = vst [vmem:[%s268_s3 + $0x20] sm:$0xff] %v124_v28  ;;  %v127_v31 = vadd.f32 %v140_v14, %v126_v30  ;;  %v174_v32 = vpop.f32.mrb[7].mxu1 }
  0xf2   :  { %135 = vst [vmem:[%s268_s3 + $0x28] sm:$0xff] %v127_v31 }

// kernel: _forward_impl.13
= control target key start
LH: loop header
LB: loop body
LE: loop exit
PB: predicated region body
PF: predicated region fallthrough
CT: control target
= control target key end

     0   :  { %v1408_v60 = vmov 0   ;;  %s1881_s0 = inlined_call_operand.vmem [shape: f32[48,128], index: 0, kind: input, shape index: {}]   ;;  %s1882_s7 = inlined_call_operand.vmem [shape: f32[1,128], index: 7, kind: input, shape index: {}]   ;;  %s1883_s8 = inlined_call_operand.vmem [shape: f32[1,128], index: 8, kind: input, shape index: {}]   ;;  %s1884_s3 = inlined_call_operand.vmem [shape: bf16[128,512], index: 3, kind: input, shape index: {}]   ;;  %s1885_s1 = inlined_call_operand.vmem [shape: f32[1,128], index: 1, kind: input, shape index: {}]   ;;  %s1886_s2 = inlined_call_operand.vmem [shape: f32[1,128], index: 2, kind: input, shape index: {}]   ;;  %s1887_s5 = inlined_call_operand.vmem [shape: bf16[512,128], index: 5, kind: input, shape index: {}]   ;;  %s1888_s4 = inlined_call_operand.vmem [shape: f32[1,512], index: 4, kind: input, shape index: {}]   ;;  %s1889_s6 = inlined_call_operand.vmem [shape: f32[1,128], index: 6, kind: input, shape index: {}]   ;;  %s1890_s9 = inlined_call_operand.vmem [shape: f32[48,128], index: 9, kind: output, shape index: {}]  }
   0x1   :  { %v33_v0 = vld [vmem:[%s1881_s0] sm:$0xff]  ;;  %v35_v1 = vld [vmem:[%s1881_s0 + $0x10] sm:$0xff]  ;;  %v34_v2 = vld [vmem:[%s1881_s0 + $0x8] sm:$0xff]  ;;  %381 = vmatprep.mubr.bf16.mxu0 %v1408_v60  ;;  %444 = vmatprep.mubr.bf16.mxu1 %v1408_v60 }
   0x2   :  { %39 = vadd.xlane.f32.xlu0 %v33_v0  ;;  %43 = vadd.xlane.f32.xlu1 %v35_v1  ;;  %v36_v3 = vld [vmem:[%s1881_s0 + $0x18] sm:$0xff]  ;;  %v37_v4 = vld [vmem:[%s1881_s0 + $0x20] sm:$0xff]  ;;  %v38_v5 = vld [vmem:[%s1881_s0 + $0x28] sm:$0xff] }
   0x3   :  { %v1214_v6 = vld [vmem:[%s1884_s3 + $0x4] ss:$16 sps:$4 sm:$0xff]   ;;  %v1216_v7 = vld [vmem:[%s1884_s3 + $0xc] ss:$16 sps:$4 sm:$0xff]   ;;  %v1218_v8 = vld [vmem:[%s1884_s3] ss:$16 sps:$4 sm:$0xff]  }
   0x4   :  { %349 = vmatprep.subr.bf16.mxu0 %v1214_v6  ;;  %v1219_v9 = vld [vmem:[%s1884_s3 + $0x8] ss:$16 sps:$4 sm:$0xff]   ;;  %412 = vmatprep.subr.bf16.mxu1 %v1216_v7  ;;  %v1220_v10 = vld [vmem:[%s1884_s3 + $0x24] ss:$16 sps:$4 sm:$0xff]   ;;  %v1222_v11 = vld [vmem:[%s1884_s3 + $0x2c] ss:$16 sps:$4 sm:$0xff]  }
   0x5   :  { %350 = vmatpush1.bf16.msra.mxu0 %v1218_v8  ;;  %413 = vmatpush1.bf16.msra.mxu1 %v1219_v9  ;;  %v1224_v36 = vld [vmem:[%s1884_s3 + $0x20] ss:$16 sps:$4 sm:$0xff]   ;;  %v1225_v37 = vld [vmem:[%s1884_s3 + $0x28] ss:$16 sps:$4 sm:$0xff]   ;;  %v1226_v38 = vld [vmem:[%s1884_s3 + $0x44] ss:$16 sps:$4 sm:$0xff]  }
   0x6   :  { %41 = vadd.xlane.f32.xlu0 %v34_v2  ;;  %45 = vadd.xlane.f32.xlu1 %v36_v3  ;;  %v1228_v39 = vld [vmem:[%s1884_s3 + $0x4c] ss:$16 sps:$4 sm:$0xff]   ;;  %v1230_v40 = vld [vmem:[%s1884_s3 + $0x40] ss:$16 sps:$4 sm:$0xff]   ;;  %v1231_v41 = vld [vmem:[%s1884_s3 + $0x48] ss:$16 sps:$4 sm:$0xff]  }
   0x7   :  { %351 = vmatprep.subr.bf16.mxu0 %v1220_v10  ;;  %414 = vmatprep.subr.bf16.mxu1 %v1222_v11  ;;  %v1232_v42 = vld [vmem:[%s1884_s3 + $0x64] ss:$16 sps:$4 sm:$0xff]   ;;  %v1234_v43 = vld [vmem:[%s1884_s3 + $0x6c] ss:$16 sps:$4 sm:$0xff]   ;;  %v1236_v44 = vld [vmem:[%s1884_s3 + $0x60] ss:$16 sps:$4 sm:$0xff]  }
   0x8   :  { %v1237_v45 = vld [vmem:[%s1884_s3 + $0x68] ss:$16 sps:$4 sm:$0xff]   ;;  %v1238_v46 = vld [vmem:[%s1884_s3 + $0x84] ss:$16 sps:$4 sm:$0xff]   ;;  %v1240_v47 = vld [vmem:[%s1884_s3 + $0x8c] ss:$16 sps:$4 sm:$0xff]  }
   0x9   :  { %352 = vmatpush1.bf16.msra.mxu0 %v1224_v36  ;;  %415 = vmatpush1.bf16.msra.mxu1 %v1225_v37  ;;  %v1242_v48 = vld [vmem:[%s1884_s3 + $0x80] ss:$16 sps:$4 sm:$0xff]   ;;  %v1243_v49 = vld [vmem:[%s1884_s3 + $0x88] ss:$16 sps:$4 sm:$0xff]   ;;  %v1244_v50 = vld [vmem:[%s1884_s3 + $0xa4] ss:$16 sps:$4 sm:$0xff]  }
   0xa   :  { %47 = vadd.xlane.f32.xlu0 %v37_v4  ;;  %49 = vadd.xlane.f32.xlu1 %v38_v5  ;;  %v1246_v51 = vld [vmem:[%s1884_s3 + $0xac] ss:$16 sps:$4 sm:$0xff]   ;;  %v1248_v52 = vld [vmem:[%s1884_s3 + $0xa0] ss:$16 sps:$4 sm:$0xff]   ;;  %v1249_v53 = vld [vmem:[%s1884_s3 + $0xa8] ss:$16 sps:$4 sm:$0xff]  }
   0xb   :  { %353 = vmatprep.subr.bf16.mxu0 %v1226_v38  ;;  %416 = vmatprep.subr.bf16.mxu1 %v1228_v39  ;;  %v1250_v54 = vld [vmem:[%s1884_s3 + $0xc4] ss:$16 sps:$4 sm:$0xff]   ;;  %v1252_v55 = vld [vmem:[%s1884_s3 + $0xcc] ss:$16 sps:$4 sm:$0xff]   ;;  %v1254_v56 = vld [vmem:[%s1884_s3 + $0xc0] ss:$16 sps:$4 sm:$0xff]  }
   0xc   :  { %v1255_v57 = vld [vmem:[%s1884_s3 + $0xc8] ss:$16 sps:$4 sm:$0xff]   ;;  %v1256_v58 = vld [vmem:[%s1884_s3 + $0xe4] ss:$16 sps:$4 sm:$0xff]   ;;  %v1258_v59 = vld [vmem:[%s1884_s3 + $0xec] ss:$16 sps:$4 sm:$0xff]  }
   0xd   :  { %354 = vmatpush1.bf16.msra.mxu0 %v1230_v40  ;;  %417 = vmatpush1.bf16.msra.mxu1 %v1231_v41  ;;  %v1260_v61 = vld [vmem:[%s1884_s3 + $0xe0] ss:$16 sps:$4 sm:$0xff]   ;;  %v1261_v62 = vld [vmem:[%s1884_s3 + $0xe8] ss:$16 sps:$4 sm:$0xff]  }
   0xe   :  { %355 = vmatprep.subr.bf16.mxu0 %v1232_v42  ;;  %418 = vmatprep.subr.bf16.mxu1 %v1234_v43 }
  0x11   :  { %356 = vmatpush1.bf16.msra.mxu0 %v1236_v44  ;;  %419 = vmatpush1.bf16.msra.mxu1 %v1237_v45 }
  0x12   :  { %357 = vmatprep.subr.bf16.mxu0 %v1238_v46  ;;  %420 = vmatprep.subr.bf16.mxu1 %v1240_v47 }
  0x15   :  { %358 = vmatpush1.bf16.msra.mxu0 %v1242_v48  ;;  %421 = vmatpush1.bf16.msra.mxu1 %v1243_v49  ;;  %v1264_v48 = vld [vmem:[%s1887_s5] sm:$0xff]  }
  0x16   :  { %359 = vmatprep.subr.bf16.mxu0 %v1244_v50  ;;  %422 = vmatprep.subr.bf16.mxu1 %v1246_v51  ;;  %v1265_v49 = vld [vmem:[%s1887_s5 + $0x80] sm:$0xff]   ;;  %v1266_v50 = vld [vmem:[%s1887_s5 + $0x48] sm:$0xff]  }
  0x17   :  { %v1267_v51 = vld [vmem:[%s1887_s5 + $0xc8] sm:$0xff]  }
  0x19   :  { %360 = vmatpush1.bf16.msra.mxu0 %v1248_v52  ;;  %423 = vmatpush1.bf16.msra.mxu1 %v1249_v53  ;;  %v1268_v52 = vld [vmem:[%s1887_s5 + $0x8] sm:$0xff]  }
  0x1a   :  { %361 = vmatprep.subr.bf16.mxu0 %v1250_v54  ;;  %424 = vmatprep.subr.bf16.mxu1 %v1252_v55  ;;  %v1269_v53 = vld [vmem:[%s1887_s5 + $0x88] sm:$0xff]   ;;  %v1270_v54 = vld [vmem:[%s1887_s5 + $0x50] sm:$0xff]  }
  0x1b   :  { %v1271_v55 = vld [vmem:[%s1887_s5 + $0xd0] sm:$0xff]  }
  0x1d   :  { %362 = vmatpush1.bf16.msra.mxu0 %v1254_v56  ;;  %425 = vmatpush1.bf16.msra.mxu1 %v1255_v57  ;;  %v1272_v56 = vld [vmem:[%s1887_s5 + $0x10] sm:$0xff]  }
  0x1e   :  { %363 = vmatprep.subr.bf16.mxu0 %v1256_v58  ;;  %426 = vmatprep.subr.bf16.mxu1 %v1258_v59  ;;  %v1273_v57 = vld [vmem:[%s1887_s5 + $0x90] sm:$0xff]   ;;  %v1274_v58 = vld [vmem:[%s1887_s5 + $0x58] sm:$0xff]  }
  0x1f   :  { %v1275_v59 = vld [vmem:[%s1887_s5 + $0xd8] sm:$0xff]  }
  0x21   :  { %364 = vmatpush1.bf16.msra.mxu0 %v1260_v61  ;;  %427 = vmatpush1.bf16.msra.mxu1 %v1261_v62  ;;  %v1277_v61 = vld [vmem:[%s1887_s5 + $0x98] sm:$0xff]   ;;  %v1278_v62 = vld [vmem:[%s1887_s5 + $0x60] sm:$0xff]  }
  0x8f   :  { %v40_v12 = vpop.xlane.xlu0 %39  ;;  %v44_v13 = vpop.xlane.xlu1 %43 }
  0x90   :  { %v52_v14 = vmul.f32 0.0078125, %v40_v12  ;;  %v54_v15 = vmul.f32 0.0078125, %v44_v13 }
  0x92   :  { %v1495_v16 = vsub.f32 %v33_v0, %v52_v14  ;;  %v1497_v17 = vsub.f32 %v35_v1, %v54_v15 }
  0x93   :  { %v42_v18 = vpop.xlane.xlu0 %41  ;;  %v46_v19 = vpop.xlane.xlu1 %45 }
  0x94   :  { %v53_v20 = vmul.f32 0.0078125, %v42_v18  ;;  %v64_v21 = vmul.f32 %v1495_v16, %v1495_v16  ;;  %v55_v22 = vmul.f32 0.0078125, %v46_v19  ;;  %v66_v25 = vmul.f32 %v1497_v17, %v1497_v17 }
  0x96   :  { %v1501_v23 = vsub.f32 %v34_v2, %v53_v20  ;;  %70 = vadd.xlane.f32.xlu0 %v64_v21  ;;  %v1503_v24 = vsub.f32 %v36_v3, %v55_v22  ;;  %v1054_v21 = vld [vmem:[%s1885_s1] ss:$0 sm:$0xff] }
  0x97   :  { %v48_v26 = vpop.xlane.xlu0 %47  ;;  %v50_v27 = vpop.xlane.xlu1 %49 }
  0x98   :  { %v56_v28 = vmul.f32 0.0078125, %v48_v26  ;;  %v65_v29 = vmul.f32 %v1501_v23, %v1501_v23  ;;  %v57_v30 = vmul.f32 0.0078125, %v50_v27  ;;  %v67_v33 = vmul.f32 %v1503_v24, %v1503_v24 }
  0x9a   :  { %v1509_v31 = vsub.f32 %v37_v4, %v56_v28  ;;  %74 = vadd.xlane.f32.xlu0 %v66_v25  ;;  %72 = vadd.xlane.f32.xlu1 %v65_v29  ;;  %v1511_v32 = vsub.f32 %v38_v5, %v57_v30  ;;  %v1055_v28 = vld [vmem:[%s1886_s2] ss:$0 sm:$0xff] }
  0x9c   :  { %v68_v34 = vmul.f32 %v1509_v31, %v1509_v31  ;;  %v69_v35 = vmul.f32 %v1511_v32, %v1511_v32 }
  0x9e   :  { %76 = vadd.xlane.f32.xlu1 %v67_v33  ;;  %78 = vadd.xlane.f32.xlu0 %v68_v34 }
  0xa2   :  { %80 = vadd.xlane.f32.xlu1 %v69_v35 }
 0x123   :  { %v71_v63 = vpop.xlane.xlu0 %70 }
 0x124   :  { %v82_v0 = vmul.f32 0.0078125, %v71_v63  ;;  %v1279_v63 = vld [vmem:[%s1887_s5 + $0xe0] sm:$0xff]  }
 0x126   :  { %v88_v1 = vadd.f32 1e-05, %v82_v0  ;;  %v1280_v0 = vld [vmem:[%s1887_s5 + $0x20] sm:$0xff]  }
 0x127   :  { %v73_v2 = vpop.xlane.xlu1 %72  ;;  %v75_v3 = vpop.xlane.xlu0 %74 }
 0x128   :  { %1294 = vrsqrt.f32 %v88_v1  ;;  %v83_v4 = vmul.f32 0.0078125, %v73_v2  ;;  %v84_v5 = vmul.f32 0.0078125, %v75_v3  ;;  %v1281_v1 = vld [vmem:[%s1887_s5 + $0xa0] sm:$0xff]   ;;  %v1282_v2 = vld [vmem:[%s1887_s5 + $0x68] sm:$0xff]  }
 0x129   :  { %v1283_v3 = vld [vmem:[%s1887_s5 + $0xe8] sm:$0xff]  }
 0x12a   :  { %v89_v6 = vadd.f32 1e-05, %v83_v4  ;;  %v90_v7 = vadd.f32 1e-05, %v84_v5  ;;  %v1284_v4 = vld [vmem:[%s1887_s5 + $0x28] sm:$0xff]  }
 0x12b   :  { %v77_v8 = vpop.xlane.xlu1 %76  ;;  %v79_v9 = vpop.xlane.xlu0 %78  ;;  %v1285_v5 = vld [vmem:[%s1887_s5 + $0xa8] sm:$0xff]  }
 0x12c   :  { %1296 = vrsqrt.f32 %v89_v6  ;;  %v85_v10 = vmul.f32 0.0078125, %v77_v8  ;;  %v86_v12 = vmul.f32 0.0078125, %v79_v9  ;;  %v1286_v6 = vld [vmem:[%s1887_s5 + $0x70] sm:$0xff]  }
 0x12d   :  { %1298 = vrsqrt.f32 %v90_v7  ;;  %v1287_v7 = vld [vmem:[%s1887_s5 + $0xf0] sm:$0xff]  }
 0x12e   :  { %v91_v11 = vadd.f32 1e-05, %v85_v10  ;;  %v92_v18 = vadd.f32 1e-05, %v86_v12  ;;  %v1288_v8 = vld [vmem:[%s1887_s5 + $0x30] sm:$0xff]   ;;  %v1290_v10 = vld [vmem:[%s1887_s5 + $0x78] sm:$0xff]  }
 0x12f   :  { %v81_v13 = vpop.xlane.xlu1 %80  ;;  %v1289_v9 = vld [vmem:[%s1887_s5 + $0xb0] sm:$0xff]   ;;  %v1292_v12 = vld [vmem:[%s1887_s5 + $0x38] sm:$0xff]  }
 0x130   :  { %1300 = vrsqrt.f32 %v91_v11  ;;  %v87_v14 = vmul.f32 0.0078125, %v81_v13  ;;  %v1291_v11 = vld [vmem:[%s1887_s5 + $0xf8] sm:$0xff]  }
 0x131   :  { %v1293_v13 = vld [vmem:[%s1887_s5 + $0xb8] sm:$0xff]  }
 0x132   :  { %v1295_v15 = vpop.eup %1294  ;;  %v93_v19 = vadd.f32 1e-05, %v87_v14  ;;  %v169_v14 = vlaneseq }
 0x133   :  { %v100_v20 = vmul.f32 %v1295_v15, %v1495_v16 }
 0x134   :  { %1302 = vrsqrt.f32 %v93_v19  ;;  %v170_v15 = vshrl.u32 %v169_v14, 7 }
 0x135   :  { %1304 = vrsqrt.f32 %v92_v18  ;;  %v113_v26 = vmul.f32 %v1054_v21, %v100_v20  ;;  %v167_v20 = vld [vmem:[%s1888_s4] sm:$0xf] }
 0x136   :  { %v1297_v22 = vpop.eup %1296  ;;  %v171_v18 = vsub.s32 0, %v170_v15  ;;  %v179_v19 = vsub.s32 2, %v170_v15 }
 0x137   :  { %v101_v25 = vmul.f32 %v1297_v22, %v1501_v23  ;;  %v1299_v27 = vpop.eup %1298  ;;  %v126_v33 = vadd.f32 %v1055_v28, %v113_v26  ;;  %v183_v22 = vsub.s32 3, %v170_v15 }
 0x138   :  { %v102_v16 = vmul.f32 %v1299_v27, %v1497_v17  ;;  %v1716_v26 = vrot.slane %v167_v20, %v179_v19 }
 0x139   :  { %v114_v29 = vmul.f32 %v1054_v21, %v101_v25  ;;  %v1714_v25 = vrot.slane %v167_v20, %v171_v18 }
 0x13a   :  { %v1301_v30 = vpop.eup %1300  ;;  %v115_v23 = vmul.f32 %v1054_v21, %v102_v16 }
 0x13b   :  { %v127_v34 = vadd.f32 %v1055_v28, %v114_v29  ;;  %v103_v35 = vmul.f32 %v1301_v30, %v1503_v24 }
 0x13c   :  { %v128_v42 = vadd.f32 %v1055_v28, %v115_v23 }
 0x13d   :  { %v132_v36 = vpack.c.bf16 %v127_v34, %v126_v33  ;;  %v116_v37 = vmul.f32 %v1054_v21, %v103_v35 }
 0x13e   :  { %v1303_v38 = vpop.eup %1302 }
 0x13f   :  { %382 = vmatmul.mubr.bf16.vlgmr.msra.gmra.mrb[0].mxu0 %v132_v36  ;;  %445 = vmatmul.mubr.bf16.vlgmr.msra.gmra.mrb[0].mxu1 %v132_v36  ;;  %v1305_v39 = vpop.eup %1304  ;;  %v129_v40 = vadd.f32 %v1055_v28, %v116_v37  ;;  %v105_v41 = vmul.f32 %v1303_v38, %v1511_v32  ;;  %v1262_v32 = vld [vmem:[%s1887_s5 + $0x40] sm:$0xff]  }
 0x140   :  { %391 = vmatprep.mubr.bf16.mxu0 %v1408_v60  ;;  %454 = vmatprep.mubr.bf16.mxu1 %v1408_v60  ;;  %v104_v43 = vmul.f32 %v1305_v39, %v1509_v31  ;;  %v1263_v31 = vld [vmem:[%s1887_s5 + $0xc0] sm:$0xff]  }
 0x141   :  { %v133_v17 = vpack.c.bf16 %v129_v40, %v128_v42  ;;  %v118_v44 = vmul.f32 %v1054_v21, %v105_v41  ;;  %1145 = vmatprep.subr.bf16.mxu0 %v1262_v32  ;;  %1179 = vmatprep.subr.bf16.mxu1 %v1263_v31 }
 0x142   :  { %v117_v24 = vmul.f32 %v1054_v21, %v104_v43  ;;  %1146 = vmatpush3.bf16.msra.mxu0 %v1264_v48  ;;  %1180 = vmatpush3.bf16.msra.mxu1 %v1265_v49  ;;  %v175_v21 = vsub.s32 1, %v170_v15 }
 0x143   :  { %v131_v45 = vadd.f32 %v1055_v28, %v118_v44  ;;  %1147 = vmatprep.subr.bf16.mxu0 %v1266_v50  ;;  %1181 = vmatprep.subr.bf16.mxu1 %v1267_v51 }
 0x144   :  { %v130_v46 = vadd.f32 %v1055_v28, %v117_v24  ;;  %v1718_v27 = vrot.slane %v167_v20, %v175_v21  ;;  %v1720_v28 = vrot.slane %v167_v20, %v183_v22 }
 0x146   :  { %v134_v47 = vpack.c.bf16 %v131_v45, %v130_v46  ;;  %1148 = vmatpush3.bf16.msra.mxu0 %v1268_v52  ;;  %1182 = vmatpush3.bf16.msra.mxu1 %v1269_v53 }
 0x147   :  { %392 = vmatmul.mubr.bf16.gmra.mrb[4].mxu0 %v133_v17  ;;  %455 = vmatmul.mubr.bf16.gmra.mrb[4].mxu1 %v133_v17 }
 0x148   :  { %401 = vmatprep.mubr.bf16.mxu0 %v1408_v60  ;;  %464 = vmatprep.mubr.bf16.mxu1 %v1408_v60  ;;  %v1276_v60 = vld [vmem:[%s1887_s5 + $0x18] sm:$0xff]  }
 0x149   :  { %1149 = vmatprep.subr.bf16.mxu0 %v1270_v54  ;;  %1183 = vmatprep.subr.bf16.mxu1 %v1271_v55 }
 0x14a   :  { %1150 = vmatpush3.bf16.msra.mxu0 %v1272_v56  ;;  %1184 = vmatpush3.bf16.msra.mxu1 %v1273_v57 }
 0x14b   :  { %1151 = vmatprep.subr.bf16.mxu0 %v1274_v58  ;;  %1185 = vmatprep.subr.bf16.mxu1 %v1275_v59 }
 0x14e   :  { %1152 = vmatpush3.bf16.msra.mxu0 %v1276_v60  ;;  %1186 = vmatpush3.bf16.msra.mxu1 %v1277_v61 }
 0x14f   :  { %402 = vmatmul.mubr.bf16.gmra.mrb[8].mxu0 %v134_v47  ;;  %465 = vmatmul.mubr.bf16.gmra.mrb[8].mxu1 %v134_v47 }
 0x150   :  { %1153 = vmatprep.subr.bf16.mxu0 %v1278_v62  ;;  %1187 = vmatprep.subr.bf16.mxu1 %v1279_v63 }
 0x152   :  { %1154 = vmatpush3.bf16.msra.mxu0 %v1280_v0  ;;  %1188 = vmatpush3.bf16.msra.mxu1 %v1281_v1 }
 0x153   :  { %1155 = vmatprep.subr.bf16.mxu0 %v1282_v2  ;;  %1189 = vmatprep.subr.bf16.mxu1 %v1283_v3 }
 0x156   :  { %1156 = vmatpush3.bf16.msra.mxu0 %v1284_v4  ;;  %1190 = vmatpush3.bf16.msra.mxu1 %v1285_v5 }
 0x157   :  { %1157 = vmatprep.subr.bf16.mxu0 %v1286_v6  ;;  %1191 = vmatprep.subr.bf16.mxu1 %v1287_v7 }
 0x15a   :  { %1158 = vmatpush3.bf16.msra.mxu0 %v1288_v8  ;;  %1192 = vmatpush3.bf16.msra.mxu1 %v1289_v9 }
 0x15b   :  { %1159 = vmatprep.subr.bf16.mxu0 %v1290_v10  ;;  %1193 = vmatprep.subr.bf16.mxu1 %v1291_v11 }
 0x15e   :  { %1160 = vmatpush3.bf16.msra.mxu0 %v1292_v12  ;;  %1194 = vmatpush3.bf16.msra.mxu1 %v1293_v13 }
 0x212   :  { %v383_v29 = vpop.f32.mrb[0].mxu0  ;;  %v446_v30 = vpop.f32.mrb[0].mxu1 }
 0x213   :  { %v1723_v33 = vadd.f32 %v383_v29, %v1714_v25  ;;  %v1726_v34 = vadd.f32 %v446_v30, %v1716_v26  ;;  %v385_v16 = vpop.f32.mrb[1].mxu0  ;;  %v448_v35 = vpop.f32.mrb[1].mxu1 }
 0x214   :  { %v1729_v36 = vadd.f32 %v385_v16, %v1718_v27  ;;  %v1732_v37 = vadd.f32 %v448_v35, %v1720_v28  ;;  %v387_v38 = vpop.f32.mrb[2].mxu0  ;;  %v450_v23 = vpop.f32.mrb[2].mxu1 }
 0x215   :  { %v1088_v39 = vmul.f32 -1.442695, %v1723_v33  ;;  %v1090_v40 = vmul.f32 -1.442695, %v1726_v34  ;;  %v1737_v41 = vadd.f32 %v387_v38, %v1714_v25  ;;  %v1740_v42 = vadd.f32 %v450_v23, %v1716_v26  ;;  %v389_v43 = vpop.f32.mrb[3].mxu0  ;;  %v452_v17 = vpop.f32.mrb[3].mxu1 }
 0x216   :  { %v1089_v44 = vmul.f32 -1.442695, %v1729_v36  ;;  %v1091_v24 = vmul.f32 -1.442695, %v1732_v37  ;;  %v1745_v45 = vadd.f32 %v389_v43, %v1718_v27  ;;  %v1748_v46 = vadd.f32 %v452_v17, %v1720_v28 }
 0x217   :  { %1306 = vpow2.f32 %v1088_v39  ;;  %v1092_v47 = vmul.f32 -1.442695, %v1737_v41  ;;  %v1094_v32 = vmul.f32 -1.442695, %v1740_v42 }
 0x218   :  { %1308 = vpow2.f32 %v1090_v40  ;;  %v1093_v31 = vmul.f32 -1.442695, %v1745_v45  ;;  %v1095_v48 = vmul.f32 -1.442695, %v1748_v46 }
 0x219   :  { %1310 = vpow2.f32 %v1089_v44 }
 0x21a   :  { %1312 = vpow2.f32 %v1091_v24  ;;  %v393_v49 = vpop.f32.mrb[4].mxu0  ;;  %v456_v50 = vpop.f32.mrb[4].mxu1 }
 0x21b   :  { %1314 = vpow2.f32 %v1092_v47  ;;  %v1755_v51 = vadd.f32 %v393_v49, %v1714_v25  ;;  %v1758_v52 = vadd.f32 %v456_v50, %v1716_v26  ;;  %v395_v53 = vpop.f32.mrb[5].mxu0  ;;  %v458_v54 = vpop.f32.mrb[5].mxu1 }
 0x21c   :  { %1316 = vpow2.f32 %v1094_v32  ;;  %v1761_v55 = vadd.f32 %v395_v53, %v1718_v27  ;;  %v397_v56 = vpop.f32.mrb[6].mxu0  ;;  %v460_v57 = vpop.f32.mrb[6].mxu1  ;;  %v1771_v12 = vadd.f32 %v458_v54, %v1720_v28 }
 0x21d   :  { %1318 = vpow2.f32 %v1093_v31  ;;  %v1096_v58 = vmul.f32 -1.442695, %v1755_v51  ;;  %v1098_v59 = vmul.f32 -1.442695, %v1758_v52  ;;  %v1766_v60 = vadd.f32 %v397_v56, %v1714_v25  ;;  %v399_v61 = vpop.f32.mrb[7].mxu0  ;;  %v462_v62 = vpop.f32.mrb[7].mxu1 }
 0x21e   :  { %1320 = vpow2.f32 %v1095_v48  ;;  %v1097_v63 = vmul.f32 -1.442695, %v1761_v55  ;;  %v1099_v38 = vmul.f32 -1.442695, %v1771_v12  ;;  %v1775_v40 = vadd.f32 %v460_v57, %v1716_v26 }
 0x21f   :  { %1322 = vpow2.f32 %v1096_v58  ;;  %v1100_v0 = vmul.f32 -1.442695, %v1766_v60  ;;  %v1778_v43 = vadd.f32 %v399_v61, %v1718_v27  ;;  %v1781_v47 = vadd.f32 %v462_v62, %v1720_v28 }
 0x220   :  { %1324 = vpow2.f32 %v1098_v59  ;;  %v1102_v49 = vmul.f32 -1.442695, %v1775_v40 }
 0x221   :  { %v1307_v1 = vpop.eup %1306  ;;  %1326 = vpow2.f32 %v1097_v63  ;;  %v1101_v50 = vmul.f32 -1.442695, %v1778_v43  ;;  %v1103_v62 = vmul.f32 -1.442695, %v1781_v47 }
 0x222   :  { %v1309_v2 = vpop.eup %1308  ;;  %v547_v3 = vadd.f32 1.0, %v1307_v1  ;;  %v403_v4 = vpop.f32.mrb[8].mxu0  ;;  %1328 = vpow2.f32 %v1100_v0 }
 0x223   :  { %v466_v5 = vpop.f32.mrb[8].mxu1  ;;  %v1311_v6 = vpop.eup %1310  ;;  %v549_v7 = vadd.f32 1.0, %v1309_v2  ;;  %v1784_v31 = vadd.f32 %v403_v4, %v1714_v25 }
 0x224   :  { %v405_v8 = vpop.f32.mrb[9].mxu0  ;;  %v468_v9 = vpop.f32.mrb[9].mxu1  ;;  %1330 = vrcp.f32 %v547_v3  ;;  %v548_v11 = vadd.f32 1.0, %v1311_v6  ;;  %v1789_v53 = vadd.f32 %v466_v5, %v1716_v26 }
 0x225   :  { %v1313_v10 = vpop.eup %1312  ;;  %v407_v13 = vpop.f32.mrb[10].mxu0  ;;  %1332 = vrcp.f32 %v549_v7  ;;  %v1792_v54 = vadd.f32 %v405_v8, %v1718_v27  ;;  %v1795_v58 = vadd.f32 %v468_v9, %v1720_v28  ;;  %v1104_v1 = vmul.f32 -1.442695, %v1784_v31 }
 0x226   :  { %v470_v14 = vpop.f32.mrb[10].mxu1  ;;  %v1315_v15 = vpop.eup %1314  ;;  %v550_v18 = vadd.f32 1.0, %v1313_v10  ;;  %1334 = vrcp.f32 %v548_v11  ;;  %v1798_v59 = vadd.f32 %v407_v13, %v1714_v25  ;;  %v1106_v4 = vmul.f32 -1.442695, %v1789_v53 }
 0x227   :  { %v409_v19 = vpop.f32.mrb[11].mxu0  ;;  %v1317_v20 = vpop.eup %1316  ;;  %v551_v21 = vadd.f32 1.0, %v1315_v15  ;;  %v1802_v63 = vadd.f32 %v470_v14, %v1716_v26  ;;  %v1105_v25 = vmul.f32 -1.442695, %v1792_v54  ;;  %v1107_v6 = vmul.f32 -1.442695, %v1795_v58 }
 0x228   :  { %v472_v22 = vpop.f32.mrb[11].mxu1  ;;  %v1319_v29 = vpop.eup %1318  ;;  %1336 = vrcp.f32 %v550_v18  ;;  %v553_v30 = vadd.f32 1.0, %v1317_v20  ;;  %v1806_v2 = vadd.f32 %v409_v19, %v1718_v27  ;;  %v1108_v26 = vmul.f32 -1.442695, %v1798_v59 }
 0x229   :  { %v1321_v16 = vpop.eup %1320  ;;  %1338 = vrcp.f32 %v551_v21  ;;  %v552_v35 = vadd.f32 1.0, %v1319_v29  ;;  %v1813_v7 = vadd.f32 %v472_v22, %v1720_v28  ;;  %v1110_v10 = vmul.f32 -1.442695, %v1802_v63 }
 0x22a   :  { %v1323_v23 = vpop.eup %1322  ;;  %1340 = vrcp.f32 %v553_v30  ;;  %v554_v39 = vadd.f32 1.0, %v1321_v16  ;;  %v1109_v15 = vmul.f32 -1.442695, %v1806_v2 }
 0x22b   :  { %v1325_v17 = vpop.eup %1324  ;;  %1342 = vrcp.f32 %v552_v35  ;;  %v555_v44 = vadd.f32 1.0, %v1323_v23 }
 0x22c   :  { %1344 = vrcp.f32 %v554_v39  ;;  %v557_v24 = vadd.f32 1.0, %v1325_v17  ;;  %v1327_v32 = vpop.eup %1326 }
 0x22d   :  { %1346 = vpow2.f32 %v1099_v38  ;;  %v1329_v48 = vpop.eup %1328  ;;  %v556_v30 = vadd.f32 1.0, %v1327_v32 }
 0x22e   :  { %v1331_v56 = vpop.eup %1330  ;;  %1348 = vrcp.f32 %v555_v44  ;;  %v559_v57 = vadd.f32 1.0, %v1329_v48 }
 0x22f   :  { %v1333_v61 = vpop.eup %1332  ;;  %1350 = vrcp.f32 %v557_v24  ;;  %v619_v9 = vmul.f32 %v1331_v56, %v1723_v33 }
 0x230   :  { %v1335_v0 = vpop.eup %1334  ;;  %1352 = vrcp.f32 %v559_v57  ;;  %v621_v13 = vmul.f32 %v1333_v61, %v1726_v34  ;;  %v1111_v34 = vmul.f32 -1.442695, %v1813_v7 }
 0x231   :  { %1354 = vpow2.f32 %v1102_v49  ;;  %v620_v28 = vmul.f32 %v1335_v0, %v1729_v36 }
 0x232   :  { %v1337_v3 = vpop.eup %1336  ;;  %1356 = vpow2.f32 %v1101_v50 }
 0x233   :  { %v1339_v5 = vpop.eup %1338  ;;  %1358 = vpow2.f32 %v1103_v62 }
 0x234   :  { %v1341_v8 = vpop.eup %1340  ;;  %v623_v27 = vmul.f32 %v1339_v5, %v1737_v41  ;;  %1360 = vpow2.f32 %v1104_v1  ;;  %v622_v41 = vmul.f32 %v1337_v3, %v1732_v37 }
 0x235   :  { %v1343_v11 = vpop.eup %1342  ;;  %v625_v14 = vmul.f32 %v1341_v8, %v1740_v42  ;;  %1362 = vpow2.f32 %v1106_v4 }
 0x236   :  { %v1345_v18 = vpop.eup %1344  ;;  %v643_v19 = vpack.c.bf16 %v623_v27, %v619_v9  ;;  %v624_v20 = vmul.f32 %v1343_v11, %v1745_v45  ;;  %1364 = vpow2.f32 %v1105_v25 }
 0x237   :  { %v1347_v33 = vpop.eup %1346  ;;  %v645_v21 = vpack.c.bf16 %v625_v14, %v621_v13  ;;  %v626_v22 = vmul.f32 %v1345_v18, %v1748_v46  ;;  %1366 = vpow2.f32 %v1107_v6 }
 0x238   :  { %v644_v42 = vpack.c.bf16 %v624_v20, %v620_v28  ;;  %v1349_v29 = vpop.eup %1348  ;;  %1368 = vpow2.f32 %v1108_v26  ;;  %v558_v35 = vadd.f32 1.0, %v1347_v33 }
 0x239   :  { %v646_v16 = vpack.c.bf16 %v626_v22, %v622_v41  ;;  %v1351_v36 = vpop.eup %1350  ;;  %1370 = vpow2.f32 %v1110_v10  ;;  %v627_v46 = vmul.f32 %v1349_v29, %v1755_v51 }
 0x23a   :  { %950 = vmatprep.mubr.bf16.mxu0 %v644_v42  ;;  %v1353_v45 = vpop.eup %1352  ;;  %1372 = vpow2.f32 %v1109_v15  ;;  %v629_v10 = vmul.f32 %v1351_v36, %v1758_v52 }
 0x23b   :  { %1007 = vmatprep.mubr.bf16.mxu1 %v646_v16  ;;  %951 = vmatmul.mubr.bf16.vlgmr.msra.gmra.mrb[12].mxu0 %v643_v19  ;;  %v1355_v37 = vpop.eup %1354  ;;  %v631_v38 = vmul.f32 %v1353_v45, %v1766_v60  ;;  %1374 = vpow2.f32 %v1111_v34 }
 0x23c   :  { %1008 = vmatmul.mubr.bf16.vlgmr.msra.gmra.mrb[12].mxu1 %v645_v21  ;;  %v1357_v23 = vpop.eup %1356  ;;  %1376 = vrcp.f32 %v556_v30  ;;  %v561_v39 = vadd.f32 1.0, %v1355_v37 }
 0x23d   :  { %v1359_v17 = vpop.eup %1358  ;;  %1378 = vrcp.f32 %v558_v35  ;;  %v560_v44 = vadd.f32 1.0, %v1357_v23  ;;  %v647_v24 = vpack.c.bf16 %v631_v38, %v627_v46 }
 0x23e   :  { %v1361_v32 = vpop.eup %1360  ;;  %1380 = vrcp.f32 %v561_v39  ;;  %v562_v48 = vadd.f32 1.0, %v1359_v17 }
 0x23f   :  { %v1363_v49 = vpop.eup %1362  ;;  %1382 = vrcp.f32 %v560_v44  ;;  %v563_v50 = vadd.f32 1.0, %v1361_v32 }
 0x240   :  { %v1365_v56 = vpop.eup %1364  ;;  %1384 = vrcp.f32 %v562_v48  ;;  %v565_v51 = vadd.f32 1.0, %v1363_v49 }
 0x241   :  { %v1367_v57 = vpop.eup %1366  ;;  %1386 = vrcp.f32 %v563_v50  ;;  %v564_v60 = vadd.f32 1.0, %v1365_v56 }
 0x242   :  { %v1369_v61 = vpop.eup %1368  ;;  %1388 = vrcp.f32 %v565_v51  ;;  %v566_v62 = vadd.f32 1.0, %v1367_v57  ;;  %v1402_v51 = vld [vmem:[%s1881_s0] sm:$0xff] }
 0x243   :  { %v1371_v0 = vpop.eup %1370  ;;  %1390 = vrcp.f32 %v564_v60  ;;  %v567_v1 = vadd.f32 1.0, %v1369_v61  ;;  %v1403_v61 = vld [vmem:[%s1881_s0 + $0x8] sm:$0xff] }
 0x244   :  { %v1373_v3 = vpop.eup %1372  ;;  %1392 = vrcp.f32 %v566_v62  ;;  %v569_v4 = vadd.f32 1.0, %v1371_v0 }
 0x245   :  { %v1375_v25 = vpop.eup %1374  ;;  %1394 = vrcp.f32 %v567_v1  ;;  %v568_v5 = vadd.f32 1.0, %v1373_v3 }
 0x246   :  { %v1377_v6 = vpop.eup %1376  ;;  %1396 = vrcp.f32 %v569_v4  ;;  %v570_v26 = vadd.f32 1.0, %v1375_v25 }
 0x247   :  { %v1379_v8 = vpop.eup %1378  ;;  %1398 = vrcp.f32 %v568_v5  ;;  %v628_v14 = vmul.f32 %v1377_v6, %v1761_v55 }
 0x248   :  { %v1381_v9 = vpop.eup %1380  ;;  %1400 = vrcp.f32 %v570_v26  ;;  %v630_v28 = vmul.f32 %v1379_v8, %v1771_v12 }
 0x249   :  { %v1383_v27 = vpop.eup %1382  ;;  %v633_v11 = vmul.f32 %v1381_v9, %v1775_v40 }
 0x24a   :  { %v1385_v13 = vpop.eup %1384  ;;  %v632_v15 = vmul.f32 %v1383_v27, %v1778_v43 }
 0x24b   :  { %v1387_v18 = vpop.eup %1386  ;;  %v634_v19 = vmul.f32 %v1385_v13, %v1781_v47  ;;  %v649_v20 = vpack.c.bf16 %v633_v11, %v629_v10 }
 0x24c   :  { %v1389_v33 = vpop.eup %1388  ;;  %v648_v41 = vpack.c.bf16 %v632_v15, %v628_v14  ;;  %v635_v55 = vmul.f32 %v1387_v18, %v1784_v31 }
 0x24d   :  { %v1391_v21 = vpop.eup %1390  ;;  %v650_v22 = vpack.c.bf16 %v634_v19, %v630_v28  ;;  %v637_v12 = vmul.f32 %v1389_v33, %v1789_v53  ;;  %v1404_v33 = vld [vmem:[%s1881_s0 + $0x10] sm:$0xff] }
 0x24e   :  { %v1393_v34 = vpop.eup %1392  ;;  %958 = vmatprep.mubr.bf16.mxu0 %v648_v41  ;;  %v636_v30 = vmul.f32 %v1391_v21, %v1792_v54  ;;  %v1112_v54 = vld [vmem:[%s1889_s6] ss:$0 sm:$0xff] }
 0x24f   :  { %v1395_v52 = vpop.eup %1394  ;;  %1015 = vmatprep.mubr.bf16.mxu1 %v650_v22  ;;  %959 = vmatmul.mubr.bf16.gmra.mrb[16].mxu0 %v647_v24  ;;  %v638_v35 = vmul.f32 %v1393_v34, %v1795_v58 }
 0x250   :  { %v1397_v40 = vpop.eup %1396  ;;  %v639_v43 = vmul.f32 %v1395_v52, %v1798_v59  ;;  %1016 = vmatmul.mubr.bf16.gmra.mrb[16].mxu1 %v649_v20 }
 0x251   :  { %v1399_v42 = vpop.eup %1398  ;;  %v641_v47 = vmul.f32 %v1397_v40, %v1802_v63 }
 0x252   :  { %v1401_v29 = vpop.eup %1400  ;;  %v640_v16 = vmul.f32 %v1399_v42, %v1806_v2  ;;  %v651_v36 = vpack.c.bf16 %v639_v43, %v635_v55  ;;  %v1405_v42 = vld [vmem:[%s1881_s0 + $0x18] sm:$0xff] }
 0x253   :  { %v642_v45 = vmul.f32 %v1401_v29, %v1813_v7  ;;  %v653_v37 = vpack.c.bf16 %v641_v47, %v637_v12 }
 0x254   :  { %v652_v31 = vpack.c.bf16 %v640_v16, %v636_v30 }
 0x255   :  { %v654_v46 = vpack.c.bf16 %v642_v45, %v638_v35 }
 0x256   :  { %966 = vmatprep.mubr.bf16.mxu0 %v652_v31  ;;  %v1406_v31 = vld [vmem:[%s1881_s0 + $0x20] sm:$0xff] }
 0x257   :  { %1023 = vmatprep.mubr.bf16.mxu1 %v654_v46  ;;  %967 = vmatmul.mubr.bf16.gmra.mrb[20].mxu0 %v651_v36 }
 0x258   :  { %1024 = vmatmul.mubr.bf16.gmra.mrb[20].mxu1 %v653_v37 }
 0x30e   :  { %v1161_v53 = vpop.f32.mrb[12].mxu0 }
 0x30f   :  { %v1195_v59 = vpop.f32.mrb[12].mxu1  ;;  %v1162_v63 = vpop.f32.mrb[13].mxu0 }
 0x310   :  { %v1163_v2 = vadd.f32 %v1162_v63, %v1161_v53  ;;  %v1196_v38 = vpop.f32.mrb[13].mxu1  ;;  %v1164_v23 = vpop.f32.mrb[14].mxu0 }
 0x311   :  { %v1197_v58 = vadd.f32 %v1196_v38, %v1195_v59  ;;  %v1198_v39 = vpop.f32.mrb[14].mxu1  ;;  %v1165_v7 = vpop.f32.mrb[15].mxu0  ;;  %v1407_v59 = vld [vmem:[%s1881_s0 + $0x28] sm:$0xff] }
 0x312   :  { %v953_v17 = vadd.f32 %v1163_v2, %v1112_v54  ;;  %v1166_v44 = vadd.f32 %v1165_v7, %v1164_v23  ;;  %v1199_v24 = vpop.f32.mrb[15].mxu1 }
 0x313   :  { %v1200_v32 = vadd.f32 %v1199_v24, %v1198_v39 }
 0x314   :  { %v1010_v48 = vadd.f32 %v1197_v58, %v953_v17  ;;  %v956_v49 = vadd.f32 %v1166_v44, %v1112_v54 }
 0x316   :  { %v1032_v50 = vmul.f32 0.5, %v1010_v48  ;;  %v1013_v56 = vadd.f32 %v1200_v32, %v956_v49 }
 0x318   :  { %v1038_v57 = vadd.f32 %v1402_v51, %v1032_v50  ;;  %v1033_v60 = vmul.f32 0.5, %v1013_v56 }
 0x31a   :  { %1044 = vst [vmem:[%s1890_s9] sm:$0xff] %v1038_v57  ;;  %v1039_v62 = vadd.f32 %v1403_v61, %v1033_v60 }
 0x31c   :  { %1045 = vst [vmem:[%s1890_s9 + $0x8] sm:$0xff] %v1039_v62 }
 0x322   :  { %v1167_v0 = vpop.f32.mrb[16].mxu0 }
 0x323   :  { %v1201_v1 = vpop.f32.mrb[16].mxu1  ;;  %v1168_v3 = vpop.f32.mrb[17].mxu0 }
 0x324   :  { %v1169_v4 = vadd.f32 %v1168_v3, %v1167_v0  ;;  %v1202_v25 = vpop.f32.mrb[17].mxu1  ;;  %v1170_v5 = vpop.f32.mrb[18].mxu0 }
 0x325   :  { %v1203_v6 = vadd.f32 %v1202_v25, %v1201_v1  ;;  %v1204_v26 = vpop.f32.mrb[18].mxu1  ;;  %v1171_v8 = vpop.f32.mrb[19].mxu0 }
 0x326   :  { %v961_v9 = vadd.f32 %v1169_v4, %v1112_v54  ;;  %v1172_v27 = vadd.f32 %v1171_v8, %v1170_v5  ;;  %v1205_v10 = vpop.f32.mrb[19].mxu1 }
 0x327   :  { %v1206_v11 = vadd.f32 %v1205_v10, %v1204_v26 }
 0x328   :  { %v1018_v13 = vadd.f32 %v1203_v6, %v961_v9  ;;  %v964_v14 = vadd.f32 %v1172_v27, %v1112_v54 }
 0x32a   :  { %v1034_v15 = vmul.f32 0.5, %v1018_v13  ;;  %v1021_v18 = vadd.f32 %v1206_v11, %v964_v14  ;;  %v1173_v28 = vpop.f32.mrb[20].mxu0 }
 0x32b   :  { %v1207_v19 = vpop.f32.mrb[20].mxu1  ;;  %v1174_v20 = vpop.f32.mrb[21].mxu0 }
 0x32c   :  { %v1040_v41 = vadd.f32 %v1404_v33, %v1034_v15  ;;  %v1035_v21 = vmul.f32 0.5, %v1021_v18  ;;  %v1175_v22 = vadd.f32 %v1174_v20, %v1173_v28  ;;  %v1208_v34 = vpop.f32.mrb[21].mxu1  ;;  %v1176_v52 = vpop.f32.mrb[22].mxu0 }
 0x32d   :  { %v1209_v40 = vadd.f32 %v1208_v34, %v1207_v19  ;;  %v1210_v55 = vpop.f32.mrb[22].mxu1  ;;  %v1177_v43 = vpop.f32.mrb[23].mxu0 }
 0x32e   :  { %1046 = vst [vmem:[%s1890_s9 + $0x10] sm:$0xff] %v1040_v41  ;;  %v1041_v12 = vadd.f32 %v1405_v42, %v1035_v21  ;;  %v969_v47 = vadd.f32 %v1175_v22, %v1112_v54  ;;  %v1178_v29 = vadd.f32 %v1177_v43, %v1176_v52  ;;  %v1211_v30 = vpop.f32.mrb[23].mxu1 }
 0x32f   :  { %v1212_v16 = vadd.f32 %v1211_v30, %v1210_v55 }
 0x330   :  { %1047 = vst [vmem:[%s1890_s9 + $0x18] sm:$0xff] %v1041_v12  ;;  %v1026_v36 = vadd.f32 %v1209_v40, %v969_v47  ;;  %v972_v35 = vadd.f32 %v1178_v29, %v1112_v54 }
 0x332   :  { %v1036_v45 = vmul.f32 0.5, %v1026_v36  ;;  %v1029_v37 = vadd.f32 %v1212_v16, %v972_v35 }
 0x334   :  { %v1042_v46 = vadd.f32 %v1406_v31, %v1036_v45  ;;  %v1037_v53 = vmul.f32 0.5, %v1029_v37 }
 0x336   :  { %1048 = vst [vmem:[%s1890_s9 + $0x20] sm:$0xff] %v1042_v46  ;;  %v1043_v63 = vadd.f32 %v1407_v59, %v1037_v53 }
 0x338   :  { %1049 = vst [vmem:[%s1890_s9 + $0x28] sm:$0xff] %v1043_v63 }

// kernel: _forward_impl.14
= control target key start
LH: loop header
LB: loop body
LE: loop exit
PB: predicated region body
PF: predicated region fallthrough
CT: control target
= control target key end

     0   :  { %s2136_s27 = smov 0   ;;  %s2473_s0 = inlined_call_operand.vmem [shape: f32[2,24,128], index: 0, kind: input, shape index: {}]   ;;  %s2474_s1 = inlined_call_operand.vmem [shape: f32[2,1,24], index: 1, kind: input, shape index: {}]   ;;  %s2475_s2 = inlined_call_operand.vmem [shape: f32[1,128], index: 2, kind: input, shape index: {}]   ;;  %s2476_s3 = inlined_call_operand.vmem [shape: f32[1,128], index: 3, kind: input, shape index: {}]   ;;  %s2477_s4 = inlined_call_operand.vmem [shape: bf16[128,384], index: 4, kind: input, shape index: {}]   ;;  %s2478_s5 = inlined_call_operand.vmem [shape: f32[1,384], index: 5, kind: input, shape index: {}]   ;;  %s2479_s6 = inlined_call_operand.vmem [shape: bf16[128,128], index: 6, kind: input, shape index: {}]   ;;  %s2480_s7 = inlined_call_operand.vmem [shape: f32[1,128], index: 7, kind: input, shape index: {}]   ;;  %s2481_s8 = inlined_call_operand.vmem [shape: f32[2,24,128], index: 8, kind: output, shape index: {}]  }
   0x1 LB: > { %s1715_s28 = sadd.s32 4294967295, %s2085_s27   ;;  %p1719_p0 = scmp.ge.s32.totalorder %s2085_s27, 1  ;;  %s2085_s27 = sphi %s2136_s27, %s18_s27  }
   0x2   : > { %p270_p1 = scmp.lt.s32.totalorder %s2085_s27, 3 }
   0x4   : > { %p271_p2 = pnand %p1719_p0, %p270_p1 }
   0x5   : > { %p307_p3 = scmp.lt.s32.totalorder (!%p271_p2), %s1715_s28, 1  ;;  %v1982_v3 = vld [vmem:[%s2477_s4 + $0x4] ss:$12 sps:$4 sm:$0xff] (!%p271_p2)   ;;  %v1984_v4 = vld [vmem:[%s2477_s4] ss:$12 sps:$4 sm:$0xff] (!%p271_p2)   ;;  %v2087_v35 = vmov (!%p271_p2), 0  }
   0x6   : > { %274 = sbr.rel (%p271_p2) target bundleno = 3091 (0xc13), region = 52  ;;  %v1985_v5 = vld [vmem:[%s2477_s4 + $0x8] ss:$12 sps:$4 sm:$0xff] (!%p271_p2)   ;;  %558 = vmatprep.subr.bf16.mxu0 (!%p271_p2), %v1982_v3  ;;  %v1988_v19 = vld [vmem:[%s2477_s4 + $0x18] ss:$12 sps:$4 sm:$0xff] (!%p271_p2)   ;;  %590 = vmatprep.mubr.bf16.mxu0 (!%p271_p2), %v2087_v35  ;;  %vm664_vm0 = vcmask (!%p271_p2), 261120  }
   0x7   : > { %v1986_v6 = vld [vmem:[%s2477_s4 + $0x1c] ss:$12 sps:$4 sm:$0xff] (!%p271_p2)   ;;  %1841 = vmatprep.subr.bf16.mxu1 (!%p271_p2), %v1985_v5  ;;  %559 = vmatpush1.bf16.msra.mxu0 (!%p271_p2), %v1984_v4  ;;  %v1989_v20 = vld [vmem:[%s2477_s4 + $0x20] ss:$12 sps:$4 sm:$0xff] (!%p271_p2)   ;;  %v1993_v23 = vld [vmem:[%s2477_s4 + $0x38] ss:$12 sps:$4 sm:$0xff] (!%p271_p2)  }
   0x8   : > { %1842 = vmatpush3.bf16.msra.mxu1 (!%p271_p2), %v1985_v5  ;;  %560 = vmatprep.subr.bf16.mxu0 (!%p271_p2), %v1986_v6  ;;  %v1990_v21 = vld [vmem:[%s2477_s4 + $0x34] ss:$12 sps:$4 sm:$0xff] (!%p271_p2)   ;;  %v1992_v22 = vld [vmem:[%s2477_s4 + $0x30] ss:$12 sps:$4 sm:$0xff] (!%p271_p2)   ;;  %v1994_v24 = vld [vmem:[%s2477_s4 + $0x4c] ss:$12 sps:$4 sm:$0xff] (!%p271_p2)  }
   0x9   : > { %1843 = vmatprep.subr.bf16.mxu1 (!%p271_p2), %v1989_v20  ;;  %v1996_v25 = vld [vmem:[%s2477_s4 + $0x48] ss:$12 sps:$4 sm:$0xff] (!%p271_p2)   ;;  %v1997_v26 = vld [vmem:[%s2477_s4 + $0x50] ss:$12 sps:$4 sm:$0xff] (!%p271_p2)   ;;  %v2000_v28 = vld [vmem:[%s2477_s4 + $0x60] ss:$12 sps:$4 sm:$0xff] (!%p271_p2)  }
   0xa   : > { %v1998_v27 = vld [vmem:[%s2477_s4 + $0x64] ss:$12 sps:$4 sm:$0xff] (!%p271_p2)   ;;  %v2001_v29 = vld [vmem:[%s2477_s4 + $0x68] ss:$12 sps:$4 sm:$0xff] (!%p271_p2)   ;;  %v2005_v31 = vld [vmem:[%s2477_s4 + $0x80] ss:$12 sps:$4 sm:$0xff] (!%p271_p2)  }
   0xb   : > { %561 = vmatpush1.bf16.msra.mxu0 (!%p271_p2), %v1988_v19  ;;  %v2002_v30 = vld [vmem:[%s2477_s4 + $0x7c] ss:$12 sps:$4 sm:$0xff] (!%p271_p2)   ;;  %v2004_v32 = vld [vmem:[%s2477_s4 + $0x78] ss:$12 sps:$4 sm:$0xff] (!%p271_p2)   ;;  %v2006_v33 = vld [vmem:[%s2477_s4 + $0x94] ss:$12 sps:$4 sm:$0xff] (!%p271_p2)  }
   0xc   : > { %1844 = vmatpush3.bf16.msra.mxu1 (!%p271_p2), %v1989_v20  ;;  %562 = vmatprep.subr.bf16.mxu0 (!%p271_p2), %v1990_v21  ;;  %v2009_v34 = vld [vmem:[%s2477_s4 + $0x98] ss:$12 sps:$4 sm:$0xff] (!%p271_p2)   ;;  %v2008_v36 = vld [vmem:[%s2477_s4 + $0x90] ss:$12 sps:$4 sm:$0xff] (!%p271_p2)   ;;  %v2012_v39 = vld [vmem:[%s2477_s4 + $0xa8] ss:$12 sps:$4 sm:$0xff] (!%p271_p2)  }
   0xd   : > { %s2483_s28 = smov (!%p307_p3, %s1715_s28), 1  ;;  %1845 = vmatprep.subr.bf16.mxu1 %v1993_v23  ;;  %v2010_v37 = vld [vmem:[%s2477_s4 + $0xac] ss:$12 sps:$4 sm:$0xff]   ;;  %v2013_v38 = vld [vmem:[%s2477_s4 + $0xb0] ss:$12 sps:$4 sm:$0xff]   ;;  %vm779_vm1 = vcmask 1043456  }
   0xe   : > { %s1969_s29 = smul.u32 24, %s2483_s28  ;;  %v1722_v51 = vld [vmem:[%s2475_s2] ss:$0 sm:$0xff]  ;;  %s314_s13 = scalar_lea.vmem %s2474_s1, %s2483_s28  ;;  %vm735_vm4 = vcmask 195584  }
   0xf   : > { %563 = vmatpush1.bf16.msra.mxu0 %v1992_v22  ;;  %v1723_v57 = vld [vmem:[%s2476_s3] ss:$0 sm:$0xff]  ;;  %s2088_s14 = smov 96   ;;  %s2089_s19 = smov 64  }
  0x10   : > { %s2152_s10 = scalar_lea.vmem %s2473_s0, %s1969_s29  ;;  %1846 = vmatpush3.bf16.msra.mxu1 %v1993_v23  ;;  %564 = vmatprep.subr.bf16.mxu0 %v1994_v24  ;;  %v413_v4 = vld [vmem:[%s2478_s5] sm:$0x7]  ;;  %s2090_s20 = smov 32  }
  0x11   : > { %v321_v0 = vld [vmem:[%s2152_s10] sm:$0xff]  ;;  %v323_v1 = vld [vmem:[%s2152_s10 + $0x10] sm:$0xff]  ;;  %v322_v2 = vld [vmem:[%s2152_s10 + $0x8] sm:$0xff]  ;;  %1847 = vmatprep.subr.bf16.mxu1 %v1997_v26 }
  0x12   : > { %325 = vadd.xlane.f32.xlu0 %v321_v0  ;;  %329 = vadd.xlane.f32.xlu1 %v323_v1 }
  0x13   : > { %565 = vmatpush1.bf16.msra.mxu0 %v1996_v25 }
  0x14   : > { %1848 = vmatpush3.bf16.msra.mxu1 %v1997_v26  ;;  %566 = vmatprep.subr.bf16.mxu0 %v1998_v27 }
  0x15   : > { %1849 = vmatprep.subr.bf16.mxu1 %v2001_v29 }
  0x16   : > { %327 = vadd.xlane.f32.xlu0 %v322_v2 }
  0x17   : > { %567 = vmatpush1.bf16.msra.mxu0 %v2000_v28 }
  0x18   : > { %1850 = vmatpush3.bf16.msra.mxu1 %v2001_v29  ;;  %568 = vmatprep.subr.bf16.mxu0 %v2002_v30 }
  0x19   : > { %1851 = vmatprep.subr.bf16.mxu1 %v2005_v31 }
  0x1b   : > { %569 = vmatpush1.bf16.msra.mxu0 %v2004_v32 }
  0x1c   : > { %1852 = vmatpush3.bf16.msra.mxu1 %v2005_v31  ;;  %570 = vmatprep.subr.bf16.mxu0 %v2006_v33 }
  0x1d   : > { %1853 = vmatprep.subr.bf16.mxu1 %v2009_v34 }
  0x1f   : > { %571 = vmatpush1.bf16.msra.mxu0 %v2008_v36 }
  0x20   : > { %1854 = vmatpush3.bf16.msra.mxu1 %v2009_v34  ;;  %572 = vmatprep.subr.bf16.mxu0 %v2010_v37 }
  0x21   : > { %1855 = vmatprep.subr.bf16.mxu1 %v2013_v38 }
  0x23   : > { %573 = vmatpush1.bf16.msra.mxu0 %v2012_v39 }
  0x24   : > { %1856 = vmatpush3.bf16.msra.mxu1 %v2013_v38 }
  0x9f   : > { %v326_v7 = vpop.xlane.xlu0 %325  ;;  %v330_v8 = vpop.xlane.xlu1 %329 }
  0xa0   : > { %v332_v9 = vmul.f32 0.0078125, %v326_v7  ;;  %v334_v10 = vmul.f32 0.0078125, %v330_v8 }
  0xa2   : > { %v2169_v11 = vsub.f32 %v321_v0, %v332_v9  ;;  %v2171_v12 = vsub.f32 %v323_v1, %v334_v10  ;;  %v415_v1 = vlaneseq }
  0xa3   : > { %v328_v13 = vpop.xlane.xlu0 %327 }
  0xa4   : > { %v333_v14 = vmul.f32 0.0078125, %v328_v13  ;;  %v338_v15 = vmul.f32 %v2169_v11, %v2169_v11  ;;  %v340_v17 = vmul.f32 %v2171_v12, %v2171_v12 }
  0xa6   : > { %v2175_v16 = vsub.f32 %v322_v2, %v333_v14  ;;  %341 = vadd.xlane.f32.xlu1 %v338_v15  ;;  %v416_v2 = vshrl.u32 %v415_v1, 7 }
  0xa8   : > { %v339_v18 = vmul.f32 %v2175_v16, %v2175_v16  ;;  %v417_v3 = vsub.s32 0, %v416_v2  ;;  %v421_v5 = vsub.s32 1, %v416_v2  ;;  %v425_v7 = vsub.s32 2, %v416_v2 }
  0xaa   : > { %345 = vadd.xlane.f32.xlu1 %v340_v17  ;;  %343 = vadd.xlane.f32.xlu0 %v339_v18  ;;  %v418_v6 = vrot.slane %v413_v4, %v417_v3  ;;  %v422_v9 = vrot.slane %v413_v4, %v421_v5 }
 0x133   : > { %v342_v40 = vpop.xlane.xlu1 %341 }
 0x134   : > { %v347_v41 = vmul.f32 0.0078125, %v342_v40 }
 0x136   : > { %v350_v42 = vadd.f32 1e-05, %v347_v41 }
 0x137   : > { %v346_v43 = vpop.xlane.xlu1 %345  ;;  %v344_v44 = vpop.xlane.xlu0 %343 }
 0x138   : > { %2022 = vrsqrt.f32 %v350_v42  ;;  %v349_v45 = vmul.f32 0.0078125, %v346_v43  ;;  %v348_v46 = vmul.f32 0.0078125, %v344_v44  ;;  %v324_v44 = vld [vmem:[%s314_s13] sm:$0x1] }
 0x139   : > { %vm725_vm2 = vcmp.gt.f32.partialorder %v324_v44, 0.0 }
 0x13a   : > { %v352_v47 = vadd.f32 1e-05, %v349_v45  ;;  %v351_v48 = vadd.f32 1e-05, %v348_v46  ;;  %v726_v45 = vsel %vm725_vm2, 1, %v2087_v35 }
 0x13b   : > { %v2290_v46 = vrot.slane %v726_v45, %v417_v3 }
 0x13c   : > { %2024 = vrsqrt.f32 %v352_v47 }
 0x13d   : > { %2026 = vrsqrt.f32 %v351_v48  ;;  %vm731_vm3 = vcmp.eq.s32.totalorder %v2290_v46, 1  ;;  %v2018_v46 = vld [vmem:[%s2479_s6 + $0x20] sm:$0xff]  }
 0x142   : > { %v2023_v49 = vpop.eup %2022 }
 0x143   : > { %v356_v50 = vmul.f32 %v2023_v49, %v2169_v11 }
 0x145   : > { %v366_v56 = vmul.f32 %v1722_v51, %v356_v50 }
 0x146   : > { %v2025_v52 = vpop.eup %2024 }
 0x147   : > { %v2027_v53 = vpop.eup %2026  ;;  %v358_v54 = vmul.f32 %v2025_v52, %v2171_v12  ;;  %v376_v61 = vadd.f32 %v1723_v57, %v366_v56  ;;  %v426_v12 = vrot.slane %v413_v4, %v425_v7 }
 0x148   : > { %v357_v55 = vmul.f32 %v2027_v53, %v2175_v16 }
 0x149   : > { %v368_v58 = vmul.f32 %v1722_v51, %v358_v54 }
 0x14a   : > { %v367_v59 = vmul.f32 %v1722_v51, %v357_v55 }
 0x14b   : > { %v378_v60 = vadd.f32 %v1723_v57, %v368_v58 }
 0x14c   : > { %v377_v62 = vadd.f32 %v1723_v57, %v367_v59 }
 0x14d   : > { %v380_v63 = vpack.c.bf16 %v378_v60, %v378_v60 }
 0x14e   : > { %v379_v0 = vpack.c.bf16 %v377_v62, %v376_v61 }
 0x150   : > { %591 = vmatmul.mubr.bf16.vlgmr.msra.gmra.mrb[0].mxu0 %v379_v0  ;;  %1857 = vmatprep.mubr.bf16.mxu1 %v379_v0 }
 0x151   : > { %1858 = vmatmul.mubr.bf16.vlgmr.msra.gmra.mrb[0].mxu1 %v380_v63  ;;  %600 = vmatprep.mubr.bf16.mxu0 %v2087_v35 }
 0x158   : > { %601 = vmatmul.mubr.bf16.gmra.mrb[4].mxu0 %v380_v63 }
 0x223   : > { %v592_v8 = vpop.f32.mrb[0].mxu0 }
 0x224   : > { %v593_v10 = vadd.f32 %v592_v8, %v418_v6  ;;  %v594_v11 = vpop.f32.mrb[1].mxu0  ;;  %v1859_v13 = vpop.f32.mrb[0].mxu1 }
 0x225   : > { %v596_v14 = vpop.f32.mrb[2].mxu0  ;;  %v643_v15 = vpop.f32.mrb[1].mxu1  ;;  %v595_v19 = vadd.f32 %v594_v11, %v422_v9  ;;  %v652_v26 = vadd.f32 %v1859_v13, %v426_v12 }
 0x226   : > { %v597_v16 = vadd.f32 %v596_v14, %v418_v6  ;;  %v598_v17 = vpop.f32.mrb[3].mxu0  ;;  %v1860_v18 = vpop.f32.mrb[2].mxu1  ;;  %v657_v22 = vmul.f32 0.17677669, %v593_v10  ;;  %v644_v24 = vadd.f32 %v643_v15, %v426_v12 }
 0x227   : > { %v599_v20 = vadd.f32 %v598_v17, %v422_v9  ;;  %v646_v21 = vpop.f32.mrb[3].mxu1  ;;  %v2267_v33 = vpack.c.bf16 %v652_v26, %v652_v26 }
 0x228   : > { %v658_v23 = vmul.f32 0.17677669, %v597_v16  ;;  %v647_v25 = vadd.f32 %v646_v21, %v426_v12 }
 0x229   : > { %v2255_v27 = vpack.c.bf16 %v599_v20, %v595_v19  ;;  %v781_v40 = vsel %vm779_vm1, %v2267_v33, 0 }
 0x22a   : > { %v2257_v28 = vpack.c.bf16 %v658_v23, %v657_v22  ;;  %v2259_v29 = vpack.c.bf16 %v647_v25, %v644_v24  ;;  %v2014_v22 = vld [vmem:[%s2479_s6] sm:$0xff]   ;;  %v2015_v25 = vld [vmem:[%s2479_s6 + $0x8] sm:$0xff]  }
 0x22b   : > { %v602_v30 = vpop.f32.mrb[4].mxu0  ;;  %1957 = vmatprep.subr.msk.bf16.mxu0 %vm664_vm0, %v2255_v27  ;;  %v672_v31 = vsel %vm664_vm0, %v2255_v27, 0 }
 0x22c   : > { %v604_v32 = vpop.f32.mrb[5].mxu0  ;;  %1862 = vmatpush3.bf16.xpose.msra.mxu0 %v672_v31  ;;  %1865 = vmatprep.mubr.msk.bf16.mxu0 %vm664_vm0, %v2257_v28  ;;  %v603_v39 = vadd.f32 %v602_v30, %v418_v6 }
 0x22d   : > { %v605_v34 = vadd.f32 %v604_v32, %v422_v9  ;;  %1869 = vmatprep.subr.bf16.mxu1 %v2259_v29  ;;  %v606_v36 = vpop.f32.mrb[6].mxu0 }
 0x22e   : > { %1870 = vmatpush3.bf16.msra.mxu1 %v2259_v29  ;;  %v607_v37 = vpop.f32.mrb[7].mxu0  ;;  %v659_v42 = vmul.f32 0.17677669, %v603_v39 }
 0x22f   : > { %v2271_v38 = vpack.c.bf16 %v605_v34, %v605_v34  ;;  %1959 = vmatprep.subr.msk.bf16.mxu1 %vm779_vm1, %v2267_v33 }
 0x230   : > { %v2281_v43 = vpack.c.bf16 %v659_v42, %v659_v42 }
 0x231   : > { %1958 = vmatprep.subr.msk.bf16.mxu0 %vm664_vm0, %v2271_v38  ;;  %v675_v41 = vsel %vm664_vm0, %v2271_v38, 0 }
 0x232   : > { %1872 = vmatpush3.bf16.msra.mxu1 %v781_v40 }
 0x234   : > { %1864 = vmatpush3.bf16.xpose.msra.mxu0 %v675_v41 }
 0x23b   : > { %1866 = vmatmul.mubr.msk.bf16.vlgmr.msra.gmra.mrb[8].mxu0 %vm664_vm0, %v2281_v43 }
 0x30e   : > { %v1867_v47 = vpop.f32.mrb[8].mxu0 }
 0x30f   : > { %v711_v48 = vpop.f32.mrb[9].mxu0  ;;  %v734_v53 = vsel %vm731_vm3, %v1867_v47, -1e+30 }
 0x310   : > { %v732_v49 = vsel %vm731_vm3, %v711_v48, -1e+30  ;;  %v1868_v50 = vpop.f32.mrb[10].mxu0  ;;  %v742_v55 = vsel %vm735_vm4, %v734_v53, -inf }
 0x311   : > { %v714_v51 = vpop.f32.mrb[11].mxu0  ;;  %v736_v52 = vsel %vm735_vm4, %v732_v49, -inf }
 0x312   : > { %v733_v35 = vsel %vm731_vm3, %v714_v51, -1e+30  ;;  %737 = vmax.xlane.f32.xlu0 %v736_v52 }
 0x313   : > { %v739_v54 = vsel %vm735_vm4, %v733_v35, -inf }
 0x314   : > { %740 = vmax.xlane.f32.xlu1 %v739_v54 }
 0x316   : > { %743 = vmax.xlane.f32.xlu0 %v742_v55 }
 0x39f   : > { %v738_v56 = vpop.xlane.xlu0 %737 }
 0x3a0   : > { %v745_v57 = vsub.f32 %v732_v49, %v738_v56 }
 0x3a1   : > { %v741_v58 = vpop.xlane.xlu1 %740 }
 0x3a2   : > { %v748_v59 = vmul.f32 1.442695, %v745_v57  ;;  %v746_v60 = vsub.f32 %v733_v35, %v741_v58 }
 0x3a3   : > { %v744_v61 = vpop.xlane.xlu0 %743 }
 0x3a4   : > { %2028 = vpow2.f32 %v748_v59  ;;  %v750_v62 = vmul.f32 1.442695, %v746_v60  ;;  %v747_v63 = vsub.f32 %v734_v53, %v744_v61 }
 0x3a6   : > { %2030 = vpow2.f32 %v750_v62  ;;  %v752_v0 = vmul.f32 1.442695, %v747_v63 }
 0x3a8   : > { %2032 = vpow2.f32 %v752_v0 }
 0x3ae   : > { %v2029_v1 = vpop.eup %2028 }
 0x3af   : > { %v754_v2 = vsel %vm735_vm4, %v2029_v1, 0.0 }
 0x3b0   : > { %v2031_v3 = vpop.eup %2030  ;;  %755 = vadd.xlane.f32.xlu1 %v754_v2 }
 0x3b1   : > { %v757_v4 = vsel %vm735_vm4, %v2031_v3, 0.0 }
 0x3b2   : > { %v2033_v5 = vpop.eup %2032  ;;  %758 = vadd.xlane.f32.xlu0 %v757_v4 }
 0x3b3   : > { %v760_v6 = vsel %vm735_vm4, %v2033_v5, 0.0 }
 0x3b4   : > { %761 = vadd.xlane.f32.xlu1 %v760_v6 }
 0x3c5   : > { %847 = vrot.lane.b32.xlu1 %v2271_v38, %s2088_s14 }
 0x3c8   : > { %845 = vrot.lane.b32.xlu0 %v2255_v27, %s2088_s14 }
 0x3c9   : > { %839 = vrot.lane.b32.xlu1 %v2257_v28, %s2088_s14 }
 0x3cd   : > { %841 = vrot.lane.b32.xlu1 %v2281_v43, %s2088_s14 }
 0x43d   : > { %v756_v7 = vpop.xlane.xlu1 %755 }
 0x43e   : > { %2034 = vrcp.f32 %v756_v7 }
 0x43f   : > { %v759_v8 = vpop.xlane.xlu0 %758 }
 0x440   : > { %2036 = vrcp.f32 %v759_v8 }
 0x441   : > { %v762_v9 = vpop.xlane.xlu1 %761 }
 0x442   : > { %2038 = vrcp.f32 %v762_v9 }
 0x443   : > { %v846_v10 = vpop.permute.xlu0 %845 }
 0x444   : > { %1960 = vmatprep.subr.msk.bf16.mxu1 %vm664_vm0, %v846_v10  ;;  %v856_v20 = vsel %vm664_vm0, %v846_v10, 0 }
 0x445   : > { %v848_v13 = vpop.permute.xlu1 %847 }
 0x446   : > { %v859_v23 = vsel %vm664_vm0, %v848_v13, 0 }
 0x448   : > { %v2035_v11 = vpop.eup %2034 }
 0x449   : > { %v766_v14 = vmul.f32 %v2035_v11, %v2029_v1  ;;  %v840_v21 = vpop.permute.xlu1 %839 }
 0x44a   : > { %v2037_v12 = vpop.eup %2036 }
 0x44b   : > { %v767_v15 = vmul.f32 %v2037_v12, %v2031_v3 }
 0x44c   : > { %v2039_v16 = vpop.eup %2038 }
 0x44d   : > { %v768_v17 = vmul.f32 %v2039_v16, %v2033_v5  ;;  %v769_v18 = vpack.c.bf16 %v767_v15, %v766_v14  ;;  %v842_v24 = vpop.permute.xlu1 %841  ;;  %v2017_v15 = vld [vmem:[%s2479_s6 + $0x18] sm:$0xff]  }
 0x44f   : > { %1873 = vmatprep.mubr.msk.bf16.mxu1 %vm735_vm4, %v769_v18  ;;  %v770_v19 = vpack.c.bf16 %v768_v17, %v768_v17 }
 0x451   : > { %1874 = vmatmul.mubr.msk.bf16.vlgmr.msra.gmra.mrb[4].mxu1 %vm735_vm4, %v770_v19 }
 0x452   : > { %1878 = vmatpush3.bf16.xpose.msra.mxu1 %v856_v20  ;;  %1881 = vmatprep.mubr.msk.bf16.mxu1 %vm664_vm0, %v840_v21 }
 0x453   : > { %1961 = vmatprep.subr.msk.bf16.mxu1 %vm664_vm0, %v848_v13 }
 0x45a   : > { %1880 = vmatpush3.bf16.xpose.msra.mxu1 %v859_v23 }
 0x45b   : > { %1901 = vmatprep.subr.bf16.mxu1 %v2014_v22 }
 0x461   : > { %1882 = vmatmul.mubr.msk.bf16.vlgmr.msra.gmra.mrb[8].mxu1 %vm664_vm0, %v842_v24 }
 0x462   : > { %1902 = vmatpush3.bf16.msra.mxu1 %v2014_v22 }
 0x463   : > { %1903 = vmatprep.subr.bf16.mxu1 %v2015_v25 }
 0x466   : > { %1904 = vmatpush3.bf16.msra.mxu1 %v2015_v25 }
 0x524   : > { %v1875_v26 = vpop.f32.mrb[4].mxu1 }
 0x525   : > { %v817_v30 = vpop.f32.mrb[5].mxu1  ;;  %v832_v36 = vpack.c.bf16 %v1875_v26, %v1875_v26 }
 0x526   : > { %v1876_v31 = vpop.f32.mrb[6].mxu1 }
 0x527   : > { %v820_v32 = vpop.f32.mrb[7].mxu1 }
 0x528   : > { %v831_v34 = vpack.c.bf16 %v820_v32, %v817_v30 }
 0x52a   : > { %1905 = vmatprep.mubr.msk.bf16.mxu1 %vm664_vm0, %v831_v34 }
 0x52b   : > { %1906 = vmatmul.mubr.msk.bf16.vlgmr.msra.gmra.mrb[12].mxu1 %vm664_vm0, %v832_v36 }
 0x534   : > { %v1883_v37 = vpop.f32.mrb[8].mxu1 }
 0x535   : > { %v895_v39 = vpop.f32.mrb[9].mxu1  ;;  %v911_v45 = vsel %vm731_vm3, %v1883_v37, -1e+30 }
 0x536   : > { %v909_v40 = vsel %vm731_vm3, %v895_v39, -1e+30  ;;  %v1884_v41 = vpop.f32.mrb[10].mxu1  ;;  %v918_v49 = vsel %vm735_vm4, %v911_v45, -inf }
 0x537   : > { %v898_v42 = vpop.f32.mrb[11].mxu1  ;;  %v912_v44 = vsel %vm735_vm4, %v909_v40, -inf }
 0x538   : > { %v910_v47 = vsel %vm731_vm3, %v898_v42, -1e+30  ;;  %913 = vmax.xlane.f32.xlu0 %v912_v44 }
 0x539   : > { %v915_v48 = vsel %vm735_vm4, %v910_v47, -inf }
 0x53a   : > { %916 = vmax.xlane.f32.xlu1 %v915_v48 }
 0x53c   : > { %919 = vmax.xlane.f32.xlu0 %v918_v49 }
 0x5c5   : > { %v914_v50 = vpop.xlane.xlu0 %913 }
 0x5c6   : > { %v921_v51 = vsub.f32 %v909_v40, %v914_v50 }
 0x5c7   : > { %v917_v52 = vpop.xlane.xlu1 %916 }
 0x5c8   : > { %v924_v53 = vmul.f32 1.442695, %v921_v51  ;;  %v922_v35 = vsub.f32 %v910_v47, %v917_v52 }
 0x5c9   : > { %v920_v54 = vpop.xlane.xlu0 %919 }
 0x5ca   : > { %2040 = vpow2.f32 %v924_v53  ;;  %v926_v55 = vmul.f32 1.442695, %v922_v35  ;;  %v923_v56 = vsub.f32 %v911_v45, %v920_v54 }
 0x5cc   : > { %2042 = vpow2.f32 %v926_v55  ;;  %v928_v57 = vmul.f32 1.442695, %v923_v56 }
 0x5ce   : > { %2044 = vpow2.f32 %v928_v57 }
 0x5d4   : > { %v2041_v58 = vpop.eup %2040 }
 0x5d5   : > { %v930_v59 = vsel %vm735_vm4, %v2041_v58, 0.0 }
 0x5d6   : > { %v2043_v60 = vpop.eup %2042  ;;  %931 = vadd.xlane.f32.xlu0 %v930_v59 }
 0x5d7   : > { %v933_v63 = vsel %vm735_vm4, %v2043_v60, 0.0 }
 0x5d8   : > { %v2045_v61 = vpop.eup %2044 }
 0x5d9   : > { %v936_v62 = vsel %vm735_vm4, %v2045_v61, 0.0 }
 0x5da   : > { %937 = vadd.xlane.f32.xlu1 %v936_v62  ;;  %934 = vadd.xlane.f32.xlu0 %v933_v63 }
 0x5eb   : > { %951 = vrot.lane.b32.xlu1 %v2267_v33, %s2088_s14 }
 0x5ef   : > { %1153 = vrot.lane.b32.xlu1 %v2255_v27, %s2089_s19 }
 0x5f0   : > { %949 = vrot.lane.b32.xlu0 %v2259_v29, %s2088_s14 }
 0x5f3   : > { %1155 = vrot.lane.b32.xlu1 %v2271_v38, %s2089_s19 }
 0x5f4   : > { %1149 = vrot.lane.b32.xlu0 %v2257_v28, %s2089_s19 }
 0x5f7   : > { %1151 = vrot.lane.b32.xlu1 %v2281_v43, %s2089_s19 }
 0x5f8   : > { %1396 = vrot.lane.b32.xlu0 %v2255_v27, %s2090_s20 }
 0x5fb   : > { %1398 = vrot.lane.b32.xlu1 %v2271_v38, %s2090_s20 }
 0x5fc   : > { %1392 = vrot.lane.b32.xlu0 %v2257_v28, %s2090_s20  ;;  %v2016_v28 = vld [vmem:[%s2479_s6 + $0x10] sm:$0xff]  }
 0x5fe   : > { %v2359_v0 = vpop.f32.mrb[12].mxu1 }
 0x5ff   : > { %1394 = vrot.lane.b32.xlu1 %v2281_v43, %s2090_s20  ;;  %v2363_v1 = vpop.f32.mrb[13].mxu1 }
 0x600   : > { %v1908_v2 = vpop.f32.mrb[14].mxu1 }
 0x601   : > { %v2365_v3 = vpop.f32.mrb[15].mxu1 }
 0x663   : > { %v932_v4 = vpop.xlane.xlu0 %931 }
 0x664   : > { %2046 = vrcp.f32 %v932_v4 }
 0x667   : > { %v935_v5 = vpop.xlane.xlu0 %934  ;;  %v938_v27 = vpop.xlane.xlu1 %937 }
 0x668   : > { %2048 = vrcp.f32 %v935_v5 }
 0x669   : > { %2050 = vrcp.f32 %v938_v27 }
 0x66b   : > { %v950_v38 = vpop.permute.xlu0 %949  ;;  %v952_v6 = vpop.permute.xlu1 %951 }
 0x66c   : > { %1885 = vmatprep.subr.bf16.mxu0 %v950_v38  ;;  %v961_v7 = vsel %vm779_vm1, %v952_v6, 0 }
 0x66d   : > { %1886 = vmatpush3.bf16.msra.mxu0 %v950_v38 }
 0x66e   : > { %1962 = vmatprep.subr.msk.bf16.mxu0 %vm779_vm1, %v952_v6  ;;  %v2047_v43 = vpop.eup %2046 }
 0x66f   : > { %v942_v10 = vmul.f32 %v2047_v43, %v2041_v58  ;;  %v1154_v16 = vpop.permute.xlu1 %1153  ;;  %v1150_v23 = vpop.permute.xlu0 %1149 }
 0x670   : > { %v1164_v24 = vsel %vm664_vm0, %v1154_v16, 0 }
 0x671   : > { %1888 = vmatpush3.bf16.msra.mxu0 %v961_v7 }
 0x672   : > { %v2049_v8 = vpop.eup %2048  ;;  %1893 = vmatprep.subr.bf16.mxu0 %v2016_v28 }
 0x673   : > { %v2051_v9 = vpop.eup %2050  ;;  %v943_v11 = vmul.f32 %v2049_v8, %v2043_v60  ;;  %v1156_v25 = vpop.permute.xlu1 %1155 }
 0x674   : > { %v944_v12 = vmul.f32 %v2051_v9, %v2045_v61  ;;  %v1167_v26 = vsel %vm664_vm0, %v1156_v25, 0  ;;  %v1397_v30 = vpop.permute.xlu0 %1396 }
 0x675   : > { %v945_v13 = vpack.c.bf16 %v943_v11, %v942_v10  ;;  %v1407_v32 = vsel %vm664_vm0, %v1397_v30, 0 }
 0x676   : > { %v946_v14 = vpack.c.bf16 %v944_v12, %v944_v12 }
 0x677   : > { %1889 = vmatprep.mubr.msk.bf16.mxu0 %vm735_vm4, %v945_v13  ;;  %v1152_v31 = vpop.permute.xlu1 %1151 }
 0x678   : > { %1890 = vmatmul.mubr.msk.bf16.vlgmr.msra.gmra.mrb[12].mxu0 %vm735_vm4, %v946_v14  ;;  %v1393_v34 = vpop.permute.xlu0 %1392 }
 0x679   : > { %1894 = vmatpush3.bf16.msra.mxu0 %v2016_v28 }
 0x67a   : > { %1895 = vmatprep.subr.bf16.mxu0 %v2017_v15 }
 0x67b   : > { %v1399_v36 = vpop.permute.xlu1 %1398 }
 0x67c   : > { %v1410_v37 = vsel %vm664_vm0, %v1399_v36, 0 }
 0x67d   : > { %1896 = vmatpush3.bf16.msra.mxu0 %v2017_v15 }
 0x67e   : > { %1963 = vmatprep.subr.msk.bf16.mxu0 %vm664_vm0, %v1154_v16 }
 0x67f   : > { %v1395_v39 = vpop.permute.xlu1 %1394 }
 0x74b   : > { %v1891_v17 = vpop.f32.mrb[12].mxu0 }
 0x74c   : > { %v997_v18 = vpop.f32.mrb[13].mxu0  ;;  %v1012_v22 = vpack.c.bf16 %v1891_v17, %v1891_v17 }
 0x74d   : > { %v1892_v19 = vpop.f32.mrb[14].mxu0 }
 0x74e   : > { %v1000_v20 = vpop.f32.mrb[15].mxu0 }
 0x74f   : > { %v1011_v21 = vpack.c.bf16 %v1000_v20, %v997_v18 }
 0x751   : > { %1897 = vmatprep.mubr.msk.bf16.mxu0 %vm664_vm0, %v1011_v21 }
 0x752   : > { %1898 = vmatmul.mubr.msk.bf16.vlgmr.msra.gmra.mrb[16].mxu0 %vm664_vm0, %v1012_v22 }
 0x753   : > { %1910 = vmatpush3.bf16.xpose.msra.mxu0 %v1164_v24  ;;  %1913 = vmatprep.mubr.msk.bf16.mxu0 %vm664_vm0, %v1150_v23 }
 0x754   : > { %1964 = vmatprep.subr.msk.bf16.mxu0 %vm664_vm0, %v1156_v25 }
 0x75b   : > { %1912 = vmatpush3.bf16.xpose.msra.mxu0 %v1167_v26 }
 0x75c   : > { %1966 = vmatprep.subr.msk.bf16.mxu0 %vm664_vm0, %v1397_v30 }
 0x762   : > { %1914 = vmatmul.mubr.msk.bf16.vlgmr.msra.gmra.mrb[20].mxu0 %vm664_vm0, %v1152_v31 }
 0x763   : > { %1934 = vmatpush3.bf16.xpose.msra.mxu0 %v1407_v32  ;;  %1937 = vmatprep.mubr.msk.bf16.mxu0 %vm664_vm0, %v1393_v34 }
 0x764   : > { %1967 = vmatprep.subr.msk.bf16.mxu0 %vm664_vm0, %v1399_v36 }
 0x76b   : > { %1936 = vmatpush3.bf16.xpose.msra.mxu0 %v1410_v37 }
 0x772   : > { %1938 = vmatmul.mubr.msk.bf16.vlgmr.msra.gmra.mrb[24].mxu0 %vm664_vm0, %v1395_v39 }
 0x825   : > { %v1899_v40 = vpop.f32.mrb[16].mxu0 }
 0x826   : > { %v2392_v41 = vadd.f32 %v2359_v0, %v1899_v40  ;;  %v1069_v42 = vpop.f32.mrb[17].mxu0 }
 0x827   : > { %v2395_v44 = vadd.f32 %v2363_v1, %v1069_v42  ;;  %v1900_v45 = vpop.f32.mrb[18].mxu0 }
 0x828   : > { %v1072_v47 = vpop.f32.mrb[19].mxu0 }
 0x829   : > { %v2398_v48 = vadd.f32 %v2365_v3, %v1072_v47 }
 0x835   : > { %v1915_v49 = vpop.f32.mrb[20].mxu0 }
 0x836   : > { %v1203_v50 = vpop.f32.mrb[21].mxu0  ;;  %v1219_v54 = vsel %vm731_vm3, %v1915_v49, -1e+30 }
 0x837   : > { %v1217_v51 = vsel %vm731_vm3, %v1203_v50, -1e+30  ;;  %v1916_v52 = vpop.f32.mrb[22].mxu0  ;;  %v1226_v57 = vsel %vm735_vm4, %v1219_v54, -inf }
 0x838   : > { %v1206_v53 = vpop.f32.mrb[23].mxu0  ;;  %v1220_v35 = vsel %vm735_vm4, %v1217_v51, -inf }
 0x839   : > { %v1218_v55 = vsel %vm731_vm3, %v1206_v53, -1e+30  ;;  %1221 = vmax.xlane.f32.xlu0 %v1220_v35 }
 0x83a   : > { %v1223_v56 = vsel %vm735_vm4, %v1218_v55, -inf }
 0x83b   : > { %1224 = vmax.xlane.f32.xlu1 %v1223_v56 }
 0x83d   : > { %1227 = vmax.xlane.f32.xlu0 %v1226_v57 }
 0x845   : > { %v1939_v58 = vpop.f32.mrb[24].mxu0 }
 0x846   : > { %v1446_v59 = vpop.f32.mrb[25].mxu0  ;;  %v1462_v13 = vsel %vm731_vm3, %v1939_v58, -1e+30 }
 0x847   : > { %v1940_v60 = vpop.f32.mrb[26].mxu0  ;;  %v1460_v9 = vsel %vm731_vm3, %v1446_v59, -1e+30  ;;  %v1469_v14 = vsel %vm735_vm4, %v1462_v13, -inf }
 0x848   : > { %v1449_v61 = vpop.f32.mrb[27].mxu0  ;;  %v1463_v11 = vsel %vm735_vm4, %v1460_v9, -inf }
 0x849   : > { %v1461_v10 = vsel %vm731_vm3, %v1449_v61, -1e+30 }
 0x84a   : > { %v1466_v12 = vsel %vm735_vm4, %v1461_v10, -inf }
 0x8c6   : > { %v1222_v62 = vpop.xlane.xlu0 %1221 }
 0x8c7   : > { %v1229_v63 = vsub.f32 %v1217_v51, %v1222_v62 }
 0x8c8   : > { %v1225_v0 = vpop.xlane.xlu1 %1224 }
 0x8c9   : > { %v1232_v1 = vmul.f32 1.442695, %v1229_v63  ;;  %v1230_v2 = vsub.f32 %v1218_v55, %v1225_v0 }
 0x8ca   : > { %v1228_v3 = vpop.xlane.xlu0 %1227 }
 0x8cb   : > { %2052 = vpow2.f32 %v1232_v1  ;;  %v1234_v4 = vmul.f32 1.442695, %v1230_v2  ;;  %v1231_v5 = vsub.f32 %v1219_v54, %v1228_v3  ;;  %v2019_v54 = vld [vmem:[%s2479_s6 + $0x28] sm:$0xff]  }
 0x8cd   : > { %2054 = vpow2.f32 %v1234_v4  ;;  %v1236_v27 = vmul.f32 1.442695, %v1231_v5 }
 0x8cf   : > { %2056 = vpow2.f32 %v1236_v27 }
 0x8d5   : > { %v2053_v38 = vpop.eup %2052 }
 0x8d6   : > { %v1238_v6 = vsel %vm735_vm4, %v2053_v38, 0.0 }
 0x8d7   : > { %v2055_v28 = vpop.eup %2054  ;;  %1239 = vadd.xlane.f32.xlu0 %v1238_v6 }
 0x8d8   : > { %v1241_v8 = vsel %vm735_vm4, %v2055_v28, 0.0 }
 0x8d9   : > { %v2057_v43 = vpop.eup %2056 }
 0x8da   : > { %v1244_v7 = vsel %vm735_vm4, %v2057_v43, 0.0 }
 0x8db   : > { %1245 = vadd.xlane.f32.xlu1 %v1244_v7  ;;  %1242 = vadd.xlane.f32.xlu0 %v1241_v8 }
 0x8ec   : > { %1257 = vrot.lane.b32.xlu1 %v2267_v33, %s2089_s19 }
 0x8f1   : > { %1255 = vrot.lane.b32.xlu0 %v2259_v29, %s2089_s19  ;;  %s319_s19 = scalar_lea.vmem %s2481_s8, %s1969_s29 }
 0x910   : > { %1464 = vmax.xlane.f32.xlu1 %v1463_v11  ;;  %1467 = vmax.xlane.f32.xlu0 %v1466_v12 }
 0x914   : > { %1470 = vmax.xlane.f32.xlu0 %v1469_v14 }
 0x964   : > { %v1240_v15 = vpop.xlane.xlu0 %1239 }
 0x965   : > { %2058 = vrcp.f32 %v1240_v15 }
 0x968   : > { %v1243_v16 = vpop.xlane.xlu0 %1242  ;;  %v1246_v17 = vpop.xlane.xlu1 %1245 }
 0x969   : > { %2060 = vrcp.f32 %v1243_v16 }
 0x96a   : > { %2062 = vrcp.f32 %v1246_v17 }
 0x96c   : > { %v1256_v18 = vpop.permute.xlu0 %1255  ;;  %v1258_v19 = vpop.permute.xlu1 %1257 }
 0x96d   : > { %1917 = vmatprep.subr.bf16.mxu1 %v1256_v18  ;;  %v1267_v21 = vsel %vm779_vm1, %v1258_v19, 0 }
 0x96e   : > { %1918 = vmatpush3.bf16.msra.mxu1 %v1256_v18 }
 0x96f   : > { %1965 = vmatprep.subr.msk.bf16.mxu1 %vm779_vm1, %v1258_v19  ;;  %v2059_v20 = vpop.eup %2058 }
 0x970   : > { %v1250_v24 = vmul.f32 %v2059_v20, %v2053_v38 }
 0x972   : > { %1920 = vmatpush3.bf16.msra.mxu1 %v1267_v21 }
 0x973   : > { %v2061_v22 = vpop.eup %2060  ;;  %1925 = vmatprep.subr.bf16.mxu1 %v2018_v46 }
 0x974   : > { %v2063_v23 = vpop.eup %2062  ;;  %v1251_v25 = vmul.f32 %v2061_v22, %v2055_v28  ;;  %v2020_v28 = vld [vmem:[%s2479_s6 + $0x30] sm:$0xff]  }
 0x975   : > { %v1252_v26 = vmul.f32 %v2063_v23, %v2057_v43  ;;  %v2021_v43 = vld [vmem:[%s2479_s6 + $0x38] sm:$0xff]  }
 0x976   : > { %v1253_v30 = vpack.c.bf16 %v1251_v25, %v1250_v24 }
 0x977   : > { %v1254_v31 = vpack.c.bf16 %v1252_v26, %v1252_v26  ;;  %v2076_v26 = vld [vmem:[%s2152_s10 + $0x10] sm:$0xff] }
 0x978   : > { %1921 = vmatprep.mubr.msk.bf16.mxu1 %vm735_vm4, %v1253_v30 }
 0x979   : > { %1922 = vmatmul.mubr.msk.bf16.vlgmr.msra.gmra.mrb[16].mxu1 %vm735_vm4, %v1254_v31  ;;  %v2077_v31 = vld [vmem:[%s2152_s10] sm:$0xff] }
 0x97a   : > { %1926 = vmatpush3.bf16.msra.mxu1 %v2018_v46 }
 0x97b   : > { %1927 = vmatprep.subr.bf16.mxu1 %v2019_v54 }
 0x97e   : > { %1928 = vmatpush3.bf16.msra.mxu1 %v2019_v54 }
 0x99d   : > { %v1468_v32 = vpop.xlane.xlu0 %1467  ;;  %v1465_v34 = vpop.xlane.xlu1 %1464 }
 0x99e   : > { %v1473_v36 = vsub.f32 %v1461_v10, %v1468_v32  ;;  %v1472_v39 = vsub.f32 %v1460_v9, %v1465_v34 }
 0x9a0   : > { %v1477_v37 = vmul.f32 1.442695, %v1473_v36  ;;  %v1475_v45 = vmul.f32 1.442695, %v1472_v39  ;;  %v2078_v36 = vld [vmem:[%s2152_s10 + $0x8] sm:$0xff] }
 0x9a1   : > { %v1471_v40 = vpop.xlane.xlu0 %1470 }
 0x9a2   : > { %2064 = vpow2.f32 %v1477_v37  ;;  %v1474_v42 = vsub.f32 %v1462_v13, %v1471_v40 }
 0x9a4   : > { %v1479_v47 = vmul.f32 1.442695, %v1474_v42 }
 0x9a6   : > { %2066 = vpow2.f32 %v1479_v47 }
 0x9a7   : > { %2068 = vpow2.f32 %v1475_v45 }
 0x9ac   : > { %v2065_v49 = vpop.eup %2064 }
 0x9ad   : > { %v1484_v50 = vsel %vm735_vm4, %v2065_v49, 0.0 }
 0x9ae   : > { %1485 = vadd.xlane.f32.xlu0 %v1484_v50 }
 0x9b0   : > { %v2067_v51 = vpop.eup %2066 }
 0x9b1   : > { %v1487_v52 = vsel %vm735_vm4, %v2067_v51, 0.0  ;;  %v2069_v53 = vpop.eup %2068 }
 0x9b2   : > { %1488 = vadd.xlane.f32.xlu1 %v1487_v52  ;;  %v1481_v35 = vsel %vm735_vm4, %v2069_v53, 0.0 }
 0x9b6   : > { %1482 = vadd.xlane.f32.xlu1 %v1481_v35 }
 0x9c4   : > { %1498 = vrot.lane.b32.xlu0 %v2259_v29, %s2090_s20 }
 0x9c7   : > { %1500 = vrot.lane.b32.xlu1 %v2267_v33, %s2090_s20 }
 0xa3b   : > { %v1486_v55 = vpop.xlane.xlu0 %1485 }
 0xa3c   : > { %2070 = vrcp.f32 %v1486_v55 }
 0xa3f   : > { %v1499_v56 = vpop.permute.xlu0 %1498  ;;  %v1489_v57 = vpop.xlane.xlu1 %1488 }
 0xa40   : > { %1941 = vmatprep.subr.bf16.mxu1 %v1499_v56 }
 0xa43   : > { %v1483_v58 = vpop.xlane.xlu1 %1482 }
 0xa44   : > { %2072 = vrcp.f32 %v1483_v58 }
 0xa45   : > { %2074 = vrcp.f32 %v1489_v57 }
 0xa46   : > { %v2071_v59 = vpop.eup %2070 }
 0xa47   : > { %v1494_v2 = vmul.f32 %v2071_v59, %v2065_v49  ;;  %v1501_v5 = vpop.permute.xlu1 %1500 }
 0xa48   : > { %v1510_v38 = vsel %vm779_vm1, %v1501_v5, 0 }
 0xa4c   : > { %v1923_v60 = vpop.f32.mrb[16].mxu1 }
 0xa4d   : > { %v1303_v61 = vpop.f32.mrb[17].mxu1  ;;  %v1318_v3 = vpack.c.bf16 %v1923_v60, %v1923_v60 }
 0xa4e   : > { %v2073_v62 = vpop.eup %2072  ;;  %v1924_v63 = vpop.f32.mrb[18].mxu1 }
 0xa4f   : > { %v1306_v0 = vpop.f32.mrb[19].mxu1  ;;  %v1493_v1 = vmul.f32 %v2073_v62, %v2069_v53  ;;  %v2075_v33 = vpop.eup %2074 }
 0xa50   : > { %v1317_v29 = vpack.c.bf16 %v1306_v0, %v1303_v61  ;;  %v1495_v27 = vmul.f32 %v2075_v33, %v2067_v51 }
 0xa51   : > { %v1496_v4 = vpack.c.bf16 %v1494_v2, %v1493_v1 }
 0xa52   : > { %1929 = vmatprep.mubr.msk.bf16.mxu1 %vm664_vm0, %v1317_v29  ;;  %v1497_v6 = vpack.c.bf16 %v1495_v27, %v1495_v27 }
 0xa53   : > { %1930 = vmatmul.mubr.msk.bf16.vlgmr.msra.gmra.mrb[20].mxu1 %vm664_vm0, %v1318_v3 }
 0xa54   : > { %1942 = vmatpush3.bf16.msra.mxu1 %v1499_v56  ;;  %1945 = vmatprep.mubr.msk.bf16.mxu1 %vm735_vm4, %v1496_v4 }
 0xa55   : > { %1968 = vmatprep.subr.msk.bf16.mxu1 %vm779_vm1, %v1501_v5 }
 0xa58   : > { %1944 = vmatpush3.bf16.msra.mxu1 %v1510_v38 }
 0xa59   : > { %1949 = vmatprep.subr.bf16.mxu1 %v2020_v28 }
 0xa5b   : > { %1946 = vmatmul.mubr.msk.bf16.vlgmr.msra.gmra.mrb[24].mxu1 %vm735_vm4, %v1497_v6 }
 0xa5c   : > { %1950 = vmatpush3.bf16.msra.mxu1 %v2020_v28 }
 0xa5d   : > { %1951 = vmatprep.subr.bf16.mxu1 %v2021_v43 }
 0xa60   : > { %1952 = vmatpush3.bf16.msra.mxu1 %v2021_v43 }
 0xb26   : > { %v1931_v7 = vpop.f32.mrb[20].mxu1 }
 0xb27   : > { %v1391_v8 = vadd.f32 %v1931_v7, %v2392_v41  ;;  %v1375_v9 = vpop.f32.mrb[21].mxu1 }
 0xb28   : > { %v1389_v10 = vadd.f32 %v1375_v9, %v2395_v44  ;;  %v1932_v11 = vpop.f32.mrb[22].mxu1  ;;  %v1780_v44 = vld [vmem:[%s2480_s7] ss:$0 sm:$0xff] }
 0xb29   : > { %v1378_v12 = vpop.f32.mrb[23].mxu1 }
 0xb2a   : > { %v1390_v13 = vadd.f32 %v1378_v12, %v2398_v48 }
 0xb2e   : > { %v1947_v14 = vpop.f32.mrb[24].mxu1 }
 0xb2f   : > { %v1546_v15 = vpop.f32.mrb[25].mxu1  ;;  %v1561_v19 = vpack.c.bf16 %v1947_v14, %v1947_v14 }
 0xb30   : > { %v1948_v16 = vpop.f32.mrb[26].mxu1 }
 0xb31   : > { %v1549_v17 = vpop.f32.mrb[27].mxu1 }
 0xb32   : > { %v1560_v18 = vpack.c.bf16 %v1549_v17, %v1546_v15 }
 0xb34   : > { %1953 = vmatprep.mubr.msk.bf16.mxu1 %vm664_vm0, %v1560_v18 }
 0xb35   : > { %1954 = vmatmul.mubr.msk.bf16.vlgmr.msra.gmra.mrb[28].mxu1 %vm664_vm0, %v1561_v19 }
 0xc08   : > { %v1955_v41 = vpop.f32.mrb[28].mxu1 }
 0xc09   : > { %v1634_v46 = vadd.f32 %v1955_v41, %v1391_v8  ;;  %v1618_v48 = vpop.f32.mrb[29].mxu1 }
 0xc0a   : > { %v1632_v20 = vadd.f32 %v1618_v48, %v1389_v10  ;;  %v1956_v21 = vpop.f32.mrb[30].mxu1 }
 0xc0b   : > { %v1644_v22 = vadd.f32 %v1780_v44, %v1634_v46  ;;  %v1621_v23 = vpop.f32.mrb[31].mxu1 }
 0xc0c   : > { %v1642_v24 = vadd.f32 %v1780_v44, %v1632_v20  ;;  %v1633_v25 = vadd.f32 %v1621_v23, %v1390_v13 }
 0xc0d   : > { %v1647_v30 = vadd.f32 %v2076_v26, %v1644_v22 }
 0xc0e   : > { %v1645_v32 = vadd.f32 %v2077_v31, %v1642_v24  ;;  %v1643_v34 = vadd.f32 %v1780_v44, %v1633_v25 }
 0xc0f   : > { %1650 = vst [vmem:[%s319_s19 + $0x10] sm:$0xff] %v1647_v30 }
 0xc10   : > { %1648 = vst [vmem:[%s319_s19] sm:$0xff] %v1645_v32  ;;  %v1646_v37 = vadd.f32 %v2078_v36, %v1643_v34 }
 0xc12   : > { %1649 = vst [vmem:[%s319_s19 + $0x8] sm:$0xff] %v1646_v37 }
 0xc13 PF: > { %s18_s27 = sadd.s32 1, %s2085_s27  }
 0xc14   : > { %p15_p4 = scmp.ge.s32.totalorder %s18_s27, 4  }
 0xc16   :  { %17 = sbr.rel (!%p15_p4) target bundleno = 1 (0x1), region = 85 }

// kernel: _forward_impl.15
= control target key start
LH: loop header
LB: loop body
LE: loop exit
PB: predicated region body
PF: predicated region fallthrough
CT: control target
= control target key end

     0   :  { %s1910_s17 = smov 0   ;;  %s2662_s0 = inlined_call_operand.vmem [shape: f32[2,24,128], index: 0, kind: input, shape index: {}]   ;;  %s2663_s1 = inlined_call_operand.vmem [shape: f32[1,128], index: 1, kind: input, shape index: {}]   ;;  %s2664_s2 = inlined_call_operand.vmem [shape: f32[1,128], index: 2, kind: input, shape index: {}]   ;;  %s2665_s3 = inlined_call_operand.vmem [shape: bf16[128,128], index: 3, kind: input, shape index: {}]   ;;  %s2666_s4 = inlined_call_operand.vmem [shape: f32[1,128], index: 4, kind: input, shape index: {}]   ;;  %s2667_s5 = inlined_call_operand.vmem [shape: bf16[128,128], index: 5, kind: input, shape index: {}]   ;;  %s2668_s6 = inlined_call_operand.vmem [shape: f32[1,128], index: 6, kind: input, shape index: {}]   ;;  %s2669_s7 = inlined_call_operand.vmem [shape: f32[31,128], index: 7, kind: input, shape index: {}]   ;;  %s2670_s8 = inlined_call_operand.vmem [shape: f32[1,128], index: 8, kind: input, shape index: {}]   ;;  %s2671_s9 = inlined_call_operand.vmem [shape: bf16[128,128], index: 9, kind: input, shape index: {}]   ;;  %s2672_s10 = inlined_call_operand.vmem [shape: f32[1,128], index: 10, kind: input, shape index: {}]   ;;  %s2673_s11 = inlined_call_operand.vmem [shape: f32[2,24,128], index: 11, kind: output, shape index: {}]  }
   0x1 LB: > { %s1641_s18 = sadd.s32 4294967295, %s1848_s17   ;;  %p1645_p0 = scmp.ge.s32.totalorder %s1848_s17, 1  ;;  %s1848_s17 = sphi %s1910_s17, %s21_s17  }
   0x2   : > { %p337_p1 = scmp.lt.s32.totalorder %s1848_s17, 3 }
   0x4   : > { %p338_p2 = pnand %p1645_p0, %p337_p1 }
   0x6   : > { %341 = sbr.rel (%p338_p2) target bundleno = 955 (0x3bb), region = 64 }
   0xd   : > { %p377_p3 = scmp.lt.s32.totalorder %s1641_s18, 1  ;;  %v1785_v3 = vld [vmem:[%s2665_s3] sm:$0xff]   ;;  %v1787_v17 = vld [vmem:[%s2665_s3 + $0x8] sm:$0xff]   ;;  %v1789_v19 = vld [vmem:[%s2665_s3 + $0x10] sm:$0xff]   ;;  %vm709_vm0 = vcmask 1046528   ;;  %vm772_vm1 = vcmask 1045504  }
   0xe   : > { %v1786_v4 = vld [vmem:[%s2667_s5] sm:$0xff]   ;;  %1716 = vmatprep.subr.bf16.mxu0 %v1785_v3  ;;  %v1788_v18 = vld [vmem:[%s2667_s5 + $0x8] sm:$0xff]   ;;  %v1790_v20 = vld [vmem:[%s2667_s5 + $0x10] sm:$0xff]   ;;  %vm798_vm2 = vcmask 1044480   ;;  %vm824_vm3 = vcmask 1043456   ;;  %vm850_vm4 = vcmask 1042432  }
   0xf   : > { %s2750_s18 = smov (!%p377_p3, %s1641_s18), 1  ;;  %1736 = vmatprep.subr.bf16.mxu1 %v1786_v4  ;;  %1717 = vmatpush3.bf16.msra.mxu0 %v1785_v3  ;;  %v1791_v21 = vld [vmem:[%s2665_s3 + $0x18] sm:$0xff]   ;;  %v1793_v23 = vld [vmem:[%s2665_s3 + $0x20] sm:$0xff]   ;;  %v1795_v25 = vld [vmem:[%s2665_s3 + $0x28] sm:$0xff]   ;;  %v725_v3 = vlaneseq  ;;  %vm876_vm5 = vcmask 1041408   ;;  %vm902_vm6 = vcmask 1040384  }
  0x10   : > { %s1776_s19 = smul.u32 24, %s2750_s18  ;;  %1737 = vmatpush3.bf16.msra.mxu1 %v1786_v4  ;;  %1718 = vmatprep.subr.bf16.mxu0 %v1787_v17  ;;  %v1792_v22 = vld [vmem:[%s2667_s5 + $0x18] sm:$0xff]   ;;  %v1794_v24 = vld [vmem:[%s2667_s5 + $0x20] sm:$0xff]   ;;  %v1796_v26 = vld [vmem:[%s2667_s5 + $0x28] sm:$0xff]  }
  0x11   : > { %1738 = vmatprep.subr.bf16.mxu1 %v1788_v18  ;;  %v1797_v27 = vld [vmem:[%s2665_s3 + $0x30] sm:$0xff]   ;;  %v1799_v29 = vld [vmem:[%s2665_s3 + $0x38] sm:$0xff]   ;;  %v1648_v42 = vld [vmem:[%s2663_s1] ss:$0 sm:$0xff] }
  0x12   : > { %s1926_s22 = scalar_lea.vmem %s2662_s0, %s1776_s19  ;;  %v1798_v28 = vld [vmem:[%s2667_s5 + $0x30] sm:$0xff]   ;;  %v1800_v30 = vld [vmem:[%s2667_s5 + $0x38] sm:$0xff]   ;;  %v1649_v48 = vld [vmem:[%s2664_s2] ss:$0 sm:$0xff]  ;;  %s386_s14 = scalar_lea.vmem %s2673_s11, %s1776_s19 }
  0x13   : > { %v388_v0 = vld [vmem:[%s1926_s22] sm:$0xff]  ;;  %v390_v1 = vld [vmem:[%s1926_s22 + $0x10] sm:$0xff]  ;;  %v389_v2 = vld [vmem:[%s1926_s22 + $0x8] sm:$0xff]  ;;  %1719 = vmatpush3.bf16.msra.mxu0 %v1787_v17 }
  0x14   : > { %391 = vadd.xlane.f32.xlu0 %v388_v0  ;;  %395 = vadd.xlane.f32.xlu1 %v390_v1  ;;  %v1801_v56 = vld [vmem:[%s2671_s9] sm:$0xff]   ;;  %v1802_v57 = vld [vmem:[%s2671_s9 + $0x8] sm:$0xff]   ;;  %v1803_v58 = vld [vmem:[%s2671_s9 + $0x10] sm:$0xff]  }
  0x15   : > { %1739 = vmatpush3.bf16.msra.mxu1 %v1788_v18  ;;  %1720 = vmatprep.subr.bf16.mxu0 %v1789_v19  ;;  %v1804_v59 = vld [vmem:[%s2671_s9 + $0x18] sm:$0xff]   ;;  %v1805_v60 = vld [vmem:[%s2671_s9 + $0x20] sm:$0xff]   ;;  %v1806_v61 = vld [vmem:[%s2671_s9 + $0x28] sm:$0xff]  }
  0x16   : > { %1740 = vmatprep.subr.bf16.mxu1 %v1790_v20  ;;  %v1807_v62 = vld [vmem:[%s2671_s9 + $0x30] sm:$0xff]   ;;  %v1808_v63 = vld [vmem:[%s2671_s9 + $0x38] sm:$0xff]  }
  0x17   : > { %1721 = vmatpush3.bf16.msra.mxu0 %v1789_v19 }
  0x18   : > { %393 = vadd.xlane.f32.xlu0 %v389_v2  ;;  %1722 = vmatprep.subr.bf16.mxu0 %v1791_v21 }
  0x19   : > { %1741 = vmatpush3.bf16.msra.mxu1 %v1790_v20  ;;  %v721_v20 = vld [vmem:[%s2669_s7] sm:$0xff] }
  0x1a   : > { %1742 = vmatprep.subr.bf16.mxu1 %v1792_v22 }
  0x1b   : > { %1723 = vmatpush3.bf16.msra.mxu0 %v1791_v21 }
  0x1c   : > { %1724 = vmatprep.subr.bf16.mxu0 %v1793_v23 }
  0x1d   : > { %1743 = vmatpush3.bf16.msra.mxu1 %v1792_v22 }
  0x1e   : > { %1744 = vmatprep.subr.bf16.mxu1 %v1794_v24 }
  0x1f   : > { %1725 = vmatpush3.bf16.msra.mxu0 %v1793_v23 }
  0x20   : > { %1726 = vmatprep.subr.bf16.mxu0 %v1795_v25 }
  0x21   : > { %1745 = vmatpush3.bf16.msra.mxu1 %v1794_v24 }
  0x22   : > { %1746 = vmatprep.subr.bf16.mxu1 %v1796_v26 }
  0x23   : > { %1727 = vmatpush3.bf16.msra.mxu0 %v1795_v25 }
  0x24   : > { %1728 = vmatprep.subr.bf16.mxu0 %v1797_v27 }
  0x25   : > { %1747 = vmatpush3.bf16.msra.mxu1 %v1796_v26 }
  0x26   : > { %1748 = vmatprep.subr.bf16.mxu1 %v1798_v28 }
  0x27   : > { %1729 = vmatpush3.bf16.msra.mxu0 %v1797_v27 }
  0x28   : > { %1730 = vmatprep.subr.bf16.mxu0 %v1799_v29 }
  0x29   : > { %1749 = vmatpush3.bf16.msra.mxu1 %v1798_v28 }
  0x2a   : > { %1750 = vmatprep.subr.bf16.mxu1 %v1800_v30 }
  0x2b   : > { %1731 = vmatpush3.bf16.msra.mxu0 %v1799_v29 }
  0x2c   : > { %1756 = vmatprep.subr.bf16.mxu0 %v1801_v56 }
  0x2d   : > { %1751 = vmatpush3.bf16.msra.mxu1 %v1800_v30 }
  0xa1   : > { %v392_v5 = vpop.xlane.xlu0 %391  ;;  %v396_v6 = vpop.xlane.xlu1 %395 }
  0xa2   : > { %v398_v7 = vmul.f32 0.0078125, %v392_v5  ;;  %v400_v8 = vmul.f32 0.0078125, %v396_v6 }
  0xa4   : > { %v1937_v9 = vsub.f32 %v388_v0, %v398_v7  ;;  %v1939_v10 = vsub.f32 %v390_v1, %v400_v8  ;;  %v1659_v0 = vld [vmem:[%s2668_s6] ss:$0 sm:$0xff] }
  0xa5   : > { %v394_v11 = vpop.xlane.xlu0 %393 }
  0xa6   : > { %v399_v12 = vmul.f32 0.0078125, %v394_v11  ;;  %v404_v13 = vmul.f32 %v1937_v9, %v1937_v9  ;;  %v406_v15 = vmul.f32 %v1939_v10, %v1939_v10 }
  0xa8   : > { %v1943_v14 = vsub.f32 %v389_v2, %v399_v12  ;;  %407 = vadd.xlane.f32.xlu1 %v404_v13 }
  0xaa   : > { %v405_v16 = vmul.f32 %v1943_v14, %v1943_v14 }
  0xac   : > { %411 = vadd.xlane.f32.xlu1 %v406_v15  ;;  %409 = vadd.xlane.f32.xlu0 %v405_v16  ;;  %v726_v15 = vshrl.u32 %v725_v3, 7 }
  0xae   : > { %v737_v17 = vsub.s32 1, %v726_v15  ;;  %v762_v18 = vsub.s32 2, %v726_v15  ;;  %v2033_v19 = vsub.s32 3, %v726_v15  ;;  %v2038_v21 = vsub.s32 4, %v726_v15 }
  0xaf   : > { %v2040_v22 = vsub.s32 5, %v726_v15  ;;  %v866_v23 = vsub.s32 6, %v726_v15  ;;  %v892_v24 = vsub.s32 7, %v726_v15  ;;  %v2055_v30 = vsub.s32 0, %v726_v15 }
  0xb0   : > { %v2042_v25 = vrot.slane %v721_v20, %v737_v17  ;;  %v2044_v26 = vrot.slane %v721_v20, %v762_v18  ;;  %v2047_v27 = vrot.slane %v721_v20, %v2033_v19  ;;  %v2050_v28 = vrot.slane %v721_v20, %v2038_v21 }
  0xb1   : > { %v2053_v29 = vrot.slane %v721_v20, %v2040_v22 }
 0x135   : > { %v408_v31 = vpop.xlane.xlu1 %407 }
 0x136   : > { %v413_v32 = vmul.f32 0.0078125, %v408_v31  ;;  %v2057_v31 = vrot.slane %v721_v20, %v866_v23 }
 0x138   : > { %v416_v33 = vadd.f32 1e-05, %v413_v32  ;;  %v2059_v32 = vrot.slane %v721_v20, %v892_v24 }
 0x139   : > { %v412_v34 = vpop.xlane.xlu1 %411  ;;  %v410_v35 = vpop.xlane.xlu0 %409 }
 0x13a   : > { %1809 = vrsqrt.f32 %v416_v33  ;;  %v415_v36 = vmul.f32 0.0078125, %v412_v34  ;;  %v414_v37 = vmul.f32 0.0078125, %v410_v35 }
 0x13c   : > { %v418_v38 = vadd.f32 1e-05, %v415_v36  ;;  %v417_v39 = vadd.f32 1e-05, %v414_v37  ;;  %v2062_v36 = vmul.f32 0.0, %v2042_v25  ;;  %v2065_v37 = vmul.f32 0.0, %v2044_v26 }
 0x13e   : > { %1811 = vrsqrt.f32 %v418_v38  ;;  %v2068_v38 = vmul.f32 0.0, %v2047_v27 }
 0x13f   : > { %1813 = vrsqrt.f32 %v417_v39 }
 0x144   : > { %v1810_v40 = vpop.eup %1809 }
 0x145   : > { %v422_v41 = vmul.f32 %v1810_v40, %v1937_v9  ;;  %v2071_v40 = vmul.f32 0.0, %v2050_v28 }
 0x147   : > { %v432_v47 = vmul.f32 %v1648_v42, %v422_v41  ;;  %v2074_v41 = vmul.f32 0.0, %v2053_v29 }
 0x148   : > { %v1812_v43 = vpop.eup %1811 }
 0x149   : > { %v1814_v44 = vpop.eup %1813  ;;  %v424_v45 = vmul.f32 %v1812_v43, %v1939_v10  ;;  %v442_v52 = vadd.f32 %v1649_v48, %v432_v47  ;;  %v722_v43 = vld [vmem:[%s2669_s7 + $0x8] sm:$0xff] }
 0x14a   : > { %v423_v46 = vmul.f32 %v1814_v44, %v1943_v14  ;;  %v2080_v44 = vrot.slane %v721_v20, %v2055_v30  ;;  %v2125_v3 = vrot.slane %v722_v43, %v2040_v22 }
 0x14b   : > { %v434_v49 = vmul.f32 %v1648_v42, %v424_v45  ;;  %v2083_v45 = vmul.f32 0.0, %v2057_v31 }
 0x14c   : > { %v433_v50 = vmul.f32 %v1648_v42, %v423_v46  ;;  %v2086_v46 = vmul.f32 0.0, %v2059_v32 }
 0x14d   : > { %v444_v51 = vadd.f32 %v1649_v48, %v434_v49  ;;  %v2092_v49 = vmul.f32 0.0, %v2080_v44 }
 0x14e   : > { %v443_v53 = vadd.f32 %v1649_v48, %v433_v50  ;;  %v724_v48 = vld [vmem:[%s2669_s7 + $0x18] sm:$0x7f] }
 0x14f   : > { %v446_v54 = vpack.c.bf16 %v444_v51, %v444_v51 }
 0x150   : > { %v445_v55 = vpack.c.bf16 %v443_v53, %v442_v52 }
 0x152   : > { %1732 = vmatprep.mubr.bf16.mxu0 %v445_v55  ;;  %1752 = vmatprep.mubr.bf16.mxu1 %v445_v55  ;;  %v2100_v55 = vrot.slane %v722_v43, %v2055_v30 }
 0x153   : > { %1733 = vmatmul.mubr.bf16.vlgmr.msra.gmra.mrb[0].mxu0 %v446_v54  ;;  %1753 = vmatmul.mubr.bf16.vlgmr.msra.gmra.mrb[0].mxu1 %v446_v54  ;;  %v2190_v54 = vrot.slane %v724_v48, %v2055_v30 }
 0x154   : > { %1757 = vmatpush3.bf16.msra.mxu0 %v1801_v56  ;;  %v723_v56 = vld [vmem:[%s2669_s7 + $0x10] sm:$0xff] }
 0x155   : > { %1758 = vmatprep.subr.bf16.mxu0 %v1802_v57  ;;  %v2149_v15 = vrot.slane %v723_v56, %v762_v18 }
 0x158   : > { %1759 = vmatpush3.bf16.msra.mxu0 %v1802_v57 }
 0x159   : > { %1760 = vmatprep.subr.bf16.mxu0 %v1803_v58 }
 0x15c   : > { %1761 = vmatpush3.bf16.msra.mxu0 %v1803_v58  ;;  %v2184_v58 = vrot.slane %v723_v56, %v2040_v22 }
 0x15d   : > { %1762 = vmatprep.subr.bf16.mxu0 %v1804_v59 }
 0x160   : > { %1763 = vmatpush3.bf16.msra.mxu0 %v1804_v59  ;;  %v2107_v59 = vrot.slane %v722_v43, %v737_v17 }
 0x161   : > { %1764 = vmatprep.subr.bf16.mxu0 %v1805_v60 }
 0x164   : > { %1765 = vmatpush3.bf16.msra.mxu0 %v1805_v60  ;;  %v2109_v60 = vrot.slane %v722_v43, %v762_v18 }
 0x165   : > { %1766 = vmatprep.subr.bf16.mxu0 %v1806_v61 }
 0x168   : > { %1767 = vmatpush3.bf16.msra.mxu0 %v1806_v61  ;;  %v2112_v61 = vrot.slane %v722_v43, %v2033_v19 }
 0x169   : > { %1768 = vmatprep.subr.bf16.mxu0 %v1807_v62 }
 0x16c   : > { %1769 = vmatpush3.bf16.msra.mxu0 %v1807_v62  ;;  %v2115_v62 = vrot.slane %v722_v43, %v2038_v21 }
 0x16d   : > { %1770 = vmatprep.subr.bf16.mxu0 %v1808_v63 }
 0x170   : > { %1771 = vmatpush3.bf16.msra.mxu0 %v1808_v63  ;;  %v2117_v63 = vrot.slane %v724_v48, %v737_v17 }
 0x226   : > { %v2027_v1 = vpop.f32.mrb[0].mxu0  ;;  %v1754_v2 = vpop.f32.mrb[0].mxu1 }
 0x227   : > { %v680_v4 = vadd.f32 %v1754_v2, %v1659_v0  ;;  %v2029_v5 = vpop.f32.mrb[1].mxu0  ;;  %v671_v6 = vpop.f32.mrb[1].mxu1  ;;  %v1650_v2 = vld [vmem:[%s2666_s4] ss:$0 sm:$0xff] }
 0x228   : > { %v672_v7 = vadd.f32 %v1659_v0, %v671_v6  ;;  %v1735_v8 = vpop.f32.mrb[2].mxu0  ;;  %v1755_v9 = vpop.f32.mrb[2].mxu1  ;;  %v2130_v6 = vrot.slane %v724_v48, %v2033_v19  ;;  %v561_v20 = vadd.f32 %v2027_v1, %v1650_v2 }
 0x229   : > { %v1670_v10 = vmul.f32 -1.442695, %v680_v4  ;;  %v2031_v11 = vpop.f32.mrb[3].mxu0  ;;  %v674_v12 = vpop.f32.mrb[3].mxu1  ;;  %v2127_v4 = vrot.slane %v722_v43, %v866_v23  ;;  %v2135_v8 = vrot.slane %v722_v43, %v892_v24  ;;  %v2137_v9 = vrot.slane %v723_v56, %v866_v23 }
 0x22a   : > { %v1668_v13 = vmul.f32 -1.442695, %v672_v7  ;;  %v675_v14 = vadd.f32 %v1659_v0, %v674_v12  ;;  %v2119_v0 = vrot.slane %v724_v48, %v762_v18  ;;  %v2133_v7 = vrot.slane %v724_v48, %v2038_v21 }
 0x22b   : > { %1815 = vpow2.f32 %v1670_v10  ;;  %v2140_v10 = vrot.slane %v724_v48, %v2040_v22  ;;  %v2142_v12 = vrot.slane %v724_v48, %v866_v23  ;;  %v2168_v18 = vmul.f32 0.0, %v2130_v6 }
 0x22c   : > { %1817 = vpow2.f32 %v1668_v13  ;;  %v1669_v16 = vmul.f32 -1.442695, %v675_v14  ;;  %v2145_v13 = vrot.slane %v723_v56, %v2055_v30  ;;  %v2147_v14 = vrot.slane %v723_v56, %v737_v17 }
 0x22d   : > { %2700 = vst [vmem:[#allocation2_spill] sm:$0xff] %v2140_v10  ;;  %2701 = vst [vmem:[#allocation3_spill] sm:$0xff] %v2142_v12  ;;  %v2161_v23 = vmul.f32 0.0, %v2119_v0  ;;  %v2165_v17 = vrot.slane %v723_v56, %v2038_v21  ;;  %v2171_v1 = vmul.f32 0.0, %v2133_v7  ;;  %v2177_v43 = vmul.f32 0.0, %v2142_v12 }
 0x22e   : > { %1819 = vpow2.f32 %v1669_v16  ;;  %v2151_v16 = vrot.slane %v723_v56, %v892_v24  ;;  %2704 = vst [vmem:[#allocation6_spill] sm:$0xff] %v2168_v18  ;;  %v2711_v12 = vrot.slane %v2065_v37, 2  ;;  %v2712_v37 = vrot.slane %v2068_v38, 3 }
 0x22f   : > { %2703 = vst [vmem:[#allocation5_spill] sm:$0xff] %v2161_v23  ;;  %2705 = vst [vmem:[#allocation7_spill] sm:$0xff] %v2171_v1 }
 0x230   : > { %2707 = vst [vmem:[#allocation9_spill] sm:$0xff] %v2177_v43  ;;  %v2187_v57 = vmul.f32 0.0, %v2151_v16 }
 0x232   : > { %2709 = vst [vmem:[#allocation11_spill] sm:$0xff] %v2187_v57 }
 0x235   : > { %v1816_v33 = vpop.eup %1815 }
 0x236   : > { %v1818_v34 = vpop.eup %1817  ;;  %v696_v35 = vadd.f32 1.0, %v1816_v33  ;;  %v2155_v33 = vrot.slane %v723_v56, %v2033_v19 }
 0x237   : > { %v694_v39 = vadd.f32 1.0, %v1818_v34  ;;  %v2158_v34 = vmul.f32 0.0, %v2117_v63 }
 0x238   : > { %v1820_v42 = vpop.eup %1819  ;;  %1821 = vrcp.f32 %v696_v35 }
 0x239   : > { %1823 = vrcp.f32 %v694_v39  ;;  %v695_v47 = vadd.f32 1.0, %v1820_v42  ;;  %2702 = vst [vmem:[#allocation4_spill] sm:$0xff] %v2158_v34  ;;  %v553_v39 = vadd.f32 %v1650_v2, %v2029_v5  ;;  %v2174_v42 = vmul.f32 0.0, %v2140_v10 }
 0x23a   : > { %v2180_v5 = vmul.f32 0.0, %v2137_v9 }
 0x23b   : > { %1825 = vrcp.f32 %v695_v47  ;;  %2706 = vst [vmem:[#allocation8_spill] sm:$0xff] %v2174_v42  ;;  %v556_v47 = vadd.f32 %v1650_v2, %v2031_v11 }
 0x23c   : > { %2708 = vst [vmem:[#allocation10_spill] sm:$0xff] %v2180_v5 }
 0x242   : > { %v1822_v35 = vpop.eup %1821 }
 0x243   : > { %v1824_v19 = vpop.eup %1823  ;;  %v705_v24 = vmul.f32 %v1822_v35, %v561_v20 }
 0x244   : > { %v703_v21 = vmul.f32 %v1824_v19, %v553_v39 }
 0x245   : > { %v1826_v20 = vpop.eup %1825  ;;  %v713_v35 = vrot.slane %v705_v24, 1 }
 0x246   : > { %v710_v51 = vrot.slane %v703_v21, 1  ;;  %v704_v50 = vmul.f32 %v1826_v20, %v556_v47 }
 0x247   : > { %v2197_v56 = vsel %vm709_vm0, %v713_v35, 0.0 }
 0x248   : > { %v2203_v48 = vsel %vm709_vm0, 0.0, %v710_v51  ;;  %v711_v19 = vrot.slane %v704_v50, 1  ;;  %v2207_v24 = vmul.f32 %v2107_v59, %v2197_v56 }
 0x249   : > { %v730_v47 = vmul.f32 %v2080_v44, %v2203_v48  ;;  %v740_v20 = vmul.f32 %v2042_v25, %v2203_v48  ;;  %v765_v39 = vmul.f32 %v2044_v26, %v2203_v48  ;;  %v791_v30 = vmul.f32 %v2047_v27, %v2203_v48 }
 0x24a   : > { %v2219_v50 = vsel %vm709_vm0, %v710_v51, %v711_v19  ;;  %v2222_v2 = vsel %vm709_vm0, %v711_v19, %v713_v35  ;;  %v817_v21 = vmul.f32 %v2050_v28, %v2203_v48  ;;  %v843_v22 = vmul.f32 %v2053_v29, %v2203_v48 }
 0x24b   : > { %v731_v11 = vmul.f32 %v2080_v44, %v2219_v50  ;;  %v741_v52 = vmul.f32 %v2042_v25, %v2219_v50  ;;  %v742_v51 = vmul.f32 %v2042_v25, %v2222_v2  ;;  %v748_v53 = vrot.slane %v740_v20, 1 }
 0x24c   : > { %v766_v35 = vmul.f32 %v2044_v26, %v2219_v50  ;;  %v767_v19 = vmul.f32 %v2044_v26, %v2222_v2  ;;  %v774_v57 = vrot.slane %v765_v39, 2  ;;  %v792_v5 = vmul.f32 %v2047_v27, %v2219_v50 }
 0x24d   : > { %v2710_v44 = vrot.slane %v2062_v36, 1  ;;  %v750_v42 = vrot.slane %v741_v52, 1  ;;  %v752_v1 = vrot.slane %v742_v51, 1  ;;  %v793_v25 = vmul.f32 %v2047_v27, %v2222_v2 }
 0x24e   : > { %v775_v26 = vsel %vm772_vm1, %v2711_v12, %v774_v57  ;;  %v776_v39 = vrot.slane %v766_v35, 2  ;;  %v778_v18 = vrot.slane %v767_v19, 2  ;;  %v800_v36 = vrot.slane %v791_v30, 3 }
 0x24f   : > { %v749_v43 = vsel %vm709_vm0, %v2710_v44, %v748_v53  ;;  %v751_v10 = vsel %vm709_vm0, %v748_v53, %v750_v42  ;;  %v753_v23 = vsel %vm709_vm0, %v750_v42, %v752_v1  ;;  %v802_v34 = vrot.slane %v792_v5, 3 }
 0x250   : > { %v757_v20 = vadd.f32 %v749_v43, %v2092_v49  ;;  %v758_v44 = vadd.f32 %v751_v10, %v730_v47  ;;  %v759_v52 = vadd.f32 %v753_v23, %v731_v11  ;;  %v777_v51 = vsel %vm772_vm1, %v774_v57, %v776_v39 }
 0x251   : > { %v779_v27 = vsel %vm772_vm1, %v776_v39, %v778_v18  ;;  %v801_v12 = vsel %vm798_vm2, %v2712_v37, %v800_v36  ;;  %v803_v43 = vsel %vm798_vm2, %v800_v36, %v802_v34  ;;  %v804_v35 = vrot.slane %v793_v25, 3 }
 0x252   : > { %v783_v49 = vadd.f32 %v775_v26, %v757_v20  ;;  %v784_v53 = vadd.f32 %v777_v51, %v758_v44  ;;  %v785_v19 = vadd.f32 %v779_v27, %v759_v52  ;;  %v818_v1 = vmul.f32 %v2050_v28, %v2219_v50 }
 0x253   : > { %v819_v10 = vmul.f32 %v2050_v28, %v2222_v2  ;;  %v805_v57 = vsel %vm798_vm2, %v802_v34, %v804_v35  ;;  %v826_v18 = vrot.slane %v817_v21, 4  ;;  %v844_v38 = vmul.f32 %v2053_v29, %v2219_v50 }
 0x254   : > { %v809_v23 = vadd.f32 %v801_v12, %v783_v49  ;;  %v810_v42 = vadd.f32 %v803_v43, %v784_v53  ;;  %v811_v5 = vadd.f32 %v805_v57, %v785_v19  ;;  %v828_v11 = vrot.slane %v818_v1, 4 }
 0x255   : > { %v830_v30 = vrot.slane %v819_v10, 4  ;;  %v2713_v47 = vrot.slane %v2071_v40, 4  ;;  %v845_v20 = vmul.f32 %v2053_v29, %v2222_v2  ;;  %v852_v28 = vrot.slane %v843_v22, 5 }
 0x256   : > { %v854_v26 = vrot.slane %v844_v38, 5  ;;  %v829_v34 = vsel %vm824_vm3, %v826_v18, %v828_v11  ;;  %v869_v36 = vmul.f32 %v2057_v31, %v2203_v48  ;;  %v2714_v51 = vrot.slane %v2074_v41, 5 }
 0x257   : > { %v827_v25 = vsel %vm824_vm3, %v2713_v47, %v826_v18  ;;  %v831_v21 = vsel %vm824_vm3, %v828_v11, %v830_v30  ;;  %v836_v44 = vadd.f32 %v829_v34, %v810_v42  ;;  %v856_v49 = vrot.slane %v845_v20, 5 }
 0x258   : > { %v835_v39 = vadd.f32 %v827_v25, %v809_v23  ;;  %v837_v52 = vadd.f32 %v831_v21, %v811_v5  ;;  %v853_v40 = vsel %vm850_vm4, %v2714_v51, %v852_v28  ;;  %v855_v27 = vsel %vm850_vm4, %v852_v28, %v854_v26 }
 0x259   : > { %v870_v22 = vmul.f32 %v2057_v31, %v2219_v50  ;;  %v871_v37 = vmul.f32 %v2057_v31, %v2222_v2  ;;  %v862_v12 = vadd.f32 %v855_v27, %v836_v44  ;;  %v878_v43 = vrot.slane %v869_v36, 6 }
 0x25a   : > { %v861_v29 = vadd.f32 %v853_v40, %v835_v39  ;;  %v895_v35 = vmul.f32 %v2059_v32, %v2203_v48  ;;  %v896_v41 = vmul.f32 %v2059_v32, %v2219_v50  ;;  %v857_v53 = vsel %vm850_vm4, %v854_v26, %v856_v49 }
 0x25b   : > { %v880_v19 = vrot.slane %v870_v22, 6  ;;  %v882_v1 = vrot.slane %v871_v37, 6  ;;  %v897_v10 = vmul.f32 %v2059_v32, %v2222_v2  ;;  %v863_v57 = vadd.f32 %v857_v53, %v837_v52 }
 0x25c   : > { %v2715_v23 = vrot.slane %v2083_v45, 6  ;;  %v904_v18 = vrot.slane %v895_v35, 7  ;;  %v906_v38 = vrot.slane %v896_v41, 7  ;;  %v2716_v20 = vrot.slane %v2086_v46, 7 }
 0x25d   : > { %v881_v42 = vsel %vm876_vm5, %v878_v43, %v880_v19  ;;  %v883_v5 = vsel %vm876_vm5, %v880_v19, %v882_v1  ;;  %v908_v30 = vrot.slane %v897_v10, 7  ;;  %v920_v34 = vmul.f32 %v2100_v55, %v2203_v48 }
 0x25e   : > { %v879_v31 = vsel %vm876_vm5, %v2715_v23, %v878_v43  ;;  %v888_v47 = vadd.f32 %v881_v42, %v862_v12  ;;  %v889_v25 = vadd.f32 %v883_v5, %v863_v57  ;;  %v905_v28 = vsel %vm902_vm6, %v2716_v20, %v904_v18 }
 0x25f   : > { %v887_v11 = vadd.f32 %v879_v31, %v861_v29  ;;  %v907_v32 = vsel %vm902_vm6, %v904_v18, %v906_v38  ;;  %v909_v45 = vsel %vm902_vm6, %v906_v38, %v908_v30  ;;  %v921_v21 = vmul.f32 %v2100_v55, %v2219_v50 }
 0x260   : > { %v914_v39 = vadd.f32 %v907_v32, %v888_v47  ;;  %v915_v36 = vadd.f32 %v909_v45, %v889_v25  ;;  %v922_v44 = vmul.f32 %v2100_v55, %v2222_v2  ;;  %v930_v46 = vmul.f32 %v2107_v59, %v2203_v48 }
 0x261   : > { %v913_v26 = vadd.f32 %v905_v28, %v887_v11  ;;  %v931_v51 = vmul.f32 %v2107_v59, %v2219_v50  ;;  %v932_v40 = vmul.f32 %v2107_v59, %v2222_v2  ;;  %v943_v27 = vrot.slane %v2207_v24, 1 }
 0x262   : > { %v924_v49 = vadd.f32 %v921_v21, %v914_v39  ;;  %v925_v29 = vadd.f32 %v922_v44, %v915_v36  ;;  %v938_v22 = vrot.slane %v930_v46, 1  ;;  %v955_v37 = vmul.f32 %v2109_v60, %v2203_v48 }
 0x263   : > { %v923_v52 = vadd.f32 %v920_v34, %v913_v26  ;;  %v939_v12 = vrot.slane %v931_v51, 1  ;;  %v941_v55 = vrot.slane %v932_v40, 1  ;;  %v956_v43 = vmul.f32 %v2109_v60, %v2219_v50 }
 0x264   : > { %v2317_v35 = vmul.f32 %v2109_v60, %v2222_v2  ;;  %v2321_v59 = vmul.f32 %v2109_v60, %v2197_v56  ;;  %v963_v24 = vrot.slane %v955_v37, 2  ;;  %v980_v41 = vmul.f32 %v2112_v61, %v2203_v48 }
 0x265   : > { %v981_v53 = vmul.f32 %v2112_v61, %v2219_v50  ;;  %v940_v19 = vsel %vm709_vm0, %v938_v22, %v939_v12  ;;  %v942_v1 = vsel %vm709_vm0, %v939_v12, %v941_v55  ;;  %v944_v10 = vsel %vm709_vm0, %v941_v55, %v943_v27 }
 0x266   : > { %v964_v57 = vrot.slane %v956_v43, 2  ;;  %v948_v23 = vadd.f32 %v940_v19, %v923_v52  ;;  %v949_v31 = vadd.f32 %v942_v1, %v924_v49  ;;  %v2330_v18 = vadd.f32 %v944_v10, %v925_v29 }
 0x267   : > { %v966_v60 = vrot.slane %v2317_v35, 2  ;;  %v2336_v42 = vmul.f32 %v2112_v61, %v2222_v2  ;;  %v2340_v5 = vmul.f32 %v2112_v61, %v2197_v56  ;;  %v988_v11 = vrot.slane %v980_v41, 3 }
 0x268   : > { %v965_v38 = vsel %vm772_vm1, %v963_v24, %v964_v57  ;;  %v989_v25 = vrot.slane %v981_v53, 3  ;;  %v1005_v20 = vmul.f32 %v2115_v62, %v2203_v48  ;;  %v968_v28 = vrot.slane %v2321_v59, 2 }
 0x269   : > { %v967_v30 = vsel %vm772_vm1, %v964_v57, %v966_v60  ;;  %v973_v47 = vadd.f32 %v965_v38, %v948_v23  ;;  %v991_v45 = vrot.slane %v2336_v42, 3  ;;  %v1006_v26 = vmul.f32 %v2115_v62, %v2219_v50 }
 0x26a   : > { %v974_v32 = vadd.f32 %v967_v30, %v949_v31  ;;  %v990_v61 = vsel %vm798_vm2, %v988_v11, %v989_v25  ;;  %v2354_v34 = vmul.f32 %v2115_v62, %v2222_v2  ;;  %v2358_v21 = vmul.f32 %v2115_v62, %v2197_v56 }
 0x26b   : > { %v1013_v39 = vrot.slane %v1005_v20, 4  ;;  %v992_v36 = vsel %vm798_vm2, %v989_v25, %v991_v45  ;;  %v998_v44 = vadd.f32 %v990_v61, %v973_v47  ;;  %v1014_v46 = vrot.slane %v1006_v26, 4 }
 0x26c   : > { %v1030_v52 = vmul.f32 %v2125_v3, %v2203_v48  ;;  %v993_v51 = vrot.slane %v2340_v5, 3  ;;  %v999_v40 = vadd.f32 %v992_v36, %v974_v32  ;;  %v1016_v27 = vrot.slane %v2354_v34, 4  ;;  %v2587_v5 = vld [vmem:[%s2670_s8] ss:$0 sm:$0xff] }
 0x26d   : > { %v1031_v49 = vmul.f32 %v2125_v3, %v2219_v50  ;;  %v1015_v62 = vsel %vm824_vm3, %v1013_v39, %v1014_v46  ;;  %v2372_v29 = vmul.f32 %v2125_v3, %v2222_v2  ;;  %v2376_v22 = vmul.f32 %v2125_v3, %v2197_v56 }
 0x26e   : > { %v1038_v37 = vrot.slane %v1030_v52, 5  ;;  %v1017_v12 = vsel %vm824_vm3, %v1014_v46, %v1016_v27  ;;  %v1023_v55 = vadd.f32 %v1015_v62, %v998_v44  ;;  %v1055_v24 = vmul.f32 %v2127_v4, %v2203_v48 }
 0x26f   : > { %v1039_v43 = vrot.slane %v1031_v49, 5  ;;  %v1018_v41 = vrot.slane %v2358_v21, 4  ;;  %v1024_v53 = vadd.f32 %v1017_v12, %v999_v40  ;;  %v1041_v19 = vrot.slane %v2372_v29, 5 }
 0x270   : > { %v1056_v1 = vmul.f32 %v2127_v4, %v2219_v50  ;;  %v1043_v10 = vrot.slane %v2376_v22, 5  ;;  %v2391_v57 = vmul.f32 %v2127_v4, %v2222_v2  ;;  %v1063_v23 = vrot.slane %v1055_v24, 6 }
 0x271   : > { %v1040_v3 = vsel %vm850_vm4, %v1038_v37, %v1039_v43  ;;  %v1042_v31 = vsel %vm850_vm4, %v1039_v43, %v1041_v19  ;;  %v1080_v30 = vmul.f32 %v2135_v8, %v2203_v48  ;;  %v2400_v25 = vmul.f32 %v2127_v4, %v2197_v56 }
 0x272   : > { %v1048_v38 = vadd.f32 %v1040_v3, %v1023_v55  ;;  %v1064_v11 = vrot.slane %v1056_v1, 6  ;;  %v1049_v47 = vadd.f32 %v1042_v31, %v1024_v53  ;;  %v1066_v20 = vrot.slane %v2391_v57, 6 }
 0x273   : > { %v1081_v32 = vmul.f32 %v2135_v8, %v2219_v50  ;;  %v2408_v61 = vmul.f32 %v2135_v8, %v2222_v2  ;;  %v1088_v39 = vrot.slane %v1080_v30, 7  ;;  %v1105_v48 = vmul.f32 %v2145_v13, %v2219_v50 }
 0x274   : > { %v1065_v26 = vsel %vm876_vm5, %v1063_v23, %v1064_v11  ;;  %v1067_v4 = vsel %vm876_vm5, %v1064_v11, %v1066_v20  ;;  %v1106_v46 = vmul.f32 %v2145_v13, %v2222_v2  ;;  %v1115_v49 = vmul.f32 %v2147_v14, %v2219_v50 }
 0x275   : > { %v1073_v36 = vadd.f32 %v1065_v26, %v1048_v38  ;;  %v1089_v44 = vrot.slane %v1081_v32, 7  ;;  %v1074_v52 = vadd.f32 %v1067_v4, %v1049_v47  ;;  %v2698_v40 = vrot.slane %v2408_v61, 7 }
 0x276   : > { %v1116_v62 = vmul.f32 %v2147_v14, %v2222_v2  ;;  %v2425_v12 = vmul.f32 %v2147_v14, %v2197_v56  ;;  %v1140_v55 = vmul.f32 %v2149_v15, %v2219_v50  ;;  %v1141_v43 = vmul.f32 %v2149_v15, %v2222_v2 }
 0x277   : > { %v1090_v37 = vsel %vm902_vm6, %v1088_v39, %v1089_v44  ;;  %v1092_v24 = vsel %vm902_vm6, %v1089_v44, %v2698_v40  ;;  %v1123_v1 = vrot.slane %v1115_v49, 1  ;;  %v2437_v38 = vmul.f32 %v2149_v15, %v2197_v56  ;;  %v2719_v40 = vld [vmem:[#allocation5_spill] sm:$0xff] }
 0x278   : > { %v1098_v53 = vadd.f32 %v1090_v37, %v1073_v36  ;;  %v1124_v3 = vrot.slane %v1116_v62, 1  ;;  %v1099_v23 = vadd.f32 %v1092_v24, %v1074_v52  ;;  %v2696_v31 = vrot.slane %v2425_v12, 1 }
 0x279   : > { %v1148_v11 = vrot.slane %v1140_v55, 2  ;;  %v1149_v32 = vrot.slane %v1141_v43, 2  ;;  %v1165_v26 = vmul.f32 %v2155_v33, %v2219_v50  ;;  %v2695_v36 = vrot.slane %v2437_v38, 2 }
 0x27a   : > { %v1108_v30 = vadd.f32 %v1105_v48, %v1098_v53  ;;  %v1125_v47 = vsel %vm709_vm0, %v1123_v1, %v1124_v3  ;;  %v1109_v39 = vadd.f32 %v1106_v46, %v1099_v23  ;;  %v1127_v4 = vsel %vm709_vm0, %v1124_v3, %v2696_v31 }
 0x27b   : > { %v1166_v44 = vmul.f32 %v2155_v33, %v2222_v2  ;;  %v1150_v49 = vsel %vm772_vm1, %v1148_v11, %v1149_v32  ;;  %v2451_v48 = vmul.f32 %v2155_v33, %v2197_v56  ;;  %v1173_v62 = vrot.slane %v1165_v26, 3 }
 0x27c   : > { %v1133_v52 = vadd.f32 %v1125_v47, %v1108_v30  ;;  %v1134_v37 = vadd.f32 %v1127_v4, %v1109_v39  ;;  %v1152_v46 = vsel %vm772_vm1, %v1149_v32, %v2695_v36  ;;  %v1190_v43 = vmul.f32 %v2165_v17, %v2219_v50 }
 0x27d   : > { %v1174_v55 = vrot.slane %v1166_v44, 3  ;;  %v2693_v53 = vrot.slane %v2451_v48, 3  ;;  %v1191_v1 = vmul.f32 %v2165_v17, %v2222_v2  ;;  %v2463_v3 = vmul.f32 %v2165_v17, %v2197_v56 }
 0x27e   : > { %v1158_v24 = vadd.f32 %v1150_v49, %v1133_v52  ;;  %v1159_v23 = vadd.f32 %v1152_v46, %v1134_v37  ;;  %v1198_v30 = vrot.slane %v1190_v43, 4  ;;  %v1215_v47 = vmul.f32 %v2184_v58, %v2219_v50 }
 0x27f   : > { %v1175_v11 = vsel %vm798_vm2, %v1173_v62, %v1174_v55  ;;  %v1177_v32 = vsel %vm798_vm2, %v1174_v55, %v2693_v53  ;;  %v1199_v39 = vrot.slane %v1191_v1, 4  ;;  %v2692_v4 = vrot.slane %v2463_v3, 4 }
 0x280   : > { %v1183_v26 = vadd.f32 %v1175_v11, %v1158_v24  ;;  %v1184_v44 = vadd.f32 %v1177_v32, %v1159_v23  ;;  %v1216_v52 = vmul.f32 %v2184_v58, %v2222_v2  ;;  %v2476_v49 = vmul.f32 %v2184_v58, %v2197_v56 }
 0x281   : > { %v1223_v62 = vrot.slane %v1215_v47, 5  ;;  %v1200_v37 = vsel %vm824_vm3, %v1198_v30, %v1199_v39  ;;  %v1202_v46 = vsel %vm824_vm3, %v1199_v39, %v2692_v4  ;;  %v1240_v55 = vmul.f32 %v2137_v9, %v2219_v50 }
 0x282   : > { %v1241_v43 = vmul.f32 %v2137_v9, %v2222_v2  ;;  %v1208_v24 = vadd.f32 %v1200_v37, %v1183_v26  ;;  %v1209_v1 = vadd.f32 %v1202_v46, %v1184_v44  ;;  %v1224_v23 = vrot.slane %v1216_v52, 5 }
 0x283   : > { %v2694_v11 = vrot.slane %v2476_v49, 5  ;;  %v2489_v47 = vmul.f32 %v2137_v9, %v2197_v56  ;;  %v1248_v30 = vrot.slane %v1240_v55, 6  ;;  %v1265_v39 = vmul.f32 %v2151_v16, %v2219_v50 }
 0x284   : > { %v1249_v32 = vrot.slane %v1241_v43, 6  ;;  %v1225_v4 = vsel %vm850_vm4, %v1223_v62, %v1224_v23  ;;  %v1266_v26 = vmul.f32 %v2151_v16, %v2222_v2  ;;  %v2501_v44 = vmul.f32 %v2151_v16, %v2197_v56 }
 0x285   : > { %v1227_v53 = vsel %vm850_vm4, %v1224_v23, %v2694_v11  ;;  %v1233_v9 = vadd.f32 %v1225_v4, %v1208_v24  ;;  %v2699_v46 = vrot.slane %v2489_v47, 6  ;;  %v1273_v50 = vrot.slane %v1265_v39, 7 }
 0x286   : > { %v1234_v52 = vadd.f32 %v1227_v53, %v1209_v1  ;;  %v1250_v37 = vsel %vm876_vm5, %v1248_v30, %v1249_v32  ;;  %v1274_v55 = vrot.slane %v1266_v26, 7  ;;  %v2697_v62 = vrot.slane %v2501_v44, 7 }
 0x287   : > { %v1290_v43 = vmul.f32 %v2190_v54, %v2222_v2  ;;  %v1252_v23 = vsel %vm876_vm5, %v1249_v32, %v2699_v46  ;;  %v1258_v11 = vadd.f32 %v1250_v37, %v1233_v9  ;;  %v1291_v16 = vmul.f32 %v2190_v54, %v2197_v56 }
 0x288   : > { %v1300_v53 = vmul.f32 %v2117_v63, %v2222_v2  ;;  %v1259_v4 = vadd.f32 %v1252_v23, %v1234_v52  ;;  %v1275_v24 = vsel %vm902_vm6, %v1273_v50, %v1274_v55  ;;  %v1277_v1 = vsel %vm902_vm6, %v1274_v55, %v2697_v62 }
 0x289   : > { %v1301_v30 = vmul.f32 %v2117_v63, %v2197_v56  ;;  %v1283_v39 = vadd.f32 %v1275_v24, %v1258_v11  ;;  %v1322_v32 = vmul.f32 %v2119_v0, %v2222_v2  ;;  %v1323_v9 = vmul.f32 %v2119_v0, %v2197_v56  ;;  %v2717_v24 = vld [vmem:[#allocation4_spill] sm:$0xff] }
 0x28a   : > { %v1306_v26 = vrot.slane %v1300_v53, 1  ;;  %v1284_v37 = vadd.f32 %v1277_v1, %v1259_v4  ;;  %v1344_v52 = vmul.f32 %v2130_v6, %v2222_v2  ;;  %v1345_v50 = vmul.f32 %v2130_v6, %v2197_v56 }
 0x28b   : > { %v1307_v36 = vrot.slane %v1301_v30, 1  ;;  %v1293_v55 = vadd.f32 %v1290_v43, %v1283_v39  ;;  %v1328_v23 = vrot.slane %v1322_v32, 2  ;;  %v1329_v31 = vrot.slane %v1323_v9, 2 }
 0x28c   : > { %v1366_v63 = vmul.f32 %v2133_v7, %v2222_v2  ;;  %v1294_v11 = vadd.f32 %v1291_v16, %v1284_v37  ;;  %v2718_v62 = vrot.slane %v2717_v24, 1  ;;  %v1350_v4 = vrot.slane %v1344_v52, 3 }
 0x28d   : > { %v1308_v53 = vsel %vm709_vm0, %v1306_v26, %v1307_v36  ;;  %v1330_v30 = vsel %vm772_vm1, %v1328_v23, %v1329_v31  ;;  %v2720_v46 = vrot.slane %v2719_v40, 2  ;;  %v1351_v43 = vrot.slane %v1345_v50, 3  ;;  %v2721_v26 = vld [vmem:[#allocation2_spill] sm:$0xff] }
 0x28e   : > { %v1310_v0 = vsel %vm709_vm0, %v1307_v36, %v2718_v62  ;;  %v1315_v1 = vadd.f32 %v1308_v53, %v1293_v55  ;;  %v1367_v32 = vmul.f32 %v2133_v7, %v2197_v56  ;;  %v1372_v16 = vrot.slane %v1366_v63, 4  ;;  %v2722_v62 = vld [vmem:[#allocation6_spill] sm:$0xff] }
 0x28f   : > { %v1332_v6 = vsel %vm772_vm1, %v1329_v31, %v2720_v46  ;;  %v1316_v39 = vadd.f32 %v1310_v0, %v1294_v11  ;;  %v1388_v9 = vmul.f32 %v2721_v26, %v2222_v2  ;;  %v1352_v36 = vsel %vm798_vm2, %v1350_v4, %v1351_v43  ;;  %v2724_v11 = vld [vmem:[#allocation3_spill] sm:$0xff] }
 0x290   : > { %v1337_v37 = vadd.f32 %v1330_v30, %v1315_v1  ;;  %v2723_v52 = vrot.slane %v2722_v62, 3  ;;  %v1389_v23 = vmul.f32 %v2721_v26, %v2197_v56  ;;  %v1373_v46 = vrot.slane %v1367_v32, 4 }
 0x291   : > { %v1338_v31 = vadd.f32 %v1332_v6, %v1316_v39  ;;  %v1394_v50 = vrot.slane %v1388_v9, 5  ;;  %v1410_v7 = vmul.f32 %v2724_v11, %v2222_v2  ;;  %v1411_v0 = vmul.f32 %v2724_v11, %v2197_v56  ;;  %v2725_v39 = vld [vmem:[#allocation7_spill] sm:$0xff] }
 0x292   : > { %v1354_v55 = vsel %vm798_vm2, %v1351_v43, %v2723_v52  ;;  %v1359_v63 = vadd.f32 %v1352_v36, %v1337_v37  ;;  %v1395_v53 = vrot.slane %v1389_v23, 5  ;;  %v969_v4 = vsel %vm772_vm1, %v966_v60, %v968_v28  ;;  %v2727_v28 = vld [vmem:[#allocation8_spill] sm:$0xff] }
 0x293   : > { %v1068_v1 = vrot.slane %v2400_v25, 6  ;;  %v1360_v30 = vadd.f32 %v1354_v55, %v1338_v31  ;;  %v1374_v6 = vsel %vm824_vm3, %v1372_v16, %v1373_v46  ;;  %v1416_v43 = vrot.slane %v1410_v7, 6 }
 0x294   : > { %v2726_v32 = vrot.slane %v2725_v39, 4  ;;  %v1381_v26 = vadd.f32 %v1374_v6, %v1359_v63  ;;  %v1396_v9 = vsel %vm850_vm4, %v1394_v50, %v1395_v53  ;;  %v1417_v37 = vrot.slane %v1411_v0, 6 }
 0x295   : > { %v975_v59 = vadd.f32 %v969_v4, %v2330_v18  ;;  %v994_v35 = vsel %vm798_vm2, %v991_v45, %v993_v51  ;;  %v1019_v60 = vsel %vm824_vm3, %v1016_v27, %v1018_v41  ;;  %v2728_v25 = vrot.slane %v2727_v28, 5  ;;  %v2729_v51 = vld [vmem:[#allocation9_spill] sm:$0xff] }
 0x296   : > { %v1376_v2 = vsel %vm824_vm3, %v1373_v46, %v2726_v32  ;;  %v1403_v52 = vadd.f32 %v1396_v9, %v1381_v26  ;;  %v1418_v55 = vsel %vm876_vm5, %v1416_v43, %v1417_v37  ;;  %v1044_v18 = vsel %vm850_vm4, %v1041_v19, %v1043_v10  ;;  %v2731_v46 = vld [vmem:[#allocation10_spill] sm:$0xff] }
 0x297   : > { %v1382_v36 = vadd.f32 %v1376_v2, %v1360_v30  ;;  %v1398_v16 = vsel %vm850_vm4, %v1395_v53, %v2728_v25  ;;  %v1000_v45 = vadd.f32 %v994_v35, %v975_v59  ;;  %v1069_v34 = vsel %vm876_vm5, %v1066_v20, %v1068_v1  ;;  %v2735_v53 = vld [vmem:[#allocation11_spill] sm:$0xff] }
 0x298   : > { %v1083_v21 = vmul.f32 %v2135_v8, %v2197_v56  ;;  %v2730_v27 = vrot.slane %v2729_v51, 6  ;;  %v1425_v22 = vadd.f32 %v1418_v55, %v1403_v52  ;;  %v1118_v31 = vmul.f32 0.0, %v2147_v14 }
 0x299   : > { %v1404_v42 = vadd.f32 %v1398_v16, %v1382_v36  ;;  %v1025_v19 = vadd.f32 %v1019_v60, %v1000_v45  ;;  %v2732_v50 = vrot.slane %v2731_v46, 6  ;;  %v2733_v57 = vrot.slane %v2489_v47, 6 }
 0x29a   : > { %v1420_v29 = vsel %vm876_vm5, %v1417_v37, %v2730_v27  ;;  %v1093_v10 = vrot.slane %v1083_v21, 7  ;;  %v1435_v23 = vadd.f32 %v2587_v5, %v1425_v22  ;;  %v2734_v7 = vrot.slane %v2408_v61, 7 }
 0x29b   : > { %v1426_v41 = vadd.f32 %v1420_v29, %v1404_v42  ;;  %v1254_v20 = vsel %vm876_vm5, %v2733_v57, %v2732_v50  ;;  %v1050_v11 = vadd.f32 %v1044_v18, %v1025_v19  ;;  %v2736_v0 = vrot.slane %v2735_v53, 7 }
 0x29c   : > { %v1094_v63 = vsel %vm902_vm6, %v2734_v7, %v1093_v10  ;;  %v2737_v4 = vrot.slane %v2501_v44, 7  ;;  %v1672_v14 = vmul.f32 -1.442695, %v1435_v23  ;;  %v1143_v30 = vmul.f32 0.0, %v2149_v15 }
 0x29d   : > { %v1436_v8 = vadd.f32 %v2587_v5, %v1426_v41  ;;  %v1075_v47 = vadd.f32 %v1069_v34, %v1050_v11  ;;  %v1128_v43 = vrot.slane %v1118_v31, 1  ;;  %v1168_v32 = vmul.f32 0.0, %v2155_v33 }
 0x29e   : > { %v1279_v1 = vsel %vm902_vm6, %v2737_v4, %v2736_v0  ;;  %1827 = vpow2.f32 %v1672_v14  ;;  %v1107_v61 = vmul.f32 %v2145_v13, %v2197_v56  ;;  %v1153_v26 = vrot.slane %v1143_v30, 2 }
 0x29f   : > { %v1673_v6 = vmul.f32 -1.442695, %v1436_v8  ;;  %v1100_v2 = vadd.f32 %v1094_v63, %v1075_v47  ;;  %v1193_v9 = vmul.f32 0.0, %v2165_v17  ;;  %v2738_v37 = vrot.slane %v2425_v12, 1 }
 0x2a0   : > { %v1178_v15 = vrot.slane %v1168_v32, 3  ;;  %v1218_v59 = vmul.f32 0.0, %v2184_v58  ;;  %v2739_v60 = vrot.slane %v2437_v38, 2  ;;  %v2740_v13 = vrot.slane %v2451_v48, 3 }
 0x2a1   : > { %1829 = vpow2.f32 %v1673_v6  ;;  %v1110_v44 = vadd.f32 %v1107_v61, %v1100_v2  ;;  %v1129_v36 = vsel %vm709_vm0, %v2738_v37, %v1128_v43  ;;  %v1203_v25 = vrot.slane %v1193_v9, 4  ;;  %v1839_v43 = vld [vmem:[%s1926_s22 + $0x10] sm:$0xff]  ;;  %v1840_v61 = vld [vmem:[%s1926_s22] sm:$0xff] }
 0x2a2   : > { %v1154_v33 = vsel %vm772_vm1, %v2739_v60, %v1153_v26  ;;  %v1179_v56 = vsel %vm798_vm2, %v2740_v13, %v1178_v15  ;;  %v1228_v17 = vrot.slane %v1218_v59, 5  ;;  %v2741_v12 = vrot.slane %v2463_v3, 4 }
 0x2a3   : > { %v1135_v35 = vadd.f32 %v1129_v36, %v1110_v44  ;;  %v2742_v38 = vrot.slane %v2476_v49, 5  ;;  %v1292_v29 = vmul.f32 0.0, %v2190_v54  ;;  %v2743_v3 = vrot.slane %v2717_v24, 1  ;;  %v1841_v44 = vld [vmem:[%s1926_s22 + $0x8] sm:$0xff] }
 0x2a4   : > { %v1204_v18 = vsel %vm824_vm3, %v2741_v12, %v1203_v25  ;;  %v2744_v31 = vrot.slane %v2719_v40, 2  ;;  %v2745_v11 = vrot.slane %v2722_v62, 3  ;;  %v2747_v54 = vrot.slane %v2727_v28, 5  ;;  %v1675_v28 = vld [vmem:[%s2672_s10] ss:$0 sm:$0xff] }
 0x2a5   : > { %v1160_v16 = vadd.f32 %v1154_v33, %v1135_v35  ;;  %v1229_v21 = vsel %vm850_vm4, %v2742_v38, %v1228_v17  ;;  %v2748_v24 = vrot.slane %v2729_v51, 6 }
 0x2a7   : > { %v1185_v52 = vadd.f32 %v1179_v56, %v1160_v16 }
 0x2a8   : > { %v1828_v55 = vpop.eup %1827 }
 0x2a9   : > { %v1447_v58 = vadd.f32 1.0, %v1828_v55  ;;  %v1210_v45 = vadd.f32 %v1204_v18, %v1185_v52 }
 0x2ab   : > { %v1830_v42 = vpop.eup %1829  ;;  %1831 = vrcp.f32 %v1447_v58  ;;  %v1235_v27 = vadd.f32 %v1229_v21, %v1210_v45 }
 0x2ac   : > { %v1448_v34 = vadd.f32 1.0, %v1830_v42 }
 0x2ad   : > { %v1260_v48 = vadd.f32 %v1254_v20, %v1235_v27  ;;  %v2746_v20 = vrot.slane %v2725_v39, 4 }
 0x2ae   : > { %1833 = vrcp.f32 %v1448_v34 }
 0x2af   : > { %v1285_v22 = vadd.f32 %v1279_v1, %v1260_v48 }
 0x2b1   : > { %v1295_v41 = vadd.f32 %v1292_v29, %v1285_v22 }
 0x2b3   : > { %v1317_v19 = vadd.f32 %v2743_v3, %v1295_v41 }
 0x2b5   : > { %v1832_v10 = vpop.eup %1831  ;;  %v1339_v46 = vadd.f32 %v2744_v31, %v1317_v19 }
 0x2b6   : > { %v1456_v57 = vmul.f32 %v1832_v10, %v1435_v23 }
 0x2b7   : > { %v1361_v7 = vadd.f32 %v2745_v11, %v1339_v46 }
 0x2b8   : > { %v1834_v50 = vpop.eup %1833 }
 0x2b9   : > { %v1457_v49 = vmul.f32 %v1834_v50, %v1436_v8  ;;  %v1383_v53 = vadd.f32 %v2746_v20, %v1361_v7 }
 0x2bb   : > { %v1459_v63 = vpack.c.bf16 %v1457_v49, %v1456_v57  ;;  %v1405_v0 = vadd.f32 %v2747_v54, %v1383_v53 }
 0x2bd   : > { %1772 = vmatprep.mubr.bf16.mxu0 %v1459_v63  ;;  %v1427_v4 = vadd.f32 %v2748_v24, %v1405_v0 }
 0x2bf   : > { %v1437_v40 = vadd.f32 %v2587_v5, %v1427_v4 }
 0x2c1   : > { %v1674_v1 = vmul.f32 -1.442695, %v1437_v40 }
 0x2c3   : > { %1835 = vpow2.f32 %v1674_v1 }
 0x2cd   : > { %v1836_v23 = vpop.eup %1835 }
 0x2ce   : > { %v1449_v62 = vadd.f32 1.0, %v1836_v23 }
 0x2d0   : > { %1837 = vrcp.f32 %v1449_v62 }
 0x2da   : > { %v1838_v8 = vpop.eup %1837 }
 0x2db   : > { %v1458_v39 = vmul.f32 %v1838_v8, %v1437_v40 }
 0x2dd   : > { %v1460_v14 = vpack.c.bf16 %v1458_v39, %v1458_v39 }
 0x2df   : > { %1773 = vmatmul.mubr.bf16.vlgmr.msra.gmra.mrb[4].mxu0 %v1460_v14 }
 0x3b2   : > { %v1774_v51 = vpop.f32.mrb[4].mxu0 }
 0x3b3   : > { %v1575_v30 = vadd.f32 %v1774_v51, %v1675_v28  ;;  %v1566_v6 = vpop.f32.mrb[5].mxu0 }
 0x3b4   : > { %v1567_v5 = vadd.f32 %v1675_v28, %v1566_v6  ;;  %v1775_v47 = vpop.f32.mrb[6].mxu0 }
 0x3b5   : > { %v1582_v32 = vadd.f32 %v1839_v43, %v1575_v30  ;;  %v1569_v2 = vpop.f32.mrb[7].mxu0 }
 0x3b6   : > { %v1580_v26 = vadd.f32 %v1840_v61, %v1567_v5  ;;  %v1570_v9 = vadd.f32 %v1675_v28, %v1569_v2 }
 0x3b7   : > { %1585 = vst [vmem:[%s386_s14 + $0x10] sm:$0xff] %v1582_v32 }
 0x3b8   : > { %1583 = vst [vmem:[%s386_s14] sm:$0xff] %v1580_v26  ;;  %v1581_v37 = vadd.f32 %v1841_v44, %v1570_v9 }
 0x3ba   : > { %1584 = vst [vmem:[%s386_s14 + $0x8] sm:$0xff] %v1581_v37 }
 0x3bb PF: > { %s21_s17 = sadd.s32 1, %s1848_s17  }
 0x3bc   : > { %p18_p4 = scmp.ge.s32.totalorder %s21_s17, 4  }
 0x3be   :  { %20 = sbr.rel (!%p18_p4) target bundleno = 1 (0x1), region = 94 }

// kernel: _forward_impl.16
= control target key start
LH: loop header
LB: loop body
LE: loop exit
PB: predicated region body
PF: predicated region fallthrough
CT: control target
= control target key end

     0   :  { %v1514_v60 = vmov 0   ;;  %s1993_s0 = inlined_call_operand.vmem [shape: f32[48,128], index: 0, kind: input, shape index: {}]   ;;  %s1994_s3 = inlined_call_operand.vmem [shape: bf16[128,512], index: 3, kind: input, shape index: {}]   ;;  %s1995_s1 = inlined_call_operand.vmem [shape: f32[1,128], index: 1, kind: input, shape index: {}]   ;;  %s1996_s2 = inlined_call_operand.vmem [shape: f32[1,128], index: 2, kind: input, shape index: {}]   ;;  %s1997_s5 = inlined_call_operand.vmem [shape: bf16[512,128], index: 5, kind: input, shape index: {}]   ;;  %s1998_s4 = inlined_call_operand.vmem [shape: f32[1,512], index: 4, kind: input, shape index: {}]   ;;  %s1999_s6 = inlined_call_operand.vmem [shape: f32[1,128], index: 6, kind: input, shape index: {}]   ;;  %s2000_s7 = inlined_call_operand.vmem [shape: f32[1,128], index: 7, kind: input, shape index: {}]   ;;  %s2001_s8 = inlined_call_operand.vmem [shape: f32[1,128], index: 8, kind: input, shape index: {}]   ;;  %s2002_s9 = inlined_call_operand.vmem [shape: f32[48,128], index: 9, kind: output, shape index: {}]  }
   0x1   :  { %v33_v0 = vld [vmem:[%s1993_s0] sm:$0xff]  ;;  %v35_v1 = vld [vmem:[%s1993_s0 + $0x10] sm:$0xff]  ;;  %v34_v2 = vld [vmem:[%s1993_s0 + $0x8] sm:$0xff]  ;;  %381 = vmatprep.mubr.bf16.mxu0 %v1514_v60  ;;  %444 = vmatprep.mubr.bf16.mxu1 %v1514_v60 }
   0x2   :  { %39 = vadd.xlane.f32.xlu0 %v33_v0  ;;  %43 = vadd.xlane.f32.xlu1 %v35_v1  ;;  %v36_v3 = vld [vmem:[%s1993_s0 + $0x18] sm:$0xff]  ;;  %v37_v4 = vld [vmem:[%s1993_s0 + $0x20] sm:$0xff]  ;;  %v38_v5 = vld [vmem:[%s1993_s0 + $0x28] sm:$0xff] }
   0x3   :  { %v1308_v6 = vld [vmem:[%s1994_s3 + $0x4] ss:$16 sps:$4 sm:$0xff]   ;;  %v1310_v7 = vld [vmem:[%s1994_s3 + $0xc] ss:$16 sps:$4 sm:$0xff]   ;;  %v1312_v8 = vld [vmem:[%s1994_s3] ss:$16 sps:$4 sm:$0xff]  }
   0x4   :  { %349 = vmatprep.subr.bf16.mxu0 %v1308_v6  ;;  %v1313_v9 = vld [vmem:[%s1994_s3 + $0x8] ss:$16 sps:$4 sm:$0xff]   ;;  %412 = vmatprep.subr.bf16.mxu1 %v1310_v7  ;;  %v1314_v10 = vld [vmem:[%s1994_s3 + $0x24] ss:$16 sps:$4 sm:$0xff]   ;;  %v1316_v11 = vld [vmem:[%s1994_s3 + $0x2c] ss:$16 sps:$4 sm:$0xff]  }
   0x5   :  { %350 = vmatpush1.bf16.msra.mxu0 %v1312_v8  ;;  %413 = vmatpush1.bf16.msra.mxu1 %v1313_v9  ;;  %v1318_v36 = vld [vmem:[%s1994_s3 + $0x20] ss:$16 sps:$4 sm:$0xff]   ;;  %v1319_v37 = vld [vmem:[%s1994_s3 + $0x28] ss:$16 sps:$4 sm:$0xff]   ;;  %v1320_v38 = vld [vmem:[%s1994_s3 + $0x44] ss:$16 sps:$4 sm:$0xff]  }
   0x6   :  { %41 = vadd.xlane.f32.xlu0 %v34_v2  ;;  %45 = vadd.xlane.f32.xlu1 %v36_v3  ;;  %v1322_v39 = vld [vmem:[%s1994_s3 + $0x4c] ss:$16 sps:$4 sm:$0xff]   ;;  %v1324_v40 = vld [vmem:[%s1994_s3 + $0x40] ss:$16 sps:$4 sm:$0xff]   ;;  %v1325_v41 = vld [vmem:[%s1994_s3 + $0x48] ss:$16 sps:$4 sm:$0xff]  }
   0x7   :  { %351 = vmatprep.subr.bf16.mxu0 %v1314_v10  ;;  %414 = vmatprep.subr.bf16.mxu1 %v1316_v11  ;;  %v1326_v42 = vld [vmem:[%s1994_s3 + $0x64] ss:$16 sps:$4 sm:$0xff]   ;;  %v1328_v43 = vld [vmem:[%s1994_s3 + $0x6c] ss:$16 sps:$4 sm:$0xff]   ;;  %v1330_v44 = vld [vmem:[%s1994_s3 + $0x60] ss:$16 sps:$4 sm:$0xff]  }
   0x8   :  { %v1331_v45 = vld [vmem:[%s1994_s3 + $0x68] ss:$16 sps:$4 sm:$0xff]   ;;  %v1332_v46 = vld [vmem:[%s1994_s3 + $0x84] ss:$16 sps:$4 sm:$0xff]   ;;  %v1334_v47 = vld [vmem:[%s1994_s3 + $0x8c] ss:$16 sps:$4 sm:$0xff]  }
   0x9   :  { %352 = vmatpush1.bf16.msra.mxu0 %v1318_v36  ;;  %415 = vmatpush1.bf16.msra.mxu1 %v1319_v37  ;;  %v1336_v48 = vld [vmem:[%s1994_s3 + $0x80] ss:$16 sps:$4 sm:$0xff]   ;;  %v1337_v49 = vld [vmem:[%s1994_s3 + $0x88] ss:$16 sps:$4 sm:$0xff]   ;;  %v1338_v50 = vld [vmem:[%s1994_s3 + $0xa4] ss:$16 sps:$4 sm:$0xff]  }
   0xa   :  { %47 = vadd.xlane.f32.xlu0 %v37_v4  ;;  %49 = vadd.xlane.f32.xlu1 %v38_v5  ;;  %v1340_v51 = vld [vmem:[%s1994_s3 + $0xac] ss:$16 sps:$4 sm:$0xff]   ;;  %v1342_v52 = vld [vmem:[%s1994_s3 + $0xa0] ss:$16 sps:$4 sm:$0xff]   ;;  %v1343_v53 = vld [vmem:[%s1994_s3 + $0xa8] ss:$16 sps:$4 sm:$0xff]  }
   0xb   :  { %353 = vmatprep.subr.bf16.mxu0 %v1320_v38  ;;  %416 = vmatprep.subr.bf16.mxu1 %v1322_v39  ;;  %v1344_v54 = vld [vmem:[%s1994_s3 + $0xc4] ss:$16 sps:$4 sm:$0xff]   ;;  %v1346_v55 = vld [vmem:[%s1994_s3 + $0xcc] ss:$16 sps:$4 sm:$0xff]   ;;  %v1348_v56 = vld [vmem:[%s1994_s3 + $0xc0] ss:$16 sps:$4 sm:$0xff]  }
   0xc   :  { %v1349_v57 = vld [vmem:[%s1994_s3 + $0xc8] ss:$16 sps:$4 sm:$0xff]   ;;  %v1350_v58 = vld [vmem:[%s1994_s3 + $0xe4] ss:$16 sps:$4 sm:$0xff]   ;;  %v1352_v59 = vld [vmem:[%s1994_s3 + $0xec] ss:$16 sps:$4 sm:$0xff]  }
   0xd   :  { %354 = vmatpush1.bf16.msra.mxu0 %v1324_v40  ;;  %417 = vmatpush1.bf16.msra.mxu1 %v1325_v41  ;;  %v1354_v61 = vld [vmem:[%s1994_s3 + $0xe0] ss:$16 sps:$4 sm:$0xff]   ;;  %v1355_v62 = vld [vmem:[%s1994_s3 + $0xe8] ss:$16 sps:$4 sm:$0xff]  }
   0xe   :  { %355 = vmatprep.subr.bf16.mxu0 %v1326_v42  ;;  %418 = vmatprep.subr.bf16.mxu1 %v1328_v43 }
  0x11   :  { %356 = vmatpush1.bf16.msra.mxu0 %v1330_v44  ;;  %419 = vmatpush1.bf16.msra.mxu1 %v1331_v45 }
  0x12   :  { %357 = vmatprep.subr.bf16.mxu0 %v1332_v46  ;;  %420 = vmatprep.subr.bf16.mxu1 %v1334_v47 }
  0x15   :  { %358 = vmatpush1.bf16.msra.mxu0 %v1336_v48  ;;  %421 = vmatpush1.bf16.msra.mxu1 %v1337_v49  ;;  %v1358_v48 = vld [vmem:[%s1997_s5] sm:$0xff]  }
  0x16   :  { %359 = vmatprep.subr.bf16.mxu0 %v1338_v50  ;;  %422 = vmatprep.subr.bf16.mxu1 %v1340_v51  ;;  %v1359_v49 = vld [vmem:[%s1997_s5 + $0x80] sm:$0xff]   ;;  %v1360_v50 = vld [vmem:[%s1997_s5 + $0x48] sm:$0xff]  }
  0x17   :  { %v1361_v51 = vld [vmem:[%s1997_s5 + $0xc8] sm:$0xff]  }
  0x19   :  { %360 = vmatpush1.bf16.msra.mxu0 %v1342_v52  ;;  %423 = vmatpush1.bf16.msra.mxu1 %v1343_v53  ;;  %v1362_v52 = vld [vmem:[%s1997_s5 + $0x8] sm:$0xff]  }
  0x1a   :  { %361 = vmatprep.subr.bf16.mxu0 %v1344_v54  ;;  %424 = vmatprep.subr.bf16.mxu1 %v1346_v55  ;;  %v1363_v53 = vld [vmem:[%s1997_s5 + $0x88] sm:$0xff]   ;;  %v1364_v54 = vld [vmem:[%s1997_s5 + $0x50] sm:$0xff]  }
  0x1b   :  { %v1365_v55 = vld [vmem:[%s1997_s5 + $0xd0] sm:$0xff]  }
  0x1d   :  { %362 = vmatpush1.bf16.msra.mxu0 %v1348_v56  ;;  %425 = vmatpush1.bf16.msra.mxu1 %v1349_v57  ;;  %v1366_v56 = vld [vmem:[%s1997_s5 + $0x10] sm:$0xff]  }
  0x1e   :  { %363 = vmatprep.subr.bf16.mxu0 %v1350_v58  ;;  %426 = vmatprep.subr.bf16.mxu1 %v1352_v59  ;;  %v1367_v57 = vld [vmem:[%s1997_s5 + $0x90] sm:$0xff]   ;;  %v1368_v58 = vld [vmem:[%s1997_s5 + $0x58] sm:$0xff]  }
  0x1f   :  { %v1369_v59 = vld [vmem:[%s1997_s5 + $0xd8] sm:$0xff]  }
  0x21   :  { %364 = vmatpush1.bf16.msra.mxu0 %v1354_v61  ;;  %427 = vmatpush1.bf16.msra.mxu1 %v1355_v62  ;;  %v1371_v61 = vld [vmem:[%s1997_s5 + $0x98] sm:$0xff]   ;;  %v1372_v62 = vld [vmem:[%s1997_s5 + $0x60] sm:$0xff]  }
  0x8f   :  { %v40_v12 = vpop.xlane.xlu0 %39  ;;  %v44_v13 = vpop.xlane.xlu1 %43 }
  0x90   :  { %v52_v14 = vmul.f32 0.0078125, %v40_v12  ;;  %v54_v15 = vmul.f32 0.0078125, %v44_v13 }
  0x92   :  { %v1601_v16 = vsub.f32 %v33_v0, %v52_v14  ;;  %v1603_v17 = vsub.f32 %v35_v1, %v54_v15 }
  0x93   :  { %v42_v18 = vpop.xlane.xlu0 %41  ;;  %v46_v19 = vpop.xlane.xlu1 %45 }
  0x94   :  { %v53_v20 = vmul.f32 0.0078125, %v42_v18  ;;  %v64_v21 = vmul.f32 %v1601_v16, %v1601_v16  ;;  %v55_v22 = vmul.f32 0.0078125, %v46_v19  ;;  %v66_v25 = vmul.f32 %v1603_v17, %v1603_v17 }
  0x96   :  { %v1607_v23 = vsub.f32 %v34_v2, %v53_v20  ;;  %70 = vadd.xlane.f32.xlu0 %v64_v21  ;;  %v1609_v24 = vsub.f32 %v36_v3, %v55_v22  ;;  %v1146_v21 = vld [vmem:[%s1995_s1] ss:$0 sm:$0xff] }
  0x97   :  { %v48_v26 = vpop.xlane.xlu0 %47  ;;  %v50_v27 = vpop.xlane.xlu1 %49 }
  0x98   :  { %v56_v28 = vmul.f32 0.0078125, %v48_v26  ;;  %v65_v29 = vmul.f32 %v1607_v23, %v1607_v23  ;;  %v57_v30 = vmul.f32 0.0078125, %v50_v27  ;;  %v67_v33 = vmul.f32 %v1609_v24, %v1609_v24 }
  0x9a   :  { %v1615_v31 = vsub.f32 %v37_v4, %v56_v28  ;;  %74 = vadd.xlane.f32.xlu0 %v66_v25  ;;  %72 = vadd.xlane.f32.xlu1 %v65_v29  ;;  %v1617_v32 = vsub.f32 %v38_v5, %v57_v30  ;;  %v1147_v28 = vld [vmem:[%s1996_s2] ss:$0 sm:$0xff] }
  0x9c   :  { %v68_v34 = vmul.f32 %v1615_v31, %v1615_v31  ;;  %v69_v35 = vmul.f32 %v1617_v32, %v1617_v32 }
  0x9e   :  { %76 = vadd.xlane.f32.xlu1 %v67_v33  ;;  %78 = vadd.xlane.f32.xlu0 %v68_v34 }
  0xa2   :  { %80 = vadd.xlane.f32.xlu1 %v69_v35 }
 0x123   :  { %v71_v63 = vpop.xlane.xlu0 %70 }
 0x124   :  { %v82_v0 = vmul.f32 0.0078125, %v71_v63  ;;  %v1373_v63 = vld [vmem:[%s1997_s5 + $0xe0] sm:$0xff]  }
 0x126   :  { %v88_v1 = vadd.f32 1e-05, %v82_v0  ;;  %v1374_v0 = vld [vmem:[%s1997_s5 + $0x20] sm:$0xff]  }
 0x127   :  { %v73_v2 = vpop.xlane.xlu1 %72  ;;  %v75_v3 = vpop.xlane.xlu0 %74 }
 0x128   :  { %1388 = vrsqrt.f32 %v88_v1  ;;  %v83_v4 = vmul.f32 0.0078125, %v73_v2  ;;  %v84_v5 = vmul.f32 0.0078125, %v75_v3  ;;  %v1375_v1 = vld [vmem:[%s1997_s5 + $0xa0] sm:$0xff]   ;;  %v1376_v2 = vld [vmem:[%s1997_s5 + $0x68] sm:$0xff]  }
 0x129   :  { %v1377_v3 = vld [vmem:[%s1997_s5 + $0xe8] sm:$0xff]  }
 0x12a   :  { %v89_v6 = vadd.f32 1e-05, %v83_v4  ;;  %v90_v7 = vadd.f32 1e-05, %v84_v5  ;;  %v1378_v4 = vld [vmem:[%s1997_s5 + $0x28] sm:$0xff]  }
 0x12b   :  { %v77_v8 = vpop.xlane.xlu1 %76  ;;  %v79_v9 = vpop.xlane.xlu0 %78  ;;  %v1379_v5 = vld [vmem:[%s1997_s5 + $0xa8] sm:$0xff]  }
 0x12c   :  { %1390 = vrsqrt.f32 %v89_v6  ;;  %v85_v10 = vmul.f32 0.0078125, %v77_v8  ;;  %v86_v12 = vmul.f32 0.0078125, %v79_v9  ;;  %v1380_v6 = vld [vmem:[%s1997_s5 + $0x70] sm:$0xff]  }
 0x12d   :  { %1392 = vrsqrt.f32 %v90_v7  ;;  %v1381_v7 = vld [vmem:[%s1997_s5 + $0xf0] sm:$0xff]  }
 0x12e   :  { %v91_v11 = vadd.f32 1e-05, %v85_v10  ;;  %v92_v18 = vadd.f32 1e-05, %v86_v12  ;;  %v1382_v8 = vld [vmem:[%s1997_s5 + $0x30] sm:$0xff]   ;;  %v1384_v10 = vld [vmem:[%s1997_s5 + $0x78] sm:$0xff]  }
 0x12f   :  { %v81_v13 = vpop.xlane.xlu1 %80  ;;  %v1383_v9 = vld [vmem:[%s1997_s5 + $0xb0] sm:$0xff]   ;;  %v1386_v12 = vld [vmem:[%s1997_s5 + $0x38] sm:$0xff]  }
 0x130   :  { %1394 = vrsqrt.f32 %v91_v11  ;;  %v87_v14 = vmul.f32 0.0078125, %v81_v13  ;;  %v1385_v11 = vld [vmem:[%s1997_s5 + $0xf8] sm:$0xff]  }
 0x131   :  { %v1387_v13 = vld [vmem:[%s1997_s5 + $0xb8] sm:$0xff]  }
 0x132   :  { %v1389_v15 = vpop.eup %1388  ;;  %v93_v19 = vadd.f32 1e-05, %v87_v14  ;;  %v169_v14 = vlaneseq }
 0x133   :  { %v100_v20 = vmul.f32 %v1389_v15, %v1601_v16 }
 0x134   :  { %1396 = vrsqrt.f32 %v93_v19  ;;  %v170_v15 = vshrl.u32 %v169_v14, 7 }
 0x135   :  { %1398 = vrsqrt.f32 %v92_v18  ;;  %v113_v26 = vmul.f32 %v1146_v21, %v100_v20  ;;  %v167_v20 = vld [vmem:[%s1998_s4] sm:$0xf] }
 0x136   :  { %v1391_v22 = vpop.eup %1390  ;;  %v171_v18 = vsub.s32 0, %v170_v15  ;;  %v179_v19 = vsub.s32 2, %v170_v15 }
 0x137   :  { %v101_v25 = vmul.f32 %v1391_v22, %v1607_v23  ;;  %v1393_v27 = vpop.eup %1392  ;;  %v126_v33 = vadd.f32 %v1147_v28, %v113_v26  ;;  %v183_v22 = vsub.s32 3, %v170_v15 }
 0x138   :  { %v102_v16 = vmul.f32 %v1393_v27, %v1603_v17  ;;  %v1822_v26 = vrot.slane %v167_v20, %v179_v19 }
 0x139   :  { %v114_v29 = vmul.f32 %v1146_v21, %v101_v25  ;;  %v1820_v25 = vrot.slane %v167_v20, %v171_v18 }
 0x13a   :  { %v1395_v30 = vpop.eup %1394  ;;  %v115_v23 = vmul.f32 %v1146_v21, %v102_v16 }
 0x13b   :  { %v127_v34 = vadd.f32 %v1147_v28, %v114_v29  ;;  %v103_v35 = vmul.f32 %v1395_v30, %v1609_v24 }
 0x13c   :  { %v128_v42 = vadd.f32 %v1147_v28, %v115_v23 }
 0x13d   :  { %v132_v36 = vpack.c.bf16 %v127_v34, %v126_v33  ;;  %v116_v37 = vmul.f32 %v1146_v21, %v103_v35 }
 0x13e   :  { %v1397_v38 = vpop.eup %1396 }
 0x13f   :  { %382 = vmatmul.mubr.bf16.vlgmr.msra.gmra.mrb[0].mxu0 %v132_v36  ;;  %445 = vmatmul.mubr.bf16.vlgmr.msra.gmra.mrb[0].mxu1 %v132_v36  ;;  %v1399_v39 = vpop.eup %1398  ;;  %v129_v40 = vadd.f32 %v1147_v28, %v116_v37  ;;  %v105_v41 = vmul.f32 %v1397_v38, %v1617_v32  ;;  %v1356_v32 = vld [vmem:[%s1997_s5 + $0x40] sm:$0xff]  }
 0x140   :  { %391 = vmatprep.mubr.bf16.mxu0 %v1514_v60  ;;  %454 = vmatprep.mubr.bf16.mxu1 %v1514_v60  ;;  %v104_v43 = vmul.f32 %v1399_v39, %v1615_v31  ;;  %v1357_v31 = vld [vmem:[%s1997_s5 + $0xc0] sm:$0xff]  }
 0x141   :  { %v133_v17 = vpack.c.bf16 %v129_v40, %v128_v42  ;;  %v118_v44 = vmul.f32 %v1146_v21, %v105_v41  ;;  %1239 = vmatprep.subr.bf16.mxu0 %v1356_v32  ;;  %1273 = vmatprep.subr.bf16.mxu1 %v1357_v31 }
 0x142   :  { %v117_v24 = vmul.f32 %v1146_v21, %v104_v43  ;;  %1240 = vmatpush3.bf16.msra.mxu0 %v1358_v48  ;;  %1274 = vmatpush3.bf16.msra.mxu1 %v1359_v49  ;;  %v175_v21 = vsub.s32 1, %v170_v15 }
 0x143   :  { %v131_v45 = vadd.f32 %v1147_v28, %v118_v44  ;;  %1241 = vmatprep.subr.bf16.mxu0 %v1360_v50  ;;  %1275 = vmatprep.subr.bf16.mxu1 %v1361_v51 }
 0x144   :  { %v130_v46 = vadd.f32 %v1147_v28, %v117_v24  ;;  %v1824_v27 = vrot.slane %v167_v20, %v175_v21  ;;  %v1826_v28 = vrot.slane %v167_v20, %v183_v22 }
 0x146   :  { %v134_v47 = vpack.c.bf16 %v131_v45, %v130_v46  ;;  %1242 = vmatpush3.bf16.msra.mxu0 %v1362_v52  ;;  %1276 = vmatpush3.bf16.msra.mxu1 %v1363_v53 }
 0x147   :  { %392 = vmatmul.mubr.bf16.gmra.mrb[4].mxu0 %v133_v17  ;;  %455 = vmatmul.mubr.bf16.gmra.mrb[4].mxu1 %v133_v17 }
 0x148   :  { %401 = vmatprep.mubr.bf16.mxu0 %v1514_v60  ;;  %464 = vmatprep.mubr.bf16.mxu1 %v1514_v60  ;;  %v1370_v60 = vld [vmem:[%s1997_s5 + $0x18] sm:$0xff]  }
 0x149   :  { %1243 = vmatprep.subr.bf16.mxu0 %v1364_v54  ;;  %1277 = vmatprep.subr.bf16.mxu1 %v1365_v55 }
 0x14a   :  { %1244 = vmatpush3.bf16.msra.mxu0 %v1366_v56  ;;  %1278 = vmatpush3.bf16.msra.mxu1 %v1367_v57 }
 0x14b   :  { %1245 = vmatprep.subr.bf16.mxu0 %v1368_v58  ;;  %1279 = vmatprep.subr.bf16.mxu1 %v1369_v59 }
 0x14e   :  { %1246 = vmatpush3.bf16.msra.mxu0 %v1370_v60  ;;  %1280 = vmatpush3.bf16.msra.mxu1 %v1371_v61 }
 0x14f   :  { %402 = vmatmul.mubr.bf16.gmra.mrb[8].mxu0 %v134_v47  ;;  %465 = vmatmul.mubr.bf16.gmra.mrb[8].mxu1 %v134_v47 }
 0x150   :  { %1247 = vmatprep.subr.bf16.mxu0 %v1372_v62  ;;  %1281 = vmatprep.subr.bf16.mxu1 %v1373_v63 }
 0x152   :  { %1248 = vmatpush3.bf16.msra.mxu0 %v1374_v0  ;;  %1282 = vmatpush3.bf16.msra.mxu1 %v1375_v1 }
 0x153   :  { %1249 = vmatprep.subr.bf16.mxu0 %v1376_v2  ;;  %1283 = vmatprep.subr.bf16.mxu1 %v1377_v3 }
 0x156   :  { %1250 = vmatpush3.bf16.msra.mxu0 %v1378_v4  ;;  %1284 = vmatpush3.bf16.msra.mxu1 %v1379_v5 }
 0x157   :  { %1251 = vmatprep.subr.bf16.mxu0 %v1380_v6  ;;  %1285 = vmatprep.subr.bf16.mxu1 %v1381_v7 }
 0x15a   :  { %1252 = vmatpush3.bf16.msra.mxu0 %v1382_v8  ;;  %1286 = vmatpush3.bf16.msra.mxu1 %v1383_v9 }
 0x15b   :  { %1253 = vmatprep.subr.bf16.mxu0 %v1384_v10  ;;  %1287 = vmatprep.subr.bf16.mxu1 %v1385_v11 }
 0x15e   :  { %1254 = vmatpush3.bf16.msra.mxu0 %v1386_v12  ;;  %1288 = vmatpush3.bf16.msra.mxu1 %v1387_v13 }
 0x212   :  { %v383_v29 = vpop.f32.mrb[0].mxu0  ;;  %v446_v30 = vpop.f32.mrb[0].mxu1 }
 0x213   :  { %v1829_v33 = vadd.f32 %v383_v29, %v1820_v25  ;;  %v1832_v34 = vadd.f32 %v446_v30, %v1822_v26  ;;  %v385_v16 = vpop.f32.mrb[1].mxu0  ;;  %v448_v35 = vpop.f32.mrb[1].mxu1 }
 0x214   :  { %v1835_v36 = vadd.f32 %v385_v16, %v1824_v27  ;;  %v1838_v37 = vadd.f32 %v448_v35, %v1826_v28  ;;  %v387_v38 = vpop.f32.mrb[2].mxu0  ;;  %v450_v23 = vpop.f32.mrb[2].mxu1 }
 0x215   :  { %v1180_v39 = vmul.f32 -1.442695, %v1829_v33  ;;  %v1182_v40 = vmul.f32 -1.442695, %v1832_v34  ;;  %v1843_v41 = vadd.f32 %v387_v38, %v1820_v25  ;;  %v1846_v42 = vadd.f32 %v450_v23, %v1822_v26  ;;  %v389_v43 = vpop.f32.mrb[3].mxu0  ;;  %v452_v17 = vpop.f32.mrb[3].mxu1 }
 0x216   :  { %v1181_v44 = vmul.f32 -1.442695, %v1835_v36  ;;  %v1183_v24 = vmul.f32 -1.442695, %v1838_v37  ;;  %v1851_v45 = vadd.f32 %v389_v43, %v1824_v27  ;;  %v1854_v46 = vadd.f32 %v452_v17, %v1826_v28 }
 0x217   :  { %1400 = vpow2.f32 %v1180_v39  ;;  %v1184_v47 = vmul.f32 -1.442695, %v1843_v41  ;;  %v1186_v32 = vmul.f32 -1.442695, %v1846_v42 }
 0x218   :  { %1402 = vpow2.f32 %v1182_v40  ;;  %v1185_v31 = vmul.f32 -1.442695, %v1851_v45  ;;  %v1187_v48 = vmul.f32 -1.442695, %v1854_v46 }
 0x219   :  { %1404 = vpow2.f32 %v1181_v44 }
 0x21a   :  { %1406 = vpow2.f32 %v1183_v24  ;;  %v393_v49 = vpop.f32.mrb[4].mxu0  ;;  %v456_v50 = vpop.f32.mrb[4].mxu1 }
 0x21b   :  { %1408 = vpow2.f32 %v1184_v47  ;;  %v1861_v51 = vadd.f32 %v393_v49, %v1820_v25  ;;  %v1864_v52 = vadd.f32 %v456_v50, %v1822_v26  ;;  %v395_v53 = vpop.f32.mrb[5].mxu0  ;;  %v458_v54 = vpop.f32.mrb[5].mxu1 }
 0x21c   :  { %1410 = vpow2.f32 %v1186_v32  ;;  %v1867_v55 = vadd.f32 %v395_v53, %v1824_v27  ;;  %v397_v56 = vpop.f32.mrb[6].mxu0  ;;  %v460_v57 = vpop.f32.mrb[6].mxu1  ;;  %v1877_v12 = vadd.f32 %v458_v54, %v1826_v28 }
 0x21d   :  { %1412 = vpow2.f32 %v1185_v31  ;;  %v1188_v58 = vmul.f32 -1.442695, %v1861_v51  ;;  %v1190_v59 = vmul.f32 -1.442695, %v1864_v52  ;;  %v1872_v60 = vadd.f32 %v397_v56, %v1820_v25  ;;  %v399_v61 = vpop.f32.mrb[7].mxu0  ;;  %v462_v62 = vpop.f32.mrb[7].mxu1 }
 0x21e   :  { %1414 = vpow2.f32 %v1187_v48  ;;  %v1189_v63 = vmul.f32 -1.442695, %v1867_v55  ;;  %v1191_v38 = vmul.f32 -1.442695, %v1877_v12  ;;  %v1881_v40 = vadd.f32 %v460_v57, %v1822_v26 }
 0x21f   :  { %1416 = vpow2.f32 %v1188_v58  ;;  %v1192_v0 = vmul.f32 -1.442695, %v1872_v60  ;;  %v1884_v43 = vadd.f32 %v399_v61, %v1824_v27  ;;  %v1887_v47 = vadd.f32 %v462_v62, %v1826_v28 }
 0x220   :  { %1418 = vpow2.f32 %v1190_v59  ;;  %v1194_v49 = vmul.f32 -1.442695, %v1881_v40 }
 0x221   :  { %v1401_v1 = vpop.eup %1400  ;;  %1420 = vpow2.f32 %v1189_v63  ;;  %v1193_v50 = vmul.f32 -1.442695, %v1884_v43  ;;  %v1195_v62 = vmul.f32 -1.442695, %v1887_v47 }
 0x222   :  { %v1403_v2 = vpop.eup %1402  ;;  %v547_v3 = vadd.f32 1.0, %v1401_v1  ;;  %v403_v4 = vpop.f32.mrb[8].mxu0  ;;  %1422 = vpow2.f32 %v1192_v0 }
 0x223   :  { %v466_v5 = vpop.f32.mrb[8].mxu1  ;;  %v1405_v6 = vpop.eup %1404  ;;  %v549_v7 = vadd.f32 1.0, %v1403_v2  ;;  %v1890_v31 = vadd.f32 %v403_v4, %v1820_v25 }
 0x224   :  { %v405_v8 = vpop.f32.mrb[9].mxu0  ;;  %v468_v9 = vpop.f32.mrb[9].mxu1  ;;  %1424 = vrcp.f32 %v547_v3  ;;  %v548_v11 = vadd.f32 1.0, %v1405_v6  ;;  %v1895_v53 = vadd.f32 %v466_v5, %v1822_v26 }
 0x225   :  { %v1407_v10 = vpop.eup %1406  ;;  %v407_v13 = vpop.f32.mrb[10].mxu0  ;;  %1426 = vrcp.f32 %v549_v7  ;;  %v1898_v54 = vadd.f32 %v405_v8, %v1824_v27  ;;  %v1901_v58 = vadd.f32 %v468_v9, %v1826_v28  ;;  %v1196_v1 = vmul.f32 -1.442695, %v1890_v31 }
 0x226   :  { %v470_v14 = vpop.f32.mrb[10].mxu1  ;;  %v1409_v15 = vpop.eup %1408  ;;  %v550_v18 = vadd.f32 1.0, %v1407_v10  ;;  %1428 = vrcp.f32 %v548_v11  ;;  %v1904_v59 = vadd.f32 %v407_v13, %v1820_v25  ;;  %v1198_v4 = vmul.f32 -1.442695, %v1895_v53 }
 0x227   :  { %v409_v19 = vpop.f32.mrb[11].mxu0  ;;  %v1411_v20 = vpop.eup %1410  ;;  %v551_v21 = vadd.f32 1.0, %v1409_v15  ;;  %v1908_v63 = vadd.f32 %v470_v14, %v1822_v26  ;;  %v1197_v25 = vmul.f32 -1.442695, %v1898_v54  ;;  %v1199_v6 = vmul.f32 -1.442695, %v1901_v58 }
 0x228   :  { %v472_v22 = vpop.f32.mrb[11].mxu1  ;;  %v1413_v29 = vpop.eup %1412  ;;  %1430 = vrcp.f32 %v550_v18  ;;  %v553_v30 = vadd.f32 1.0, %v1411_v20  ;;  %v1912_v2 = vadd.f32 %v409_v19, %v1824_v27  ;;  %v1200_v26 = vmul.f32 -1.442695, %v1904_v59 }
 0x229   :  { %v1415_v16 = vpop.eup %1414  ;;  %1432 = vrcp.f32 %v551_v21  ;;  %v552_v35 = vadd.f32 1.0, %v1413_v29  ;;  %v1919_v7 = vadd.f32 %v472_v22, %v1826_v28  ;;  %v1202_v10 = vmul.f32 -1.442695, %v1908_v63 }
 0x22a   :  { %v1417_v23 = vpop.eup %1416  ;;  %1434 = vrcp.f32 %v553_v30  ;;  %v554_v39 = vadd.f32 1.0, %v1415_v16  ;;  %v1201_v15 = vmul.f32 -1.442695, %v1912_v2 }
 0x22b   :  { %v1419_v17 = vpop.eup %1418  ;;  %1436 = vrcp.f32 %v552_v35  ;;  %v555_v44 = vadd.f32 1.0, %v1417_v23 }
 0x22c   :  { %1438 = vrcp.f32 %v554_v39  ;;  %v557_v24 = vadd.f32 1.0, %v1419_v17  ;;  %v1421_v32 = vpop.eup %1420 }
 0x22d   :  { %1440 = vpow2.f32 %v1191_v38  ;;  %v1423_v48 = vpop.eup %1422  ;;  %v556_v30 = vadd.f32 1.0, %v1421_v32 }
 0x22e   :  { %v1425_v56 = vpop.eup %1424  ;;  %1442 = vrcp.f32 %v555_v44  ;;  %v559_v57 = vadd.f32 1.0, %v1423_v48 }
 0x22f   :  { %v1427_v61 = vpop.eup %1426  ;;  %1444 = vrcp.f32 %v557_v24  ;;  %v619_v9 = vmul.f32 %v1425_v56, %v1829_v33 }
 0x230   :  { %v1429_v0 = vpop.eup %1428  ;;  %1446 = vrcp.f32 %v559_v57  ;;  %v621_v13 = vmul.f32 %v1427_v61, %v1832_v34  ;;  %v1203_v34 = vmul.f32 -1.442695, %v1919_v7 }
 0x231   :  { %1448 = vpow2.f32 %v1194_v49  ;;  %v620_v28 = vmul.f32 %v1429_v0, %v1835_v36 }
 0x232   :  { %v1431_v3 = vpop.eup %1430  ;;  %1450 = vpow2.f32 %v1193_v50 }
 0x233   :  { %v1433_v5 = vpop.eup %1432  ;;  %1452 = vpow2.f32 %v1195_v62 }
 0x234   :  { %v1435_v8 = vpop.eup %1434  ;;  %v623_v27 = vmul.f32 %v1433_v5, %v1843_v41  ;;  %1454 = vpow2.f32 %v1196_v1  ;;  %v622_v41 = vmul.f32 %v1431_v3, %v1838_v37 }
 0x235   :  { %v1437_v11 = vpop.eup %1436  ;;  %v625_v14 = vmul.f32 %v1435_v8, %v1846_v42  ;;  %1456 = vpow2.f32 %v1198_v4 }
 0x236   :  { %v1439_v18 = vpop.eup %1438  ;;  %v643_v19 = vpack.c.bf16 %v623_v27, %v619_v9  ;;  %v624_v20 = vmul.f32 %v1437_v11, %v1851_v45  ;;  %1458 = vpow2.f32 %v1197_v25 }
 0x237   :  { %v1441_v33 = vpop.eup %1440  ;;  %v645_v21 = vpack.c.bf16 %v625_v14, %v621_v13  ;;  %v626_v22 = vmul.f32 %v1439_v18, %v1854_v46  ;;  %1460 = vpow2.f32 %v1199_v6 }
 0x238   :  { %v644_v42 = vpack.c.bf16 %v624_v20, %v620_v28  ;;  %v1443_v29 = vpop.eup %1442  ;;  %1462 = vpow2.f32 %v1200_v26  ;;  %v558_v35 = vadd.f32 1.0, %v1441_v33 }
 0x239   :  { %v646_v16 = vpack.c.bf16 %v626_v22, %v622_v41  ;;  %v1445_v36 = vpop.eup %1444  ;;  %1464 = vpow2.f32 %v1202_v10  ;;  %v627_v46 = vmul.f32 %v1443_v29, %v1861_v51 }
 0x23a   :  { %950 = vmatprep.mubr.bf16.mxu0 %v644_v42  ;;  %v1447_v45 = vpop.eup %1446  ;;  %1466 = vpow2.f32 %v1201_v15  ;;  %v629_v10 = vmul.f32 %v1445_v36, %v1864_v52 }
 0x23b   :  { %1007 = vmatprep.mubr.bf16.mxu1 %v646_v16  ;;  %951 = vmatmul.mubr.bf16.vlgmr.msra.gmra.mrb[12].mxu0 %v643_v19  ;;  %v1449_v37 = vpop.eup %1448  ;;  %v631_v38 = vmul.f32 %v1447_v45, %v1872_v60  ;;  %1468 = vpow2.f32 %v1203_v34 }
 0x23c   :  { %1008 = vmatmul.mubr.bf16.vlgmr.msra.gmra.mrb[12].mxu1 %v645_v21  ;;  %v1451_v23 = vpop.eup %1450  ;;  %1470 = vrcp.f32 %v556_v30  ;;  %v561_v39 = vadd.f32 1.0, %v1449_v37 }
 0x23d   :  { %v1453_v17 = vpop.eup %1452  ;;  %1472 = vrcp.f32 %v558_v35  ;;  %v560_v44 = vadd.f32 1.0, %v1451_v23  ;;  %v647_v24 = vpack.c.bf16 %v631_v38, %v627_v46 }
 0x23e   :  { %v1455_v32 = vpop.eup %1454  ;;  %1474 = vrcp.f32 %v561_v39  ;;  %v562_v48 = vadd.f32 1.0, %v1453_v17 }
 0x23f   :  { %v1457_v49 = vpop.eup %1456  ;;  %1476 = vrcp.f32 %v560_v44  ;;  %v563_v50 = vadd.f32 1.0, %v1455_v32 }
 0x240   :  { %v1459_v56 = vpop.eup %1458  ;;  %1478 = vrcp.f32 %v562_v48  ;;  %v565_v51 = vadd.f32 1.0, %v1457_v49 }
 0x241   :  { %v1461_v57 = vpop.eup %1460  ;;  %1480 = vrcp.f32 %v563_v50  ;;  %v564_v60 = vadd.f32 1.0, %v1459_v56 }
 0x242   :  { %v1463_v61 = vpop.eup %1462  ;;  %1482 = vrcp.f32 %v565_v51  ;;  %v566_v62 = vadd.f32 1.0, %v1461_v57  ;;  %v1508_v57 = vld [vmem:[%s1993_s0] sm:$0xff] }
 0x243   :  { %v1465_v0 = vpop.eup %1464  ;;  %1484 = vrcp.f32 %v564_v60  ;;  %v567_v1 = vadd.f32 1.0, %v1463_v61  ;;  %v1509_v61 = vld [vmem:[%s1993_s0 + $0x8] sm:$0xff] }
 0x244   :  { %v1467_v3 = vpop.eup %1466  ;;  %1486 = vrcp.f32 %v566_v62  ;;  %v569_v4 = vadd.f32 1.0, %v1465_v0 }
 0x245   :  { %v1469_v25 = vpop.eup %1468  ;;  %1488 = vrcp.f32 %v567_v1  ;;  %v568_v5 = vadd.f32 1.0, %v1467_v3 }
 0x246   :  { %v1471_v6 = vpop.eup %1470  ;;  %1490 = vrcp.f32 %v569_v4  ;;  %v570_v26 = vadd.f32 1.0, %v1469_v25 }
 0x247   :  { %v1473_v8 = vpop.eup %1472  ;;  %1492 = vrcp.f32 %v568_v5  ;;  %v628_v14 = vmul.f32 %v1471_v6, %v1867_v55 }
 0x248   :  { %v1475_v9 = vpop.eup %1474  ;;  %1494 = vrcp.f32 %v570_v26  ;;  %v630_v28 = vmul.f32 %v1473_v8, %v1877_v12 }
 0x249   :  { %v1477_v27 = vpop.eup %1476  ;;  %v633_v11 = vmul.f32 %v1475_v9, %v1881_v40 }
 0x24a   :  { %v1479_v13 = vpop.eup %1478  ;;  %v632_v15 = vmul.f32 %v1477_v27, %v1884_v43 }
 0x24b   :  { %v1481_v18 = vpop.eup %1480  ;;  %v634_v19 = vmul.f32 %v1479_v13, %v1887_v47  ;;  %v649_v20 = vpack.c.bf16 %v633_v11, %v629_v10 }
 0x24c   :  { %v1483_v33 = vpop.eup %1482  ;;  %v648_v41 = vpack.c.bf16 %v632_v15, %v628_v14  ;;  %v635_v55 = vmul.f32 %v1481_v18, %v1890_v31 }
 0x24d   :  { %v1485_v21 = vpop.eup %1484  ;;  %v650_v22 = vpack.c.bf16 %v634_v19, %v630_v28  ;;  %v637_v12 = vmul.f32 %v1483_v33, %v1895_v53 }
 0x24e   :  { %v1487_v34 = vpop.eup %1486  ;;  %958 = vmatprep.mubr.bf16.mxu0 %v648_v41  ;;  %v636_v30 = vmul.f32 %v1485_v21, %v1898_v54  ;;  %v1204_v54 = vld [vmem:[%s1999_s6] ss:$0 sm:$0xff] }
 0x24f   :  { %v1489_v52 = vpop.eup %1488  ;;  %1015 = vmatprep.mubr.bf16.mxu1 %v650_v22  ;;  %959 = vmatmul.mubr.bf16.gmra.mrb[16].mxu0 %v647_v24  ;;  %v638_v35 = vmul.f32 %v1487_v34, %v1901_v58  ;;  %v1510_v34 = vld [vmem:[%s1993_s0 + $0x10] sm:$0xff] }
 0x250   :  { %v1491_v40 = vpop.eup %1490  ;;  %v639_v43 = vmul.f32 %v1489_v52, %v1904_v59  ;;  %1016 = vmatmul.mubr.bf16.gmra.mrb[16].mxu1 %v649_v20 }
 0x251   :  { %v1493_v42 = vpop.eup %1492  ;;  %v641_v47 = vmul.f32 %v1491_v40, %v1908_v63 }
 0x252   :  { %v1495_v29 = vpop.eup %1494  ;;  %v640_v16 = vmul.f32 %v1493_v42, %v1912_v2  ;;  %v651_v36 = vpack.c.bf16 %v639_v43, %v635_v55 }
 0x253   :  { %v642_v45 = vmul.f32 %v1495_v29, %v1919_v7  ;;  %v653_v37 = vpack.c.bf16 %v641_v47, %v637_v12  ;;  %v1511_v29 = vld [vmem:[%s1993_s0 + $0x18] sm:$0xff] }
 0x254   :  { %v652_v31 = vpack.c.bf16 %v640_v16, %v636_v30 }
 0x255   :  { %v654_v46 = vpack.c.bf16 %v642_v45, %v638_v35 }
 0x256   :  { %966 = vmatprep.mubr.bf16.mxu0 %v652_v31 }
 0x257   :  { %1023 = vmatprep.mubr.bf16.mxu1 %v654_v46  ;;  %967 = vmatmul.mubr.bf16.gmra.mrb[20].mxu0 %v651_v36  ;;  %v1512_v46 = vld [vmem:[%s1993_s0 + $0x20] sm:$0xff] }
 0x258   :  { %1024 = vmatmul.mubr.bf16.gmra.mrb[20].mxu1 %v653_v37 }
 0x30e   :  { %v1255_v53 = vpop.f32.mrb[12].mxu0 }
 0x30f   :  { %v1289_v59 = vpop.f32.mrb[12].mxu1  ;;  %v1256_v63 = vpop.f32.mrb[13].mxu0 }
 0x310   :  { %v1257_v2 = vadd.f32 %v1256_v63, %v1255_v53  ;;  %v1290_v38 = vpop.f32.mrb[13].mxu1  ;;  %v1258_v23 = vpop.f32.mrb[14].mxu0 }
 0x311   :  { %v1291_v58 = vadd.f32 %v1290_v38, %v1289_v59  ;;  %v1292_v39 = vpop.f32.mrb[14].mxu1  ;;  %v1259_v7 = vpop.f32.mrb[15].mxu0  ;;  %v1513_v59 = vld [vmem:[%s1993_s0 + $0x28] sm:$0xff] }
 0x312   :  { %v953_v17 = vadd.f32 %v1257_v2, %v1204_v54  ;;  %v1260_v44 = vadd.f32 %v1259_v7, %v1258_v23  ;;  %v1293_v24 = vpop.f32.mrb[15].mxu1 }
 0x313   :  { %v1294_v32 = vadd.f32 %v1293_v24, %v1292_v39 }
 0x314   :  { %v1010_v48 = vadd.f32 %v1291_v58, %v953_v17  ;;  %v956_v49 = vadd.f32 %v1260_v44, %v1204_v54 }
 0x316   :  { %v1032_v50 = vmul.f32 0.5, %v1010_v48  ;;  %v1013_v56 = vadd.f32 %v1294_v32, %v956_v49 }
 0x318   :  { %v1033_v51 = vmul.f32 0.5, %v1013_v56  ;;  %v1038_v60 = vadd.f32 %v1508_v57, %v1032_v50 }
 0x31a   :  { %1044 = vadd.xlane.f32.xlu0 %v1038_v60  ;;  %v1039_v62 = vadd.f32 %v1509_v61, %v1033_v51 }
 0x31c   :  { %1046 = vadd.xlane.f32.xlu1 %v1039_v62 }
 0x322   :  { %v1261_v0 = vpop.f32.mrb[16].mxu0 }
 0x323   :  { %v1295_v1 = vpop.f32.mrb[16].mxu1  ;;  %v1262_v3 = vpop.f32.mrb[17].mxu0 }
 0x324   :  { %v1263_v4 = vadd.f32 %v1262_v3, %v1261_v0  ;;  %v1296_v25 = vpop.f32.mrb[17].mxu1  ;;  %v1264_v5 = vpop.f32.mrb[18].mxu0 }
 0x325   :  { %v1297_v6 = vadd.f32 %v1296_v25, %v1295_v1  ;;  %v1298_v26 = vpop.f32.mrb[18].mxu1  ;;  %v1265_v8 = vpop.f32.mrb[19].mxu0 }
 0x326   :  { %v961_v9 = vadd.f32 %v1263_v4, %v1204_v54  ;;  %v1266_v27 = vadd.f32 %v1265_v8, %v1264_v5  ;;  %v1299_v10 = vpop.f32.mrb[19].mxu1 }
 0x327   :  { %v1300_v11 = vadd.f32 %v1299_v10, %v1298_v26  ;;  %v1237_v10 = vld [vmem:[%s2000_s7] ss:$0 sm:$0xff] }
 0x328   :  { %v1018_v13 = vadd.f32 %v1297_v6, %v961_v9  ;;  %v964_v14 = vadd.f32 %v1266_v27, %v1204_v54 }
 0x32a   :  { %v1034_v15 = vmul.f32 0.5, %v1018_v13  ;;  %v1021_v18 = vadd.f32 %v1300_v11, %v964_v14  ;;  %v1267_v28 = vpop.f32.mrb[20].mxu0  ;;  %v1238_v14 = vld [vmem:[%s2001_s8] ss:$0 sm:$0xff] }
 0x32b   :  { %v1301_v19 = vpop.f32.mrb[20].mxu1  ;;  %v1268_v20 = vpop.f32.mrb[21].mxu0 }
 0x32c   :  { %v1035_v33 = vmul.f32 0.5, %v1021_v18  ;;  %v1269_v41 = vadd.f32 %v1268_v20, %v1267_v28  ;;  %v1302_v21 = vpop.f32.mrb[21].mxu1  ;;  %v1270_v22 = vpop.f32.mrb[22].mxu0  ;;  %v1040_v52 = vadd.f32 %v1510_v34, %v1034_v15 }
 0x32d   :  { %v1303_v40 = vadd.f32 %v1302_v21, %v1301_v19  ;;  %v1304_v55 = vpop.f32.mrb[22].mxu1  ;;  %v1271_v43 = vpop.f32.mrb[23].mxu0 }
 0x32e   :  { %v969_v42 = vadd.f32 %v1269_v41, %v1204_v54  ;;  %v1272_v12 = vadd.f32 %v1271_v43, %v1270_v22  ;;  %v1305_v47 = vpop.f32.mrb[23].mxu1  ;;  %1048 = vadd.xlane.f32.xlu0 %v1040_v52  ;;  %v1041_v30 = vadd.f32 %v1511_v29, %v1035_v33 }
 0x32f   :  { %v1306_v16 = vadd.f32 %v1305_v47, %v1304_v55 }
 0x330   :  { %v1026_v36 = vadd.f32 %v1303_v40, %v969_v42  ;;  %v972_v35 = vadd.f32 %v1272_v12, %v1204_v54  ;;  %1050 = vadd.xlane.f32.xlu1 %v1041_v30 }
 0x332   :  { %v1036_v45 = vmul.f32 0.5, %v1026_v36  ;;  %v1029_v37 = vadd.f32 %v1306_v16, %v972_v35 }
 0x334   :  { %v1037_v31 = vmul.f32 0.5, %v1029_v37  ;;  %v1042_v53 = vadd.f32 %v1512_v46, %v1036_v45 }
 0x336   :  { %1052 = vadd.xlane.f32.xlu0 %v1042_v53  ;;  %v1043_v63 = vadd.f32 %v1513_v59, %v1037_v31 }
 0x338   :  { %1054 = vadd.xlane.f32.xlu1 %v1043_v63 }
 0x3a7   :  { %v1045_v2 = vpop.xlane.xlu0 %1044 }
 0x3a8   :  { %v1056_v38 = vmul.f32 0.0078125, %v1045_v2 }
 0x3a9   :  { %v1047_v23 = vpop.xlane.xlu1 %1046 }
 0x3aa   :  { %v1062_v54 = vsub.f32 %v1038_v60, %v1056_v38  ;;  %v1057_v58 = vmul.f32 0.0078125, %v1047_v23 }
 0x3ac   :  { %v1063_v39 = vsub.f32 %v1039_v62, %v1057_v58  ;;  %v1068_v7 = vmul.f32 %v1062_v54, %v1062_v54 }
 0x3ae   :  { %1074 = vadd.xlane.f32.xlu0 %v1068_v7  ;;  %v1069_v17 = vmul.f32 %v1063_v39, %v1063_v39 }
 0x3b0   :  { %1076 = vadd.xlane.f32.xlu1 %v1069_v17 }
 0x3bb   :  { %v1049_v44 = vpop.xlane.xlu0 %1048 }
 0x3bc   :  { %v1058_v24 = vmul.f32 0.0078125, %v1049_v44 }
 0x3bd   :  { %v1051_v32 = vpop.xlane.xlu1 %1050 }
 0x3be   :  { %v1064_v48 = vsub.f32 %v1040_v52, %v1058_v24  ;;  %v1059_v49 = vmul.f32 0.0078125, %v1051_v32 }
 0x3c0   :  { %v1065_v50 = vsub.f32 %v1041_v30, %v1059_v49  ;;  %v1070_v56 = vmul.f32 %v1064_v48, %v1064_v48 }
 0x3c2   :  { %1078 = vadd.xlane.f32.xlu0 %v1070_v56  ;;  %v1071_v51 = vmul.f32 %v1065_v50, %v1065_v50 }
 0x3c3   :  { %v1053_v57 = vpop.xlane.xlu0 %1052 }
 0x3c4   :  { %v1060_v61 = vmul.f32 0.0078125, %v1053_v57  ;;  %1080 = vadd.xlane.f32.xlu1 %v1071_v51 }
 0x3c5   :  { %v1055_v0 = vpop.xlane.xlu1 %1054 }
 0x3c6   :  { %v1066_v60 = vsub.f32 %v1042_v53, %v1060_v61  ;;  %v1061_v1 = vmul.f32 0.0078125, %v1055_v0 }
 0x3c8   :  { %v1067_v62 = vsub.f32 %v1043_v63, %v1061_v1  ;;  %v1072_v3 = vmul.f32 %v1066_v60, %v1066_v60 }
 0x3ca   :  { %1082 = vadd.xlane.f32.xlu0 %v1072_v3  ;;  %v1073_v4 = vmul.f32 %v1067_v62, %v1067_v62 }
 0x3cc   :  { %1084 = vadd.xlane.f32.xlu1 %v1073_v4 }
 0x43b   :  { %v1075_v25 = vpop.xlane.xlu0 %1074 }
 0x43c   :  { %v1086_v5 = vmul.f32 0.0078125, %v1075_v25 }
 0x43d   :  { %v1077_v6 = vpop.xlane.xlu1 %1076 }
 0x43e   :  { %v1092_v26 = vadd.f32 1e-05, %v1086_v5  ;;  %v1087_v8 = vmul.f32 0.0078125, %v1077_v6 }
 0x440   :  { %1496 = vrsqrt.f32 %v1092_v26  ;;  %v1093_v9 = vadd.f32 1e-05, %v1087_v8 }
 0x442   :  { %1498 = vrsqrt.f32 %v1093_v9 }
 0x44a   :  { %v1497_v27 = vpop.eup %1496 }
 0x44b   :  { %v1104_v11 = vmul.f32 %v1497_v27, %v1062_v54 }
 0x44c   :  { %v1499_v13 = vpop.eup %1498 }
 0x44d   :  { %v1117_v15 = vmul.f32 %v1237_v10, %v1104_v11  ;;  %v1105_v18 = vmul.f32 %v1499_v13, %v1063_v39 }
 0x44f   :  { %v1130_v28 = vadd.f32 %v1238_v14, %v1117_v15  ;;  %v1118_v19 = vmul.f32 %v1237_v10, %v1105_v18  ;;  %v1079_v20 = vpop.xlane.xlu0 %1078 }
 0x450   :  { %v1088_v41 = vmul.f32 0.0078125, %v1079_v20 }
 0x451   :  { %1136 = vst [vmem:[%s2002_s9] sm:$0xff] %v1130_v28  ;;  %v1131_v33 = vadd.f32 %v1238_v14, %v1118_v19  ;;  %v1081_v21 = vpop.xlane.xlu1 %1080 }
 0x452   :  { %v1094_v22 = vadd.f32 1e-05, %v1088_v41  ;;  %v1089_v34 = vmul.f32 0.0078125, %v1081_v21 }
 0x453   :  { %1137 = vst [vmem:[%s2002_s9 + $0x8] sm:$0xff] %v1131_v33 }
 0x454   :  { %1500 = vrsqrt.f32 %v1094_v22  ;;  %v1095_v52 = vadd.f32 1e-05, %v1089_v34 }
 0x456   :  { %1502 = vrsqrt.f32 %v1095_v52 }
 0x457   :  { %v1083_v40 = vpop.xlane.xlu0 %1082 }
 0x458   :  { %v1090_v55 = vmul.f32 0.0078125, %v1083_v40 }
 0x459   :  { %v1085_v43 = vpop.xlane.xlu1 %1084 }
 0x45a   :  { %v1096_v42 = vadd.f32 1e-05, %v1090_v55  ;;  %v1091_v12 = vmul.f32 0.0078125, %v1085_v43 }
 0x45c   :  { %1504 = vrsqrt.f32 %v1096_v42  ;;  %v1097_v47 = vadd.f32 1e-05, %v1091_v12 }
 0x45e   :  { %v1501_v29 = vpop.eup %1500  ;;  %1506 = vrsqrt.f32 %v1097_v47 }
 0x45f   :  { %v1106_v30 = vmul.f32 %v1501_v29, %v1064_v48 }
 0x460   :  { %v1503_v16 = vpop.eup %1502 }
 0x461   :  { %v1119_v36 = vmul.f32 %v1237_v10, %v1106_v30  ;;  %v1107_v35 = vmul.f32 %v1503_v16, %v1065_v50 }
 0x463   :  { %v1132_v45 = vadd.f32 %v1238_v14, %v1119_v36  ;;  %v1120_v37 = vmul.f32 %v1237_v10, %v1107_v35 }
 0x465   :  { %1138 = vst [vmem:[%s2002_s9 + $0x10] sm:$0xff] %v1132_v45  ;;  %v1133_v31 = vadd.f32 %v1238_v14, %v1120_v37 }
 0x466   :  { %v1505_v46 = vpop.eup %1504 }
 0x467   :  { %1139 = vst [vmem:[%s2002_s9 + $0x18] sm:$0xff] %v1133_v31  ;;  %v1108_v53 = vmul.f32 %v1505_v46, %v1066_v60 }
 0x468   :  { %v1507_v59 = vpop.eup %1506 }
 0x469   :  { %v1121_v63 = vmul.f32 %v1237_v10, %v1108_v53  ;;  %v1109_v2 = vmul.f32 %v1507_v59, %v1067_v62 }
 0x46b   :  { %v1134_v38 = vadd.f32 %v1238_v14, %v1121_v63  ;;  %v1122_v23 = vmul.f32 %v1237_v10, %v1109_v2 }
 0x46d   :  { %1140 = vst [vmem:[%s2002_s9 + $0x20] sm:$0xff] %v1134_v38  ;;  %v1135_v54 = vadd.f32 %v1238_v14, %v1122_v23 }
 0x46f   :  { %1141 = vst [vmem:[%s2002_s9 + $0x28] sm:$0xff] %v1135_v54 }

// kernel: _forward_impl.21
= control target key start
LH: loop header
LB: loop body
LE: loop exit
PB: predicated region body
PF: predicated region fallthrough
CT: control target
= control target key end

     0   :  { %v819_v3 = vmov 0   ;;  %s1297_s1 = inlined_call_operand.vmem [shape: bf16[128,1024], index: 1, kind: input, shape index: {}]   ;;  %s1298_s0 = inlined_call_operand.vmem [shape: f32[48,128], index: 0, kind: input, shape index: {}]   ;;  %s1299_s2 = inlined_call_operand.vmem [shape: f32[1,1024], index: 2, kind: input, shape index: {}]   ;;  %s1300_s3 = inlined_call_operand.vmem [shape: f32[48,1024], index: 3, kind: output, shape index: {}]  }
   0x1   :  { %v24_v0 = vld [vmem:[%s1297_s1] sm:$0xff]  ;;  %v25_v2 = vld [vmem:[%s1297_s1 + $0x8] sm:$0xff]  ;;  %482 = vmatprep.mubr.bf16.mxu0 %v819_v3  ;;  %545 = vmatprep.mubr.bf16.mxu1 %v819_v3  ;;  %v26_v63 = vld [vmem:[%s1297_s1 + $0x10] sm:$0xff] }
   0x2   :  { %v28_v1 = vld [vmem:[%s1297_s1 + $0x20] sm:$0xff]  ;;  %v29_v5 = vld [vmem:[%s1297_s1 + $0x28] sm:$0xff] }
   0x3   :  { %v755_v4 = vcombine.high %v24_v0, %v28_v1  ;;  %v754_v6 = vcombine.low %v24_v0, %v28_v1  ;;  %v32_v7 = vld [vmem:[%s1297_s1 + $0x40] sm:$0xff]  ;;  %v757_v9 = vcombine.high %v25_v2, %v29_v5  ;;  %v756_v10 = vcombine.low %v25_v2, %v29_v5  ;;  %v33_v12 = vld [vmem:[%s1297_s1 + $0x48] sm:$0xff]  ;;  %v30_v0 = vld [vmem:[%s1297_s1 + $0x30] sm:$0xff] }
   0x4   :  { %v36_v8 = vld [vmem:[%s1297_s1 + $0x60] sm:$0xff]  ;;  %v37_v13 = vld [vmem:[%s1297_s1 + $0x68] sm:$0xff]  ;;  %v27_v1 = vld [vmem:[%s1297_s1 + $0x18] sm:$0xff] }
   0x5   :  { %v763_v11 = vcombine.high %v32_v7, %v36_v8  ;;  %v40_v14 = vld [vmem:[%s1297_s1 + $0x80] sm:$0xff]  ;;  %450 = vmatprep.subr.bf16.mxu0 %v755_v4  ;;  %v765_v15 = vcombine.high %v33_v12, %v37_v13  ;;  %v41_v17 = vld [vmem:[%s1297_s1 + $0x88] sm:$0xff]  ;;  %513 = vmatprep.subr.bf16.mxu1 %v757_v9  ;;  %v762_v19 = vcombine.low %v32_v7, %v36_v8  ;;  %v31_v2 = vld [vmem:[%s1297_s1 + $0x38] sm:$0xff] }
   0x6   :  { %v44_v16 = vld [vmem:[%s1297_s1 + $0xa0] sm:$0xff]  ;;  %v45_v18 = vld [vmem:[%s1297_s1 + $0xa8] sm:$0xff]  ;;  %451 = vmatpush1.bf16.msra.mxu0 %v754_v6  ;;  %514 = vmatpush1.bf16.msra.mxu1 %v756_v10  ;;  %v764_v20 = vcombine.low %v33_v12, %v37_v13  ;;  %v759_v8 = vcombine.high %v26_v63, %v30_v0  ;;  %v761_v9 = vcombine.high %v27_v1, %v31_v2  ;;  %v34_v10 = vld [vmem:[%s1297_s1 + $0x50] sm:$0xff] }
   0x7   :  { %452 = vmatprep.subr.bf16.mxu0 %v763_v11  ;;  %v771_v21 = vcombine.high %v40_v14, %v44_v16  ;;  %515 = vmatprep.subr.bf16.mxu1 %v765_v15  ;;  %v773_v22 = vcombine.high %v41_v17, %v45_v18  ;;  %v48_v23 = vld [vmem:[%s1297_s1 + $0xc0] sm:$0xff]  ;;  %v49_v25 = vld [vmem:[%s1297_s1 + $0xc8] sm:$0xff]  ;;  %v770_v27 = vcombine.low %v40_v14, %v44_v16  ;;  %v38_v11 = vld [vmem:[%s1297_s1 + $0x70] sm:$0xff] }
   0x8   :  { %v52_v24 = vld [vmem:[%s1297_s1 + $0xe0] sm:$0xff]  ;;  %v53_v26 = vld [vmem:[%s1297_s1 + $0xe8] sm:$0xff]  ;;  %v772_v28 = vcombine.low %v41_v17, %v45_v18  ;;  %v35_v13 = vld [vmem:[%s1297_s1 + $0x58] sm:$0xff]  ;;  %v758_v15 = vcombine.low %v26_v63, %v30_v0  ;;  %v760_v16 = vcombine.low %v27_v1, %v31_v2  ;;  %v767_v17 = vcombine.high %v34_v10, %v38_v11 }
   0x9   :  { %v779_v29 = vcombine.high %v48_v23, %v52_v24  ;;  %v781_v30 = vcombine.high %v49_v25, %v53_v26  ;;  %v56_v31 = vld [vmem:[%s1297_s1 + $0x100] sm:$0xff]  ;;  %v57_v33 = vld [vmem:[%s1297_s1 + $0x108] sm:$0xff]  ;;  %v778_v35 = vcombine.low %v48_v23, %v52_v24  ;;  %v780_v36 = vcombine.low %v49_v25, %v53_v26  ;;  %v39_v14 = vld [vmem:[%s1297_s1 + $0x78] sm:$0xff] }
   0xa   :  { %453 = vmatpush1.bf16.msra.mxu0 %v762_v19  ;;  %516 = vmatpush1.bf16.msra.mxu1 %v764_v20  ;;  %v60_v32 = vld [vmem:[%s1297_s1 + $0x120] sm:$0xff]  ;;  %v61_v34 = vld [vmem:[%s1297_s1 + $0x128] sm:$0xff]  ;;  %v769_v18 = vcombine.high %v35_v13, %v39_v14  ;;  %v42_v19 = vld [vmem:[%s1297_s1 + $0x90] sm:$0xff]  ;;  %v766_v23 = vcombine.low %v34_v10, %v38_v11  ;;  %v768_v26 = vcombine.low %v35_v13, %v39_v14  ;;  %v90_v13 = vlaneseq }
   0xb   :  { %454 = vmatprep.subr.bf16.mxu0 %v771_v21  ;;  %517 = vmatprep.subr.bf16.mxu1 %v773_v22  ;;  %v787_v37 = vcombine.high %v56_v31, %v60_v32  ;;  %v789_v38 = vcombine.high %v57_v33, %v61_v34  ;;  %v64_v39 = vld [vmem:[%s1297_s1 + $0x140] sm:$0xff]  ;;  %v65_v41 = vld [vmem:[%s1297_s1 + $0x148] sm:$0xff]  ;;  %v786_v43 = vcombine.low %v56_v31, %v60_v32  ;;  %v46_v20 = vld [vmem:[%s1297_s1 + $0xb0] sm:$0xff] }
   0xc   :  { %v68_v40 = vld [vmem:[%s1297_s1 + $0x160] sm:$0xff]  ;;  %v69_v42 = vld [vmem:[%s1297_s1 + $0x168] sm:$0xff]  ;;  %v788_v44 = vcombine.low %v57_v33, %v61_v34  ;;  %v43_v21 = vld [vmem:[%s1297_s1 + $0x98] sm:$0xff]  ;;  %v774_v34 = vcombine.low %v42_v19, %v46_v20  ;;  %v1074_v14 = vshrl.u32 %v90_v13, 7 }
   0xd   :  { %v795_v45 = vcombine.high %v64_v39, %v68_v40  ;;  %v797_v46 = vcombine.high %v65_v41, %v69_v42  ;;  %v72_v47 = vld [vmem:[%s1297_s1 + $0x180] sm:$0xff]  ;;  %v73_v49 = vld [vmem:[%s1297_s1 + $0x188] sm:$0xff]  ;;  %v794_v51 = vcombine.low %v64_v39, %v68_v40  ;;  %v796_v52 = vcombine.low %v65_v41, %v69_v42  ;;  %v47_v22 = vld [vmem:[%s1297_s1 + $0xb8] sm:$0xff] }
   0xe   :  { %455 = vmatpush1.bf16.msra.mxu0 %v770_v27  ;;  %518 = vmatpush1.bf16.msra.mxu1 %v772_v28  ;;  %v76_v48 = vld [vmem:[%s1297_s1 + $0x1a0] sm:$0xff]  ;;  %v77_v50 = vld [vmem:[%s1297_s1 + $0x1a8] sm:$0xff]  ;;  %v17_v24 = vld [vmem:[%s1298_s0 + $0x10] sm:$0xff]  ;;  %v775_v27 = vcombine.high %v42_v19, %v46_v20  ;;  %v777_v28 = vcombine.high %v43_v21, %v47_v22 }
   0xf   :  { %456 = vmatprep.subr.bf16.mxu0 %v779_v29  ;;  %519 = vmatprep.subr.bf16.mxu1 %v781_v30  ;;  %v803_v53 = vcombine.high %v72_v47, %v76_v48  ;;  %v805_v54 = vcombine.high %v73_v49, %v77_v50  ;;  %v80_v55 = vld [vmem:[%s1297_s1 + $0x1c0] sm:$0xff]  ;;  %v81_v57 = vld [vmem:[%s1297_s1 + $0x1c8] sm:$0xff]  ;;  %v802_v59 = vcombine.low %v72_v47, %v76_v48  ;;  %v18_v25 = vld [vmem:[%s1298_s0 + $0x18] sm:$0xff] }
  0x10   :  { %v84_v56 = vld [vmem:[%s1297_s1 + $0x1e0] sm:$0xff]  ;;  %v85_v58 = vld [vmem:[%s1297_s1 + $0x1e8] sm:$0xff]  ;;  %v804_v60 = vcombine.low %v73_v49, %v77_v50  ;;  %v50_v29 = vld [vmem:[%s1297_s1 + $0xd0] sm:$0xff]  ;;  %v1004_v33 = vpack.c.bf16 %v18_v25, %v17_v24 }
  0x11   :  { %v811_v61 = vcombine.high %v80_v55, %v84_v56  ;;  %v813_v62 = vcombine.high %v81_v57, %v85_v58  ;;  %v810_v4 = vcombine.low %v80_v55, %v84_v56  ;;  %v15_v5 = vld [vmem:[%s1298_s0] sm:$0xff]  ;;  %v16_v6 = vld [vmem:[%s1298_s0 + $0x8] sm:$0xff]  ;;  %v812_v7 = vcombine.low %v81_v57, %v85_v58  ;;  %v54_v30 = vld [vmem:[%s1297_s1 + $0xf0] sm:$0xff] }
  0x12   :  { %457 = vmatpush1.bf16.msra.mxu0 %v778_v35  ;;  %520 = vmatpush1.bf16.msra.mxu1 %v780_v36  ;;  %v962_v12 = vpack.c.bf16 %v16_v6, %v15_v5  ;;  %v51_v31 = vld [vmem:[%s1297_s1 + $0xd8] sm:$0xff]  ;;  %v776_v35 = vcombine.low %v43_v21, %v47_v22  ;;  %v783_v36 = vcombine.high %v50_v29, %v54_v30  ;;  %v62_v39 = vld [vmem:[%s1297_s1 + $0x130] sm:$0xff] }
  0x13   :  { %458 = vmatprep.subr.bf16.mxu0 %v787_v37  ;;  %521 = vmatprep.subr.bf16.mxu1 %v789_v38  ;;  %v55_v32 = vld [vmem:[%s1297_s1 + $0xf8] sm:$0xff]  ;;  %v58_v38 = vld [vmem:[%s1297_s1 + $0x110] sm:$0xff]  ;;  %v782_v42 = vcombine.low %v50_v29, %v54_v30 }
  0x14   :  { %v785_v37 = vcombine.high %v51_v31, %v55_v32  ;;  %v59_v40 = vld [vmem:[%s1297_s1 + $0x118] sm:$0xff]  ;;  %v66_v48 = vld [vmem:[%s1297_s1 + $0x150] sm:$0xff] }
  0x15   :  { %v63_v41 = vld [vmem:[%s1297_s1 + $0x138] sm:$0xff]  ;;  %v70_v49 = vld [vmem:[%s1297_s1 + $0x170] sm:$0xff] }
  0x16   :  { %459 = vmatpush1.bf16.msra.mxu0 %v786_v43  ;;  %522 = vmatpush1.bf16.msra.mxu1 %v788_v44  ;;  %v19_v43 = vld [vmem:[%s1298_s0 + $0x20] sm:$0xff]  ;;  %v20_v44 = vld [vmem:[%s1298_s0 + $0x28] sm:$0xff]  ;;  %v793_v47 = vcombine.high %v59_v40, %v63_v41  ;;  %v67_v50 = vld [vmem:[%s1297_s1 + $0x158] sm:$0xff]  ;;  %v799_v55 = vcombine.high %v66_v48, %v70_v49 }
  0x17   :  { %460 = vmatprep.subr.bf16.mxu0 %v795_v45  ;;  %523 = vmatprep.subr.bf16.mxu1 %v797_v46  ;;  %v784_v45 = vcombine.low %v51_v31, %v55_v32  ;;  %v791_v46 = vcombine.high %v58_v38, %v62_v39  ;;  %v74_v57 = vld [vmem:[%s1297_s1 + $0x190] sm:$0xff]  ;;  %v87_v5 = vld [vmem:[%s1297_s1 + $0x1f8] sm:$0xff] }
  0x18   :  { %v78_v58 = vld [vmem:[%s1297_s1 + $0x1b0] sm:$0xff] }
  0x19   :  { %v807_v63 = vcombine.high %v74_v57, %v78_v58  ;;  %v82_v1 = vld [vmem:[%s1297_s1 + $0x1d0] sm:$0xff]  ;;  %v806_v6 = vcombine.low %v74_v57, %v78_v58 }
  0x1a   :  { %461 = vmatpush1.bf16.msra.mxu0 %v794_v51  ;;  %524 = vmatpush1.bf16.msra.mxu1 %v796_v52  ;;  %v71_v51 = vld [vmem:[%s1297_s1 + $0x178] sm:$0xff]  ;;  %v23_v52 = vpack.c.bf16 %v20_v44, %v19_v43  ;;  %v86_v2 = vld [vmem:[%s1297_s1 + $0x1f0] sm:$0xff] }
  0x1b   :  { %462 = vmatprep.subr.bf16.mxu0 %v803_v53  ;;  %525 = vmatprep.subr.bf16.mxu1 %v805_v54  ;;  %v790_v53 = vcombine.low %v58_v38, %v62_v39  ;;  %v792_v54 = vcombine.low %v59_v40, %v63_v41  ;;  %v801_v56 = vcombine.high %v67_v50, %v71_v51 }
  0x1c   :  { %v814_v10 = vcombine.low %v82_v1, %v86_v2 }
  0x1e   :  { %463 = vmatpush1.bf16.msra.mxu0 %v802_v59  ;;  %526 = vmatpush1.bf16.msra.mxu1 %v804_v60  ;;  %v75_v59 = vld [vmem:[%s1297_s1 + $0x198] sm:$0xff] }
  0x1f   :  { %464 = vmatprep.subr.bf16.mxu0 %v811_v61  ;;  %527 = vmatprep.subr.bf16.mxu1 %v813_v62  ;;  %v79_v60 = vld [vmem:[%s1297_s1 + $0x1b8] sm:$0xff]  ;;  %v798_v61 = vcombine.low %v66_v48, %v70_v49  ;;  %v800_v62 = vcombine.low %v67_v50, %v71_v51 }
  0x20   :  { %v809_v0 = vcombine.high %v75_v59, %v79_v60 }
  0x22   :  { %465 = vmatpush1.bf16.msra.mxu0 %v810_v4  ;;  %528 = vmatpush1.bf16.msra.mxu1 %v812_v7  ;;  %v83_v4 = vld [vmem:[%s1297_s1 + $0x1d8] sm:$0xff]  ;;  %v808_v7 = vcombine.low %v75_v59, %v79_v60 }
  0x23   :  { %576 = vmatprep.subr.bf16.mxu0 %v759_v8  ;;  %639 = vmatprep.subr.bf16.mxu1 %v761_v9  ;;  %v815_v8 = vcombine.high %v82_v1, %v86_v2  ;;  %v817_v9 = vcombine.high %v83_v4, %v87_v5  ;;  %v816_v11 = vcombine.low %v83_v4, %v87_v5 }
  0x25   :  { %483 = vmatmul.mubr.bf16.vlgmr.msra.gmra.mrb[0].mxu0 %v962_v12  ;;  %546 = vmatmul.mubr.bf16.vlgmr.msra.gmra.mrb[0].mxu1 %v962_v12 }
  0x26   :  { %577 = vmatpush1.bf16.msra.mxu0 %v758_v15  ;;  %640 = vmatpush1.bf16.msra.mxu1 %v760_v16  ;;  %v92_v15 = vsub.s32 0, %v1074_v14  ;;  %v100_v16 = vsub.s32 2, %v1074_v14 }
  0x27   :  { %578 = vmatprep.subr.bf16.mxu0 %v767_v17  ;;  %641 = vmatprep.subr.bf16.mxu1 %v769_v18  ;;  %v96_v17 = vsub.s32 1, %v1074_v14  ;;  %v104_v18 = vsub.s32 3, %v1074_v14 }
  0x28   :  { %492 = vmatprep.mubr.bf16.mxu0 %v819_v3  ;;  %555 = vmatprep.mubr.bf16.mxu1 %v819_v3 }
  0x2a   :  { %579 = vmatpush1.bf16.msra.mxu0 %v766_v23  ;;  %642 = vmatpush1.bf16.msra.mxu1 %v768_v26 }
  0x2b   :  { %580 = vmatprep.subr.bf16.mxu0 %v775_v27  ;;  %643 = vmatprep.subr.bf16.mxu1 %v777_v28 }
  0x2d   :  { %493 = vmatmul.mubr.bf16.gmra.mrb[4].mxu0 %v1004_v33  ;;  %556 = vmatmul.mubr.bf16.gmra.mrb[4].mxu1 %v1004_v33 }
  0x2e   :  { %581 = vmatpush1.bf16.msra.mxu0 %v774_v34  ;;  %644 = vmatpush1.bf16.msra.mxu1 %v776_v35 }
  0x2f   :  { %582 = vmatprep.subr.bf16.mxu0 %v783_v36  ;;  %645 = vmatprep.subr.bf16.mxu1 %v785_v37 }
  0x30   :  { %502 = vmatprep.mubr.bf16.mxu0 %v819_v3  ;;  %565 = vmatprep.mubr.bf16.mxu1 %v819_v3 }
  0x32   :  { %583 = vmatpush1.bf16.msra.mxu0 %v782_v42  ;;  %646 = vmatpush1.bf16.msra.mxu1 %v784_v45 }
  0x33   :  { %584 = vmatprep.subr.bf16.mxu0 %v791_v46  ;;  %647 = vmatprep.subr.bf16.mxu1 %v793_v47 }
  0x35   :  { %503 = vmatmul.mubr.bf16.gmra.mrb[8].mxu0 %v23_v52  ;;  %566 = vmatmul.mubr.bf16.gmra.mrb[8].mxu1 %v23_v52 }
  0x36   :  { %585 = vmatpush1.bf16.msra.mxu0 %v790_v53  ;;  %648 = vmatpush1.bf16.msra.mxu1 %v792_v54 }
  0x37   :  { %586 = vmatprep.subr.bf16.mxu0 %v799_v55  ;;  %649 = vmatprep.subr.bf16.mxu1 %v801_v56 }
  0x38   :  { %608 = vmatprep.mubr.bf16.mxu0 %v819_v3  ;;  %671 = vmatprep.mubr.bf16.mxu1 %v819_v3 }
  0x3a   :  { %587 = vmatpush1.bf16.msra.mxu0 %v798_v61  ;;  %650 = vmatpush1.bf16.msra.mxu1 %v800_v62 }
  0x3b   :  { %588 = vmatprep.subr.bf16.mxu0 %v807_v63  ;;  %651 = vmatprep.subr.bf16.mxu1 %v809_v0 }
  0x3e   :  { %589 = vmatpush1.bf16.msra.mxu0 %v806_v6  ;;  %652 = vmatpush1.bf16.msra.mxu1 %v808_v7  ;;  %v108_v7 = vsub.s32 4, %v1074_v14 }
  0x3f   :  { %590 = vmatprep.subr.bf16.mxu0 %v815_v8  ;;  %653 = vmatprep.subr.bf16.mxu1 %v817_v9  ;;  %v116_v8 = vsub.s32 6, %v1074_v14  ;;  %v112_v9 = vsub.s32 5, %v1074_v14 }
  0x42   :  { %591 = vmatpush1.bf16.msra.mxu0 %v814_v10  ;;  %654 = vmatpush1.bf16.msra.mxu1 %v816_v11  ;;  %v120_v10 = vsub.s32 7, %v1074_v14 }
  0x45   :  { %609 = vmatmul.mubr.bf16.vlgmr.msra.gmra.mrb[12].mxu0 %v962_v12  ;;  %672 = vmatmul.mubr.bf16.vlgmr.msra.gmra.mrb[12].mxu1 %v962_v12  ;;  %v1080_v12 = vld [vmem:[%s1299_s2] sm:$0xff] }
  0x46   :  { %618 = vmatprep.mubr.bf16.mxu0 %v819_v3  ;;  %681 = vmatprep.mubr.bf16.mxu1 %v819_v3  ;;  %v1089_v19 = vrot.slane %v1080_v12, %v100_v16  ;;  %v1092_v20 = vrot.slane %v1080_v12, %v96_v17  ;;  %v1095_v21 = vrot.slane %v1080_v12, %v104_v18 }
  0x47   :  { %v109_v11 = vrot.slane %v1080_v12, %v108_v7  ;;  %v1199_v13 = vrot.slane %v1080_v12, %v116_v8  ;;  %v1205_v16 = vrot.slane %v1080_v12, %v120_v10 }
  0x4d   :  { %619 = vmatmul.mubr.bf16.gmra.mrb[16].mxu0 %v1004_v33  ;;  %682 = vmatmul.mubr.bf16.gmra.mrb[16].mxu1 %v1004_v33 }
  0x4e   :  { %628 = vmatprep.mubr.bf16.mxu0 %v819_v3  ;;  %691 = vmatprep.mubr.bf16.mxu1 %v819_v3  ;;  %v1086_v3 = vrot.slane %v1080_v12, %v92_v15  ;;  %v1202_v15 = vrot.slane %v1080_v12, %v112_v9 }
  0x55   :  { %629 = vmatmul.mubr.bf16.gmra.mrb[20].mxu0 %v23_v52  ;;  %692 = vmatmul.mubr.bf16.gmra.mrb[20].mxu1 %v23_v52 }
  0xf8   :  { %v484_v22 = vpop.f32.mrb[0].mxu0  ;;  %v547_v24 = vpop.f32.mrb[0].mxu1 }
  0xf9   :  { %v485_v23 = vadd.f32 %v484_v22, %v1086_v3  ;;  %v486_v25 = vpop.f32.mrb[1].mxu0  ;;  %v548_v26 = vadd.f32 %v547_v24, %v1089_v19  ;;  %v549_v28 = vpop.f32.mrb[1].mxu1 }
  0xfa   :  { %v487_v27 = vadd.f32 %v486_v25, %v1092_v20  ;;  %v488_v29 = vpop.f32.mrb[2].mxu0  ;;  %v550_v30 = vadd.f32 %v549_v28, %v1095_v21  ;;  %v551_v32 = vpop.f32.mrb[2].mxu1 }
  0xfb   :  { %702 = vst [vmem:[%s1300_s3] sm:$0xff] %v485_v23  ;;  %v489_v31 = vadd.f32 %v488_v29, %v1086_v3  ;;  %v490_v33 = vpop.f32.mrb[3].mxu0  ;;  %704 = vst [vmem:[%s1300_s3 + $0x10] sm:$0xff] %v548_v26  ;;  %v552_v34 = vadd.f32 %v551_v32, %v1089_v19  ;;  %v553_v36 = vpop.f32.mrb[3].mxu1 }
  0xfc   :  { %703 = vst [vmem:[%s1300_s3 + $0x8] sm:$0xff] %v487_v27  ;;  %v491_v35 = vadd.f32 %v490_v33, %v1092_v20  ;;  %705 = vst [vmem:[%s1300_s3 + $0x18] sm:$0xff] %v550_v30  ;;  %v554_v37 = vadd.f32 %v553_v36, %v1095_v21 }
  0xfd   :  { %710 = vst [vmem:[%s1300_s3 + $0x40] sm:$0xff] %v489_v31  ;;  %712 = vst [vmem:[%s1300_s3 + $0x50] sm:$0xff] %v552_v34 }
  0xfe   :  { %711 = vst [vmem:[%s1300_s3 + $0x48] sm:$0xff] %v491_v35  ;;  %713 = vst [vmem:[%s1300_s3 + $0x58] sm:$0xff] %v554_v37 }
 0x100   :  { %v494_v38 = vpop.f32.mrb[4].mxu0  ;;  %v557_v40 = vpop.f32.mrb[4].mxu1 }
 0x101   :  { %v495_v39 = vadd.f32 %v494_v38, %v1086_v3  ;;  %v496_v41 = vpop.f32.mrb[5].mxu0  ;;  %v558_v42 = vadd.f32 %v557_v40, %v1089_v19  ;;  %v559_v44 = vpop.f32.mrb[5].mxu1 }
 0x102   :  { %v497_v43 = vadd.f32 %v496_v41, %v1092_v20  ;;  %v498_v45 = vpop.f32.mrb[6].mxu0  ;;  %v560_v46 = vadd.f32 %v559_v44, %v1095_v21  ;;  %v561_v48 = vpop.f32.mrb[6].mxu1 }
 0x103   :  { %718 = vst [vmem:[%s1300_s3 + $0x80] sm:$0xff] %v495_v39  ;;  %v499_v47 = vadd.f32 %v498_v45, %v1086_v3  ;;  %v500_v49 = vpop.f32.mrb[7].mxu0  ;;  %720 = vst [vmem:[%s1300_s3 + $0x90] sm:$0xff] %v558_v42  ;;  %v562_v50 = vadd.f32 %v561_v48, %v1089_v19  ;;  %v563_v52 = vpop.f32.mrb[7].mxu1 }
 0x104   :  { %719 = vst [vmem:[%s1300_s3 + $0x88] sm:$0xff] %v497_v43  ;;  %v501_v51 = vadd.f32 %v500_v49, %v1092_v20  ;;  %721 = vst [vmem:[%s1300_s3 + $0x98] sm:$0xff] %v560_v46  ;;  %v564_v53 = vadd.f32 %v563_v52, %v1095_v21 }
 0x105   :  { %726 = vst [vmem:[%s1300_s3 + $0xc0] sm:$0xff] %v499_v47  ;;  %728 = vst [vmem:[%s1300_s3 + $0xd0] sm:$0xff] %v562_v50 }
 0x106   :  { %727 = vst [vmem:[%s1300_s3 + $0xc8] sm:$0xff] %v501_v51  ;;  %729 = vst [vmem:[%s1300_s3 + $0xd8] sm:$0xff] %v564_v53 }
 0x108   :  { %v504_v54 = vpop.f32.mrb[8].mxu0  ;;  %v567_v56 = vpop.f32.mrb[8].mxu1 }
 0x109   :  { %v505_v55 = vadd.f32 %v504_v54, %v1086_v3  ;;  %v506_v57 = vpop.f32.mrb[9].mxu0  ;;  %v568_v58 = vadd.f32 %v567_v56, %v1089_v19  ;;  %v569_v60 = vpop.f32.mrb[9].mxu1 }
 0x10a   :  { %v507_v59 = vadd.f32 %v506_v57, %v1092_v20  ;;  %v508_v61 = vpop.f32.mrb[10].mxu0  ;;  %v570_v62 = vadd.f32 %v569_v60, %v1095_v21  ;;  %v571_v0 = vpop.f32.mrb[10].mxu1 }
 0x10b   :  { %734 = vst [vmem:[%s1300_s3 + $0x100] sm:$0xff] %v505_v55  ;;  %v509_v63 = vadd.f32 %v508_v61, %v1086_v3  ;;  %v510_v1 = vpop.f32.mrb[11].mxu0  ;;  %736 = vst [vmem:[%s1300_s3 + $0x110] sm:$0xff] %v568_v58  ;;  %v572_v2 = vadd.f32 %v571_v0, %v1089_v19  ;;  %v573_v5 = vpop.f32.mrb[11].mxu1 }
 0x10c   :  { %735 = vst [vmem:[%s1300_s3 + $0x108] sm:$0xff] %v507_v59  ;;  %v511_v4 = vadd.f32 %v510_v1, %v1092_v20  ;;  %737 = vst [vmem:[%s1300_s3 + $0x118] sm:$0xff] %v570_v62  ;;  %v574_v6 = vadd.f32 %v573_v5, %v1095_v21 }
 0x10d   :  { %742 = vst [vmem:[%s1300_s3 + $0x140] sm:$0xff] %v509_v63  ;;  %744 = vst [vmem:[%s1300_s3 + $0x150] sm:$0xff] %v572_v2 }
 0x10e   :  { %743 = vst [vmem:[%s1300_s3 + $0x148] sm:$0xff] %v511_v4  ;;  %745 = vst [vmem:[%s1300_s3 + $0x158] sm:$0xff] %v574_v6 }
 0x118   :  { %v610_v17 = vpop.f32.mrb[12].mxu0  ;;  %v673_v3 = vpop.f32.mrb[12].mxu1 }
 0x119   :  { %v611_v18 = vadd.f32 %v610_v17, %v109_v11  ;;  %v612_v19 = vpop.f32.mrb[13].mxu0  ;;  %v674_v20 = vadd.f32 %v673_v3, %v1199_v13  ;;  %v675_v14 = vpop.f32.mrb[13].mxu1 }
 0x11a   :  { %v613_v21 = vadd.f32 %v612_v19, %v1202_v15  ;;  %v614_v22 = vpop.f32.mrb[14].mxu0  ;;  %v676_v23 = vadd.f32 %v675_v14, %v1205_v16  ;;  %v677_v25 = vpop.f32.mrb[14].mxu1 }
 0x11b   :  { %706 = vst [vmem:[%s1300_s3 + $0x20] sm:$0xff] %v611_v18  ;;  %v615_v24 = vadd.f32 %v614_v22, %v109_v11  ;;  %v616_v12 = vpop.f32.mrb[15].mxu0  ;;  %708 = vst [vmem:[%s1300_s3 + $0x30] sm:$0xff] %v674_v20  ;;  %v678_v26 = vadd.f32 %v677_v25, %v1199_v13  ;;  %v679_v28 = vpop.f32.mrb[15].mxu1 }
 0x11c   :  { %707 = vst [vmem:[%s1300_s3 + $0x28] sm:$0xff] %v613_v21  ;;  %v617_v27 = vadd.f32 %v616_v12, %v1202_v15  ;;  %709 = vst [vmem:[%s1300_s3 + $0x38] sm:$0xff] %v676_v23  ;;  %v680_v29 = vadd.f32 %v679_v28, %v1205_v16 }
 0x11d   :  { %714 = vst [vmem:[%s1300_s3 + $0x60] sm:$0xff] %v615_v24  ;;  %716 = vst [vmem:[%s1300_s3 + $0x70] sm:$0xff] %v678_v26 }
 0x11e   :  { %715 = vst [vmem:[%s1300_s3 + $0x68] sm:$0xff] %v617_v27  ;;  %717 = vst [vmem:[%s1300_s3 + $0x78] sm:$0xff] %v680_v29 }
 0x120   :  { %v620_v30 = vpop.f32.mrb[16].mxu0  ;;  %v683_v32 = vpop.f32.mrb[16].mxu1 }
 0x121   :  { %v621_v31 = vadd.f32 %v620_v30, %v109_v11  ;;  %v622_v33 = vpop.f32.mrb[17].mxu0  ;;  %v684_v34 = vadd.f32 %v683_v32, %v1199_v13  ;;  %v685_v36 = vpop.f32.mrb[17].mxu1 }
 0x122   :  { %v623_v35 = vadd.f32 %v622_v33, %v1202_v15  ;;  %v624_v37 = vpop.f32.mrb[18].mxu0  ;;  %v686_v38 = vadd.f32 %v685_v36, %v1205_v16  ;;  %v687_v40 = vpop.f32.mrb[18].mxu1 }
 0x123   :  { %722 = vst [vmem:[%s1300_s3 + $0xa0] sm:$0xff] %v621_v31  ;;  %v625_v39 = vadd.f32 %v624_v37, %v109_v11  ;;  %v626_v41 = vpop.f32.mrb[19].mxu0  ;;  %724 = vst [vmem:[%s1300_s3 + $0xb0] sm:$0xff] %v684_v34  ;;  %v688_v42 = vadd.f32 %v687_v40, %v1199_v13  ;;  %v689_v44 = vpop.f32.mrb[19].mxu1 }
 0x124   :  { %723 = vst [vmem:[%s1300_s3 + $0xa8] sm:$0xff] %v623_v35  ;;  %v627_v43 = vadd.f32 %v626_v41, %v1202_v15  ;;  %725 = vst [vmem:[%s1300_s3 + $0xb8] sm:$0xff] %v686_v38  ;;  %v690_v45 = vadd.f32 %v689_v44, %v1205_v16 }
 0x125   :  { %730 = vst [vmem:[%s1300_s3 + $0xe0] sm:$0xff] %v625_v39  ;;  %732 = vst [vmem:[%s1300_s3 + $0xf0] sm:$0xff] %v688_v42 }
 0x126   :  { %731 = vst [vmem:[%s1300_s3 + $0xe8] sm:$0xff] %v627_v43  ;;  %733 = vst [vmem:[%s1300_s3 + $0xf8] sm:$0xff] %v690_v45 }
 0x128   :  { %v630_v46 = vpop.f32.mrb[20].mxu0  ;;  %v693_v48 = vpop.f32.mrb[20].mxu1 }
 0x129   :  { %v631_v47 = vadd.f32 %v630_v46, %v109_v11  ;;  %v632_v49 = vpop.f32.mrb[21].mxu0  ;;  %v694_v50 = vadd.f32 %v693_v48, %v1199_v13  ;;  %v695_v52 = vpop.f32.mrb[21].mxu1 }
 0x12a   :  { %v633_v51 = vadd.f32 %v632_v49, %v1202_v15  ;;  %v634_v53 = vpop.f32.mrb[22].mxu0  ;;  %v696_v54 = vadd.f32 %v695_v52, %v1205_v16  ;;  %v697_v56 = vpop.f32.mrb[22].mxu1 }
 0x12b   :  { %738 = vst [vmem:[%s1300_s3 + $0x120] sm:$0xff] %v631_v47  ;;  %v635_v55 = vadd.f32 %v634_v53, %v109_v11  ;;  %v636_v57 = vpop.f32.mrb[23].mxu0  ;;  %740 = vst [vmem:[%s1300_s3 + $0x130] sm:$0xff] %v694_v50  ;;  %v698_v58 = vadd.f32 %v697_v56, %v1199_v13  ;;  %v699_v60 = vpop.f32.mrb[23].mxu1 }
 0x12c   :  { %739 = vst [vmem:[%s1300_s3 + $0x128] sm:$0xff] %v633_v51  ;;  %v637_v59 = vadd.f32 %v636_v57, %v1202_v15  ;;  %741 = vst [vmem:[%s1300_s3 + $0x138] sm:$0xff] %v696_v54  ;;  %v700_v61 = vadd.f32 %v699_v60, %v1205_v16 }
 0x12d   :  { %746 = vst [vmem:[%s1300_s3 + $0x160] sm:$0xff] %v635_v55  ;;  %748 = vst [vmem:[%s1300_s3 + $0x170] sm:$0xff] %v698_v58 }
 0x12e   :  { %747 = vst [vmem:[%s1300_s3 + $0x168] sm:$0xff] %v637_v59  ;;  %749 = vst [vmem:[%s1300_s3 + $0x178] sm:$0xff] %v700_v61 }

// kernel: _forward_impl.22
= control target key start
LH: loop header
LB: loop body
LE: loop exit
PB: predicated region body
PF: predicated region fallthrough
CT: control target
= control target key end

     0   :  { %v783_v0 = vmov 0.0   ;;  %s811_s15 = smov 0   ;;  %s1226_s0 = inlined_call_operand.vmem [shape: f32[24,2,1024], index: 0, kind: input, shape index: {}]   ;;  %s1227_s1 = inlined_call_operand.vmem [shape: f32[128,512], index: 1, kind: input, shape index: {}]   ;;  %s1228_s2 = inlined_call_operand.vmem [shape: f32[128,512], index: 2, kind: input, shape index: {}]   ;;  %s1229_s3 = inlined_call_operand.vmem [shape: f32[24,2,128], index: 3, kind: output, shape index: {0}]   ;;  %s1230_s4 = inlined_call_operand.vmem [shape: f32[24,2,128], index: 4, kind: output, shape index: {1}]  }
   0x1   :  { %16 = vst [vmem:[#allocation2] sm:$0x3] %v783_v0  ;;  %17 = vst [vmem:[#allocation3] sm:$0x3] %v783_v0 }
   0x2   :  { %18 = vst [vmem:[#allocation4] sm:$0x3] %v783_v0  ;;  %19 = vst [vmem:[#allocation5] sm:$0x3] %v783_v0 }
   0x3 LB: > { %v37_v1 = vld [vmem:[%s1227_s1 + $0x8] sm:$0xff]  ;;  %v39_v3 = vld [vmem:[%s1227_s1 + $0x18] sm:$0xff]  ;;  %v36_v6 = vld [vmem:[%s1227_s1] sm:$0xff]  ;;  %v784_v8 = vmov 0.0   ;;  %s602_s22 = sshll.u32 %s781_s15, 4  ;;  %s26_s26 = ssub.s32 23, %s781_s15  ;;  %s781_s15 = sphi %s811_s15, %s25_s15  }
   0x4   : > { %v41_v2 = vld [vmem:[%s1227_s1 + $0x28] sm:$0xff]  ;;  %v43_v5 = vld [vmem:[%s1227_s1 + $0x38] sm:$0xff]  ;;  %v40_v7 = vld [vmem:[%s1227_s1 + $0x20] sm:$0xff]  ;;  %164 = vmatprep.mubr.f32.mxu0 %v784_v8  ;;  %235 = vmatprep.mubr.f32.mxu1 %v784_v8  ;;  %s29_s25 = scalar_lea.vmem %s1226_s0, %s602_s22  ;;  %s603_s27 = sshll.u32 %s26_s26, 4 }
   0x5   : > { %v604_v4 = vpack.c.bf16 %v41_v2, %v37_v1  ;;  %v636_v9 = vpack.c.bf16 %v43_v5, %v39_v3  ;;  %v606_v10 = vpack.c.bf16 %v40_v7, %v36_v6  ;;  %v38_v11 = vld [vmem:[%s1227_s1 + $0x10] sm:$0xff]  ;;  %v45_v13 = vld [vmem:[%s1227_s1 + $0x48] sm:$0xff]  ;;  %v47_v16 = vld [vmem:[%s1227_s1 + $0x58] sm:$0xff]  ;;  %s33_s30 = scalar_lea.vmem %s1226_s0, %s603_s27  ;;  %s597_s5 = sshll.u32 %s781_s15, 1 }
   0x6   : > { %v42_v12 = vld [vmem:[%s1227_s1 + $0x30] sm:$0xff]  ;;  %v49_v15 = vld [vmem:[%s1227_s1 + $0x68] sm:$0xff]  ;;  %v51_v17 = vld [vmem:[%s1227_s1 + $0x78] sm:$0xff]  ;;  %s530_s8 = scalar_lea.vmem %s1229_s3, %s597_s5  ;;  %s601_s9 = sshll.u32 %s26_s26, 1 }
   0x7   : > { %605 = vmatprep.subr.bf16.mxu0 %v604_v4  ;;  %v638_v14 = vpack.c.bf16 %v42_v12, %v38_v11  ;;  %637 = vmatprep.subr.bf16.mxu1 %v636_v9  ;;  %v608_v18 = vpack.c.bf16 %v49_v15, %v45_v13  ;;  %v640_v19 = vpack.c.bf16 %v51_v17, %v47_v16  ;;  %v44_v20 = vld [vmem:[%s1227_s1 + $0x40] sm:$0xff]  ;;  %v46_v22 = vld [vmem:[%s1227_s1 + $0x50] sm:$0xff]  ;;  %v53_v25 = vld [vmem:[%s1227_s1 + $0x88] sm:$0xff]  ;;  %s567_s12 = scalar_lea.vmem %s1230_s4, %s601_s9  ;;  %s25_s15 = sadd.s32 1, %s781_s15  }
   0x8   : > { %607 = vmatpush1.bf16.msra.mxu0 %v606_v10  ;;  %v48_v21 = vld [vmem:[%s1227_s1 + $0x60] sm:$0xff]  ;;  %v50_v24 = vld [vmem:[%s1227_s1 + $0x70] sm:$0xff]  ;;  %v57_v26 = vld [vmem:[%s1227_s1 + $0xa8] sm:$0xff]  ;;  %p22_p0 = scmp.ge.s32.totalorder %s25_s15, 24  }
   0x9   : > { %639 = vmatpush1.bf16.msra.mxu1 %v638_v14  ;;  %v610_v23 = vpack.c.bf16 %v48_v21, %v44_v20  ;;  %609 = vmatprep.subr.bf16.mxu0 %v608_v18  ;;  %v642_v27 = vpack.c.bf16 %v50_v24, %v46_v22  ;;  %v612_v28 = vpack.c.bf16 %v57_v26, %v53_v25  ;;  %v55_v29 = vld [vmem:[%s1227_s1 + $0x98] sm:$0xff]  ;;  %v52_v31 = vld [vmem:[%s1227_s1 + $0x80] sm:$0xff]  ;;  %v54_v34 = vld [vmem:[%s1227_s1 + $0x90] sm:$0xff] }
   0xa   : > { %641 = vmatprep.subr.bf16.mxu1 %v640_v19  ;;  %v59_v30 = vld [vmem:[%s1227_s1 + $0xb8] sm:$0xff]  ;;  %v56_v33 = vld [vmem:[%s1227_s1 + $0xa0] sm:$0xff]  ;;  %v58_v35 = vld [vmem:[%s1227_s1 + $0xb0] sm:$0xff] }
   0xb   : > { %v644_v32 = vpack.c.bf16 %v59_v30, %v55_v29  ;;  %v614_v36 = vpack.c.bf16 %v56_v33, %v52_v31  ;;  %v61_v37 = vld [vmem:[%s1227_s1 + $0xc8] sm:$0xff]  ;;  %v63_v39 = vld [vmem:[%s1227_s1 + $0xd8] sm:$0xff]  ;;  %v646_v40 = vpack.c.bf16 %v58_v35, %v54_v34  ;;  %v60_v43 = vld [vmem:[%s1227_s1 + $0xc0] sm:$0xff] }
   0xc   : > { %611 = vmatpush1.bf16.msra.mxu0 %v610_v23  ;;  %v65_v38 = vld [vmem:[%s1227_s1 + $0xe8] sm:$0xff]  ;;  %v67_v42 = vld [vmem:[%s1227_s1 + $0xf8] sm:$0xff]  ;;  %v64_v44 = vld [vmem:[%s1227_s1 + $0xe0] sm:$0xff] }
   0xd   : > { %643 = vmatpush1.bf16.msra.mxu1 %v642_v27  ;;  %613 = vmatprep.subr.bf16.mxu0 %v612_v28  ;;  %v616_v41 = vpack.c.bf16 %v65_v38, %v61_v37  ;;  %v648_v45 = vpack.c.bf16 %v67_v42, %v63_v39  ;;  %v62_v46 = vld [vmem:[%s1227_s1 + $0xd0] sm:$0xff]  ;;  %v69_v48 = vld [vmem:[%s1227_s1 + $0x108] sm:$0xff]  ;;  %v71_v50 = vld [vmem:[%s1227_s1 + $0x118] sm:$0xff]  ;;  %v618_v52 = vpack.c.bf16 %v64_v44, %v60_v43 }
   0xe   : > { %645 = vmatprep.subr.bf16.mxu1 %v644_v32  ;;  %v66_v47 = vld [vmem:[%s1227_s1 + $0xf0] sm:$0xff]  ;;  %v73_v49 = vld [vmem:[%s1227_s1 + $0x128] sm:$0xff]  ;;  %v75_v51 = vld [vmem:[%s1227_s1 + $0x138] sm:$0xff] }
   0xf   : > { %v650_v53 = vpack.c.bf16 %v66_v47, %v62_v46  ;;  %v620_v54 = vpack.c.bf16 %v73_v49, %v69_v48  ;;  %v68_v55 = vld [vmem:[%s1227_s1 + $0x100] sm:$0xff]  ;;  %v70_v57 = vld [vmem:[%s1227_s1 + $0x110] sm:$0xff]  ;;  %v652_v58 = vpack.c.bf16 %v75_v51, %v71_v50  ;;  %v77_v60 = vld [vmem:[%s1227_s1 + $0x148] sm:$0xff] }
  0x10   : > { %615 = vmatpush1.bf16.msra.mxu0 %v614_v36  ;;  %v72_v56 = vld [vmem:[%s1227_s1 + $0x120] sm:$0xff]  ;;  %v74_v59 = vld [vmem:[%s1227_s1 + $0x130] sm:$0xff]  ;;  %v81_v61 = vld [vmem:[%s1227_s1 + $0x168] sm:$0xff] }
  0x11   : > { %647 = vmatpush1.bf16.msra.mxu1 %v646_v40  ;;  %617 = vmatprep.subr.bf16.mxu0 %v616_v41  ;;  %v79_v62 = vld [vmem:[%s1227_s1 + $0x158] sm:$0xff]  ;;  %v622_v0 = vpack.c.bf16 %v72_v56, %v68_v55  ;;  %v654_v1 = vpack.c.bf16 %v74_v59, %v70_v57  ;;  %v624_v2 = vpack.c.bf16 %v81_v61, %v77_v60  ;;  %v76_v3 = vld [vmem:[%s1227_s1 + $0x140] sm:$0xff]  ;;  %v78_v5 = vld [vmem:[%s1227_s1 + $0x150] sm:$0xff] }
  0x12   : > { %649 = vmatprep.subr.bf16.mxu1 %v648_v45  ;;  %v83_v63 = vld [vmem:[%s1227_s1 + $0x178] sm:$0xff]  ;;  %v80_v4 = vld [vmem:[%s1227_s1 + $0x160] sm:$0xff]  ;;  %v82_v7 = vld [vmem:[%s1227_s1 + $0x170] sm:$0xff] }
  0x13   : > { %v656_v6 = vpack.c.bf16 %v83_v63, %v79_v62  ;;  %v85_v9 = vld [vmem:[%s1227_s1 + $0x188] sm:$0xff]  ;;  %v87_v11 = vld [vmem:[%s1227_s1 + $0x198] sm:$0xff]  ;;  %v626_v13 = vpack.c.bf16 %v80_v4, %v76_v3  ;;  %v658_v14 = vpack.c.bf16 %v82_v7, %v78_v5  ;;  %v84_v16 = vld [vmem:[%s1227_s1 + $0x180] sm:$0xff] }
  0x14   : > { %619 = vmatpush1.bf16.msra.mxu0 %v618_v52  ;;  %v89_v10 = vld [vmem:[%s1227_s1 + $0x1a8] sm:$0xff]  ;;  %v91_v12 = vld [vmem:[%s1227_s1 + $0x1b8] sm:$0xff]  ;;  %v88_v17 = vld [vmem:[%s1227_s1 + $0x1a0] sm:$0xff] }
  0x15   : > { %651 = vmatpush1.bf16.msra.mxu1 %v650_v53  ;;  %621 = vmatprep.subr.bf16.mxu0 %v620_v54  ;;  %v628_v15 = vpack.c.bf16 %v89_v10, %v85_v9  ;;  %v86_v18 = vld [vmem:[%s1227_s1 + $0x190] sm:$0xff]  ;;  %v660_v19 = vpack.c.bf16 %v91_v12, %v87_v11  ;;  %v93_v21 = vld [vmem:[%s1227_s1 + $0x1c8] sm:$0xff]  ;;  %v95_v23 = vld [vmem:[%s1227_s1 + $0x1d8] sm:$0xff]  ;;  %v630_v25 = vpack.c.bf16 %v88_v17, %v84_v16 }
  0x16   : > { %653 = vmatprep.subr.bf16.mxu1 %v652_v58  ;;  %v90_v20 = vld [vmem:[%s1227_s1 + $0x1b0] sm:$0xff]  ;;  %v97_v22 = vld [vmem:[%s1227_s1 + $0x1e8] sm:$0xff]  ;;  %v99_v24 = vld [vmem:[%s1227_s1 + $0x1f8] sm:$0xff] }
  0x17   : > { %v662_v26 = vpack.c.bf16 %v90_v20, %v86_v18  ;;  %v632_v27 = vpack.c.bf16 %v97_v22, %v93_v21  ;;  %v92_v28 = vld [vmem:[%s1227_s1 + $0x1c0] sm:$0xff]  ;;  %v94_v30 = vld [vmem:[%s1227_s1 + $0x1d0] sm:$0xff]  ;;  %v664_v31 = vpack.c.bf16 %v99_v24, %v95_v23  ;;  %v267_v33 = vld [vmem:[%s1228_s2 + $0x8] sm:$0xff] }
  0x18   : > { %623 = vmatpush1.bf16.msra.mxu0 %v622_v0  ;;  %v96_v29 = vld [vmem:[%s1227_s1 + $0x1e0] sm:$0xff]  ;;  %v98_v32 = vld [vmem:[%s1227_s1 + $0x1f0] sm:$0xff]  ;;  %v271_v34 = vld [vmem:[%s1228_s2 + $0x28] sm:$0xff] }
  0x19   : > { %655 = vmatpush1.bf16.msra.mxu1 %v654_v1  ;;  %625 = vmatprep.subr.bf16.mxu0 %v624_v2  ;;  %v269_v35 = vld [vmem:[%s1228_s2 + $0x18] sm:$0xff]  ;;  %v634_v37 = vpack.c.bf16 %v96_v29, %v92_v28  ;;  %v666_v38 = vpack.c.bf16 %v98_v32, %v94_v30  ;;  %v668_v39 = vpack.c.bf16 %v271_v34, %v267_v33  ;;  %v266_v40 = vld [vmem:[%s1228_s2] sm:$0xff]  ;;  %v268_v42 = vld [vmem:[%s1228_s2 + $0x10] sm:$0xff] }
  0x1a   : > { %657 = vmatprep.subr.bf16.mxu1 %v656_v6  ;;  %v273_v36 = vld [vmem:[%s1228_s2 + $0x38] sm:$0xff]  ;;  %v270_v41 = vld [vmem:[%s1228_s2 + $0x20] sm:$0xff]  ;;  %v272_v44 = vld [vmem:[%s1228_s2 + $0x30] sm:$0xff] }
  0x1b   : > { %v700_v43 = vpack.c.bf16 %v273_v36, %v269_v35  ;;  %v275_v45 = vld [vmem:[%s1228_s2 + $0x48] sm:$0xff]  ;;  %v277_v47 = vld [vmem:[%s1228_s2 + $0x58] sm:$0xff]  ;;  %v35_v49 = vld [vmem:[#allocation2] sm:$0x3]  ;;  %v670_v50 = vpack.c.bf16 %v270_v41, %v266_v40  ;;  %v702_v51 = vpack.c.bf16 %v272_v44, %v268_v42 }
  0x1c   : > { %627 = vmatpush1.bf16.msra.mxu0 %v626_v13  ;;  %v279_v46 = vld [vmem:[%s1228_s2 + $0x68] sm:$0xff]  ;;  %v281_v48 = vld [vmem:[%s1228_s2 + $0x78] sm:$0xff]  ;;  %v274_v53 = vld [vmem:[%s1228_s2 + $0x40] sm:$0xff] }
  0x1d   : > { %659 = vmatpush1.bf16.msra.mxu1 %v658_v14  ;;  %629 = vmatprep.subr.bf16.mxu0 %v628_v15  ;;  %v672_v52 = vpack.c.bf16 %v279_v46, %v275_v45  ;;  %v278_v54 = vld [vmem:[%s1228_s2 + $0x60] sm:$0xff]  ;;  %v276_v55 = vld [vmem:[%s1228_s2 + $0x50] sm:$0xff]  ;;  %v704_v56 = vpack.c.bf16 %v281_v48, %v277_v47  ;;  %v283_v58 = vld [vmem:[%s1228_s2 + $0x88] sm:$0xff] }
  0x1e   : > { %661 = vmatprep.subr.bf16.mxu1 %v660_v19  ;;  %v280_v57 = vld [vmem:[%s1228_s2 + $0x70] sm:$0xff]  ;;  %v287_v59 = vld [vmem:[%s1228_s2 + $0xa8] sm:$0xff]  ;;  %v285_v60 = vld [vmem:[%s1228_s2 + $0x98] sm:$0xff]  ;;  %v674_v62 = vpack.c.bf16 %v278_v54, %v274_v53 }
  0x1f   : > { %v289_v61 = vld [vmem:[%s1228_s2 + $0xb8] sm:$0xff]  ;;  %v706_v63 = vpack.c.bf16 %v280_v57, %v276_v55  ;;  %v676_v0 = vpack.c.bf16 %v287_v59, %v283_v58  ;;  %v282_v1 = vld [vmem:[%s1228_s2 + $0x80] sm:$0xff]  ;;  %v284_v3 = vld [vmem:[%s1228_s2 + $0x90] sm:$0xff] }
  0x20   : > { %631 = vmatpush1.bf16.msra.mxu0 %v630_v25  ;;  %v286_v2 = vld [vmem:[%s1228_s2 + $0xa0] sm:$0xff]  ;;  %v708_v4 = vpack.c.bf16 %v289_v61, %v285_v60  ;;  %v288_v5 = vld [vmem:[%s1228_s2 + $0xb0] sm:$0xff]  ;;  %v291_v6 = vld [vmem:[%s1228_s2 + $0xc8] sm:$0xff] }
  0x21   : > { %663 = vmatpush1.bf16.msra.mxu1 %v662_v26  ;;  %633 = vmatprep.subr.bf16.mxu0 %v632_v27  ;;  %v295_v7 = vld [vmem:[%s1228_s2 + $0xe8] sm:$0xff]  ;;  %v293_v9 = vld [vmem:[%s1228_s2 + $0xd8] sm:$0xff]  ;;  %v678_v11 = vpack.c.bf16 %v286_v2, %v282_v1  ;;  %v710_v12 = vpack.c.bf16 %v288_v5, %v284_v3  ;;  %v290_v14 = vld [vmem:[%s1228_s2 + $0xc0] sm:$0xff]  ;;  %v785_v5 = vmov 1983009808  }
  0x22   : > { %665 = vmatprep.subr.bf16.mxu1 %v664_v31  ;;  %v297_v10 = vld [vmem:[%s1228_s2 + $0xf8] sm:$0xff]  ;;  %v680_v13 = vpack.c.bf16 %v295_v7, %v291_v6  ;;  %v294_v15 = vld [vmem:[%s1228_s2 + $0xe0] sm:$0xff]  ;;  %v292_v16 = vld [vmem:[%s1228_s2 + $0xd0] sm:$0xff]  ;;  %v249_v6 = vunpack.c.l.s4 %v785_v5  ;;  %v251_v7 = vlaneseq }
  0x23   : > { %v296_v17 = vld [vmem:[%s1228_s2 + $0xf0] sm:$0xff]  ;;  %v299_v18 = vld [vmem:[%s1228_s2 + $0x108] sm:$0xff]  ;;  %v301_v20 = vld [vmem:[%s1228_s2 + $0x118] sm:$0xff]  ;;  %v682_v22 = vpack.c.bf16 %v294_v15, %v290_v14 }
  0x24   : > { %635 = vmatpush1.bf16.msra.mxu0 %v634_v37  ;;  %v303_v19 = vld [vmem:[%s1228_s2 + $0x128] sm:$0xff]  ;;  %v305_v21 = vld [vmem:[%s1228_s2 + $0x138] sm:$0xff]  ;;  %v714_v23 = vpack.c.bf16 %v296_v17, %v292_v16  ;;  %v298_v25 = vld [vmem:[%s1228_s2 + $0x100] sm:$0xff] }
  0x25   : > { %667 = vmatpush1.bf16.msra.mxu1 %v666_v38  ;;  %669 = vmatprep.subr.bf16.mxu0 %v668_v39  ;;  %v684_v24 = vpack.c.bf16 %v303_v19, %v299_v18  ;;  %v302_v26 = vld [vmem:[%s1228_s2 + $0x120] sm:$0xff]  ;;  %v300_v27 = vld [vmem:[%s1228_s2 + $0x110] sm:$0xff]  ;;  %v716_v28 = vpack.c.bf16 %v305_v21, %v301_v20  ;;  %v307_v30 = vld [vmem:[%s1228_s2 + $0x148] sm:$0xff] }
  0x26   : > { %701 = vmatprep.subr.bf16.mxu1 %v700_v43  ;;  %v304_v29 = vld [vmem:[%s1228_s2 + $0x130] sm:$0xff]  ;;  %v311_v31 = vld [vmem:[%s1228_s2 + $0x168] sm:$0xff]  ;;  %v309_v32 = vld [vmem:[%s1228_s2 + $0x158] sm:$0xff]  ;;  %v686_v34 = vpack.c.bf16 %v302_v26, %v298_v25 }
  0x27   : > { %165 = vmatmul.mubr.f32.vlgmr.msra.gmra.mrb[0].mxu0 %v35_v49  ;;  %v313_v33 = vld [vmem:[%s1228_s2 + $0x178] sm:$0xff]  ;;  %v718_v35 = vpack.c.bf16 %v304_v29, %v300_v27  ;;  %v688_v36 = vpack.c.bf16 %v311_v31, %v307_v30  ;;  %v306_v37 = vld [vmem:[%s1228_s2 + $0x140] sm:$0xff]  ;;  %v308_v39 = vld [vmem:[%s1228_s2 + $0x150] sm:$0xff] }
  0x28   : > { %236 = vmatmul.mubr.f32.vlgmr.msra.gmra.mrb[0].mxu1 %v35_v49  ;;  %671 = vmatpush1.bf16.msra.mxu0 %v670_v50  ;;  %v310_v38 = vld [vmem:[%s1228_s2 + $0x160] sm:$0xff]  ;;  %v720_v40 = vpack.c.bf16 %v313_v33, %v309_v32  ;;  %v312_v41 = vld [vmem:[%s1228_s2 + $0x170] sm:$0xff]  ;;  %v315_v42 = vld [vmem:[%s1228_s2 + $0x188] sm:$0xff] }
  0x29   : > { %703 = vmatpush1.bf16.msra.mxu1 %v702_v51  ;;  %673 = vmatprep.subr.bf16.mxu0 %v672_v52  ;;  %v319_v43 = vld [vmem:[%s1228_s2 + $0x1a8] sm:$0xff]  ;;  %v317_v44 = vld [vmem:[%s1228_s2 + $0x198] sm:$0xff]  ;;  %v690_v46 = vpack.c.bf16 %v310_v38, %v306_v37  ;;  %v722_v47 = vpack.c.bf16 %v312_v41, %v308_v39  ;;  %v314_v49 = vld [vmem:[%s1228_s2 + $0x180] sm:$0xff] }
  0x2a   : > { %705 = vmatprep.subr.bf16.mxu1 %v704_v56  ;;  %394 = vmatprep.mubr.f32.mxu0 %v784_v8  ;;  %v321_v45 = vld [vmem:[%s1228_s2 + $0x1b8] sm:$0xff]  ;;  %v692_v48 = vpack.c.bf16 %v319_v43, %v315_v42  ;;  %v318_v50 = vld [vmem:[%s1228_s2 + $0x1a0] sm:$0xff]  ;;  %v316_v51 = vld [vmem:[%s1228_s2 + $0x190] sm:$0xff] }
  0x2b   : > { %465 = vmatprep.mubr.f32.mxu1 %v784_v8  ;;  %v712_v8 = vpack.c.bf16 %v297_v10, %v293_v9  ;;  %v724_v52 = vpack.c.bf16 %v321_v45, %v317_v44  ;;  %v320_v53 = vld [vmem:[%s1228_s2 + $0x1b0] sm:$0xff]  ;;  %v323_v54 = vld [vmem:[%s1228_s2 + $0x1c8] sm:$0xff]  ;;  %v325_v56 = vld [vmem:[%s1228_s2 + $0x1d8] sm:$0xff]  ;;  %v694_v58 = vpack.c.bf16 %v318_v50, %v314_v49  ;;  %v250_v9 = vunpack.c.0.s8 %v249_v6 }
  0x2c   : > { %675 = vmatpush1.bf16.msra.mxu0 %v674_v62  ;;  %v327_v55 = vld [vmem:[%s1228_s2 + $0x1e8] sm:$0xff]  ;;  %v329_v57 = vld [vmem:[%s1228_s2 + $0x1f8] sm:$0xff]  ;;  %v726_v59 = vpack.c.bf16 %v320_v53, %v316_v51  ;;  %v322_v61 = vld [vmem:[%s1228_s2 + $0x1c0] sm:$0xff]  ;;  %v252_v10 = vshrl.u32 %v251_v7, 7 }
  0x2d   : > { %707 = vmatpush1.bf16.msra.mxu1 %v706_v63  ;;  %677 = vmatprep.subr.bf16.mxu0 %v676_v0  ;;  %v696_v60 = vpack.c.bf16 %v327_v55, %v323_v54  ;;  %v326_v62 = vld [vmem:[%s1228_s2 + $0x1e0] sm:$0xff]  ;;  %v728_v63 = vpack.c.bf16 %v329_v57, %v325_v56  ;;  %v324_v0 = vld [vmem:[%s1228_s2 + $0x1d0] sm:$0xff] }
  0x2e   : > { %709 = vmatprep.subr.bf16.mxu1 %v708_v4  ;;  %v328_v1 = vld [vmem:[%s1228_s2 + $0x1f0] sm:$0xff]  ;;  %v698_v2 = vpack.c.bf16 %v326_v62, %v322_v61  ;;  %v265_v4 = vld [vmem:[#allocation4] sm:$0x3] }
  0x2f   : > { %v730_v3 = vpack.c.bf16 %v328_v1, %v324_v0  ;;  %v30_v19 = vld [vmem:[%s29_s25] sm:$0xff] }
  0x30   : > { %679 = vmatpush1.bf16.msra.mxu0 %v678_v11 }
  0x31   : > { %711 = vmatpush1.bf16.msra.mxu1 %v710_v12  ;;  %681 = vmatprep.subr.bf16.mxu0 %v680_v13  ;;  %v253_v12 = vsub.s32 %v250_v9, %v252_v10 }
  0x32   : > { %713 = vmatprep.subr.bf16.mxu1 %v712_v8 }
  0x34   : > { %683 = vmatpush1.bf16.msra.mxu0 %v682_v22 }
  0x35   : > { %715 = vmatpush1.bf16.msra.mxu1 %v714_v23  ;;  %685 = vmatprep.subr.bf16.mxu0 %v684_v24 }
  0x36   : > { %717 = vmatprep.subr.bf16.mxu1 %v716_v28 }
  0x38   : > { %687 = vmatpush1.bf16.msra.mxu0 %v686_v34 }
  0x39   : > { %719 = vmatpush1.bf16.msra.mxu1 %v718_v35  ;;  %689 = vmatprep.subr.bf16.mxu0 %v688_v36 }
  0x3a   : > { %721 = vmatprep.subr.bf16.mxu1 %v720_v40  ;;  %v495_v40 = vld [vmem:[#allocation3] sm:$0x3] }
  0x3c   : > { %691 = vmatpush1.bf16.msra.mxu0 %v690_v46  ;;  %v34_v46 = vld [vmem:[%s33_s30 + $0x8] sm:$0xff] }
  0x3d   : > { %723 = vmatpush1.bf16.msra.mxu1 %v722_v47  ;;  %693 = vmatprep.subr.bf16.mxu0 %v692_v48 }
  0x3e   : > { %725 = vmatprep.subr.bf16.mxu1 %v724_v52 }
  0x40   : > { %695 = vmatpush1.bf16.msra.mxu0 %v694_v58 }
  0x41   : > { %727 = vmatpush1.bf16.msra.mxu1 %v726_v59  ;;  %697 = vmatprep.subr.bf16.mxu0 %v696_v60 }
  0x42   : > { %729 = vmatprep.subr.bf16.mxu1 %v728_v63 }
  0x44   : > { %699 = vmatpush1.bf16.msra.mxu0 %v698_v2 }
  0x45   : > { %731 = vmatpush1.bf16.msra.mxu1 %v730_v3  ;;  %v532_v3 = vld [vmem:[#allocation5] sm:$0x3] }
  0x47   : > { %395 = vmatmul.mubr.f32.vlgmr.msra.gmra.mrb[2].mxu0 %v265_v4 }
  0x48   : > { %466 = vmatmul.mubr.f32.vlgmr.msra.gmra.mrb[2].mxu1 %v265_v4 }
  0xfa   : > { %v166_v11 = vpop.f32.mrb[0].mxu0 }
  0xfb   : > { %v237_v13 = vpop.f32.mrb[0].mxu1  ;;  %v168_v14 = vpop.f32.mrb[1].mxu0 }
  0xfc   : > { %v246_v15 = vcombine.low %v166_v11, %v168_v14  ;;  %v239_v16 = vpop.f32.mrb[1].mxu1 }
  0xfd   : > { %v247_v8 = vcombine.low %v237_v13, %v239_v16 }
  0xfe   : > { %v254_v17 = vrot.slane %v246_v15, %v253_v12 }
  0xff   : > { %v261_v18 = vrot.slane %v247_v8, %v253_v12 }
 0x101   : > { %v262_v20 = vcombine.low %v254_v17, %v261_v18 }
 0x103   : > { %v264_v21 = vadd.f32 %v262_v20, %v30_v19 }
 0x105   : > { %v594_v22 = vmul.f32 -1.442695, %v264_v21  ;;  %v503_v23 = vrot.slane %v264_v21, 2  ;;  %v514_v25 = vrot.slane %v264_v21, 6  ;;  %v511_v28 = vrot.slane %v264_v21, 4 }
 0x107   : > { %743 = vpow2.f32 %v594_v22  ;;  %v595_v24 = vmul.f32 -1.442695, %v503_v23  ;;  %v596_v26 = vmul.f32 -1.442695, %v514_v25 }
 0x109   : > { %745 = vpow2.f32 %v595_v24 }
 0x10a   : > { %747 = vpow2.f32 %v596_v26 }
 0x111   : > { %v744_v27 = vpop.eup %743 }
 0x112   : > { %v499_v29 = vadd.f32 1.0, %v744_v27 }
 0x113   : > { %v746_v30 = vpop.eup %745 }
 0x114   : > { %749 = vrcp.f32 %v499_v29  ;;  %v508_v31 = vadd.f32 1.0, %v746_v30  ;;  %v748_v37 = vpop.eup %747 }
 0x115   : > { %751 = vtanh.f32 %v511_v28  ;;  %v519_v45 = vadd.f32 1.0, %v748_v37 }
 0x116   : > { %753 = vrcp.f32 %v508_v31 }
 0x117   : > { %755 = vrcp.f32 %v519_v45 }
 0x11a   : > { %v396_v32 = vpop.f32.mrb[2].mxu0 }
 0x11b   : > { %v467_v33 = vpop.f32.mrb[2].mxu1  ;;  %v398_v34 = vpop.f32.mrb[3].mxu0 }
 0x11c   : > { %v476_v35 = vcombine.low %v396_v32, %v398_v34  ;;  %v469_v36 = vpop.f32.mrb[3].mxu1 }
 0x11d   : > { %v477_v38 = vcombine.low %v467_v33, %v469_v36 }
 0x11e   : > { %v750_v39 = vpop.eup %749  ;;  %v484_v41 = vrot.slane %v476_v35, %v253_v12 }
 0x11f   : > { %v752_v42 = vpop.eup %751  ;;  %v491_v43 = vrot.slane %v477_v38, %v253_v12 }
 0x120   : > { %v754_v44 = vpop.eup %753  ;;  %v523_v48 = vmul.f32 %v752_v42, %v750_v39 }
 0x121   : > { %v522_v47 = vmul.f32 %v754_v44, %v495_v40  ;;  %v492_v49 = vcombine.low %v484_v41, %v491_v43  ;;  %v756_v56 = vpop.eup %755 }
 0x123   : > { %v524_v50 = vadd.f32 %v523_v48, %v522_v47  ;;  %v494_v51 = vadd.f32 %v492_v49, %v34_v46 }
 0x125   : > { %757 = vtanh.f32 %v524_v50  ;;  %528 = vst [vmem:[#allocation3] sm:$0x3] %v524_v50  ;;  %v598_v52 = vmul.f32 -1.442695, %v494_v51  ;;  %v540_v53 = vrot.slane %v494_v51, 2  ;;  %v551_v55 = vrot.slane %v494_v51, 6 }
 0x126   : > { %v548_v61 = vrot.slane %v494_v51, 4 }
 0x127   : > { %759 = vpow2.f32 %v598_v52  ;;  %v599_v54 = vmul.f32 -1.442695, %v540_v53  ;;  %v600_v58 = vmul.f32 -1.442695, %v551_v55 }
 0x129   : > { %761 = vpow2.f32 %v599_v54 }
 0x12a   : > { %763 = vpow2.f32 %v600_v58 }
 0x12f   : > { %v758_v57 = vpop.eup %757 }
 0x130   : > { %v526_v59 = vmul.f32 %v758_v57, %v756_v56 }
 0x131   : > { %v760_v60 = vpop.eup %759 }
 0x132   : > { %527 = vst [vmem:[#allocation2] sm:$0x3] %v526_v59  ;;  %531 = vst [vmem:[%s530_s8] sm:$0x3] %v526_v59  ;;  %v536_v62 = vadd.f32 1.0, %v760_v60 }
 0x133   : > { %v762_v63 = vpop.eup %761 }
 0x134   : > { %765 = vrcp.f32 %v536_v62  ;;  %v545_v0 = vadd.f32 1.0, %v762_v63  ;;  %v764_v1 = vpop.eup %763 }
 0x135   : > { %767 = vtanh.f32 %v548_v61  ;;  %v556_v6 = vadd.f32 1.0, %v764_v1 }
 0x136   : > { %769 = vrcp.f32 %v545_v0 }
 0x137   : > { %771 = vrcp.f32 %v556_v6 }
 0x13e   : > { %v766_v2 = vpop.eup %765 }
 0x13f   : > { %v768_v4 = vpop.eup %767 }
 0x140   : > { %v770_v5 = vpop.eup %769  ;;  %v560_v9 = vmul.f32 %v768_v4, %v766_v2 }
 0x141   : > { %v559_v7 = vmul.f32 %v770_v5, %v532_v3  ;;  %v772_v11 = vpop.eup %771 }
 0x143   : > { %v561_v10 = vadd.f32 %v560_v9, %v559_v7 }
 0x145   : > { %773 = vtanh.f32 %v561_v10  ;;  %565 = vst [vmem:[#allocation5] sm:$0x3] %v561_v10 }
 0x14c   :  { %24 = sbr.rel (!%p22_p0) target bundleno = 3 (0x3), region = 51 }
 0x14f   : > { %v774_v12 = vpop.eup %773 }
 0x150   : > { %v563_v13 = vmul.f32 %v774_v12, %v772_v11 }
 0x152   : > { %564 = vst [vmem:[#allocation4] sm:$0x3] %v563_v13  ;;  %568 = vst [vmem:[%s567_s12] sm:$0x3] %v563_v13 }

// kernel: _forward_impl.23
= control target key start
LH: loop header
LB: loop body
LE: loop exit
PB: predicated region body
PF: predicated region fallthrough
CT: control target
= control target key end

     0   :  { %v385_v1 = vmov 0   ;;  %vm276_vm0 = vcmask 64512   ;;  %s540_s1 = inlined_call_operand.vmem [shape: bf16[256,8], index: 1, kind: input, shape index: {}]   ;;  %s541_s0 = inlined_call_operand.vmem [shape: f32[48,256], index: 0, kind: input, shape index: {}]   ;;  %s542_s3 = inlined_call_operand.vmem [shape: f32[48,1], index: 3, kind: input, shape index: {}]   ;;  %s543_s2 = inlined_call_operand.vmem [shape: f32[1,8], index: 2, kind: input, shape index: {}]   ;;  %s544_s4 = inlined_call_operand.vmem [shape: f32[48,8], index: 4, kind: output, shape index: {}]  }
   0x1   :  { %v357_v0 = vld [vmem:[%s540_s1 + $0x40] sm:$0xff]   ;;  %356 = vset.pattern.permute.xlu1 %v385_v1  ;;  %355 = vset.pattern.permute.xlu0 %v385_v1  ;;  %v359_v3 = vld [vmem:[%s540_s1 + $0x48] sm:$0xff]   ;;  %v361_v5 = vld [vmem:[%s540_s1 + $0x50] sm:$0xff]  }
   0x2   :  { %v358_v2 = vld [vmem:[%s540_s1] sm:$0xff]   ;;  %304 = vmatprep.subr.bf16.mxu0 %v357_v0  ;;  %338 = vmatprep.subr.bf16.mxu1 %v357_v0  ;;  %v360_v4 = vld [vmem:[%s540_s1 + $0x8] sm:$0xff]   ;;  %v362_v6 = vld [vmem:[%s540_s1 + $0x10] sm:$0xff]  }
   0x3   :  { %305 = vmatpush3.bf16.msra.mxu0 %v358_v2  ;;  %346 = vmatpush3.bf16.msra.mxu1 %v358_v2  ;;  %v363_v7 = vld [vmem:[%s540_s1 + $0x58] sm:$0xff]   ;;  %v365_v9 = vld [vmem:[%s540_s1 + $0x60] sm:$0xff]   ;;  %v367_v11 = vld [vmem:[%s540_s1 + $0x68] sm:$0xff]  }
   0x4   :  { %306 = vmatprep.subr.bf16.mxu0 %v359_v3  ;;  %339 = vmatprep.subr.bf16.mxu1 %v359_v3  ;;  %v364_v8 = vld [vmem:[%s540_s1 + $0x18] sm:$0xff]   ;;  %v366_v10 = vld [vmem:[%s540_s1 + $0x20] sm:$0xff]   ;;  %v19_v12 = vld [vmem:[%s541_s0 + $0x8] sm:$0xff] }
   0x5   :  { %v21_v13 = vld [vmem:[%s541_s0 + $0x18] sm:$0xff]  ;;  %v23_v14 = vld [vmem:[%s541_s0 + $0x28] sm:$0xff]  ;;  %v369_v19 = vld [vmem:[%s540_s1 + $0x70] sm:$0xff]  }
   0x6   :  { %v31_v15 = vpack.c.bf16 %v21_v13, %v19_v12  ;;  %v25_v16 = vld [vmem:[%s541_s0 + $0x38] sm:$0xff]  ;;  %v368_v18 = vld [vmem:[%s540_s1 + $0x28] sm:$0xff]   ;;  %v236_v20 = vld [vmem:[%s542_s3 + $0x10] sm:$0xff] }
   0x7   :  { %307 = vmatpush3.bf16.msra.mxu0 %v360_v4  ;;  %347 = vmatpush3.bf16.msra.mxu1 %v360_v4  ;;  %v33_v17 = vpack.c.bf16 %v25_v16, %v23_v14  ;;  %v234_v21 = vld [vmem:[%s542_s3] sm:$0xff]  ;;  %v370_v22 = vld [vmem:[%s540_s1 + $0x30] sm:$0xff]   ;;  %v237_v23 = vld [vmem:[%s542_s3 + $0x18] sm:$0xff] }
   0x8   :  { %308 = vmatprep.subr.bf16.mxu0 %v361_v5  ;;  %340 = vmatprep.subr.bf16.mxu1 %v361_v5  ;;  %v235_v24 = vld [vmem:[%s542_s3 + $0x8] sm:$0xff]  ;;  %v371_v25 = vld [vmem:[%s540_s1 + $0x78] sm:$0xff]   ;;  %v18_v27 = vld [vmem:[%s541_s0] sm:$0xff] }
   0x9   :  { %203 = vmatprep.mubr.bf16.mxu0 %v31_v15  ;;  %211 = vmatprep.mubr.bf16.mxu1 %v33_v17  ;;  %v372_v26 = vld [vmem:[%s540_s1 + $0x38] sm:$0xff]   ;;  %v20_v28 = vld [vmem:[%s541_s0 + $0x10] sm:$0xff]  ;;  %v22_v29 = vld [vmem:[%s541_s0 + $0x20] sm:$0xff] }
   0xa   :  { %252 = vperm.xlu1 %356, %v236_v20   ;;  %242 = vperm.xlu0 %355, %v234_v21   ;;  %v24_v30 = vld [vmem:[%s541_s0 + $0x30] sm:$0xff]  ;;  %v239_v31 = vld [vmem:[%s542_s3 + $0x28] sm:$0xff]  ;;  %v238_v32 = vld [vmem:[%s542_s3 + $0x20] sm:$0xff]  ;;  %v30_v35 = vpack.c.bf16 %v20_v28, %v18_v27 }
   0xb   :  { %309 = vmatpush3.bf16.msra.mxu0 %v362_v6  ;;  %348 = vmatpush3.bf16.msra.mxu1 %v362_v6  ;;  %v27_v33 = vld [vmem:[%s541_s0 + $0x48] sm:$0xff]  ;;  %v29_v34 = vld [vmem:[%s541_s0 + $0x58] sm:$0xff]  ;;  %v32_v36 = vpack.c.bf16 %v24_v30, %v22_v29  ;;  %v26_v38 = vld [vmem:[%s541_s0 + $0x40] sm:$0xff] }
   0xc   :  { %310 = vmatprep.subr.bf16.mxu0 %v363_v7  ;;  %341 = vmatprep.subr.bf16.mxu1 %v363_v7  ;;  %v35_v37 = vpack.c.bf16 %v29_v34, %v27_v33  ;;  %v28_v39 = vld [vmem:[%s541_s0 + $0x50] sm:$0xff]  ;;  %v287_v43 = vld [vmem:[%s543_s2] ss:$0 sm:$0xff] }
   0xd   :  { %v34_v40 = vpack.c.bf16 %v28_v39, %v26_v38 }
   0xe   :  { %257 = vperm.xlu1 %356, %v237_v23   ;;  %247 = vperm.xlu0 %355, %v235_v24  }
   0xf   :  { %311 = vmatpush3.bf16.msra.mxu0 %v364_v8  ;;  %349 = vmatpush3.bf16.msra.mxu1 %v364_v8 }
  0x10   :  { %312 = vmatprep.subr.bf16.mxu0 %v365_v9  ;;  %342 = vmatprep.subr.bf16.mxu1 %v365_v9 }
  0x12   :  { %267 = vperm.xlu1 %356, %v239_v31   ;;  %262 = vperm.xlu0 %355, %v238_v32  }
  0x13   :  { %313 = vmatpush3.bf16.msra.mxu0 %v366_v10  ;;  %350 = vmatpush3.bf16.msra.mxu1 %v366_v10 }
  0x14   :  { %314 = vmatprep.subr.bf16.mxu0 %v367_v11  ;;  %343 = vmatprep.subr.bf16.mxu1 %v367_v11 }
  0x17   :  { %315 = vmatpush3.bf16.msra.mxu0 %v368_v18  ;;  %351 = vmatpush3.bf16.msra.mxu1 %v368_v18 }
  0x18   :  { %316 = vmatprep.subr.bf16.mxu0 %v369_v19  ;;  %344 = vmatprep.subr.bf16.mxu1 %v369_v19 }
  0x1b   :  { %317 = vmatpush3.bf16.msra.mxu0 %v370_v22  ;;  %352 = vmatpush3.bf16.msra.mxu1 %v370_v22 }
  0x1c   :  { %318 = vmatprep.subr.bf16.mxu0 %v371_v25  ;;  %345 = vmatprep.subr.bf16.mxu1 %v371_v25 }
  0x1f   :  { %319 = vmatpush3.bf16.msra.mxu0 %v372_v26  ;;  %353 = vmatpush3.bf16.msra.mxu1 %v372_v26 }
  0x22   :  { %204 = vmatmul.mubr.bf16.vlgmr.msra.gmra.mrb[0].mxu0 %v30_v35  ;;  %212 = vmatmul.mubr.bf16.vlgmr.msra.gmra.mrb[0].mxu1 %v32_v36 }
  0x23   :  { %219 = vmatprep.mubr.bf16.mxu1 %v35_v37 }
  0x2a   :  { %220 = vmatmul.mubr.bf16.gmra.mrb[4].mxu1 %v34_v40 }
  0x89   :  { %v243_v0 = vpop.permute.xlu0 %242  ;;  %v253_v2 = vpop.permute.xlu1 %252 }
  0x8d   :  { %v248_v9 = vpop.permute.xlu0 %247  ;;  %v258_v11 = vpop.permute.xlu1 %257 }
  0x91   :  { %v263_v15 = vpop.permute.xlu0 %262  ;;  %v268_v18 = vpop.permute.xlu1 %267 }
  0xf5   :  { %v320_v41 = vpop.f32.mrb[0].mxu0  ;;  %v326_v42 = vpop.f32.mrb[0].mxu1 }
  0xf6   :  { %v321_v44 = vpop.f32.mrb[1].mxu0  ;;  %v327_v45 = vpop.f32.mrb[1].mxu1 }
  0xf7   :  { %v322_v46 = vadd.f32 %v321_v44, %v320_v41  ;;  %v328_v47 = vadd.f32 %v327_v45, %v326_v42  ;;  %v323_v48 = vpop.f32.mrb[2].mxu0  ;;  %v329_v49 = vpop.f32.mrb[2].mxu1 }
  0xf8   :  { %v324_v50 = vpop.f32.mrb[3].mxu0  ;;  %v330_v51 = vpop.f32.mrb[3].mxu1 }
  0xf9   :  { %v206_v52 = vadd.f32 %v322_v46, %v287_v43  ;;  %v214_v53 = vadd.f32 %v328_v47, %v287_v43  ;;  %v325_v54 = vadd.f32 %v324_v50, %v323_v48  ;;  %v331_v55 = vadd.f32 %v330_v51, %v329_v49 }
  0xfb   :  { %373 = vtanh.f32 %v206_v52  ;;  %v209_v56 = vadd.f32 %v325_v54, %v287_v43  ;;  %v217_v57 = vadd.f32 %v331_v55, %v287_v43 }
  0xfc   :  { %375 = vtanh.f32 %v214_v53 }
  0xfd   :  { %377 = vtanh.f32 %v209_v56  ;;  %v332_v58 = vpop.f32.mrb[4].mxu1 }
  0xfe   :  { %379 = vtanh.f32 %v217_v57  ;;  %v333_v59 = vpop.f32.mrb[5].mxu1 }
  0xff   :  { %v334_v60 = vadd.f32 %v333_v59, %v332_v58  ;;  %v335_v61 = vpop.f32.mrb[6].mxu1 }
 0x100   :  { %v336_v62 = vpop.f32.mrb[7].mxu1 }
 0x101   :  { %v222_v63 = vadd.f32 %v334_v60, %v287_v43  ;;  %v337_v1 = vadd.f32 %v336_v62, %v335_v61 }
 0x103   :  { %381 = vtanh.f32 %v222_v63  ;;  %v225_v3 = vadd.f32 %v337_v1, %v287_v43 }
 0x105   :  { %v374_v4 = vpop.eup %373  ;;  %383 = vtanh.f32 %v225_v3 }
 0x106   :  { %v376_v5 = vpop.eup %375  ;;  %v270_v6 = vmul.f32 %v374_v4, %v243_v0 }
 0x107   :  { %v378_v7 = vpop.eup %377  ;;  %v272_v8 = vmul.f32 %v376_v5, %v253_v2 }
 0x108   :  { %v380_v10 = vpop.eup %379  ;;  %277 = vst.msk [vmem:[%s544_s4] sm:$0xff] %vm276_vm0, %v270_v6  ;;  %v271_v12 = vmul.f32 %v378_v7, %v248_v9 }
 0x109   :  { %279 = vst.msk [vmem:[%s544_s4 + $0x10] sm:$0xff] %vm276_vm0, %v272_v8  ;;  %v273_v13 = vmul.f32 %v380_v10, %v258_v11 }
 0x10a   :  { %278 = vst.msk [vmem:[%s544_s4 + $0x8] sm:$0xff] %vm276_vm0, %v271_v12 }
 0x10b   :  { %280 = vst.msk [vmem:[%s544_s4 + $0x18] sm:$0xff] %vm276_vm0, %v273_v13 }
 0x10d   :  { %v382_v14 = vpop.eup %381 }
 0x10e   :  { %v274_v16 = vmul.f32 %v382_v14, %v263_v15 }
 0x10f   :  { %v384_v17 = vpop.eup %383 }
 0x110   :  { %v275_v19 = vmul.f32 %v384_v17, %v268_v18  ;;  %281 = vst.msk [vmem:[%s544_s4 + $0x20] sm:$0xff] %vm276_vm0, %v274_v16 }
 0x112   :  { %282 = vst.msk [vmem:[%s544_s4 + $0x28] sm:$0xff] %vm276_vm0, %v275_v19 }

</bundles_post_ra>
